<compile_context>
chip_gen: v7x
topology: tpu7x:2x2x1
jax: 0.10.0
libtpu: 0.0.40
codegen_flags: <defaults>
</compile_context>

<pallas_src>
import functools

import jax
import jax.numpy as jnp
import numpy as np
from jax.experimental import pallas as pl
from jax.experimental.pallas import tpu as pltpu

VOICES = ("soprano", "alto", "tenor", "bass")
GATE_ORDER = (0, 1, 3, 2)  # PyTorch [i, f, g, o] -> kernel [i, f, o, g]


# ----------------------------- fused forward kernel -----------------------------

def _sigmoid(x):
    # One EUP push (tanh) instead of exp + reciprocal.
    return 0.5 * (jnp.tanh(0.5 * x) + 1.0)


def _lstm_gates(pre, c, s):
    """pre: (Bp, 4s) gate pre-activations in kernel order [i|f|o|g]. Returns (h, c)."""
    ifo = _sigmoid(pre[:, :3 * s])     # one contiguous sigmoid over i|f|o
    g = jnp.tanh(pre[:, 3 * s:])       # one tanh over g
    i = ifo[:, :s]
    f = ifo[:, s:2 * s]
    o = ifo[:, 2 * s:]
    c = f * c + i * g
    h = o * jnp.tanh(c)
    return h, c


def _fused_forward_kernel(x_ref,
                          ew_ih1, ew_hh1, eb1, ew_ih2, ew_hh2, eb2,
                          dw_ih1_hbm, dw_hh1_hbm, db1,
                          dw_ih2_hbm, dw_hh2_hbm, db2,
                          w_lin_hbm, b_lin,
                          out_ref,
                          dw_ih1_v, dw_hh1_v, dw_ih2_v, dw_hh2_v, w_lin_v, dma_sem,
                          *, T, Bp, H):
    S = 4 * H                      # voice-stacked decoder state width (4 voices x H)
    BF = jnp.bfloat16
    f32 = jnp.float32

    # ---- kick off decoder-weight DMA (HBM -> VMEM); hidden under encoder steps ----
    dec1_copies = [pltpu.make_async_copy(dw_ih1_hbm, dw_ih1_v, dma_sem.at[0]),
                   pltpu.make_async_copy(dw_hh1_hbm, dw_hh1_v, dma_sem.at[1])]
    dec2_copies = [pltpu.make_async_copy(dw_ih2_hbm, dw_ih2_v, dma_sem.at[2]),
                   pltpu.make_async_copy(dw_hh2_hbm, dw_hh2_v, dma_sem.at[3]),
                   pltpu.make_async_copy(w_lin_hbm, w_lin_v, dma_sem.at[4])]
    for cp in dec1_copies + dec2_copies:
        cp.start()

    # ---- hoisted encoder-L1 input projection, bias folded once (off critical path) ----
    x = x_ref[...].astype(BF)                                               # (T*Bp, 2H)
    gx1 = (jnp.dot(x, ew_ih1[...], preferred_element_type=f32)
           + jnp.broadcast_to(eb1[...], (T * Bp, 4 * H)))                   # (T*Bp, 4H)

    # ---- biases broadcast ONCE (no broadcast_in_dim inside the unrolled recurrence) ----
    eb2_b = jnp.broadcast_to(eb2[...], (Bp, 4 * H))
    db1_b = jnp.broadcast_to(db1[...], (Bp, 4 * S))
    db2_b = jnp.broadcast_to(db2[...], (Bp, 4 * S))
    blin_b = jnp.broadcast_to(b_lin[...], (Bp, out_ref.shape[1]))

    h1 = c1 = jnp.zeros((Bp, H), f32)
    h2 = c2 = jnp.zeros((Bp, H), f32)
    h3 = c3 = jnp.zeros((Bp, S), f32)
    h4 = c4 = jnp.zeros((Bp, S), f32)
    h1_prev = h2_prev = h3_prev = None

    # ---- wavefront over the 4 stacked layers: chain length T+3 instead of 4*T ----
    for w in range(T + 3):
        if w == 2:                            # first decoder-L1 use of its weights
            for cp in dec1_copies:
                cp.wait()
        if w == 3:                            # first decoder-L2 / Linear weight use
            for cp in dec2_copies:
                cp.wait()

        n_h1 = n_h2 = n_h3 = None

        if w < T:                                            # encoder L1, step t = w
            pre = (gx1[w * Bp:(w + 1) * Bp, :]
                   + jnp.dot(h1.astype(BF), ew_hh1[...], preferred_element_type=f32))
            h1, c1 = _lstm_gates(pre, c1, H)
            n_h1 = h1

        if 0 <= w - 1 < T:                                   # encoder L2, step t = w-1
            pre = (jnp.dot(h1_prev.astype(BF), ew_ih2[...], preferred_element_type=f32)
                   + jnp.dot(h2.astype(BF), ew_hh2[...], preferred_element_type=f32)
                   + eb2_b)
            h2, c2 = _lstm_gates(pre, c2, H)
            n_h2 = h2

        if 0 <= w - 2 < T:                                   # voice-batched dec L1, t = w-2
            pre = (jnp.dot(h2_prev.astype(BF), dw_ih1_v[...], preferred_element_type=f32)
                   + jnp.dot(h3.astype(BF), dw_hh1_v[...], preferred_element_type=f32)
                   + db1_b)
            h3, c3 = _lstm_gates(pre, c3, S)
            n_h3 = h3

        if 0 <= w - 3 < T:                                   # dec L2 + fused Linear, t = w-3
            t = w - 3
            pre = (jnp.dot(h3_prev.astype(BF), dw_ih2_v[...], preferred_element_type=f32)
                   + jnp.dot(h4.astype(BF), dw_hh2_v[...], preferred_element_type=f32)
                   + db2_b)
            h4, c4 = _lstm_gates(pre, c4, S)
            out_ref[t * Bp:(t + 1) * Bp, :] = (
                jnp.dot(h4.astype(BF), w_lin_v[...], preferred_element_type=f32) + blin_b
            ).astype(out_ref.dtype)

        h1_prev, h2_prev, h3_prev = n_h1, n_h2, n_h3


# --------------------------- parameters (PyTorch layout) ---------------------------

def _init_lstm_layers(key, num_layers, in_dim, hidden):
    layers = []
    for l in range(num_layers):
        d = in_dim if l == 0 else hidden
        key, k1, k2, k3, k4 = jax.random.split(key, 5)
        layers.append({
            "w_ih": 0.1 * jax.random.normal(k1, (4 * hidden, d), jnp.float32),
            "w_hh": 0.1 * jax.random.normal(k2, (4 * hidden, hidden), jnp.float32),
            "b_ih": 0.1 * jax.random.normal(k3, (4 * hidden,), jnp.float32),
            "b_hh": 0.1 * jax.random.normal(k4, (4 * hidden,), jnp.float32),
        })
    return key, layers


def init_raw_params(key, note_vocab, chord_vocab, hidden=32, num_layers=2):
    assert num_layers == 2, "fused kernel is specialized for num_layers=2 (module default)"
    key, k_ne, k_ce = jax.random.split(key, 3)
    raw = {
        "hidden": hidden,
        "note_vocab": note_vocab,
        "note_embed": 0.1 * jax.random.normal(k_ne, (note_vocab, hidden), jnp.float32),
        "chord_embed": 0.1 * jax.random.normal(k_ce, (chord_vocab, hidden), jnp.float32),
    }
    key, raw["encoder"] = _init_lstm_layers(key, num_layers, 2 * hidden, hidden)
    raw["decoders"] = {}
    for voice in VOICES:
        key, lstm = _init_lstm_layers(key, num_layers, hidden, hidden)
        key, kw, kb = jax.random.split(key, 3)
        raw["decoders"][voice] = {
            "lstm": lstm,
            "linear": {"w": 0.1 * jax.random.normal(kw, (note_vocab, hidden), jnp.float32),
                       "b": 0.1 * jax.random.normal(kb, (note_vocab,), jnp.float32)},
        }
    return raw


def _reorder_gates(a, H):
    """Last-dim gate blocks: [i|f|g|o] -> [i|f|o|g]."""
    return np.concatenate([a[..., g * H:(g + 1) * H] for g in GATE_ORDER], axis=-1)


def pack_params(raw):
    """Pack PyTorch-layout weights into the fused, voice-batched kernel layout."""
    H = raw["hidden"]
    V = raw["note_vocab"]
    S = 4 * H                                    # voice-stacked decoder state width
    V_pad = ((max(V, 64) + 63) // 64) * 64       # per-voice lane-padded vocab width

    def lstm_t(layer):
        w_ih_t = _reorder_gates(np.asarray(layer["w_ih"]).T, H)                 # (D, 4H)
        w_hh_t = _reorder_gates(np.asarray(layer["w_hh"]).T, H)                 # (H, 4H)
        b = _reorder_gates(np.asarray(layer["b_ih"] + layer["b_hh"]).reshape(1, 4 * H), H)
        return w_ih_t, w_hh_t, b

    ew_ih1, ew_hh1, eb1 = lstm_t(raw["encoder"][0])
    ew_ih2, ew_hh2, eb2 = lstm_t(raw["encoder"][1])

    dw_ih1 = np.zeros((H, 4 * S), np.float32)    # shared input -> dense across voices
    dw_hh1 = np.zeros((S, 4 * S), np.float32)    # block-diagonal over voices
    db1 = np.zeros((1, 4 * S), np.float32)
    dw_ih2 = np.zeros((S, 4 * S), np.float32)    # block-diagonal (input is voice-stacked)
    dw_hh2 = np.zeros((S, 4 * S), np.float32)
    db2 = np.zeros((1, 4 * S), np.float32)
    w_lin = np.zeros((S, 4 * V_pad), np.float32)
    b_lin = np.zeros((1, 4 * V_pad), np.float32)

    for v, voice in enumerate(VOICES):
        l1, l2 = raw["decoders"][voice]["lstm"]
        wih1, whh1, b1 = lstm_t(l1)
        wih2, whh2, b2 = lstm_t(l2)
        rows = slice(v * H, (v + 1) * H)
        for gt in range(4):  # kernel gate order, gate-major across voices
            col = slice(gt * S + v * H, gt * S + (v + 1) * H)
            src = slice(gt * H, (gt + 1) * H)
            dw_ih1[:, col] = wih1[:, src]
            dw_hh1[rows, col] = whh1[:, src]
            db1[0, col] = b1[0, src]
            dw_ih2[rows, col] = wih2[:, src]
            dw_hh2[rows, col] = whh2[:, src]
            db2[0, col] = b2[0, src]
        w_lin[rows, v * V_pad:v * V_pad + V] = np.asarray(raw["decoders"][voice]["linear"]["w"]).T
        b_lin[0, v * V_pad:v * V_pad + V] = np.asarray(raw["decoders"][voice]["linear"]["b"])

    # Matmul weights are packed as bf16 (single-pass MXU); biases stay f32 (post-matmul adds).
    fused = (
        jnp.asarray(ew_ih1, jnp.bfloat16), jnp.asarray(ew_hh1, jnp.bfloat16), jnp.asarray(eb1),
        jnp.asarray(ew_ih2, jnp.bfloat16), jnp.asarray(ew_hh2, jnp.bfloat16), jnp.asarray(eb2),
        jnp.asarray(dw_ih1, jnp.bfloat16), jnp.asarray(dw_hh1, jnp.bfloat16), jnp.asarray(db1),
        jnp.asarray(dw_ih2, jnp.bfloat16), jnp.asarray(dw_hh2, jnp.bfloat16), jnp.asarray(db2),
        jnp.asarray(w_lin, jnp.bfloat16), jnp.asarray(b_lin),
    )
    return {"hidden": H, "note_vocab": V, "v_pad": V_pad,
            "note_embed": raw["note_embed"], "chord_embed": raw["chord_embed"],
            "fused": fused}


# ------------------------------------ forward ------------------------------------

def deep_choir_forward(params, melody, chords):
    """melody, chords: int32 (B, T). Returns dict voice -> (B, T, note_vocab) logits."""
    B, T = melody.shape
    H = params["hidden"]
    V = params["note_vocab"]
    V_pad = params["v_pad"]
    S = 4 * H
    Bp = max(8, ((B + 7) // 8) * 8)  # pad batch to full sublane groups

    # TODO(synk): embedding gathers + concat/pad kept in plain JAX (tiny glue);
    # everything downstream runs inside one fused Pallas call.
    mel_e = jnp.take(params["note_embed"], melody, axis=0)    # (B, T, H)
    ch_e = jnp.take(params["chord_embed"], chords, axis=0)    # (B, T, H)
    x = jnp.concatenate([mel_e, ch_e], axis=-1)               # (B, T, 2H)
    x = jnp.transpose(x, (1, 0, 2))                           # (T, B, 2H), time-major
    x = jnp.pad(x, ((0, 0), (0, Bp - B), (0, 0)))             # (T, Bp, 2H)
    x_flat = x.reshape(T * Bp, 2 * H)

    vmem = pl.BlockSpec(memory_space=pltpu.MemorySpace.VMEM)
    hbm = pl.BlockSpec(memory_space=pl.ANY)   # manual-DMA decoder weights
    in_specs = [vmem,                    # x
                vmem, vmem, vmem,        # encoder layer 1
                vmem, vmem, vmem,        # encoder layer 2
                hbm, hbm, vmem,          # decoder layer 1 weights (manual DMA) + bias
                hbm, hbm, vmem,          # decoder layer 2 weights (manual DMA) + bias
                hbm, vmem]               # fused output Linear weight (manual DMA) + bias

    out_flat = pl.pallas_call(
        functools.partial(_fused_forward_kernel, T=T, Bp=Bp, H=H),
        out_shape=jax.ShapeDtypeStruct((T * Bp, 4 * V_pad), jnp.float32),
        in_specs=in_specs,
        out_specs=pl.BlockSpec(memory_space=pltpu.MemorySpace.VMEM),
        scratch_shapes=[
            pltpu.VMEM((H, 4 * S), jnp.bfloat16),      # dw_ih1
            pltpu.VMEM((S, 4 * S), jnp.bfloat16),      # dw_hh1
            pltpu.VMEM((S, 4 * S), jnp.bfloat16),      # dw_ih2
            pltpu.VMEM((S, 4 * S), jnp.bfloat16),      # dw_hh2
            pltpu.VMEM((S, 4 * V_pad), jnp.bfloat16),  # w_lin
            pltpu.SemaphoreType.DMA((5,)),
        ],
    )(x_flat, *params["fused"])

    logits = jnp.transpose(out_flat.reshape(T, Bp, 4 * V_pad), (1, 0, 2))[:B]  # (B,T,4*Vp)
    return {voice: logits[..., v * V_pad: v * V_pad + V]
            for v, voice in enumerate(VOICES)}


# ------------------------- pure-JAX reference (for checking) -------------------------

def _lstm_ref(x, layers):
    for layer in layers:
        w_ih, w_hh = layer["w_ih"], layer["w_hh"]
        b = layer["b_ih"] + layer["b_hh"]
        Hh = w_hh.shape[1]
        B, T, _ = x.shape
        h = jnp.zeros((B, Hh), jnp.float32)
        c = jnp.zeros((B, Hh), jnp.float32)
        outs = []
        for t in range(T):
            gates = (jnp.dot(x[:, t], w_ih.T, precision=jax.lax.Precision.HIGHEST)
                     + jnp.dot(h, w_hh.T, precision=jax.lax.Precision.HIGHEST) + b)
            i = jax.nn.sigmoid(gates[:, :Hh])
            f = jax.nn.sigmoid(gates[:, Hh:2 * Hh])
            g = jnp.tanh(gates[:, 2 * Hh:3 * Hh])
            o = jax.nn.sigmoid(gates[:, 3 * Hh:4 * Hh])
            c = f * c + i * g
            h = o * jnp.tanh(c)
            outs.append(h)
        x = jnp.stack(outs, axis=1)
    return x


def deep_choir_forward_ref(raw, melody, chords):
    mel_e = jnp.take(raw["note_embed"], melody, axis=0)
    ch_e = jnp.take(raw["chord_embed"], chords, axis=0)
    x = jnp.concatenate([mel_e, ch_e], axis=-1)
    enc = _lstm_ref(x, raw["encoder"])
    outs = {}
    for voice in VOICES:
        d = _lstm_ref(enc, raw["decoders"][voice]["lstm"])
        lin = raw["decoders"][voice]["linear"]
        outs[voice] = jnp.dot(d, lin["w"].T, precision=jax.lax.Precision.HIGHEST) + lin["b"]
    return outs


# -------------------------------------- main --------------------------------------

if __name__ == "__main__":
    NOTE_VOCAB = 40
    CHORD_VOCAB = 24
    HIDDEN = 32
    NUM_LAYERS = 2
    B, T = 2, 8

    key = jax.random.PRNGKey(0)
    k_params, k_mel, k_ch = jax.random.split(key, 3)

    raw = init_raw_params(k_params, NOTE_VOCAB, CHORD_VOCAB,
                          hidden=HIDDEN, num_layers=NUM_LAYERS)
    params = pack_params(raw)

    melody = jax.random.randint(k_mel, (B, T), 0, NOTE_VOCAB, dtype=jnp.int32)
    chords = jax.random.randint(k_ch, (B, T), 0, CHORD_VOCAB, dtype=jnp.int32)

    fwd = jax.jit(lambda m, c: deep_choir_forward(params, m, c))
    outs = jax.block_until_ready(fwd(melody, chords))

    # correctness check against a pure-JAX (f32, HIGHEST precision) port of the module;
    # tolerance loosened to 2e-2 because kernel matmul operands are bf16 (per perf review).
    refs = jax.block_until_ready(deep_choir_forward_ref(raw, melody, chords))
    for voice in VOICES:
        assert outs[voice].shape == (B, T, NOTE_VOCAB), outs[voice].shape
        assert outs[voice].dtype == jnp.float32
        err = float(jnp.max(jnp.abs(outs[voice] - refs[voice])))
        assert err < 2e-2, (voice, err)

    print("KERNEL_OK")
</pallas_src>

<mosaic_0001>
module attributes {stable_mosaic.version = 11 : i64} {
  func.func @_fused_forward_kernel(%arg0: memref<64x64xf32, #tpu.memory_space<vmem>>, %arg1: memref<64x128xbf16, #tpu.memory_space<vmem>>, %arg2: memref<32x128xbf16, #tpu.memory_space<vmem>>, %arg3: memref<1x128xf32, #tpu.memory_space<vmem>>, %arg4: memref<32x128xbf16, #tpu.memory_space<vmem>>, %arg5: memref<32x128xbf16, #tpu.memory_space<vmem>>, %arg6: memref<1x128xf32, #tpu.memory_space<vmem>>, %arg7: memref<32x512xbf16, #tpu.memory_space<any>>, %arg8: memref<128x512xbf16, #tpu.memory_space<any>>, %arg9: memref<1x512xf32, #tpu.memory_space<vmem>>, %arg10: memref<128x512xbf16, #tpu.memory_space<any>>, %arg11: memref<128x512xbf16, #tpu.memory_space<any>>, %arg12: memref<1x512xf32, #tpu.memory_space<vmem>>, %arg13: memref<128x256xbf16, #tpu.memory_space<any>>, %arg14: memref<1x256xf32, #tpu.memory_space<vmem>>, %arg15: memref<64x256xf32, #tpu.memory_space<vmem>>, %arg16: memref<32x512xbf16, #tpu.memory_space<vmem>>, %arg17: memref<128x512xbf16, #tpu.memory_space<vmem>>, %arg18: memref<128x512xbf16, #tpu.memory_space<vmem>>, %arg19: memref<128x512xbf16, #tpu.memory_space<vmem>>, %arg20: memref<128x256xbf16, #tpu.memory_space<vmem>>, %arg21: memref<5x!tpu.dma_semaphore, #tpu.memory_space<semaphore_mem>>) attributes {dimension_semantics = [], scalar_prefetch = 0 : i64, scratch_operands = 6 : i64, tpu.core_type = #tpu.core_type<tc>} {
    %c0_i32 = arith.constant 0 : i32
    %0 = tpu.memref_slice %arg21[%c0_i32] : memref<5x!tpu.dma_semaphore, #tpu.memory_space<semaphore_mem>> -> memref<1x!tpu.dma_semaphore, #tpu.memory_space<semaphore_mem>>
    %1 = tpu.memref_squeeze %0 : memref<1x!tpu.dma_semaphore, #tpu.memory_space<semaphore_mem>> -> memref<!tpu.dma_semaphore, #tpu.memory_space<semaphore_mem>>
    tpu.enqueue_dma source(%arg7 : memref<32x512xbf16, #tpu.memory_space<any>>) target(%arg16 : memref<32x512xbf16, #tpu.memory_space<vmem>>) target_semaphore(%1 : memref<!tpu.dma_semaphore, #tpu.memory_space<semaphore_mem>>)
    %c1_i32 = arith.constant 1 : i32
    %2 = tpu.memref_slice %arg21[%c1_i32] : memref<5x!tpu.dma_semaphore, #tpu.memory_space<semaphore_mem>> -> memref<1x!tpu.dma_semaphore, #tpu.memory_space<semaphore_mem>>
    %3 = tpu.memref_squeeze %2 : memref<1x!tpu.dma_semaphore, #tpu.memory_space<semaphore_mem>> -> memref<!tpu.dma_semaphore, #tpu.memory_space<semaphore_mem>>
    tpu.enqueue_dma source(%arg8 : memref<128x512xbf16, #tpu.memory_space<any>>) target(%arg17 : memref<128x512xbf16, #tpu.memory_space<vmem>>) target_semaphore(%3 : memref<!tpu.dma_semaphore, #tpu.memory_space<semaphore_mem>>)
    %c2_i32 = arith.constant 2 : i32
    %4 = tpu.memref_slice %arg21[%c2_i32] : memref<5x!tpu.dma_semaphore, #tpu.memory_space<semaphore_mem>> -> memref<1x!tpu.dma_semaphore, #tpu.memory_space<semaphore_mem>>
    %5 = tpu.memref_squeeze %4 : memref<1x!tpu.dma_semaphore, #tpu.memory_space<semaphore_mem>> -> memref<!tpu.dma_semaphore, #tpu.memory_space<semaphore_mem>>
    tpu.enqueue_dma source(%arg10 : memref<128x512xbf16, #tpu.memory_space<any>>) target(%arg18 : memref<128x512xbf16, #tpu.memory_space<vmem>>) target_semaphore(%5 : memref<!tpu.dma_semaphore, #tpu.memory_space<semaphore_mem>>)
    %c3_i32 = arith.constant 3 : i32
    %6 = tpu.memref_slice %arg21[%c3_i32] : memref<5x!tpu.dma_semaphore, #tpu.memory_space<semaphore_mem>> -> memref<1x!tpu.dma_semaphore, #tpu.memory_space<semaphore_mem>>
    %7 = tpu.memref_squeeze %6 : memref<1x!tpu.dma_semaphore, #tpu.memory_space<semaphore_mem>> -> memref<!tpu.dma_semaphore, #tpu.memory_space<semaphore_mem>>
    tpu.enqueue_dma source(%arg11 : memref<128x512xbf16, #tpu.memory_space<any>>) target(%arg19 : memref<128x512xbf16, #tpu.memory_space<vmem>>) target_semaphore(%7 : memref<!tpu.dma_semaphore, #tpu.memory_space<semaphore_mem>>)
    %c4_i32 = arith.constant 4 : i32
    %8 = tpu.memref_slice %arg21[%c4_i32] : memref<5x!tpu.dma_semaphore, #tpu.memory_space<semaphore_mem>> -> memref<1x!tpu.dma_semaphore, #tpu.memory_space<semaphore_mem>>
    %9 = tpu.memref_squeeze %8 : memref<1x!tpu.dma_semaphore, #tpu.memory_space<semaphore_mem>> -> memref<!tpu.dma_semaphore, #tpu.memory_space<semaphore_mem>>
    tpu.enqueue_dma source(%arg13 : memref<128x256xbf16, #tpu.memory_space<any>>) target(%arg20 : memref<128x256xbf16, #tpu.memory_space<vmem>>) target_semaphore(%9 : memref<!tpu.dma_semaphore, #tpu.memory_space<semaphore_mem>>)
    %c0 = arith.constant 0 : index
    %c0_0 = arith.constant 0 : index
    %10 = vector.load %arg0[%c0, %c0_0] : memref<64x64xf32, #tpu.memory_space<vmem>>, vector<64x64xf32>
    %11 = arith.truncf %10 : vector<64x64xf32> to vector<64x64xbf16>
    %c0_1 = arith.constant 0 : index
    %c0_2 = arith.constant 0 : index
    %12 = vector.load %arg1[%c0_1, %c0_2] : memref<64x128xbf16, #tpu.memory_space<vmem>>, vector<64x128xbf16>
    %cst = arith.constant dense<0.000000e+00> : vector<64x128xf32>
    %13 = tpu.matmul %11, %12, %cst {dimension_numbers = #tpu.dot_dimension_numbers<[1], [0], [0], [1], [0, 0, 1, 1], [], []>} : vector<64x64xbf16>, vector<64x128xbf16>, vector<64x128xf32> -> vector<64x128xf32>
    %c0_3 = arith.constant 0 : index
    %c0_4 = arith.constant 0 : index
    %14 = vector.load %arg3[%c0_3, %c0_4] : memref<1x128xf32, #tpu.memory_space<vmem>>, vector<1x128xf32>
    %15 = vector.shape_cast %14 : vector<1x128xf32> to vector<1x128xf32>
    %16 = vector.broadcast %15 : vector<1x128xf32> to vector<64x128xf32>
    %17 = arith.addf %13, %16 : vector<64x128xf32>
    %c0_5 = arith.constant 0 : index
    %c0_6 = arith.constant 0 : index
    %18 = vector.load %arg6[%c0_5, %c0_6] : memref<1x128xf32, #tpu.memory_space<vmem>>, vector<1x128xf32>
    %19 = vector.shape_cast %18 : vector<1x128xf32> to vector<1x128xf32>
    %20 = vector.broadcast %19 : vector<1x128xf32> to vector<8x128xf32>
    %c0_7 = arith.constant 0 : index
    %c0_8 = arith.constant 0 : index
    %21 = vector.load %arg9[%c0_7, %c0_8] : memref<1x512xf32, #tpu.memory_space<vmem>>, vector<1x512xf32>
    %22 = vector.shape_cast %21 : vector<1x512xf32> to vector<1x512xf32>
    %23 = vector.broadcast %22 : vector<1x512xf32> to vector<8x512xf32>
    %c0_9 = arith.constant 0 : index
    %c0_10 = arith.constant 0 : index
    %24 = vector.load %arg12[%c0_9, %c0_10] : memref<1x512xf32, #tpu.memory_space<vmem>>, vector<1x512xf32>
    %25 = vector.shape_cast %24 : vector<1x512xf32> to vector<1x512xf32>
    %26 = vector.broadcast %25 : vector<1x512xf32> to vector<8x512xf32>
    %c0_11 = arith.constant 0 : index
    %c0_12 = arith.constant 0 : index
    %27 = vector.load %arg14[%c0_11, %c0_12] : memref<1x256xf32, #tpu.memory_space<vmem>>, vector<1x256xf32>
    %28 = vector.shape_cast %27 : vector<1x256xf32> to vector<1x256xf32>
    %29 = vector.broadcast %28 : vector<1x256xf32> to vector<8x256xf32>
    %cst_13 = arith.constant 0.000000e+00 : f32
    %30 = vector.broadcast %cst_13 : f32 to vector<8x32xf32>
    %cst_14 = arith.constant 0.000000e+00 : f32
    %31 = vector.broadcast %cst_14 : f32 to vector<8x32xf32>
    %cst_15 = arith.constant 0.000000e+00 : f32
    %32 = vector.broadcast %cst_15 : f32 to vector<8x128xf32>
    %cst_16 = arith.constant 0.000000e+00 : f32
    %33 = vector.broadcast %cst_16 : f32 to vector<8x128xf32>
    %34 = vector.extract_strided_slice %17 {offsets = [0, 0], sizes = [8, 128], strides = [1, 1]} : vector<64x128xf32> to vector<8x128xf32>
    %35 = arith.truncf %30 : vector<8x32xf32> to vector<8x32xbf16>
    %c0_17 = arith.constant 0 : index
    %c0_18 = arith.constant 0 : index
    %36 = vector.load %arg2[%c0_17, %c0_18] : memref<32x128xbf16, #tpu.memory_space<vmem>>, vector<32x128xbf16>
    %cst_19 = arith.constant dense<0.000000e+00> : vector<8x128xf32>
    %37 = tpu.matmul %35, %36, %cst_19 {dimension_numbers = #tpu.dot_dimension_numbers<[1], [0], [0], [1], [0, 0, 1, 1], [], []>} : vector<8x32xbf16>, vector<32x128xbf16>, vector<8x128xf32> -> vector<8x128xf32>
    %38 = arith.addf %34, %37 : vector<8x128xf32>
    %39 = vector.extract_strided_slice %38 {offsets = [0, 0], sizes = [8, 96], strides = [1, 1]} : vector<8x128xf32> to vector<8x96xf32>
    %cst_20 = arith.constant 5.000000e-01 : f32
    %40 = vector.broadcast %cst_20 : f32 to vector<8x96xf32>
    %41 = arith.mulf %40, %39 : vector<8x96xf32>
    %42 = math.tanh %41 : vector<8x96xf32>
    %cst_21 = arith.constant 1.000000e+00 : f32
    %43 = vector.broadcast %cst_21 : f32 to vector<8x96xf32>
    %44 = arith.addf %42, %43 : vector<8x96xf32>
    %cst_22 = arith.constant 5.000000e-01 : f32
    %45 = vector.broadcast %cst_22 : f32 to vector<8x96xf32>
    %46 = arith.mulf %45, %44 : vector<8x96xf32>
    %47 = vector.extract_strided_slice %38 {offsets = [0, 96], sizes = [8, 32], strides = [1, 1]} : vector<8x128xf32> to vector<8x32xf32>
    %48 = math.tanh %47 : vector<8x32xf32>
    %49 = vector.extract_strided_slice %46 {offsets = [0, 0], sizes = [8, 32], strides = [1, 1]} : vector<8x96xf32> to vector<8x32xf32>
    %50 = vector.extract_strided_slice %46 {offsets = [0, 32], sizes = [8, 32], strides = [1, 1]} : vector<8x96xf32> to vector<8x32xf32>
    %51 = vector.extract_strided_slice %46 {offsets = [0, 64], sizes = [8, 32], strides = [1, 1]} : vector<8x96xf32> to vector<8x32xf32>
    %52 = arith.mulf %50, %30 : vector<8x32xf32>
    %53 = arith.mulf %49, %48 : vector<8x32xf32>
    %54 = arith.addf %52, %53 : vector<8x32xf32>
    %55 = math.tanh %54 : vector<8x32xf32>
    %56 = arith.mulf %51, %55 : vector<8x32xf32>
    %57 = vector.extract_strided_slice %17 {offsets = [8, 0], sizes = [8, 128], strides = [1, 1]} : vector<64x128xf32> to vector<8x128xf32>
    %58 = arith.truncf %56 : vector<8x32xf32> to vector<8x32xbf16>
    %c0_23 = arith.constant 0 : index
    %c0_24 = arith.constant 0 : index
    %59 = vector.load %arg2[%c0_23, %c0_24] : memref<32x128xbf16, #tpu.memory_space<vmem>>, vector<32x128xbf16>
    %cst_25 = arith.constant dense<0.000000e+00> : vector<8x128xf32>
    %60 = tpu.matmul %58, %59, %cst_25 {dimension_numbers = #tpu.dot_dimension_numbers<[1], [0], [0], [1], [0, 0, 1, 1], [], []>} : vector<8x32xbf16>, vector<32x128xbf16>, vector<8x128xf32> -> vector<8x128xf32>
    %61 = arith.addf %57, %60 : vector<8x128xf32>
    %62 = vector.extract_strided_slice %61 {offsets = [0, 0], sizes = [8, 96], strides = [1, 1]} : vector<8x128xf32> to vector<8x96xf32>
    %cst_26 = arith.constant 5.000000e-01 : f32
    %63 = vector.broadcast %cst_26 : f32 to vector<8x96xf32>
    %64 = arith.mulf %63, %62 : vector<8x96xf32>
    %65 = math.tanh %64 : vector<8x96xf32>
    %cst_27 = arith.constant 1.000000e+00 : f32
    %66 = vector.broadcast %cst_27 : f32 to vector<8x96xf32>
    %67 = arith.addf %65, %66 : vector<8x96xf32>
    %cst_28 = arith.constant 5.000000e-01 : f32
    %68 = vector.broadcast %cst_28 : f32 to vector<8x96xf32>
    %69 = arith.mulf %68, %67 : vector<8x96xf32>
    %70 = vector.extract_strided_slice %61 {offsets = [0, 96], sizes = [8, 32], strides = [1, 1]} : vector<8x128xf32> to vector<8x32xf32>
    %71 = math.tanh %70 : vector<8x32xf32>
    %72 = vector.extract_strided_slice %69 {offsets = [0, 0], sizes = [8, 32], strides = [1, 1]} : vector<8x96xf32> to vector<8x32xf32>
    %73 = vector.extract_strided_slice %69 {offsets = [0, 32], sizes = [8, 32], strides = [1, 1]} : vector<8x96xf32> to vector<8x32xf32>
    %74 = vector.extract_strided_slice %69 {offsets = [0, 64], sizes = [8, 32], strides = [1, 1]} : vector<8x96xf32> to vector<8x32xf32>
    %75 = arith.mulf %73, %54 : vector<8x32xf32>
    %76 = arith.mulf %72, %71 : vector<8x32xf32>
    %77 = arith.addf %75, %76 : vector<8x32xf32>
    %78 = math.tanh %77 : vector<8x32xf32>
    %79 = arith.mulf %74, %78 : vector<8x32xf32>
    %80 = arith.truncf %56 : vector<8x32xf32> to vector<8x32xbf16>
    %c0_29 = arith.constant 0 : index
    %c0_30 = arith.constant 0 : index
    %81 = vector.load %arg4[%c0_29, %c0_30] : memref<32x128xbf16, #tpu.memory_space<vmem>>, vector<32x128xbf16>
    %cst_31 = arith.constant dense<0.000000e+00> : vector<8x128xf32>
    %82 = tpu.matmul %80, %81, %cst_31 {dimension_numbers = #tpu.dot_dimension_numbers<[1], [0], [0], [1], [0, 0, 1, 1], [], []>} : vector<8x32xbf16>, vector<32x128xbf16>, vector<8x128xf32> -> vector<8x128xf32>
    %83 = arith.truncf %31 : vector<8x32xf32> to vector<8x32xbf16>
    %c0_32 = arith.constant 0 : index
    %c0_33 = arith.constant 0 : index
    %84 = vector.load %arg5[%c0_32, %c0_33] : memref<32x128xbf16, #tpu.memory_space<vmem>>, vector<32x128xbf16>
    %cst_34 = arith.constant dense<0.000000e+00> : vector<8x128xf32>
    %85 = tpu.matmul %83, %84, %cst_34 {dimension_numbers = #tpu.dot_dimension_numbers<[1], [0], [0], [1], [0, 0, 1, 1], [], []>} : vector<8x32xbf16>, vector<32x128xbf16>, vector<8x128xf32> -> vector<8x128xf32>
    %86 = arith.addf %82, %85 : vector<8x128xf32>
    %87 = arith.addf %86, %20 : vector<8x128xf32>
    %88 = vector.extract_strided_slice %87 {offsets = [0, 0], sizes = [8, 96], strides = [1, 1]} : vector<8x128xf32> to vector<8x96xf32>
    %cst_35 = arith.constant 5.000000e-01 : f32
    %89 = vector.broadcast %cst_35 : f32 to vector<8x96xf32>
    %90 = arith.mulf %89, %88 : vector<8x96xf32>
    %91 = math.tanh %90 : vector<8x96xf32>
    %cst_36 = arith.constant 1.000000e+00 : f32
    %92 = vector.broadcast %cst_36 : f32 to vector<8x96xf32>
    %93 = arith.addf %91, %92 : vector<8x96xf32>
    %cst_37 = arith.constant 5.000000e-01 : f32
    %94 = vector.broadcast %cst_37 : f32 to vector<8x96xf32>
    %95 = arith.mulf %94, %93 : vector<8x96xf32>
    %96 = vector.extract_strided_slice %87 {offsets = [0, 96], sizes = [8, 32], strides = [1, 1]} : vector<8x128xf32> to vector<8x32xf32>
    %97 = math.tanh %96 : vector<8x32xf32>
    %98 = vector.extract_strided_slice %95 {offsets = [0, 0], sizes = [8, 32], strides = [1, 1]} : vector<8x96xf32> to vector<8x32xf32>
    %99 = vector.extract_strided_slice %95 {offsets = [0, 32], sizes = [8, 32], strides = [1, 1]} : vector<8x96xf32> to vector<8x32xf32>
    %100 = vector.extract_strided_slice %95 {offsets = [0, 64], sizes = [8, 32], strides = [1, 1]} : vector<8x96xf32> to vector<8x32xf32>
    %101 = arith.mulf %99, %31 : vector<8x32xf32>
    %102 = arith.mulf %98, %97 : vector<8x32xf32>
    %103 = arith.addf %101, %102 : vector<8x32xf32>
    %104 = math.tanh %103 : vector<8x32xf32>
    %105 = arith.mulf %100, %104 : vector<8x32xf32>
    %c0_i32_38 = arith.constant 0 : i32
    %106 = tpu.memref_slice %arg21[%c0_i32_38] : memref<5x!tpu.dma_semaphore, #tpu.memory_space<semaphore_mem>> -> memref<1x!tpu.dma_semaphore, #tpu.memory_space<semaphore_mem>>
    %107 = tpu.memref_squeeze %106 : memref<1x!tpu.dma_semaphore, #tpu.memory_space<semaphore_mem>> -> memref<!tpu.dma_semaphore, #tpu.memory_space<semaphore_mem>>
    tpu.wait_dma2 semaphore(%107 : memref<!tpu.dma_semaphore, #tpu.memory_space<semaphore_mem>>) src(%arg7 : memref<32x512xbf16, #tpu.memory_space<any>>) dst(%arg16 : memref<32x512xbf16, #tpu.memory_space<vmem>>)
    %c1_i32_39 = arith.constant 1 : i32
    %108 = tpu.memref_slice %arg21[%c1_i32_39] : memref<5x!tpu.dma_semaphore, #tpu.memory_space<semaphore_mem>> -> memref<1x!tpu.dma_semaphore, #tpu.memory_space<semaphore_mem>>
    %109 = tpu.memref_squeeze %108 : memref<1x!tpu.dma_semaphore, #tpu.memory_space<semaphore_mem>> -> memref<!tpu.dma_semaphore, #tpu.memory_space<semaphore_mem>>
    tpu.wait_dma2 semaphore(%109 : memref<!tpu.dma_semaphore, #tpu.memory_space<semaphore_mem>>) src(%arg8 : memref<128x512xbf16, #tpu.memory_space<any>>) dst(%arg17 : memref<128x512xbf16, #tpu.memory_space<vmem>>)
    %110 = vector.extract_strided_slice %17 {offsets = [16, 0], sizes = [8, 128], strides = [1, 1]} : vector<64x128xf32> to vector<8x128xf32>
    %111 = arith.truncf %79 : vector<8x32xf32> to vector<8x32xbf16>
    %c0_40 = arith.constant 0 : index
    %c0_41 = arith.constant 0 : index
    %112 = vector.load %arg2[%c0_40, %c0_41] : memref<32x128xbf16, #tpu.memory_space<vmem>>, vector<32x128xbf16>
    %cst_42 = arith.constant dense<0.000000e+00> : vector<8x128xf32>
    %113 = tpu.matmul %111, %112, %cst_42 {dimension_numbers = #tpu.dot_dimension_numbers<[1], [0], [0], [1], [0, 0, 1, 1], [], []>} : vector<8x32xbf16>, vector<32x128xbf16>, vector<8x128xf32> -> vector<8x128xf32>
    %114 = arith.addf %110, %113 : vector<8x128xf32>
    %115 = vector.extract_strided_slice %114 {offsets = [0, 0], sizes = [8, 96], strides = [1, 1]} : vector<8x128xf32> to vector<8x96xf32>
    %cst_43 = arith.constant 5.000000e-01 : f32
    %116 = vector.broadcast %cst_43 : f32 to vector<8x96xf32>
    %117 = arith.mulf %116, %115 : vector<8x96xf32>
    %118 = math.tanh %117 : vector<8x96xf32>
    %cst_44 = arith.constant 1.000000e+00 : f32
    %119 = vector.broadcast %cst_44 : f32 to vector<8x96xf32>
    %120 = arith.addf %118, %119 : vector<8x96xf32>
    %cst_45 = arith.constant 5.000000e-01 : f32
    %121 = vector.broadcast %cst_45 : f32 to vector<8x96xf32>
    %122 = arith.mulf %121, %120 : vector<8x96xf32>
    %123 = vector.extract_strided_slice %114 {offsets = [0, 96], sizes = [8, 32], strides = [1, 1]} : vector<8x128xf32> to vector<8x32xf32>
    %124 = math.tanh %123 : vector<8x32xf32>
    %125 = vector.extract_strided_slice %122 {offsets = [0, 0], sizes = [8, 32], strides = [1, 1]} : vector<8x96xf32> to vector<8x32xf32>
    %126 = vector.extract_strided_slice %122 {offsets = [0, 32], sizes = [8, 32], strides = [1, 1]} : vector<8x96xf32> to vector<8x32xf32>
    %127 = vector.extract_strided_slice %122 {offsets = [0, 64], sizes = [8, 32], strides = [1, 1]} : vector<8x96xf32> to vector<8x32xf32>
    %128 = arith.mulf %126, %77 : vector<8x32xf32>
    %129 = arith.mulf %125, %124 : vector<8x32xf32>
    %130 = arith.addf %128, %129 : vector<8x32xf32>
    %131 = math.tanh %130 : vector<8x32xf32>
    %132 = arith.mulf %127, %131 : vector<8x32xf32>
    %133 = arith.truncf %79 : vector<8x32xf32> to vector<8x32xbf16>
    %c0_46 = arith.constant 0 : index
    %c0_47 = arith.constant 0 : index
    %134 = vector.load %arg4[%c0_46, %c0_47] : memref<32x128xbf16, #tpu.memory_space<vmem>>, vector<32x128xbf16>
    %cst_48 = arith.constant dense<0.000000e+00> : vector<8x128xf32>
    %135 = tpu.matmul %133, %134, %cst_48 {dimension_numbers = #tpu.dot_dimension_numbers<[1], [0], [0], [1], [0, 0, 1, 1], [], []>} : vector<8x32xbf16>, vector<32x128xbf16>, vector<8x128xf32> -> vector<8x128xf32>
    %136 = arith.truncf %105 : vector<8x32xf32> to vector<8x32xbf16>
    %c0_49 = arith.constant 0 : index
    %c0_50 = arith.constant 0 : index
    %137 = vector.load %arg5[%c0_49, %c0_50] : memref<32x128xbf16, #tpu.memory_space<vmem>>, vector<32x128xbf16>
    %cst_51 = arith.constant dense<0.000000e+00> : vector<8x128xf32>
    %138 = tpu.matmul %136, %137, %cst_51 {dimension_numbers = #tpu.dot_dimension_numbers<[1], [0], [0], [1], [0, 0, 1, 1], [], []>} : vector<8x32xbf16>, vector<32x128xbf16>, vector<8x128xf32> -> vector<8x128xf32>
    %139 = arith.addf %135, %138 : vector<8x128xf32>
    %140 = arith.addf %139, %20 : vector<8x128xf32>
    %141 = vector.extract_strided_slice %140 {offsets = [0, 0], sizes = [8, 96], strides = [1, 1]} : vector<8x128xf32> to vector<8x96xf32>
    %cst_52 = arith.constant 5.000000e-01 : f32
    %142 = vector.broadcast %cst_52 : f32 to vector<8x96xf32>
    %143 = arith.mulf %142, %141 : vector<8x96xf32>
    %144 = math.tanh %143 : vector<8x96xf32>
    %cst_53 = arith.constant 1.000000e+00 : f32
    %145 = vector.broadcast %cst_53 : f32 to vector<8x96xf32>
    %146 = arith.addf %144, %145 : vector<8x96xf32>
    %cst_54 = arith.constant 5.000000e-01 : f32
    %147 = vector.broadcast %cst_54 : f32 to vector<8x96xf32>
    %148 = arith.mulf %147, %146 : vector<8x96xf32>
    %149 = vector.extract_strided_slice %140 {offsets = [0, 96], sizes = [8, 32], strides = [1, 1]} : vector<8x128xf32> to vector<8x32xf32>
    %150 = math.tanh %149 : vector<8x32xf32>
    %151 = vector.extract_strided_slice %148 {offsets = [0, 0], sizes = [8, 32], strides = [1, 1]} : vector<8x96xf32> to vector<8x32xf32>
    %152 = vector.extract_strided_slice %148 {offsets = [0, 32], sizes = [8, 32], strides = [1, 1]} : vector<8x96xf32> to vector<8x32xf32>
    %153 = vector.extract_strided_slice %148 {offsets = [0, 64], sizes = [8, 32], strides = [1, 1]} : vector<8x96xf32> to vector<8x32xf32>
    %154 = arith.mulf %152, %103 : vector<8x32xf32>
    %155 = arith.mulf %151, %150 : vector<8x32xf32>
    %156 = arith.addf %154, %155 : vector<8x32xf32>
    %157 = math.tanh %156 : vector<8x32xf32>
    %158 = arith.mulf %153, %157 : vector<8x32xf32>
    %159 = arith.truncf %105 : vector<8x32xf32> to vector<8x32xbf16>
    %c0_55 = arith.constant 0 : index
    %c0_56 = arith.constant 0 : index
    %160 = vector.load %arg16[%c0_55, %c0_56] : memref<32x512xbf16, #tpu.memory_space<vmem>>, vector<32x512xbf16>
    %cst_57 = arith.constant dense<0.000000e+00> : vector<8x512xf32>
    %161 = tpu.matmul %159, %160, %cst_57 {dimension_numbers = #tpu.dot_dimension_numbers<[1], [0], [0], [1], [0, 0, 1, 1], [], []>} : vector<8x32xbf16>, vector<32x512xbf16>, vector<8x512xf32> -> vector<8x512xf32>
    %162 = arith.truncf %32 : vector<8x128xf32> to vector<8x128xbf16>
    %c0_58 = arith.constant 0 : index
    %c0_59 = arith.constant 0 : index
    %163 = vector.load %arg17[%c0_58, %c0_59] : memref<128x512xbf16, #tpu.memory_space<vmem>>, vector<128x512xbf16>
    %cst_60 = arith.constant dense<0.000000e+00> : vector<8x512xf32>
    %164 = tpu.matmul %162, %163, %cst_60 {dimension_numbers = #tpu.dot_dimension_numbers<[1], [0], [0], [1], [0, 0, 1, 1], [], []>} : vector<8x128xbf16>, vector<128x512xbf16>, vector<8x512xf32> -> vector<8x512xf32>
    %165 = arith.addf %161, %164 : vector<8x512xf32>
    %166 = arith.addf %165, %23 : vector<8x512xf32>
    %167 = vector.extract_strided_slice %166 {offsets = [0, 0], sizes = [8, 384], strides = [1, 1]} : vector<8x512xf32> to vector<8x384xf32>
    %cst_61 = arith.constant 5.000000e-01 : f32
    %168 = vector.broadcast %cst_61 : f32 to vector<8x384xf32>
    %169 = arith.mulf %168, %167 : vector<8x384xf32>
    %170 = math.tanh %169 : vector<8x384xf32>
    %cst_62 = arith.constant 1.000000e+00 : f32
    %171 = vector.broadcast %cst_62 : f32 to vector<8x384xf32>
    %172 = arith.addf %170, %171 : vector<8x384xf32>
    %cst_63 = arith.constant 5.000000e-01 : f32
    %173 = vector.broadcast %cst_63 : f32 to vector<8x384xf32>
    %174 = arith.mulf %173, %172 : vector<8x384xf32>
    %175 = vector.extract_strided_slice %166 {offsets = [0, 384], sizes = [8, 128], strides = [1, 1]} : vector<8x512xf32> to vector<8x128xf32>
    %176 = math.tanh %175 : vector<8x128xf32>
    %177 = vector.extract_strided_slice %174 {offsets = [0, 0], sizes = [8, 128], strides = [1, 1]} : vector<8x384xf32> to vector<8x128xf32>
    %178 = vector.extract_strided_slice %174 {offsets = [0, 128], sizes = [8, 128], strides = [1, 1]} : vector<8x384xf32> to vector<8x128xf32>
    %179 = vector.extract_strided_slice %174 {offsets = [0, 256], sizes = [8, 128], strides = [1, 1]} : vector<8x384xf32> to vector<8x128xf32>
    %180 = arith.mulf %178, %32 : vector<8x128xf32>
    %181 = arith.mulf %177, %176 : vector<8x128xf32>
    %182 = arith.addf %180, %181 : vector<8x128xf32>
    %183 = math.tanh %182 : vector<8x128xf32>
    %184 = arith.mulf %179, %183 : vector<8x128xf32>
    %c2_i32_64 = arith.constant 2 : i32
    %185 = tpu.memref_slice %arg21[%c2_i32_64] : memref<5x!tpu.dma_semaphore, #tpu.memory_space<semaphore_mem>> -> memref<1x!tpu.dma_semaphore, #tpu.memory_space<semaphore_mem>>
    %186 = tpu.memref_squeeze %185 : memref<1x!tpu.dma_semaphore, #tpu.memory_space<semaphore_mem>> -> memref<!tpu.dma_semaphore, #tpu.memory_space<semaphore_mem>>
    tpu.wait_dma2 semaphore(%186 : memref<!tpu.dma_semaphore, #tpu.memory_space<semaphore_mem>>) src(%arg10 : memref<128x512xbf16, #tpu.memory_space<any>>) dst(%arg18 : memref<128x512xbf16, #tpu.memory_space<vmem>>)
    %c3_i32_65 = arith.constant 3 : i32
    %187 = tpu.memref_slice %arg21[%c3_i32_65] : memref<5x!tpu.dma_semaphore, #tpu.memory_space<semaphore_mem>> -> memref<1x!tpu.dma_semaphore, #tpu.memory_space<semaphore_mem>>
    %188 = tpu.memref_squeeze %187 : memref<1x!tpu.dma_semaphore, #tpu.memory_space<semaphore_mem>> -> memref<!tpu.dma_semaphore, #tpu.memory_space<semaphore_mem>>
    tpu.wait_dma2 semaphore(%188 : memref<!tpu.dma_semaphore, #tpu.memory_space<semaphore_mem>>) src(%arg11 : memref<128x512xbf16, #tpu.memory_space<any>>) dst(%arg19 : memref<128x512xbf16, #tpu.memory_space<vmem>>)
    %c4_i32_66 = arith.constant 4 : i32
    %189 = tpu.memref_slice %arg21[%c4_i32_66] : memref<5x!tpu.dma_semaphore, #tpu.memory_space<semaphore_mem>> -> memref<1x!tpu.dma_semaphore, #tpu.memory_space<semaphore_mem>>
    %190 = tpu.memref_squeeze %189 : memref<1x!tpu.dma_semaphore, #tpu.memory_space<semaphore_mem>> -> memref<!tpu.dma_semaphore, #tpu.memory_space<semaphore_mem>>
    tpu.wait_dma2 semaphore(%190 : memref<!tpu.dma_semaphore, #tpu.memory_space<semaphore_mem>>) src(%arg13 : memref<128x256xbf16, #tpu.memory_space<any>>) dst(%arg20 : memref<128x256xbf16, #tpu.memory_space<vmem>>)
    %191 = vector.extract_strided_slice %17 {offsets = [24, 0], sizes = [8, 128], strides = [1, 1]} : vector<64x128xf32> to vector<8x128xf32>
    %192 = arith.truncf %132 : vector<8x32xf32> to vector<8x32xbf16>
    %c0_67 = arith.constant 0 : index
    %c0_68 = arith.constant 0 : index
    %193 = vector.load %arg2[%c0_67, %c0_68] : memref<32x128xbf16, #tpu.memory_space<vmem>>, vector<32x128xbf16>
    %cst_69 = arith.constant dense<0.000000e+00> : vector<8x128xf32>
    %194 = tpu.matmul %192, %193, %cst_69 {dimension_numbers = #tpu.dot_dimension_numbers<[1], [0], [0], [1], [0, 0, 1, 1], [], []>} : vector<8x32xbf16>, vector<32x128xbf16>, vector<8x128xf32> -> vector<8x128xf32>
    %195 = arith.addf %191, %194 : vector<8x128xf32>
    %196 = vector.extract_strided_slice %195 {offsets = [0, 0], sizes = [8, 96], strides = [1, 1]} : vector<8x128xf32> to vector<8x96xf32>
    %cst_70 = arith.constant 5.000000e-01 : f32
    %197 = vector.broadcast %cst_70 : f32 to vector<8x96xf32>
    %198 = arith.mulf %197, %196 : vector<8x96xf32>
    %199 = math.tanh %198 : vector<8x96xf32>
    %cst_71 = arith.constant 1.000000e+00 : f32
    %200 = vector.broadcast %cst_71 : f32 to vector<8x96xf32>
    %201 = arith.addf %199, %200 : vector<8x96xf32>
    %cst_72 = arith.constant 5.000000e-01 : f32
    %202 = vector.broadcast %cst_72 : f32 to vector<8x96xf32>
    %203 = arith.mulf %202, %201 : vector<8x96xf32>
    %204 = vector.extract_strided_slice %195 {offsets = [0, 96], sizes = [8, 32], strides = [1, 1]} : vector<8x128xf32> to vector<8x32xf32>
    %205 = math.tanh %204 : vector<8x32xf32>
    %206 = vector.extract_strided_slice %203 {offsets = [0, 0], sizes = [8, 32], strides = [1, 1]} : vector<8x96xf32> to vector<8x32xf32>
    %207 = vector.extract_strided_slice %203 {offsets = [0, 32], sizes = [8, 32], strides = [1, 1]} : vector<8x96xf32> to vector<8x32xf32>
    %208 = vector.extract_strided_slice %203 {offsets = [0, 64], sizes = [8, 32], strides = [1, 1]} : vector<8x96xf32> to vector<8x32xf32>
    %209 = arith.mulf %207, %130 : vector<8x32xf32>
    %210 = arith.mulf %206, %205 : vector<8x32xf32>
    %211 = arith.addf %209, %210 : vector<8x32xf32>
    %212 = math.tanh %211 : vector<8x32xf32>
    %213 = arith.mulf %208, %212 : vector<8x32xf32>
    %214 = arith.truncf %132 : vector<8x32xf32> to vector<8x32xbf16>
    %c0_73 = arith.constant 0 : index
    %c0_74 = arith.constant 0 : index
    %215 = vector.load %arg4[%c0_73, %c0_74] : memref<32x128xbf16, #tpu.memory_space<vmem>>, vector<32x128xbf16>
    %cst_75 = arith.constant dense<0.000000e+00> : vector<8x128xf32>
    %216 = tpu.matmul %214, %215, %cst_75 {dimension_numbers = #tpu.dot_dimension_numbers<[1], [0], [0], [1], [0, 0, 1, 1], [], []>} : vector<8x32xbf16>, vector<32x128xbf16>, vector<8x128xf32> -> vector<8x128xf32>
    %217 = arith.truncf %158 : vector<8x32xf32> to vector<8x32xbf16>
    %c0_76 = arith.constant 0 : index
    %c0_77 = arith.constant 0 : index
    %218 = vector.load %arg5[%c0_76, %c0_77] : memref<32x128xbf16, #tpu.memory_space<vmem>>, vector<32x128xbf16>
    %cst_78 = arith.constant dense<0.000000e+00> : vector<8x128xf32>
    %219 = tpu.matmul %217, %218, %cst_78 {dimension_numbers = #tpu.dot_dimension_numbers<[1], [0], [0], [1], [0, 0, 1, 1], [], []>} : vector<8x32xbf16>, vector<32x128xbf16>, vector<8x128xf32> -> vector<8x128xf32>
    %220 = arith.addf %216, %219 : vector<8x128xf32>
    %221 = arith.addf %220, %20 : vector<8x128xf32>
    %222 = vector.extract_strided_slice %221 {offsets = [0, 0], sizes = [8, 96], strides = [1, 1]} : vector<8x128xf32> to vector<8x96xf32>
    %cst_79 = arith.constant 5.000000e-01 : f32
    %223 = vector.broadcast %cst_79 : f32 to vector<8x96xf32>
    %224 = arith.mulf %223, %222 : vector<8x96xf32>
    %225 = math.tanh %224 : vector<8x96xf32>
    %cst_80 = arith.constant 1.000000e+00 : f32
    %226 = vector.broadcast %cst_80 : f32 to vector<8x96xf32>
    %227 = arith.addf %225, %226 : vector<8x96xf32>
    %cst_81 = arith.constant 5.000000e-01 : f32
    %228 = vector.broadcast %cst_81 : f32 to vector<8x96xf32>
    %229 = arith.mulf %228, %227 : vector<8x96xf32>
    %230 = vector.extract_strided_slice %221 {offsets = [0, 96], sizes = [8, 32], strides = [1, 1]} : vector<8x128xf32> to vector<8x32xf32>
    %231 = math.tanh %230 : vector<8x32xf32>
    %232 = vector.extract_strided_slice %229 {offsets = [0, 0], sizes = [8, 32], strides = [1, 1]} : vector<8x96xf32> to vector<8x32xf32>
    %233 = vector.extract_strided_slice %229 {offsets = [0, 32], sizes = [8, 32], strides = [1, 1]} : vector<8x96xf32> to vector<8x32xf32>
    %234 = vector.extract_strided_slice %229 {offsets = [0, 64], sizes = [8, 32], strides = [1, 1]} : vector<8x96xf32> to vector<8x32xf32>
    %235 = arith.mulf %233, %156 : vector<8x32xf32>
    %236 = arith.mulf %232, %231 : vector<8x32xf32>
    %237 = arith.addf %235, %236 : vector<8x32xf32>
    %238 = math.tanh %237 : vector<8x32xf32>
    %239 = arith.mulf %234, %238 : vector<8x32xf32>
    %240 = arith.truncf %158 : vector<8x32xf32> to vector<8x32xbf16>
    %c0_82 = arith.constant 0 : index
    %c0_83 = arith.constant 0 : index
    %241 = vector.load %arg16[%c0_82, %c0_83] : memref<32x512xbf16, #tpu.memory_space<vmem>>, vector<32x512xbf16>
    %cst_84 = arith.constant dense<0.000000e+00> : vector<8x512xf32>
    %242 = tpu.matmul %240, %241, %cst_84 {dimension_numbers = #tpu.dot_dimension_numbers<[1], [0], [0], [1], [0, 0, 1, 1], [], []>} : vector<8x32xbf16>, vector<32x512xbf16>, vector<8x512xf32> -> vector<8x512xf32>
    %243 = arith.truncf %184 : vector<8x128xf32> to vector<8x128xbf16>
    %c0_85 = arith.constant 0 : index
    %c0_86 = arith.constant 0 : index
    %244 = vector.load %arg17[%c0_85, %c0_86] : memref<128x512xbf16, #tpu.memory_space<vmem>>, vector<128x512xbf16>
    %cst_87 = arith.constant dense<0.000000e+00> : vector<8x512xf32>
    %245 = tpu.matmul %243, %244, %cst_87 {dimension_numbers = #tpu.dot_dimension_numbers<[1], [0], [0], [1], [0, 0, 1, 1], [], []>} : vector<8x128xbf16>, vector<128x512xbf16>, vector<8x512xf32> -> vector<8x512xf32>
    %246 = arith.addf %242, %245 : vector<8x512xf32>
    %247 = arith.addf %246, %23 : vector<8x512xf32>
    %248 = vector.extract_strided_slice %247 {offsets = [0, 0], sizes = [8, 384], strides = [1, 1]} : vector<8x512xf32> to vector<8x384xf32>
    %cst_88 = arith.constant 5.000000e-01 : f32
    %249 = vector.broadcast %cst_88 : f32 to vector<8x384xf32>
    %250 = arith.mulf %249, %248 : vector<8x384xf32>
    %251 = math.tanh %250 : vector<8x384xf32>
    %cst_89 = arith.constant 1.000000e+00 : f32
    %252 = vector.broadcast %cst_89 : f32 to vector<8x384xf32>
    %253 = arith.addf %251, %252 : vector<8x384xf32>
    %cst_90 = arith.constant 5.000000e-01 : f32
    %254 = vector.broadcast %cst_90 : f32 to vector<8x384xf32>
    %255 = arith.mulf %254, %253 : vector<8x384xf32>
    %256 = vector.extract_strided_slice %247 {offsets = [0, 384], sizes = [8, 128], strides = [1, 1]} : vector<8x512xf32> to vector<8x128xf32>
    %257 = math.tanh %256 : vector<8x128xf32>
    %258 = vector.extract_strided_slice %255 {offsets = [0, 0], sizes = [8, 128], strides = [1, 1]} : vector<8x384xf32> to vector<8x128xf32>
    %259 = vector.extract_strided_slice %255 {offsets = [0, 128], sizes = [8, 128], strides = [1, 1]} : vector<8x384xf32> to vector<8x128xf32>
    %260 = vector.extract_strided_slice %255 {offsets = [0, 256], sizes = [8, 128], strides = [1, 1]} : vector<8x384xf32> to vector<8x128xf32>
    %261 = arith.mulf %259, %182 : vector<8x128xf32>
    %262 = arith.mulf %258, %257 : vector<8x128xf32>
    %263 = arith.addf %261, %262 : vector<8x128xf32>
    %264 = math.tanh %263 : vector<8x128xf32>
    %265 = arith.mulf %260, %264 : vector<8x128xf32>
    %266 = arith.truncf %184 : vector<8x128xf32> to vector<8x128xbf16>
    %c0_91 = arith.constant 0 : index
    %c0_92 = arith.constant 0 : index
    %267 = vector.load %arg18[%c0_91, %c0_92] : memref<128x512xbf16, #tpu.memory_space<vmem>>, vector<128x512xbf16>
    %cst_93 = arith.constant dense<0.000000e+00> : vector<8x512xf32>
    %268 = tpu.matmul %266, %267, %cst_93 {dimension_numbers = #tpu.dot_dimension_numbers<[1], [0], [0], [1], [0, 0, 1, 1], [], []>} : vector<8x128xbf16>, vector<128x512xbf16>, vector<8x512xf32> -> vector<8x512xf32>
    %269 = arith.truncf %33 : vector<8x128xf32> to vector<8x128xbf16>
    %c0_94 = arith.constant 0 : index
    %c0_95 = arith.constant 0 : index
    %270 = vector.load %arg19[%c0_94, %c0_95] : memref<128x512xbf16, #tpu.memory_space<vmem>>, vector<128x512xbf16>
    %cst_96 = arith.constant dense<0.000000e+00> : vector<8x512xf32>
    %271 = tpu.matmul %269, %270, %cst_96 {dimension_numbers = #tpu.dot_dimension_numbers<[1], [0], [0], [1], [0, 0, 1, 1], [], []>} : vector<8x128xbf16>, vector<128x512xbf16>, vector<8x512xf32> -> vector<8x512xf32>
    %272 = arith.addf %268, %271 : vector<8x512xf32>
    %273 = arith.addf %272, %26 : vector<8x512xf32>
    %274 = vector.extract_strided_slice %273 {offsets = [0, 0], sizes = [8, 384], strides = [1, 1]} : vector<8x512xf32> to vector<8x384xf32>
    %cst_97 = arith.constant 5.000000e-01 : f32
    %275 = vector.broadcast %cst_97 : f32 to vector<8x384xf32>
    %276 = arith.mulf %275, %274 : vector<8x384xf32>
    %277 = math.tanh %276 : vector<8x384xf32>
    %cst_98 = arith.constant 1.000000e+00 : f32
    %278 = vector.broadcast %cst_98 : f32 to vector<8x384xf32>
    %279 = arith.addf %277, %278 : vector<8x384xf32>
    %cst_99 = arith.constant 5.000000e-01 : f32
    %280 = vector.broadcast %cst_99 : f32 to vector<8x384xf32>
    %281 = arith.mulf %280, %279 : vector<8x384xf32>
    %282 = vector.extract_strided_slice %273 {offsets = [0, 384], sizes = [8, 128], strides = [1, 1]} : vector<8x512xf32> to vector<8x128xf32>
    %283 = math.tanh %282 : vector<8x128xf32>
    %284 = vector.extract_strided_slice %281 {offsets = [0, 0], sizes = [8, 128], strides = [1, 1]} : vector<8x384xf32> to vector<8x128xf32>
    %285 = vector.extract_strided_slice %281 {offsets = [0, 128], sizes = [8, 128], strides = [1, 1]} : vector<8x384xf32> to vector<8x128xf32>
    %286 = vector.extract_strided_slice %281 {offsets = [0, 256], sizes = [8, 128], strides = [1, 1]} : vector<8x384xf32> to vector<8x128xf32>
    %287 = arith.mulf %285, %33 : vector<8x128xf32>
    %288 = arith.mulf %284, %283 : vector<8x128xf32>
    %289 = arith.addf %287, %288 : vector<8x128xf32>
    %290 = math.tanh %289 : vector<8x128xf32>
    %291 = arith.mulf %286, %290 : vector<8x128xf32>
    %292 = arith.truncf %291 : vector<8x128xf32> to vector<8x128xbf16>
    %c0_100 = arith.constant 0 : index
    %c0_101 = arith.constant 0 : index
    %293 = vector.load %arg20[%c0_100, %c0_101] : memref<128x256xbf16, #tpu.memory_space<vmem>>, vector<128x256xbf16>
    %cst_102 = arith.constant dense<0.000000e+00> : vector<8x256xf32>
    %294 = tpu.matmul %292, %293, %cst_102 {dimension_numbers = #tpu.dot_dimension_numbers<[1], [0], [0], [1], [0, 0, 1, 1], [], []>} : vector<8x128xbf16>, vector<128x256xbf16>, vector<8x256xf32> -> vector<8x256xf32>
    %295 = arith.addf %294, %29 : vector<8x256xf32>
    %c0_103 = arith.constant 0 : index
    %c0_104 = arith.constant 0 : index
    %296 = vector.load %arg15[%c0_103, %c0_104] : memref<64x256xf32, #tpu.memory_space<vmem>>, vector<8x256xf32>
    tpu.vector_store %arg15[%c0_103, %c0_104], %295 {strides = array<i32>} : memref<64x256xf32, #tpu.memory_space<vmem>>, vector<8x256xf32>,
    %297 = vector.extract_strided_slice %17 {offsets = [32, 0], sizes = [8, 128], strides = [1, 1]} : vector<64x128xf32> to vector<8x128xf32>
    %298 = arith.truncf %213 : vector<8x32xf32> to vector<8x32xbf16>
    %c0_105 = arith.constant 0 : index
    %c0_106 = arith.constant 0 : index
    %299 = vector.load %arg2[%c0_105, %c0_106] : memref<32x128xbf16, #tpu.memory_space<vmem>>, vector<32x128xbf16>
    %cst_107 = arith.constant dense<0.000000e+00> : vector<8x128xf32>
    %300 = tpu.matmul %298, %299, %cst_107 {dimension_numbers = #tpu.dot_dimension_numbers<[1], [0], [0], [1], [0, 0, 1, 1], [], []>} : vector<8x32xbf16>, vector<32x128xbf16>, vector<8x128xf32> -> vector<8x128xf32>
    %301 = arith.addf %297, %300 : vector<8x128xf32>
    %302 = vector.extract_strided_slice %301 {offsets = [0, 0], sizes = [8, 96], strides = [1, 1]} : vector<8x128xf32> to vector<8x96xf32>
    %cst_108 = arith.constant 5.000000e-01 : f32
    %303 = vector.broadcast %cst_108 : f32 to vector<8x96xf32>
    %304 = arith.mulf %303, %302 : vector<8x96xf32>
    %305 = math.tanh %304 : vector<8x96xf32>
    %cst_109 = arith.constant 1.000000e+00 : f32
    %306 = vector.broadcast %cst_109 : f32 to vector<8x96xf32>
    %307 = arith.addf %305, %306 : vector<8x96xf32>
    %cst_110 = arith.constant 5.000000e-01 : f32
    %308 = vector.broadcast %cst_110 : f32 to vector<8x96xf32>
    %309 = arith.mulf %308, %307 : vector<8x96xf32>
    %310 = vector.extract_strided_slice %301 {offsets = [0, 96], sizes = [8, 32], strides = [1, 1]} : vector<8x128xf32> to vector<8x32xf32>
    %311 = math.tanh %310 : vector<8x32xf32>
    %312 = vector.extract_strided_slice %309 {offsets = [0, 0], sizes = [8, 32], strides = [1, 1]} : vector<8x96xf32> to vector<8x32xf32>
    %313 = vector.extract_strided_slice %309 {offsets = [0, 32], sizes = [8, 32], strides = [1, 1]} : vector<8x96xf32> to vector<8x32xf32>
    %314 = vector.extract_strided_slice %309 {offsets = [0, 64], sizes = [8, 32], strides = [1, 1]} : vector<8x96xf32> to vector<8x32xf32>
    %315 = arith.mulf %313, %211 : vector<8x32xf32>
    %316 = arith.mulf %312, %311 : vector<8x32xf32>
    %317 = arith.addf %315, %316 : vector<8x32xf32>
    %318 = math.tanh %317 : vector<8x32xf32>
    %319 = arith.mulf %314, %318 : vector<8x32xf32>
    %320 = arith.truncf %213 : vector<8x32xf32> to vector<8x32xbf16>
    %c0_111 = arith.constant 0 : index
    %c0_112 = arith.constant 0 : index
    %321 = vector.load %arg4[%c0_111, %c0_112] : memref<32x128xbf16, #tpu.memory_space<vmem>>, vector<32x128xbf16>
    %cst_113 = arith.constant dense<0.000000e+00> : vector<8x128xf32>
    %322 = tpu.matmul %320, %321, %cst_113 {dimension_numbers = #tpu.dot_dimension_numbers<[1], [0], [0], [1], [0, 0, 1, 1], [], []>} : vector<8x32xbf16>, vector<32x128xbf16>, vector<8x128xf32> -> vector<8x128xf32>
    %323 = arith.truncf %239 : vector<8x32xf32> to vector<8x32xbf16>
    %c0_114 = arith.constant 0 : index
    %c0_115 = arith.constant 0 : index
    %324 = vector.load %arg5[%c0_114, %c0_115] : memref<32x128xbf16, #tpu.memory_space<vmem>>, vector<32x128xbf16>
    %cst_116 = arith.constant dense<0.000000e+00> : vector<8x128xf32>
    %325 = tpu.matmul %323, %324, %cst_116 {dimension_numbers = #tpu.dot_dimension_numbers<[1], [0], [0], [1], [0, 0, 1, 1], [], []>} : vector<8x32xbf16>, vector<32x128xbf16>, vector<8x128xf32> -> vector<8x128xf32>
    %326 = arith.addf %322, %325 : vector<8x128xf32>
    %327 = arith.addf %326, %20 : vector<8x128xf32>
    %328 = vector.extract_strided_slice %327 {offsets = [0, 0], sizes = [8, 96], strides = [1, 1]} : vector<8x128xf32> to vector<8x96xf32>
    %cst_117 = arith.constant 5.000000e-01 : f32
    %329 = vector.broadcast %cst_117 : f32 to vector<8x96xf32>
    %330 = arith.mulf %329, %328 : vector<8x96xf32>
    %331 = math.tanh %330 : vector<8x96xf32>
    %cst_118 = arith.constant 1.000000e+00 : f32
    %332 = vector.broadcast %cst_118 : f32 to vector<8x96xf32>
    %333 = arith.addf %331, %332 : vector<8x96xf32>
    %cst_119 = arith.constant 5.000000e-01 : f32
    %334 = vector.broadcast %cst_119 : f32 to vector<8x96xf32>
    %335 = arith.mulf %334, %333 : vector<8x96xf32>
    %336 = vector.extract_strided_slice %327 {offsets = [0, 96], sizes = [8, 32], strides = [1, 1]} : vector<8x128xf32> to vector<8x32xf32>
    %337 = math.tanh %336 : vector<8x32xf32>
    %338 = vector.extract_strided_slice %335 {offsets = [0, 0], sizes = [8, 32], strides = [1, 1]} : vector<8x96xf32> to vector<8x32xf32>
    %339 = vector.extract_strided_slice %335 {offsets = [0, 32], sizes = [8, 32], strides = [1, 1]} : vector<8x96xf32> to vector<8x32xf32>
    %340 = vector.extract_strided_slice %335 {offsets = [0, 64], sizes = [8, 32], strides = [1, 1]} : vector<8x96xf32> to vector<8x32xf32>
    %341 = arith.mulf %339, %237 : vector<8x32xf32>
    %342 = arith.mulf %338, %337 : vector<8x32xf32>
    %343 = arith.addf %341, %342 : vector<8x32xf32>
    %344 = math.tanh %343 : vector<8x32xf32>
    %345 = arith.mulf %340, %344 : vector<8x32xf32>
    %346 = arith.truncf %239 : vector<8x32xf32> to vector<8x32xbf16>
    %c0_120 = arith.constant 0 : index
    %c0_121 = arith.constant 0 : index
    %347 = vector.load %arg16[%c0_120, %c0_121] : memref<32x512xbf16, #tpu.memory_space<vmem>>, vector<32x512xbf16>
    %cst_122 = arith.constant dense<0.000000e+00> : vector<8x512xf32>
    %348 = tpu.matmul %346, %347, %cst_122 {dimension_numbers = #tpu.dot_dimension_numbers<[1], [0], [0], [1], [0, 0, 1, 1], [], []>} : vector<8x32xbf16>, vector<32x512xbf16>, vector<8x512xf32> -> vector<8x512xf32>
    %349 = arith.truncf %265 : vector<8x128xf32> to vector<8x128xbf16>
    %c0_123 = arith.constant 0 : index
    %c0_124 = arith.constant 0 : index
    %350 = vector.load %arg17[%c0_123, %c0_124] : memref<128x512xbf16, #tpu.memory_space<vmem>>, vector<128x512xbf16>
    %cst_125 = arith.constant dense<0.000000e+00> : vector<8x512xf32>
    %351 = tpu.matmul %349, %350, %cst_125 {dimension_numbers = #tpu.dot_dimension_numbers<[1], [0], [0], [1], [0, 0, 1, 1], [], []>} : vector<8x128xbf16>, vector<128x512xbf16>, vector<8x512xf32> -> vector<8x512xf32>
    %352 = arith.addf %348, %351 : vector<8x512xf32>
    %353 = arith.addf %352, %23 : vector<8x512xf32>
    %354 = vector.extract_strided_slice %353 {offsets = [0, 0], sizes = [8, 384], strides = [1, 1]} : vector<8x512xf32> to vector<8x384xf32>
    %cst_126 = arith.constant 5.000000e-01 : f32
    %355 = vector.broadcast %cst_126 : f32 to vector<8x384xf32>
    %356 = arith.mulf %355, %354 : vector<8x384xf32>
    %357 = math.tanh %356 : vector<8x384xf32>
    %cst_127 = arith.constant 1.000000e+00 : f32
    %358 = vector.broadcast %cst_127 : f32 to vector<8x384xf32>
    %359 = arith.addf %357, %358 : vector<8x384xf32>
    %cst_128 = arith.constant 5.000000e-01 : f32
    %360 = vector.broadcast %cst_128 : f32 to vector<8x384xf32>
    %361 = arith.mulf %360, %359 : vector<8x384xf32>
    %362 = vector.extract_strided_slice %353 {offsets = [0, 384], sizes = [8, 128], strides = [1, 1]} : vector<8x512xf32> to vector<8x128xf32>
    %363 = math.tanh %362 : vector<8x128xf32>
    %364 = vector.extract_strided_slice %361 {offsets = [0, 0], sizes = [8, 128], strides = [1, 1]} : vector<8x384xf32> to vector<8x128xf32>
    %365 = vector.extract_strided_slice %361 {offsets = [0, 128], sizes = [8, 128], strides = [1, 1]} : vector<8x384xf32> to vector<8x128xf32>
    %366 = vector.extract_strided_slice %361 {offsets = [0, 256], sizes = [8, 128], strides = [1, 1]} : vector<8x384xf32> to vector<8x128xf32>
    %367 = arith.mulf %365, %263 : vector<8x128xf32>
    %368 = arith.mulf %364, %363 : vector<8x128xf32>
    %369 = arith.addf %367, %368 : vector<8x128xf32>
    %370 = math.tanh %369 : vector<8x128xf32>
    %371 = arith.mulf %366, %370 : vector<8x128xf32>
    %372 = arith.truncf %265 : vector<8x128xf32> to vector<8x128xbf16>
    %c0_129 = arith.constant 0 : index
    %c0_130 = arith.constant 0 : index
    %373 = vector.load %arg18[%c0_129, %c0_130] : memref<128x512xbf16, #tpu.memory_space<vmem>>, vector<128x512xbf16>
    %cst_131 = arith.constant dense<0.000000e+00> : vector<8x512xf32>
    %374 = tpu.matmul %372, %373, %cst_131 {dimension_numbers = #tpu.dot_dimension_numbers<[1], [0], [0], [1], [0, 0, 1, 1], [], []>} : vector<8x128xbf16>, vector<128x512xbf16>, vector<8x512xf32> -> vector<8x512xf32>
    %375 = arith.truncf %291 : vector<8x128xf32> to vector<8x128xbf16>
    %c0_132 = arith.constant 0 : index
    %c0_133 = arith.constant 0 : index
    %376 = vector.load %arg19[%c0_132, %c0_133] : memref<128x512xbf16, #tpu.memory_space<vmem>>, vector<128x512xbf16>
    %cst_134 = arith.constant dense<0.000000e+00> : vector<8x512xf32>
    %377 = tpu.matmul %375, %376, %cst_134 {dimension_numbers = #tpu.dot_dimension_numbers<[1], [0], [0], [1], [0, 0, 1, 1], [], []>} : vector<8x128xbf16>, vector<128x512xbf16>, vector<8x512xf32> -> vector<8x512xf32>
    %378 = arith.addf %374, %377 : vector<8x512xf32>
    %379 = arith.addf %378, %26 : vector<8x512xf32>
    %380 = vector.extract_strided_slice %379 {offsets = [0, 0], sizes = [8, 384], strides = [1, 1]} : vector<8x512xf32> to vector<8x384xf32>
    %cst_135 = arith.constant 5.000000e-01 : f32
    %381 = vector.broadcast %cst_135 : f32 to vector<8x384xf32>
    %382 = arith.mulf %381, %380 : vector<8x384xf32>
    %383 = math.tanh %382 : vector<8x384xf32>
    %cst_136 = arith.constant 1.000000e+00 : f32
    %384 = vector.broadcast %cst_136 : f32 to vector<8x384xf32>
    %385 = arith.addf %383, %384 : vector<8x384xf32>
    %cst_137 = arith.constant 5.000000e-01 : f32
    %386 = vector.broadcast %cst_137 : f32 to vector<8x384xf32>
    %387 = arith.mulf %386, %385 : vector<8x384xf32>
    %388 = vector.extract_strided_slice %379 {offsets = [0, 384], sizes = [8, 128], strides = [1, 1]} : vector<8x512xf32> to vector<8x128xf32>
    %389 = math.tanh %388 : vector<8x128xf32>
    %390 = vector.extract_strided_slice %387 {offsets = [0, 0], sizes = [8, 128], strides = [1, 1]} : vector<8x384xf32> to vector<8x128xf32>
    %391 = vector.extract_strided_slice %387 {offsets = [0, 128], sizes = [8, 128], strides = [1, 1]} : vector<8x384xf32> to vector<8x128xf32>
    %392 = vector.extract_strided_slice %387 {offsets = [0, 256], sizes = [8, 128], strides = [1, 1]} : vector<8x384xf32> to vector<8x128xf32>
    %393 = arith.mulf %391, %289 : vector<8x128xf32>
    %394 = arith.mulf %390, %389 : vector<8x128xf32>
    %395 = arith.addf %393, %394 : vector<8x128xf32>
    %396 = math.tanh %395 : vector<8x128xf32>
    %397 = arith.mulf %392, %396 : vector<8x128xf32>
    %398 = arith.truncf %397 : vector<8x128xf32> to vector<8x128xbf16>
    %c0_138 = arith.constant 0 : index
    %c0_139 = arith.constant 0 : index
    %399 = vector.load %arg20[%c0_138, %c0_139] : memref<128x256xbf16, #tpu.memory_space<vmem>>, vector<128x256xbf16>
    %cst_140 = arith.constant dense<0.000000e+00> : vector<8x256xf32>
    %400 = tpu.matmul %398, %399, %cst_140 {dimension_numbers = #tpu.dot_dimension_numbers<[1], [0], [0], [1], [0, 0, 1, 1], [], []>} : vector<8x128xbf16>, vector<128x256xbf16>, vector<8x256xf32> -> vector<8x256xf32>
    %401 = arith.addf %400, %29 : vector<8x256xf32>
    %c8 = arith.constant 8 : index
    %c0_141 = arith.constant 0 : index
    %402 = vector.load %arg15[%c8, %c0_141] : memref<64x256xf32, #tpu.memory_space<vmem>>, vector<8x256xf32>
    tpu.vector_store %arg15[%c8, %c0_141], %401 {strides = array<i32>} : memref<64x256xf32, #tpu.memory_space<vmem>>, vector<8x256xf32>,
    %403 = vector.extract_strided_slice %17 {offsets = [40, 0], sizes = [8, 128], strides = [1, 1]} : vector<64x128xf32> to vector<8x128xf32>
    %404 = arith.truncf %319 : vector<8x32xf32> to vector<8x32xbf16>
    %c0_142 = arith.constant 0 : index
    %c0_143 = arith.constant 0 : index
    %405 = vector.load %arg2[%c0_142, %c0_143] : memref<32x128xbf16, #tpu.memory_space<vmem>>, vector<32x128xbf16>
    %cst_144 = arith.constant dense<0.000000e+00> : vector<8x128xf32>
    %406 = tpu.matmul %404, %405, %cst_144 {dimension_numbers = #tpu.dot_dimension_numbers<[1], [0], [0], [1], [0, 0, 1, 1], [], []>} : vector<8x32xbf16>, vector<32x128xbf16>, vector<8x128xf32> -> vector<8x128xf32>
    %407 = arith.addf %403, %406 : vector<8x128xf32>
    %408 = vector.extract_strided_slice %407 {offsets = [0, 0], sizes = [8, 96], strides = [1, 1]} : vector<8x128xf32> to vector<8x96xf32>
    %cst_145 = arith.constant 5.000000e-01 : f32
    %409 = vector.broadcast %cst_145 : f32 to vector<8x96xf32>
    %410 = arith.mulf %409, %408 : vector<8x96xf32>
    %411 = math.tanh %410 : vector<8x96xf32>
    %cst_146 = arith.constant 1.000000e+00 : f32
    %412 = vector.broadcast %cst_146 : f32 to vector<8x96xf32>
    %413 = arith.addf %411, %412 : vector<8x96xf32>
    %cst_147 = arith.constant 5.000000e-01 : f32
    %414 = vector.broadcast %cst_147 : f32 to vector<8x96xf32>
    %415 = arith.mulf %414, %413 : vector<8x96xf32>
    %416 = vector.extract_strided_slice %407 {offsets = [0, 96], sizes = [8, 32], strides = [1, 1]} : vector<8x128xf32> to vector<8x32xf32>
    %417 = math.tanh %416 : vector<8x32xf32>
    %418 = vector.extract_strided_slice %415 {offsets = [0, 0], sizes = [8, 32], strides = [1, 1]} : vector<8x96xf32> to vector<8x32xf32>
    %419 = vector.extract_strided_slice %415 {offsets = [0, 32], sizes = [8, 32], strides = [1, 1]} : vector<8x96xf32> to vector<8x32xf32>
    %420 = vector.extract_strided_slice %415 {offsets = [0, 64], sizes = [8, 32], strides = [1, 1]} : vector<8x96xf32> to vector<8x32xf32>
    %421 = arith.mulf %419, %317 : vector<8x32xf32>
    %422 = arith.mulf %418, %417 : vector<8x32xf32>
    %423 = arith.addf %421, %422 : vector<8x32xf32>
    %424 = math.tanh %423 : vector<8x32xf32>
    %425 = arith.mulf %420, %424 : vector<8x32xf32>
    %426 = arith.truncf %319 : vector<8x32xf32> to vector<8x32xbf16>
    %c0_148 = arith.constant 0 : index
    %c0_149 = arith.constant 0 : index
    %427 = vector.load %arg4[%c0_148, %c0_149] : memref<32x128xbf16, #tpu.memory_space<vmem>>, vector<32x128xbf16>
    %cst_150 = arith.constant dense<0.000000e+00> : vector<8x128xf32>
    %428 = tpu.matmul %426, %427, %cst_150 {dimension_numbers = #tpu.dot_dimension_numbers<[1], [0], [0], [1], [0, 0, 1, 1], [], []>} : vector<8x32xbf16>, vector<32x128xbf16>, vector<8x128xf32> -> vector<8x128xf32>
    %429 = arith.truncf %345 : vector<8x32xf32> to vector<8x32xbf16>
    %c0_151 = arith.constant 0 : index
    %c0_152 = arith.constant 0 : index
    %430 = vector.load %arg5[%c0_151, %c0_152] : memref<32x128xbf16, #tpu.memory_space<vmem>>, vector<32x128xbf16>
    %cst_153 = arith.constant dense<0.000000e+00> : vector<8x128xf32>
    %431 = tpu.matmul %429, %430, %cst_153 {dimension_numbers = #tpu.dot_dimension_numbers<[1], [0], [0], [1], [0, 0, 1, 1], [], []>} : vector<8x32xbf16>, vector<32x128xbf16>, vector<8x128xf32> -> vector<8x128xf32>
    %432 = arith.addf %428, %431 : vector<8x128xf32>
    %433 = arith.addf %432, %20 : vector<8x128xf32>
    %434 = vector.extract_strided_slice %433 {offsets = [0, 0], sizes = [8, 96], strides = [1, 1]} : vector<8x128xf32> to vector<8x96xf32>
    %cst_154 = arith.constant 5.000000e-01 : f32
    %435 = vector.broadcast %cst_154 : f32 to vector<8x96xf32>
    %436 = arith.mulf %435, %434 : vector<8x96xf32>
    %437 = math.tanh %436 : vector<8x96xf32>
    %cst_155 = arith.constant 1.000000e+00 : f32
    %438 = vector.broadcast %cst_155 : f32 to vector<8x96xf32>
    %439 = arith.addf %437, %438 : vector<8x96xf32>
    %cst_156 = arith.constant 5.000000e-01 : f32
    %440 = vector.broadcast %cst_156 : f32 to vector<8x96xf32>
    %441 = arith.mulf %440, %439 : vector<8x96xf32>
    %442 = vector.extract_strided_slice %433 {offsets = [0, 96], sizes = [8, 32], strides = [1, 1]} : vector<8x128xf32> to vector<8x32xf32>
    %443 = math.tanh %442 : vector<8x32xf32>
    %444 = vector.extract_strided_slice %441 {offsets = [0, 0], sizes = [8, 32], strides = [1, 1]} : vector<8x96xf32> to vector<8x32xf32>
    %445 = vector.extract_strided_slice %441 {offsets = [0, 32], sizes = [8, 32], strides = [1, 1]} : vector<8x96xf32> to vector<8x32xf32>
    %446 = vector.extract_strided_slice %441 {offsets = [0, 64], sizes = [8, 32], strides = [1, 1]} : vector<8x96xf32> to vector<8x32xf32>
    %447 = arith.mulf %445, %343 : vector<8x32xf32>
    %448 = arith.mulf %444, %443 : vector<8x32xf32>
    %449 = arith.addf %447, %448 : vector<8x32xf32>
    %450 = math.tanh %449 : vector<8x32xf32>
    %451 = arith.mulf %446, %450 : vector<8x32xf32>
    %452 = arith.truncf %345 : vector<8x32xf32> to vector<8x32xbf16>
    %c0_157 = arith.constant 0 : index
    %c0_158 = arith.constant 0 : index
    %453 = vector.load %arg16[%c0_157, %c0_158] : memref<32x512xbf16, #tpu.memory_space<vmem>>, vector<32x512xbf16>
    %cst_159 = arith.constant dense<0.000000e+00> : vector<8x512xf32>
    %454 = tpu.matmul %452, %453, %cst_159 {dimension_numbers = #tpu.dot_dimension_numbers<[1], [0], [0], [1], [0, 0, 1, 1], [], []>} : vector<8x32xbf16>, vector<32x512xbf16>, vector<8x512xf32> -> vector<8x512xf32>
    %455 = arith.truncf %371 : vector<8x128xf32> to vector<8x128xbf16>
    %c0_160 = arith.constant 0 : index
    %c0_161 = arith.constant 0 : index
    %456 = vector.load %arg17[%c0_160, %c0_161] : memref<128x512xbf16, #tpu.memory_space<vmem>>, vector<128x512xbf16>
    %cst_162 = arith.constant dense<0.000000e+00> : vector<8x512xf32>
    %457 = tpu.matmul %455, %456, %cst_162 {dimension_numbers = #tpu.dot_dimension_numbers<[1], [0], [0], [1], [0, 0, 1, 1], [], []>} : vector<8x128xbf16>, vector<128x512xbf16>, vector<8x512xf32> -> vector<8x512xf32>
    %458 = arith.addf %454, %457 : vector<8x512xf32>
    %459 = arith.addf %458, %23 : vector<8x512xf32>
    %460 = vector.extract_strided_slice %459 {offsets = [0, 0], sizes = [8, 384], strides = [1, 1]} : vector<8x512xf32> to vector<8x384xf32>
    %cst_163 = arith.constant 5.000000e-01 : f32
    %461 = vector.broadcast %cst_163 : f32 to vector<8x384xf32>
    %462 = arith.mulf %461, %460 : vector<8x384xf32>
    %463 = math.tanh %462 : vector<8x384xf32>
    %cst_164 = arith.constant 1.000000e+00 : f32
    %464 = vector.broadcast %cst_164 : f32 to vector<8x384xf32>
    %465 = arith.addf %463, %464 : vector<8x384xf32>
    %cst_165 = arith.constant 5.000000e-01 : f32
    %466 = vector.broadcast %cst_165 : f32 to vector<8x384xf32>
    %467 = arith.mulf %466, %465 : vector<8x384xf32>
    %468 = vector.extract_strided_slice %459 {offsets = [0, 384], sizes = [8, 128], strides = [1, 1]} : vector<8x512xf32> to vector<8x128xf32>
    %469 = math.tanh %468 : vector<8x128xf32>
    %470 = vector.extract_strided_slice %467 {offsets = [0, 0], sizes = [8, 128], strides = [1, 1]} : vector<8x384xf32> to vector<8x128xf32>
    %471 = vector.extract_strided_slice %467 {offsets = [0, 128], sizes = [8, 128], strides = [1, 1]} : vector<8x384xf32> to vector<8x128xf32>
    %472 = vector.extract_strided_slice %467 {offsets = [0, 256], sizes = [8, 128], strides = [1, 1]} : vector<8x384xf32> to vector<8x128xf32>
    %473 = arith.mulf %471, %369 : vector<8x128xf32>
    %474 = arith.mulf %470, %469 : vector<8x128xf32>
    %475 = arith.addf %473, %474 : vector<8x128xf32>
    %476 = math.tanh %475 : vector<8x128xf32>
    %477 = arith.mulf %472, %476 : vector<8x128xf32>
    %478 = arith.truncf %371 : vector<8x128xf32> to vector<8x128xbf16>
    %c0_166 = arith.constant 0 : index
    %c0_167 = arith.constant 0 : index
    %479 = vector.load %arg18[%c0_166, %c0_167] : memref<128x512xbf16, #tpu.memory_space<vmem>>, vector<128x512xbf16>
    %cst_168 = arith.constant dense<0.000000e+00> : vector<8x512xf32>
    %480 = tpu.matmul %478, %479, %cst_168 {dimension_numbers = #tpu.dot_dimension_numbers<[1], [0], [0], [1], [0, 0, 1, 1], [], []>} : vector<8x128xbf16>, vector<128x512xbf16>, vector<8x512xf32> -> vector<8x512xf32>
    %481 = arith.truncf %397 : vector<8x128xf32> to vector<8x128xbf16>
    %c0_169 = arith.constant 0 : index
    %c0_170 = arith.constant 0 : index
    %482 = vector.load %arg19[%c0_169, %c0_170] : memref<128x512xbf16, #tpu.memory_space<vmem>>, vector<128x512xbf16>
    %cst_171 = arith.constant dense<0.000000e+00> : vector<8x512xf32>
    %483 = tpu.matmul %481, %482, %cst_171 {dimension_numbers = #tpu.dot_dimension_numbers<[1], [0], [0], [1], [0, 0, 1, 1], [], []>} : vector<8x128xbf16>, vector<128x512xbf16>, vector<8x512xf32> -> vector<8x512xf32>
    %484 = arith.addf %480, %483 : vector<8x512xf32>
    %485 = arith.addf %484, %26 : vector<8x512xf32>
    %486 = vector.extract_strided_slice %485 {offsets = [0, 0], sizes = [8, 384], strides = [1, 1]} : vector<8x512xf32> to vector<8x384xf32>
    %cst_172 = arith.constant 5.000000e-01 : f32
    %487 = vector.broadcast %cst_172 : f32 to vector<8x384xf32>
    %488 = arith.mulf %487, %486 : vector<8x384xf32>
    %489 = math.tanh %488 : vector<8x384xf32>
    %cst_173 = arith.constant 1.000000e+00 : f32
    %490 = vector.broadcast %cst_173 : f32 to vector<8x384xf32>
    %491 = arith.addf %489, %490 : vector<8x384xf32>
    %cst_174 = arith.constant 5.000000e-01 : f32
    %492 = vector.broadcast %cst_174 : f32 to vector<8x384xf32>
    %493 = arith.mulf %492, %491 : vector<8x384xf32>
    %494 = vector.extract_strided_slice %485 {offsets = [0, 384], sizes = [8, 128], strides = [1, 1]} : vector<8x512xf32> to vector<8x128xf32>
    %495 = math.tanh %494 : vector<8x128xf32>
    %496 = vector.extract_strided_slice %493 {offsets = [0, 0], sizes = [8, 128], strides = [1, 1]} : vector<8x384xf32> to vector<8x128xf32>
    %497 = vector.extract_strided_slice %493 {offsets = [0, 128], sizes = [8, 128], strides = [1, 1]} : vector<8x384xf32> to vector<8x128xf32>
    %498 = vector.extract_strided_slice %493 {offsets = [0, 256], sizes = [8, 128], strides = [1, 1]} : vector<8x384xf32> to vector<8x128xf32>
    %499 = arith.mulf %497, %395 : vector<8x128xf32>
    %500 = arith.mulf %496, %495 : vector<8x128xf32>
    %501 = arith.addf %499, %500 : vector<8x128xf32>
    %502 = math.tanh %501 : vector<8x128xf32>
    %503 = arith.mulf %498, %502 : vector<8x128xf32>
    %504 = arith.truncf %503 : vector<8x128xf32> to vector<8x128xbf16>
    %c0_175 = arith.constant 0 : index
    %c0_176 = arith.constant 0 : index
    %505 = vector.load %arg20[%c0_175, %c0_176] : memref<128x256xbf16, #tpu.memory_space<vmem>>, vector<128x256xbf16>
    %cst_177 = arith.constant dense<0.000000e+00> : vector<8x256xf32>
    %506 = tpu.matmul %504, %505, %cst_177 {dimension_numbers = #tpu.dot_dimension_numbers<[1], [0], [0], [1], [0, 0, 1, 1], [], []>} : vector<8x128xbf16>, vector<128x256xbf16>, vector<8x256xf32> -> vector<8x256xf32>
    %507 = arith.addf %506, %29 : vector<8x256xf32>
    %c16 = arith.constant 16 : index
    %c0_178 = arith.constant 0 : index
    %508 = vector.load %arg15[%c16, %c0_178] : memref<64x256xf32, #tpu.memory_space<vmem>>, vector<8x256xf32>
    tpu.vector_store %arg15[%c16, %c0_178], %507 {strides = array<i32>} : memref<64x256xf32, #tpu.memory_space<vmem>>, vector<8x256xf32>,
    %509 = vector.extract_strided_slice %17 {offsets = [48, 0], sizes = [8, 128], strides = [1, 1]} : vector<64x128xf32> to vector<8x128xf32>
    %510 = arith.truncf %425 : vector<8x32xf32> to vector<8x32xbf16>
    %c0_179 = arith.constant 0 : index
    %c0_180 = arith.constant 0 : index
    %511 = vector.load %arg2[%c0_179, %c0_180] : memref<32x128xbf16, #tpu.memory_space<vmem>>, vector<32x128xbf16>
    %cst_181 = arith.constant dense<0.000000e+00> : vector<8x128xf32>
    %512 = tpu.matmul %510, %511, %cst_181 {dimension_numbers = #tpu.dot_dimension_numbers<[1], [0], [0], [1], [0, 0, 1, 1], [], []>} : vector<8x32xbf16>, vector<32x128xbf16>, vector<8x128xf32> -> vector<8x128xf32>
    %513 = arith.addf %509, %512 : vector<8x128xf32>
    %514 = vector.extract_strided_slice %513 {offsets = [0, 0], sizes = [8, 96], strides = [1, 1]} : vector<8x128xf32> to vector<8x96xf32>
    %cst_182 = arith.constant 5.000000e-01 : f32
    %515 = vector.broadcast %cst_182 : f32 to vector<8x96xf32>
    %516 = arith.mulf %515, %514 : vector<8x96xf32>
    %517 = math.tanh %516 : vector<8x96xf32>
    %cst_183 = arith.constant 1.000000e+00 : f32
    %518 = vector.broadcast %cst_183 : f32 to vector<8x96xf32>
    %519 = arith.addf %517, %518 : vector<8x96xf32>
    %cst_184 = arith.constant 5.000000e-01 : f32
    %520 = vector.broadcast %cst_184 : f32 to vector<8x96xf32>
    %521 = arith.mulf %520, %519 : vector<8x96xf32>
    %522 = vector.extract_strided_slice %513 {offsets = [0, 96], sizes = [8, 32], strides = [1, 1]} : vector<8x128xf32> to vector<8x32xf32>
    %523 = math.tanh %522 : vector<8x32xf32>
    %524 = vector.extract_strided_slice %521 {offsets = [0, 0], sizes = [8, 32], strides = [1, 1]} : vector<8x96xf32> to vector<8x32xf32>
    %525 = vector.extract_strided_slice %521 {offsets = [0, 32], sizes = [8, 32], strides = [1, 1]} : vector<8x96xf32> to vector<8x32xf32>
    %526 = vector.extract_strided_slice %521 {offsets = [0, 64], sizes = [8, 32], strides = [1, 1]} : vector<8x96xf32> to vector<8x32xf32>
    %527 = arith.mulf %525, %423 : vector<8x32xf32>
    %528 = arith.mulf %524, %523 : vector<8x32xf32>
    %529 = arith.addf %527, %528 : vector<8x32xf32>
    %530 = math.tanh %529 : vector<8x32xf32>
    %531 = arith.mulf %526, %530 : vector<8x32xf32>
    %532 = arith.truncf %425 : vector<8x32xf32> to vector<8x32xbf16>
    %c0_185 = arith.constant 0 : index
    %c0_186 = arith.constant 0 : index
    %533 = vector.load %arg4[%c0_185, %c0_186] : memref<32x128xbf16, #tpu.memory_space<vmem>>, vector<32x128xbf16>
    %cst_187 = arith.constant dense<0.000000e+00> : vector<8x128xf32>
    %534 = tpu.matmul %532, %533, %cst_187 {dimension_numbers = #tpu.dot_dimension_numbers<[1], [0], [0], [1], [0, 0, 1, 1], [], []>} : vector<8x32xbf16>, vector<32x128xbf16>, vector<8x128xf32> -> vector<8x128xf32>
    %535 = arith.truncf %451 : vector<8x32xf32> to vector<8x32xbf16>
    %c0_188 = arith.constant 0 : index
    %c0_189 = arith.constant 0 : index
    %536 = vector.load %arg5[%c0_188, %c0_189] : memref<32x128xbf16, #tpu.memory_space<vmem>>, vector<32x128xbf16>
    %cst_190 = arith.constant dense<0.000000e+00> : vector<8x128xf32>
    %537 = tpu.matmul %535, %536, %cst_190 {dimension_numbers = #tpu.dot_dimension_numbers<[1], [0], [0], [1], [0, 0, 1, 1], [], []>} : vector<8x32xbf16>, vector<32x128xbf16>, vector<8x128xf32> -> vector<8x128xf32>
    %538 = arith.addf %534, %537 : vector<8x128xf32>
    %539 = arith.addf %538, %20 : vector<8x128xf32>
    %540 = vector.extract_strided_slice %539 {offsets = [0, 0], sizes = [8, 96], strides = [1, 1]} : vector<8x128xf32> to vector<8x96xf32>
    %cst_191 = arith.constant 5.000000e-01 : f32
    %541 = vector.broadcast %cst_191 : f32 to vector<8x96xf32>
    %542 = arith.mulf %541, %540 : vector<8x96xf32>
    %543 = math.tanh %542 : vector<8x96xf32>
    %cst_192 = arith.constant 1.000000e+00 : f32
    %544 = vector.broadcast %cst_192 : f32 to vector<8x96xf32>
    %545 = arith.addf %543, %544 : vector<8x96xf32>
    %cst_193 = arith.constant 5.000000e-01 : f32
    %546 = vector.broadcast %cst_193 : f32 to vector<8x96xf32>
    %547 = arith.mulf %546, %545 : vector<8x96xf32>
    %548 = vector.extract_strided_slice %539 {offsets = [0, 96], sizes = [8, 32], strides = [1, 1]} : vector<8x128xf32> to vector<8x32xf32>
    %549 = math.tanh %548 : vector<8x32xf32>
    %550 = vector.extract_strided_slice %547 {offsets = [0, 0], sizes = [8, 32], strides = [1, 1]} : vector<8x96xf32> to vector<8x32xf32>
    %551 = vector.extract_strided_slice %547 {offsets = [0, 32], sizes = [8, 32], strides = [1, 1]} : vector<8x96xf32> to vector<8x32xf32>
    %552 = vector.extract_strided_slice %547 {offsets = [0, 64], sizes = [8, 32], strides = [1, 1]} : vector<8x96xf32> to vector<8x32xf32>
    %553 = arith.mulf %551, %449 : vector<8x32xf32>
    %554 = arith.mulf %550, %549 : vector<8x32xf32>
    %555 = arith.addf %553, %554 : vector<8x32xf32>
    %556 = math.tanh %555 : vector<8x32xf32>
    %557 = arith.mulf %552, %556 : vector<8x32xf32>
    %558 = arith.truncf %451 : vector<8x32xf32> to vector<8x32xbf16>
    %c0_194 = arith.constant 0 : index
    %c0_195 = arith.constant 0 : index
    %559 = vector.load %arg16[%c0_194, %c0_195] : memref<32x512xbf16, #tpu.memory_space<vmem>>, vector<32x512xbf16>
    %cst_196 = arith.constant dense<0.000000e+00> : vector<8x512xf32>
    %560 = tpu.matmul %558, %559, %cst_196 {dimension_numbers = #tpu.dot_dimension_numbers<[1], [0], [0], [1], [0, 0, 1, 1], [], []>} : vector<8x32xbf16>, vector<32x512xbf16>, vector<8x512xf32> -> vector<8x512xf32>
    %561 = arith.truncf %477 : vector<8x128xf32> to vector<8x128xbf16>
    %c0_197 = arith.constant 0 : index
    %c0_198 = arith.constant 0 : index
    %562 = vector.load %arg17[%c0_197, %c0_198] : memref<128x512xbf16, #tpu.memory_space<vmem>>, vector<128x512xbf16>
    %cst_199 = arith.constant dense<0.000000e+00> : vector<8x512xf32>
    %563 = tpu.matmul %561, %562, %cst_199 {dimension_numbers = #tpu.dot_dimension_numbers<[1], [0], [0], [1], [0, 0, 1, 1], [], []>} : vector<8x128xbf16>, vector<128x512xbf16>, vector<8x512xf32> -> vector<8x512xf32>
    %564 = arith.addf %560, %563 : vector<8x512xf32>
    %565 = arith.addf %564, %23 : vector<8x512xf32>
    %566 = vector.extract_strided_slice %565 {offsets = [0, 0], sizes = [8, 384], strides = [1, 1]} : vector<8x512xf32> to vector<8x384xf32>
    %cst_200 = arith.constant 5.000000e-01 : f32
    %567 = vector.broadcast %cst_200 : f32 to vector<8x384xf32>
    %568 = arith.mulf %567, %566 : vector<8x384xf32>
    %569 = math.tanh %568 : vector<8x384xf32>
    %cst_201 = arith.constant 1.000000e+00 : f32
    %570 = vector.broadcast %cst_201 : f32 to vector<8x384xf32>
    %571 = arith.addf %569, %570 : vector<8x384xf32>
    %cst_202 = arith.constant 5.000000e-01 : f32
    %572 = vector.broadcast %cst_202 : f32 to vector<8x384xf32>
    %573 = arith.mulf %572, %571 : vector<8x384xf32>
    %574 = vector.extract_strided_slice %565 {offsets = [0, 384], sizes = [8, 128], strides = [1, 1]} : vector<8x512xf32> to vector<8x128xf32>
    %575 = math.tanh %574 : vector<8x128xf32>
    %576 = vector.extract_strided_slice %573 {offsets = [0, 0], sizes = [8, 128], strides = [1, 1]} : vector<8x384xf32> to vector<8x128xf32>
    %577 = vector.extract_strided_slice %573 {offsets = [0, 128], sizes = [8, 128], strides = [1, 1]} : vector<8x384xf32> to vector<8x128xf32>
    %578 = vector.extract_strided_slice %573 {offsets = [0, 256], sizes = [8, 128], strides = [1, 1]} : vector<8x384xf32> to vector<8x128xf32>
    %579 = arith.mulf %577, %475 : vector<8x128xf32>
    %580 = arith.mulf %576, %575 : vector<8x128xf32>
    %581 = arith.addf %579, %580 : vector<8x128xf32>
    %582 = math.tanh %581 : vector<8x128xf32>
    %583 = arith.mulf %578, %582 : vector<8x128xf32>
    %584 = arith.truncf %477 : vector<8x128xf32> to vector<8x128xbf16>
    %c0_203 = arith.constant 0 : index
    %c0_204 = arith.constant 0 : index
    %585 = vector.load %arg18[%c0_203, %c0_204] : memref<128x512xbf16, #tpu.memory_space<vmem>>, vector<128x512xbf16>
    %cst_205 = arith.constant dense<0.000000e+00> : vector<8x512xf32>
    %586 = tpu.matmul %584, %585, %cst_205 {dimension_numbers = #tpu.dot_dimension_numbers<[1], [0], [0], [1], [0, 0, 1, 1], [], []>} : vector<8x128xbf16>, vector<128x512xbf16>, vector<8x512xf32> -> vector<8x512xf32>
    %587 = arith.truncf %503 : vector<8x128xf32> to vector<8x128xbf16>
    %c0_206 = arith.constant 0 : index
    %c0_207 = arith.constant 0 : index
    %588 = vector.load %arg19[%c0_206, %c0_207] : memref<128x512xbf16, #tpu.memory_space<vmem>>, vector<128x512xbf16>
    %cst_208 = arith.constant dense<0.000000e+00> : vector<8x512xf32>
    %589 = tpu.matmul %587, %588, %cst_208 {dimension_numbers = #tpu.dot_dimension_numbers<[1], [0], [0], [1], [0, 0, 1, 1], [], []>} : vector<8x128xbf16>, vector<128x512xbf16>, vector<8x512xf32> -> vector<8x512xf32>
    %590 = arith.addf %586, %589 : vector<8x512xf32>
    %591 = arith.addf %590, %26 : vector<8x512xf32>
    %592 = vector.extract_strided_slice %591 {offsets = [0, 0], sizes = [8, 384], strides = [1, 1]} : vector<8x512xf32> to vector<8x384xf32>
    %cst_209 = arith.constant 5.000000e-01 : f32
    %593 = vector.broadcast %cst_209 : f32 to vector<8x384xf32>
    %594 = arith.mulf %593, %592 : vector<8x384xf32>
    %595 = math.tanh %594 : vector<8x384xf32>
    %cst_210 = arith.constant 1.000000e+00 : f32
    %596 = vector.broadcast %cst_210 : f32 to vector<8x384xf32>
    %597 = arith.addf %595, %596 : vector<8x384xf32>
    %cst_211 = arith.constant 5.000000e-01 : f32
    %598 = vector.broadcast %cst_211 : f32 to vector<8x384xf32>
    %599 = arith.mulf %598, %597 : vector<8x384xf32>
    %600 = vector.extract_strided_slice %591 {offsets = [0, 384], sizes = [8, 128], strides = [1, 1]} : vector<8x512xf32> to vector<8x128xf32>
    %601 = math.tanh %600 : vector<8x128xf32>
    %602 = vector.extract_strided_slice %599 {offsets = [0, 0], sizes = [8, 128], strides = [1, 1]} : vector<8x384xf32> to vector<8x128xf32>
    %603 = vector.extract_strided_slice %599 {offsets = [0, 128], sizes = [8, 128], strides = [1, 1]} : vector<8x384xf32> to vector<8x128xf32>
    %604 = vector.extract_strided_slice %599 {offsets = [0, 256], sizes = [8, 128], strides = [1, 1]} : vector<8x384xf32> to vector<8x128xf32>
    %605 = arith.mulf %603, %501 : vector<8x128xf32>
    %606 = arith.mulf %602, %601 : vector<8x128xf32>
    %607 = arith.addf %605, %606 : vector<8x128xf32>
    %608 = math.tanh %607 : vector<8x128xf32>
    %609 = arith.mulf %604, %608 : vector<8x128xf32>
    %610 = arith.truncf %609 : vector<8x128xf32> to vector<8x128xbf16>
    %c0_212 = arith.constant 0 : index
    %c0_213 = arith.constant 0 : index
    %611 = vector.load %arg20[%c0_212, %c0_213] : memref<128x256xbf16, #tpu.memory_space<vmem>>, vector<128x256xbf16>
    %cst_214 = arith.constant dense<0.000000e+00> : vector<8x256xf32>
    %612 = tpu.matmul %610, %611, %cst_214 {dimension_numbers = #tpu.dot_dimension_numbers<[1], [0], [0], [1], [0, 0, 1, 1], [], []>} : vector<8x128xbf16>, vector<128x256xbf16>, vector<8x256xf32> -> vector<8x256xf32>
    %613 = arith.addf %612, %29 : vector<8x256xf32>
    %c24 = arith.constant 24 : index
    %c0_215 = arith.constant 0 : index
    %614 = vector.load %arg15[%c24, %c0_215] : memref<64x256xf32, #tpu.memory_space<vmem>>, vector<8x256xf32>
    tpu.vector_store %arg15[%c24, %c0_215], %613 {strides = array<i32>} : memref<64x256xf32, #tpu.memory_space<vmem>>, vector<8x256xf32>,
    %615 = vector.extract_strided_slice %17 {offsets = [56, 0], sizes = [8, 128], strides = [1, 1]} : vector<64x128xf32> to vector<8x128xf32>
    %616 = arith.truncf %531 : vector<8x32xf32> to vector<8x32xbf16>
    %c0_216 = arith.constant 0 : index
    %c0_217 = arith.constant 0 : index
    %617 = vector.load %arg2[%c0_216, %c0_217] : memref<32x128xbf16, #tpu.memory_space<vmem>>, vector<32x128xbf16>
    %cst_218 = arith.constant dense<0.000000e+00> : vector<8x128xf32>
    %618 = tpu.matmul %616, %617, %cst_218 {dimension_numbers = #tpu.dot_dimension_numbers<[1], [0], [0], [1], [0, 0, 1, 1], [], []>} : vector<8x32xbf16>, vector<32x128xbf16>, vector<8x128xf32> -> vector<8x128xf32>
    %619 = arith.addf %615, %618 : vector<8x128xf32>
    %620 = vector.extract_strided_slice %619 {offsets = [0, 0], sizes = [8, 96], strides = [1, 1]} : vector<8x128xf32> to vector<8x96xf32>
    %cst_219 = arith.constant 5.000000e-01 : f32
    %621 = vector.broadcast %cst_219 : f32 to vector<8x96xf32>
    %622 = arith.mulf %621, %620 : vector<8x96xf32>
    %623 = math.tanh %622 : vector<8x96xf32>
    %cst_220 = arith.constant 1.000000e+00 : f32
    %624 = vector.broadcast %cst_220 : f32 to vector<8x96xf32>
    %625 = arith.addf %623, %624 : vector<8x96xf32>
    %cst_221 = arith.constant 5.000000e-01 : f32
    %626 = vector.broadcast %cst_221 : f32 to vector<8x96xf32>
    %627 = arith.mulf %626, %625 : vector<8x96xf32>
    %628 = vector.extract_strided_slice %619 {offsets = [0, 96], sizes = [8, 32], strides = [1, 1]} : vector<8x128xf32> to vector<8x32xf32>
    %629 = math.tanh %628 : vector<8x32xf32>
    %630 = vector.extract_strided_slice %627 {offsets = [0, 0], sizes = [8, 32], strides = [1, 1]} : vector<8x96xf32> to vector<8x32xf32>
    %631 = vector.extract_strided_slice %627 {offsets = [0, 32], sizes = [8, 32], strides = [1, 1]} : vector<8x96xf32> to vector<8x32xf32>
    %632 = vector.extract_strided_slice %627 {offsets = [0, 64], sizes = [8, 32], strides = [1, 1]} : vector<8x96xf32> to vector<8x32xf32>
    %633 = arith.mulf %631, %529 : vector<8x32xf32>
    %634 = arith.mulf %630, %629 : vector<8x32xf32>
    %635 = arith.addf %633, %634 : vector<8x32xf32>
    %636 = math.tanh %635 : vector<8x32xf32>
    %637 = arith.mulf %632, %636 : vector<8x32xf32>
    %638 = arith.truncf %531 : vector<8x32xf32> to vector<8x32xbf16>
    %c0_222 = arith.constant 0 : index
    %c0_223 = arith.constant 0 : index
    %639 = vector.load %arg4[%c0_222, %c0_223] : memref<32x128xbf16, #tpu.memory_space<vmem>>, vector<32x128xbf16>
    %cst_224 = arith.constant dense<0.000000e+00> : vector<8x128xf32>
    %640 = tpu.matmul %638, %639, %cst_224 {dimension_numbers = #tpu.dot_dimension_numbers<[1], [0], [0], [1], [0, 0, 1, 1], [], []>} : vector<8x32xbf16>, vector<32x128xbf16>, vector<8x128xf32> -> vector<8x128xf32>
    %641 = arith.truncf %557 : vector<8x32xf32> to vector<8x32xbf16>
    %c0_225 = arith.constant 0 : index
    %c0_226 = arith.constant 0 : index
    %642 = vector.load %arg5[%c0_225, %c0_226] : memref<32x128xbf16, #tpu.memory_space<vmem>>, vector<32x128xbf16>
    %cst_227 = arith.constant dense<0.000000e+00> : vector<8x128xf32>
    %643 = tpu.matmul %641, %642, %cst_227 {dimension_numbers = #tpu.dot_dimension_numbers<[1], [0], [0], [1], [0, 0, 1, 1], [], []>} : vector<8x32xbf16>, vector<32x128xbf16>, vector<8x128xf32> -> vector<8x128xf32>
    %644 = arith.addf %640, %643 : vector<8x128xf32>
    %645 = arith.addf %644, %20 : vector<8x128xf32>
    %646 = vector.extract_strided_slice %645 {offsets = [0, 0], sizes = [8, 96], strides = [1, 1]} : vector<8x128xf32> to vector<8x96xf32>
    %cst_228 = arith.constant 5.000000e-01 : f32
    %647 = vector.broadcast %cst_228 : f32 to vector<8x96xf32>
    %648 = arith.mulf %647, %646 : vector<8x96xf32>
    %649 = math.tanh %648 : vector<8x96xf32>
    %cst_229 = arith.constant 1.000000e+00 : f32
    %650 = vector.broadcast %cst_229 : f32 to vector<8x96xf32>
    %651 = arith.addf %649, %650 : vector<8x96xf32>
    %cst_230 = arith.constant 5.000000e-01 : f32
    %652 = vector.broadcast %cst_230 : f32 to vector<8x96xf32>
    %653 = arith.mulf %652, %651 : vector<8x96xf32>
    %654 = vector.extract_strided_slice %645 {offsets = [0, 96], sizes = [8, 32], strides = [1, 1]} : vector<8x128xf32> to vector<8x32xf32>
    %655 = math.tanh %654 : vector<8x32xf32>
    %656 = vector.extract_strided_slice %653 {offsets = [0, 0], sizes = [8, 32], strides = [1, 1]} : vector<8x96xf32> to vector<8x32xf32>
    %657 = vector.extract_strided_slice %653 {offsets = [0, 32], sizes = [8, 32], strides = [1, 1]} : vector<8x96xf32> to vector<8x32xf32>
    %658 = vector.extract_strided_slice %653 {offsets = [0, 64], sizes = [8, 32], strides = [1, 1]} : vector<8x96xf32> to vector<8x32xf32>
    %659 = arith.mulf %657, %555 : vector<8x32xf32>
    %660 = arith.mulf %656, %655 : vector<8x32xf32>
    %661 = arith.addf %659, %660 : vector<8x32xf32>
    %662 = math.tanh %661 : vector<8x32xf32>
    %663 = arith.mulf %658, %662 : vector<8x32xf32>
    %664 = arith.truncf %557 : vector<8x32xf32> to vector<8x32xbf16>
    %c0_231 = arith.constant 0 : index
    %c0_232 = arith.constant 0 : index
    %665 = vector.load %arg16[%c0_231, %c0_232] : memref<32x512xbf16, #tpu.memory_space<vmem>>, vector<32x512xbf16>
    %cst_233 = arith.constant dense<0.000000e+00> : vector<8x512xf32>
    %666 = tpu.matmul %664, %665, %cst_233 {dimension_numbers = #tpu.dot_dimension_numbers<[1], [0], [0], [1], [0, 0, 1, 1], [], []>} : vector<8x32xbf16>, vector<32x512xbf16>, vector<8x512xf32> -> vector<8x512xf32>
    %667 = arith.truncf %583 : vector<8x128xf32> to vector<8x128xbf16>
    %c0_234 = arith.constant 0 : index
    %c0_235 = arith.constant 0 : index
    %668 = vector.load %arg17[%c0_234, %c0_235] : memref<128x512xbf16, #tpu.memory_space<vmem>>, vector<128x512xbf16>
    %cst_236 = arith.constant dense<0.000000e+00> : vector<8x512xf32>
    %669 = tpu.matmul %667, %668, %cst_236 {dimension_numbers = #tpu.dot_dimension_numbers<[1], [0], [0], [1], [0, 0, 1, 1], [], []>} : vector<8x128xbf16>, vector<128x512xbf16>, vector<8x512xf32> -> vector<8x512xf32>
    %670 = arith.addf %666, %669 : vector<8x512xf32>
    %671 = arith.addf %670, %23 : vector<8x512xf32>
    %672 = vector.extract_strided_slice %671 {offsets = [0, 0], sizes = [8, 384], strides = [1, 1]} : vector<8x512xf32> to vector<8x384xf32>
    %cst_237 = arith.constant 5.000000e-01 : f32
    %673 = vector.broadcast %cst_237 : f32 to vector<8x384xf32>
    %674 = arith.mulf %673, %672 : vector<8x384xf32>
    %675 = math.tanh %674 : vector<8x384xf32>
    %cst_238 = arith.constant 1.000000e+00 : f32
    %676 = vector.broadcast %cst_238 : f32 to vector<8x384xf32>
    %677 = arith.addf %675, %676 : vector<8x384xf32>
    %cst_239 = arith.constant 5.000000e-01 : f32
    %678 = vector.broadcast %cst_239 : f32 to vector<8x384xf32>
    %679 = arith.mulf %678, %677 : vector<8x384xf32>
    %680 = vector.extract_strided_slice %671 {offsets = [0, 384], sizes = [8, 128], strides = [1, 1]} : vector<8x512xf32> to vector<8x128xf32>
    %681 = math.tanh %680 : vector<8x128xf32>
    %682 = vector.extract_strided_slice %679 {offsets = [0, 0], sizes = [8, 128], strides = [1, 1]} : vector<8x384xf32> to vector<8x128xf32>
    %683 = vector.extract_strided_slice %679 {offsets = [0, 128], sizes = [8, 128], strides = [1, 1]} : vector<8x384xf32> to vector<8x128xf32>
    %684 = vector.extract_strided_slice %679 {offsets = [0, 256], sizes = [8, 128], strides = [1, 1]} : vector<8x384xf32> to vector<8x128xf32>
    %685 = arith.mulf %683, %581 : vector<8x128xf32>
    %686 = arith.mulf %682, %681 : vector<8x128xf32>
    %687 = arith.addf %685, %686 : vector<8x128xf32>
    %688 = math.tanh %687 : vector<8x128xf32>
    %689 = arith.mulf %684, %688 : vector<8x128xf32>
    %690 = arith.truncf %583 : vector<8x128xf32> to vector<8x128xbf16>
    %c0_240 = arith.constant 0 : index
    %c0_241 = arith.constant 0 : index
    %691 = vector.load %arg18[%c0_240, %c0_241] : memref<128x512xbf16, #tpu.memory_space<vmem>>, vector<128x512xbf16>
    %cst_242 = arith.constant dense<0.000000e+00> : vector<8x512xf32>
    %692 = tpu.matmul %690, %691, %cst_242 {dimension_numbers = #tpu.dot_dimension_numbers<[1], [0], [0], [1], [0, 0, 1, 1], [], []>} : vector<8x128xbf16>, vector<128x512xbf16>, vector<8x512xf32> -> vector<8x512xf32>
    %693 = arith.truncf %609 : vector<8x128xf32> to vector<8x128xbf16>
    %c0_243 = arith.constant 0 : index
    %c0_244 = arith.constant 0 : index
    %694 = vector.load %arg19[%c0_243, %c0_244] : memref<128x512xbf16, #tpu.memory_space<vmem>>, vector<128x512xbf16>
    %cst_245 = arith.constant dense<0.000000e+00> : vector<8x512xf32>
    %695 = tpu.matmul %693, %694, %cst_245 {dimension_numbers = #tpu.dot_dimension_numbers<[1], [0], [0], [1], [0, 0, 1, 1], [], []>} : vector<8x128xbf16>, vector<128x512xbf16>, vector<8x512xf32> -> vector<8x512xf32>
    %696 = arith.addf %692, %695 : vector<8x512xf32>
    %697 = arith.addf %696, %26 : vector<8x512xf32>
    %698 = vector.extract_strided_slice %697 {offsets = [0, 0], sizes = [8, 384], strides = [1, 1]} : vector<8x512xf32> to vector<8x384xf32>
    %cst_246 = arith.constant 5.000000e-01 : f32
    %699 = vector.broadcast %cst_246 : f32 to vector<8x384xf32>
    %700 = arith.mulf %699, %698 : vector<8x384xf32>
    %701 = math.tanh %700 : vector<8x384xf32>
    %cst_247 = arith.constant 1.000000e+00 : f32
    %702 = vector.broadcast %cst_247 : f32 to vector<8x384xf32>
    %703 = arith.addf %701, %702 : vector<8x384xf32>
    %cst_248 = arith.constant 5.000000e-01 : f32
    %704 = vector.broadcast %cst_248 : f32 to vector<8x384xf32>
    %705 = arith.mulf %704, %703 : vector<8x384xf32>
    %706 = vector.extract_strided_slice %697 {offsets = [0, 384], sizes = [8, 128], strides = [1, 1]} : vector<8x512xf32> to vector<8x128xf32>
    %707 = math.tanh %706 : vector<8x128xf32>
    %708 = vector.extract_strided_slice %705 {offsets = [0, 0], sizes = [8, 128], strides = [1, 1]} : vector<8x384xf32> to vector<8x128xf32>
    %709 = vector.extract_strided_slice %705 {offsets = [0, 128], sizes = [8, 128], strides = [1, 1]} : vector<8x384xf32> to vector<8x128xf32>
    %710 = vector.extract_strided_slice %705 {offsets = [0, 256], sizes = [8, 128], strides = [1, 1]} : vector<8x384xf32> to vector<8x128xf32>
    %711 = arith.mulf %709, %607 : vector<8x128xf32>
    %712 = arith.mulf %708, %707 : vector<8x128xf32>
    %713 = arith.addf %711, %712 : vector<8x128xf32>
    %714 = math.tanh %713 : vector<8x128xf32>
    %715 = arith.mulf %710, %714 : vector<8x128xf32>
    %716 = arith.truncf %715 : vector<8x128xf32> to vector<8x128xbf16>
    %c0_249 = arith.constant 0 : index
    %c0_250 = arith.constant 0 : index
    %717 = vector.load %arg20[%c0_249, %c0_250] : memref<128x256xbf16, #tpu.memory_space<vmem>>, vector<128x256xbf16>
    %cst_251 = arith.constant dense<0.000000e+00> : vector<8x256xf32>
    %718 = tpu.matmul %716, %717, %cst_251 {dimension_numbers = #tpu.dot_dimension_numbers<[1], [0], [0], [1], [0, 0, 1, 1], [], []>} : vector<8x128xbf16>, vector<128x256xbf16>, vector<8x256xf32> -> vector<8x256xf32>
    %719 = arith.addf %718, %29 : vector<8x256xf32>
    %c32 = arith.constant 32 : index
    %c0_252 = arith.constant 0 : index
    %720 = vector.load %arg15[%c32, %c0_252] : memref<64x256xf32, #tpu.memory_space<vmem>>, vector<8x256xf32>
    tpu.vector_store %arg15[%c32, %c0_252], %719 {strides = array<i32>} : memref<64x256xf32, #tpu.memory_space<vmem>>, vector<8x256xf32>,
    %721 = arith.truncf %637 : vector<8x32xf32> to vector<8x32xbf16>
    %c0_253 = arith.constant 0 : index
    %c0_254 = arith.constant 0 : index
    %722 = vector.load %arg4[%c0_253, %c0_254] : memref<32x128xbf16, #tpu.memory_space<vmem>>, vector<32x128xbf16>
    %cst_255 = arith.constant dense<0.000000e+00> : vector<8x128xf32>
    %723 = tpu.matmul %721, %722, %cst_255 {dimension_numbers = #tpu.dot_dimension_numbers<[1], [0], [0], [1], [0, 0, 1, 1], [], []>} : vector<8x32xbf16>, vector<32x128xbf16>, vector<8x128xf32> -> vector<8x128xf32>
    %724 = arith.truncf %663 : vector<8x32xf32> to vector<8x32xbf16>
    %c0_256 = arith.constant 0 : index
    %c0_257 = arith.constant 0 : index
    %725 = vector.load %arg5[%c0_256, %c0_257] : memref<32x128xbf16, #tpu.memory_space<vmem>>, vector<32x128xbf16>
    %cst_258 = arith.constant dense<0.000000e+00> : vector<8x128xf32>
    %726 = tpu.matmul %724, %725, %cst_258 {dimension_numbers = #tpu.dot_dimension_numbers<[1], [0], [0], [1], [0, 0, 1, 1], [], []>} : vector<8x32xbf16>, vector<32x128xbf16>, vector<8x128xf32> -> vector<8x128xf32>
    %727 = arith.addf %723, %726 : vector<8x128xf32>
    %728 = arith.addf %727, %20 : vector<8x128xf32>
    %729 = vector.extract_strided_slice %728 {offsets = [0, 0], sizes = [8, 96], strides = [1, 1]} : vector<8x128xf32> to vector<8x96xf32>
    %cst_259 = arith.constant 5.000000e-01 : f32
    %730 = vector.broadcast %cst_259 : f32 to vector<8x96xf32>
    %731 = arith.mulf %730, %729 : vector<8x96xf32>
    %732 = math.tanh %731 : vector<8x96xf32>
    %cst_260 = arith.constant 1.000000e+00 : f32
    %733 = vector.broadcast %cst_260 : f32 to vector<8x96xf32>
    %734 = arith.addf %732, %733 : vector<8x96xf32>
    %cst_261 = arith.constant 5.000000e-01 : f32
    %735 = vector.broadcast %cst_261 : f32 to vector<8x96xf32>
    %736 = arith.mulf %735, %734 : vector<8x96xf32>
    %737 = vector.extract_strided_slice %728 {offsets = [0, 96], sizes = [8, 32], strides = [1, 1]} : vector<8x128xf32> to vector<8x32xf32>
    %738 = math.tanh %737 : vector<8x32xf32>
    %739 = vector.extract_strided_slice %736 {offsets = [0, 0], sizes = [8, 32], strides = [1, 1]} : vector<8x96xf32> to vector<8x32xf32>
    %740 = vector.extract_strided_slice %736 {offsets = [0, 32], sizes = [8, 32], strides = [1, 1]} : vector<8x96xf32> to vector<8x32xf32>
    %741 = vector.extract_strided_slice %736 {offsets = [0, 64], sizes = [8, 32], strides = [1, 1]} : vector<8x96xf32> to vector<8x32xf32>
    %742 = arith.mulf %740, %661 : vector<8x32xf32>
    %743 = arith.mulf %739, %738 : vector<8x32xf32>
    %744 = arith.addf %742, %743 : vector<8x32xf32>
    %745 = math.tanh %744 : vector<8x32xf32>
    %746 = arith.mulf %741, %745 : vector<8x32xf32>
    %747 = arith.truncf %663 : vector<8x32xf32> to vector<8x32xbf16>
    %c0_262 = arith.constant 0 : index
    %c0_263 = arith.constant 0 : index
    %748 = vector.load %arg16[%c0_262, %c0_263] : memref<32x512xbf16, #tpu.memory_space<vmem>>, vector<32x512xbf16>
    %cst_264 = arith.constant dense<0.000000e+00> : vector<8x512xf32>
    %749 = tpu.matmul %747, %748, %cst_264 {dimension_numbers = #tpu.dot_dimension_numbers<[1], [0], [0], [1], [0, 0, 1, 1], [], []>} : vector<8x32xbf16>, vector<32x512xbf16>, vector<8x512xf32> -> vector<8x512xf32>
    %750 = arith.truncf %689 : vector<8x128xf32> to vector<8x128xbf16>
    %c0_265 = arith.constant 0 : index
    %c0_266 = arith.constant 0 : index
    %751 = vector.load %arg17[%c0_265, %c0_266] : memref<128x512xbf16, #tpu.memory_space<vmem>>, vector<128x512xbf16>
    %cst_267 = arith.constant dense<0.000000e+00> : vector<8x512xf32>
    %752 = tpu.matmul %750, %751, %cst_267 {dimension_numbers = #tpu.dot_dimension_numbers<[1], [0], [0], [1], [0, 0, 1, 1], [], []>} : vector<8x128xbf16>, vector<128x512xbf16>, vector<8x512xf32> -> vector<8x512xf32>
    %753 = arith.addf %749, %752 : vector<8x512xf32>
    %754 = arith.addf %753, %23 : vector<8x512xf32>
    %755 = vector.extract_strided_slice %754 {offsets = [0, 0], sizes = [8, 384], strides = [1, 1]} : vector<8x512xf32> to vector<8x384xf32>
    %cst_268 = arith.constant 5.000000e-01 : f32
    %756 = vector.broadcast %cst_268 : f32 to vector<8x384xf32>
    %757 = arith.mulf %756, %755 : vector<8x384xf32>
    %758 = math.tanh %757 : vector<8x384xf32>
    %cst_269 = arith.constant 1.000000e+00 : f32
    %759 = vector.broadcast %cst_269 : f32 to vector<8x384xf32>
    %760 = arith.addf %758, %759 : vector<8x384xf32>
    %cst_270 = arith.constant 5.000000e-01 : f32
    %761 = vector.broadcast %cst_270 : f32 to vector<8x384xf32>
    %762 = arith.mulf %761, %760 : vector<8x384xf32>
    %763 = vector.extract_strided_slice %754 {offsets = [0, 384], sizes = [8, 128], strides = [1, 1]} : vector<8x512xf32> to vector<8x128xf32>
    %764 = math.tanh %763 : vector<8x128xf32>
    %765 = vector.extract_strided_slice %762 {offsets = [0, 0], sizes = [8, 128], strides = [1, 1]} : vector<8x384xf32> to vector<8x128xf32>
    %766 = vector.extract_strided_slice %762 {offsets = [0, 128], sizes = [8, 128], strides = [1, 1]} : vector<8x384xf32> to vector<8x128xf32>
    %767 = vector.extract_strided_slice %762 {offsets = [0, 256], sizes = [8, 128], strides = [1, 1]} : vector<8x384xf32> to vector<8x128xf32>
    %768 = arith.mulf %766, %687 : vector<8x128xf32>
    %769 = arith.mulf %765, %764 : vector<8x128xf32>
    %770 = arith.addf %768, %769 : vector<8x128xf32>
    %771 = math.tanh %770 : vector<8x128xf32>
    %772 = arith.mulf %767, %771 : vector<8x128xf32>
    %773 = arith.truncf %689 : vector<8x128xf32> to vector<8x128xbf16>
    %c0_271 = arith.constant 0 : index
    %c0_272 = arith.constant 0 : index
    %774 = vector.load %arg18[%c0_271, %c0_272] : memref<128x512xbf16, #tpu.memory_space<vmem>>, vector<128x512xbf16>
    %cst_273 = arith.constant dense<0.000000e+00> : vector<8x512xf32>
    %775 = tpu.matmul %773, %774, %cst_273 {dimension_numbers = #tpu.dot_dimension_numbers<[1], [0], [0], [1], [0, 0, 1, 1], [], []>} : vector<8x128xbf16>, vector<128x512xbf16>, vector<8x512xf32> -> vector<8x512xf32>
    %776 = arith.truncf %715 : vector<8x128xf32> to vector<8x128xbf16>
    %c0_274 = arith.constant 0 : index
    %c0_275 = arith.constant 0 : index
    %777 = vector.load %arg19[%c0_274, %c0_275] : memref<128x512xbf16, #tpu.memory_space<vmem>>, vector<128x512xbf16>
    %cst_276 = arith.constant dense<0.000000e+00> : vector<8x512xf32>
    %778 = tpu.matmul %776, %777, %cst_276 {dimension_numbers = #tpu.dot_dimension_numbers<[1], [0], [0], [1], [0, 0, 1, 1], [], []>} : vector<8x128xbf16>, vector<128x512xbf16>, vector<8x512xf32> -> vector<8x512xf32>
    %779 = arith.addf %775, %778 : vector<8x512xf32>
    %780 = arith.addf %779, %26 : vector<8x512xf32>
    %781 = vector.extract_strided_slice %780 {offsets = [0, 0], sizes = [8, 384], strides = [1, 1]} : vector<8x512xf32> to vector<8x384xf32>
    %cst_277 = arith.constant 5.000000e-01 : f32
    %782 = vector.broadcast %cst_277 : f32 to vector<8x384xf32>
    %783 = arith.mulf %782, %781 : vector<8x384xf32>
    %784 = math.tanh %783 : vector<8x384xf32>
    %cst_278 = arith.constant 1.000000e+00 : f32
    %785 = vector.broadcast %cst_278 : f32 to vector<8x384xf32>
    %786 = arith.addf %784, %785 : vector<8x384xf32>
    %cst_279 = arith.constant 5.000000e-01 : f32
    %787 = vector.broadcast %cst_279 : f32 to vector<8x384xf32>
    %788 = arith.mulf %787, %786 : vector<8x384xf32>
    %789 = vector.extract_strided_slice %780 {offsets = [0, 384], sizes = [8, 128], strides = [1, 1]} : vector<8x512xf32> to vector<8x128xf32>
    %790 = math.tanh %789 : vector<8x128xf32>
    %791 = vector.extract_strided_slice %788 {offsets = [0, 0], sizes = [8, 128], strides = [1, 1]} : vector<8x384xf32> to vector<8x128xf32>
    %792 = vector.extract_strided_slice %788 {offsets = [0, 128], sizes = [8, 128], strides = [1, 1]} : vector<8x384xf32> to vector<8x128xf32>
    %793 = vector.extract_strided_slice %788 {offsets = [0, 256], sizes = [8, 128], strides = [1, 1]} : vector<8x384xf32> to vector<8x128xf32>
    %794 = arith.mulf %792, %713 : vector<8x128xf32>
    %795 = arith.mulf %791, %790 : vector<8x128xf32>
    %796 = arith.addf %794, %795 : vector<8x128xf32>
    %797 = math.tanh %796 : vector<8x128xf32>
    %798 = arith.mulf %793, %797 : vector<8x128xf32>
    %799 = arith.truncf %798 : vector<8x128xf32> to vector<8x128xbf16>
    %c0_280 = arith.constant 0 : index
    %c0_281 = arith.constant 0 : index
    %800 = vector.load %arg20[%c0_280, %c0_281] : memref<128x256xbf16, #tpu.memory_space<vmem>>, vector<128x256xbf16>
    %cst_282 = arith.constant dense<0.000000e+00> : vector<8x256xf32>
    %801 = tpu.matmul %799, %800, %cst_282 {dimension_numbers = #tpu.dot_dimension_numbers<[1], [0], [0], [1], [0, 0, 1, 1], [], []>} : vector<8x128xbf16>, vector<128x256xbf16>, vector<8x256xf32> -> vector<8x256xf32>
    %802 = arith.addf %801, %29 : vector<8x256xf32>
    %c40 = arith.constant 40 : index
    %c0_283 = arith.constant 0 : index
    %803 = vector.load %arg15[%c40, %c0_283] : memref<64x256xf32, #tpu.memory_space<vmem>>, vector<8x256xf32>
    tpu.vector_store %arg15[%c40, %c0_283], %802 {strides = array<i32>} : memref<64x256xf32, #tpu.memory_space<vmem>>, vector<8x256xf32>,
    %804 = arith.truncf %746 : vector<8x32xf32> to vector<8x32xbf16>
    %c0_284 = arith.constant 0 : index
    %c0_285 = arith.constant 0 : index
    %805 = vector.load %arg16[%c0_284, %c0_285] : memref<32x512xbf16, #tpu.memory_space<vmem>>, vector<32x512xbf16>
    %cst_286 = arith.constant dense<0.000000e+00> : vector<8x512xf32>
    %806 = tpu.matmul %804, %805, %cst_286 {dimension_numbers = #tpu.dot_dimension_numbers<[1], [0], [0], [1], [0, 0, 1, 1], [], []>} : vector<8x32xbf16>, vector<32x512xbf16>, vector<8x512xf32> -> vector<8x512xf32>
    %807 = arith.truncf %772 : vector<8x128xf32> to vector<8x128xbf16>
    %c0_287 = arith.constant 0 : index
    %c0_288 = arith.constant 0 : index
    %808 = vector.load %arg17[%c0_287, %c0_288] : memref<128x512xbf16, #tpu.memory_space<vmem>>, vector<128x512xbf16>
    %cst_289 = arith.constant dense<0.000000e+00> : vector<8x512xf32>
    %809 = tpu.matmul %807, %808, %cst_289 {dimension_numbers = #tpu.dot_dimension_numbers<[1], [0], [0], [1], [0, 0, 1, 1], [], []>} : vector<8x128xbf16>, vector<128x512xbf16>, vector<8x512xf32> -> vector<8x512xf32>
    %810 = arith.addf %806, %809 : vector<8x512xf32>
    %811 = arith.addf %810, %23 : vector<8x512xf32>
    %812 = vector.extract_strided_slice %811 {offsets = [0, 0], sizes = [8, 384], strides = [1, 1]} : vector<8x512xf32> to vector<8x384xf32>
    %cst_290 = arith.constant 5.000000e-01 : f32
    %813 = vector.broadcast %cst_290 : f32 to vector<8x384xf32>
    %814 = arith.mulf %813, %812 : vector<8x384xf32>
    %815 = math.tanh %814 : vector<8x384xf32>
    %cst_291 = arith.constant 1.000000e+00 : f32
    %816 = vector.broadcast %cst_291 : f32 to vector<8x384xf32>
    %817 = arith.addf %815, %816 : vector<8x384xf32>
    %cst_292 = arith.constant 5.000000e-01 : f32
    %818 = vector.broadcast %cst_292 : f32 to vector<8x384xf32>
    %819 = arith.mulf %818, %817 : vector<8x384xf32>
    %820 = vector.extract_strided_slice %811 {offsets = [0, 384], sizes = [8, 128], strides = [1, 1]} : vector<8x512xf32> to vector<8x128xf32>
    %821 = math.tanh %820 : vector<8x128xf32>
    %822 = vector.extract_strided_slice %819 {offsets = [0, 0], sizes = [8, 128], strides = [1, 1]} : vector<8x384xf32> to vector<8x128xf32>
    %823 = vector.extract_strided_slice %819 {offsets = [0, 128], sizes = [8, 128], strides = [1, 1]} : vector<8x384xf32> to vector<8x128xf32>
    %824 = vector.extract_strided_slice %819 {offsets = [0, 256], sizes = [8, 128], strides = [1, 1]} : vector<8x384xf32> to vector<8x128xf32>
    %825 = arith.mulf %823, %770 : vector<8x128xf32>
    %826 = arith.mulf %822, %821 : vector<8x128xf32>
    %827 = arith.addf %825, %826 : vector<8x128xf32>
    %828 = math.tanh %827 : vector<8x128xf32>
    %829 = arith.mulf %824, %828 : vector<8x128xf32>
    %830 = arith.truncf %772 : vector<8x128xf32> to vector<8x128xbf16>
    %c0_293 = arith.constant 0 : index
    %c0_294 = arith.constant 0 : index
    %831 = vector.load %arg18[%c0_293, %c0_294] : memref<128x512xbf16, #tpu.memory_space<vmem>>, vector<128x512xbf16>
    %cst_295 = arith.constant dense<0.000000e+00> : vector<8x512xf32>
    %832 = tpu.matmul %830, %831, %cst_295 {dimension_numbers = #tpu.dot_dimension_numbers<[1], [0], [0], [1], [0, 0, 1, 1], [], []>} : vector<8x128xbf16>, vector<128x512xbf16>, vector<8x512xf32> -> vector<8x512xf32>
    %833 = arith.truncf %798 : vector<8x128xf32> to vector<8x128xbf16>
    %c0_296 = arith.constant 0 : index
    %c0_297 = arith.constant 0 : index
    %834 = vector.load %arg19[%c0_296, %c0_297] : memref<128x512xbf16, #tpu.memory_space<vmem>>, vector<128x512xbf16>
    %cst_298 = arith.constant dense<0.000000e+00> : vector<8x512xf32>
    %835 = tpu.matmul %833, %834, %cst_298 {dimension_numbers = #tpu.dot_dimension_numbers<[1], [0], [0], [1], [0, 0, 1, 1], [], []>} : vector<8x128xbf16>, vector<128x512xbf16>, vector<8x512xf32> -> vector<8x512xf32>
    %836 = arith.addf %832, %835 : vector<8x512xf32>
    %837 = arith.addf %836, %26 : vector<8x512xf32>
    %838 = vector.extract_strided_slice %837 {offsets = [0, 0], sizes = [8, 384], strides = [1, 1]} : vector<8x512xf32> to vector<8x384xf32>
    %cst_299 = arith.constant 5.000000e-01 : f32
    %839 = vector.broadcast %cst_299 : f32 to vector<8x384xf32>
    %840 = arith.mulf %839, %838 : vector<8x384xf32>
    %841 = math.tanh %840 : vector<8x384xf32>
    %cst_300 = arith.constant 1.000000e+00 : f32
    %842 = vector.broadcast %cst_300 : f32 to vector<8x384xf32>
    %843 = arith.addf %841, %842 : vector<8x384xf32>
    %cst_301 = arith.constant 5.000000e-01 : f32
    %844 = vector.broadcast %cst_301 : f32 to vector<8x384xf32>
    %845 = arith.mulf %844, %843 : vector<8x384xf32>
    %846 = vector.extract_strided_slice %837 {offsets = [0, 384], sizes = [8, 128], strides = [1, 1]} : vector<8x512xf32> to vector<8x128xf32>
    %847 = math.tanh %846 : vector<8x128xf32>
    %848 = vector.extract_strided_slice %845 {offsets = [0, 0], sizes = [8, 128], strides = [1, 1]} : vector<8x384xf32> to vector<8x128xf32>
    %849 = vector.extract_strided_slice %845 {offsets = [0, 128], sizes = [8, 128], strides = [1, 1]} : vector<8x384xf32> to vector<8x128xf32>
    %850 = vector.extract_strided_slice %845 {offsets = [0, 256], sizes = [8, 128], strides = [1, 1]} : vector<8x384xf32> to vector<8x128xf32>
    %851 = arith.mulf %849, %796 : vector<8x128xf32>
    %852 = arith.mulf %848, %847 : vector<8x128xf32>
    %853 = arith.addf %851, %852 : vector<8x128xf32>
    %854 = math.tanh %853 : vector<8x128xf32>
    %855 = arith.mulf %850, %854 : vector<8x128xf32>
    %856 = arith.truncf %855 : vector<8x128xf32> to vector<8x128xbf16>
    %c0_302 = arith.constant 0 : index
    %c0_303 = arith.constant 0 : index
    %857 = vector.load %arg20[%c0_302, %c0_303] : memref<128x256xbf16, #tpu.memory_space<vmem>>, vector<128x256xbf16>
    %cst_304 = arith.constant dense<0.000000e+00> : vector<8x256xf32>
    %858 = tpu.matmul %856, %857, %cst_304 {dimension_numbers = #tpu.dot_dimension_numbers<[1], [0], [0], [1], [0, 0, 1, 1], [], []>} : vector<8x128xbf16>, vector<128x256xbf16>, vector<8x256xf32> -> vector<8x256xf32>
    %859 = arith.addf %858, %29 : vector<8x256xf32>
    %c48 = arith.constant 48 : index
    %c0_305 = arith.constant 0 : index
    %860 = vector.load %arg15[%c48, %c0_305] : memref<64x256xf32, #tpu.memory_space<vmem>>, vector<8x256xf32>
    tpu.vector_store %arg15[%c48, %c0_305], %859 {strides = array<i32>} : memref<64x256xf32, #tpu.memory_space<vmem>>, vector<8x256xf32>,
    %861 = arith.truncf %829 : vector<8x128xf32> to vector<8x128xbf16>
    %c0_306 = arith.constant 0 : index
    %c0_307 = arith.constant 0 : index
    %862 = vector.load %arg18[%c0_306, %c0_307] : memref<128x512xbf16, #tpu.memory_space<vmem>>, vector<128x512xbf16>
    %cst_308 = arith.constant dense<0.000000e+00> : vector<8x512xf32>
    %863 = tpu.matmul %861, %862, %cst_308 {dimension_numbers = #tpu.dot_dimension_numbers<[1], [0], [0], [1], [0, 0, 1, 1], [], []>} : vector<8x128xbf16>, vector<128x512xbf16>, vector<8x512xf32> -> vector<8x512xf32>
    %864 = arith.truncf %855 : vector<8x128xf32> to vector<8x128xbf16>
    %c0_309 = arith.constant 0 : index
    %c0_310 = arith.constant 0 : index
    %865 = vector.load %arg19[%c0_309, %c0_310] : memref<128x512xbf16, #tpu.memory_space<vmem>>, vector<128x512xbf16>
    %cst_311 = arith.constant dense<0.000000e+00> : vector<8x512xf32>
    %866 = tpu.matmul %864, %865, %cst_311 {dimension_numbers = #tpu.dot_dimension_numbers<[1], [0], [0], [1], [0, 0, 1, 1], [], []>} : vector<8x128xbf16>, vector<128x512xbf16>, vector<8x512xf32> -> vector<8x512xf32>
    %867 = arith.addf %863, %866 : vector<8x512xf32>
    %868 = arith.addf %867, %26 : vector<8x512xf32>
    %869 = vector.extract_strided_slice %868 {offsets = [0, 0], sizes = [8, 384], strides = [1, 1]} : vector<8x512xf32> to vector<8x384xf32>
    %cst_312 = arith.constant 5.000000e-01 : f32
    %870 = vector.broadcast %cst_312 : f32 to vector<8x384xf32>
    %871 = arith.mulf %870, %869 : vector<8x384xf32>
    %872 = math.tanh %871 : vector<8x384xf32>
    %cst_313 = arith.constant 1.000000e+00 : f32
    %873 = vector.broadcast %cst_313 : f32 to vector<8x384xf32>
    %874 = arith.addf %872, %873 : vector<8x384xf32>
    %cst_314 = arith.constant 5.000000e-01 : f32
    %875 = vector.broadcast %cst_314 : f32 to vector<8x384xf32>
    %876 = arith.mulf %875, %874 : vector<8x384xf32>
    %877 = vector.extract_strided_slice %868 {offsets = [0, 384], sizes = [8, 128], strides = [1, 1]} : vector<8x512xf32> to vector<8x128xf32>
    %878 = math.tanh %877 : vector<8x128xf32>
    %879 = vector.extract_strided_slice %876 {offsets = [0, 0], sizes = [8, 128], strides = [1, 1]} : vector<8x384xf32> to vector<8x128xf32>
    %880 = vector.extract_strided_slice %876 {offsets = [0, 128], sizes = [8, 128], strides = [1, 1]} : vector<8x384xf32> to vector<8x128xf32>
    %881 = vector.extract_strided_slice %876 {offsets = [0, 256], sizes = [8, 128], strides = [1, 1]} : vector<8x384xf32> to vector<8x128xf32>
    %882 = arith.mulf %880, %853 : vector<8x128xf32>
    %883 = arith.mulf %879, %878 : vector<8x128xf32>
    %884 = arith.addf %882, %883 : vector<8x128xf32>
    %885 = math.tanh %884 : vector<8x128xf32>
    %886 = arith.mulf %881, %885 : vector<8x128xf32>
    %887 = arith.truncf %886 : vector<8x128xf32> to vector<8x128xbf16>
    %c0_315 = arith.constant 0 : index
    %c0_316 = arith.constant 0 : index
    %888 = vector.load %arg20[%c0_315, %c0_316] : memref<128x256xbf16, #tpu.memory_space<vmem>>, vector<128x256xbf16>
    %cst_317 = arith.constant dense<0.000000e+00> : vector<8x256xf32>
    %889 = tpu.matmul %887, %888, %cst_317 {dimension_numbers = #tpu.dot_dimension_numbers<[1], [0], [0], [1], [0, 0, 1, 1], [], []>} : vector<8x128xbf16>, vector<128x256xbf16>, vector<8x256xf32> -> vector<8x256xf32>
    %890 = arith.addf %889, %29 : vector<8x256xf32>
    %c56 = arith.constant 56 : index
    %c0_318 = arith.constant 0 : index
    %891 = vector.load %arg15[%c56, %c0_318] : memref<64x256xf32, #tpu.memory_space<vmem>>, vector<8x256xf32>
    tpu.vector_store %arg15[%c56, %c0_318], %890 {strides = array<i32>} : memref<64x256xf32, #tpu.memory_space<vmem>>, vector<8x256xf32>,
    return
  }
}

</mosaic_0001>

<bundles_post_ra>
// kernel: _lambda_.1
= control target key start
LH: loop header
LB: loop body
LE: loop exit
PB: predicated region body
PF: predicated region fallthrough
CT: control target
= control target key end

     0   :  { %s11706_s0 = inlined_call_operand.vmem [shape: f32[64,64], index: 0, kind: input, shape index: {}]   ;;  %s11707_s1 = inlined_call_operand.vmem [shape: bf16[64,128], index: 1, kind: input, shape index: {}]   ;;  %s11708_s2 = inlined_call_operand.vmem [shape: bf16[32,128], index: 2, kind: input, shape index: {}]   ;;  %s11709_s3 = inlined_call_operand.vmem [shape: f32[1,128], index: 3, kind: input, shape index: {}]   ;;  %s11710_s4 = inlined_call_operand.vmem [shape: bf16[32,128], index: 4, kind: input, shape index: {}]   ;;  %s11711_s5 = inlined_call_operand.vmem [shape: bf16[32,128], index: 5, kind: input, shape index: {}]   ;;  %s11712_s6 = inlined_call_operand.vmem [shape: f32[1,128], index: 6, kind: input, shape index: {}]   ;;  %s11713_s7 = inlined_call_operand.vmem [shape: bf16[32,512], index: 7, kind: input, shape index: {}]   ;;  %s11714_s8 = inlined_call_operand.vmem [shape: bf16[128,512], index: 8, kind: input, shape index: {}]   ;;  %s11715_s9 = inlined_call_operand.vmem [shape: f32[1,512], index: 9, kind: input, shape index: {}]   ;;  %s11716_s10 = inlined_call_operand.vmem [shape: bf16[128,512], index: 10, kind: input, shape index: {}]   ;;  %s11717_s11 = inlined_call_operand.vmem [shape: bf16[128,512], index: 11, kind: input, shape index: {}]   ;;  %s11718_s12 = inlined_call_operand.vmem [shape: f32[1,512], index: 12, kind: input, shape index: {}]   ;;  %s11719_s13 = inlined_call_operand.vmem [shape: bf16[128,256], index: 13, kind: input, shape index: {}]   ;;  %s11720_s14 = inlined_call_operand.vmem [shape: f32[1,256], index: 14, kind: input, shape index: {}]   ;;  %s11721_s15 = inlined_call_operand.vmem [shape: f32[64,256], index: 15, kind: output, shape index: {}]  }
   0x1   :  { %v58_v0 = vld [vmem:[%s11713_s7] sm:$0xf]  ;;  %v60_v1 = vld [vmem:[%s11713_s7 + $0x10] sm:$0xf]  ;;  %v62_v2 = vld [vmem:[%s11713_s7 + $0x4] sm:$0xf] }
   0x2   :  { %59 = vst [vmem:[#allocation2] sm:$0xf] %v58_v0  ;;  %61 = vst [vmem:[#allocation2 + $0x4] sm:$0xf] %v60_v1  ;;  %v64_v3 = vld [vmem:[%s11713_s7 + $0x14] sm:$0xf] }
   0x3   :  { %63 = vst [vmem:[#allocation2 + $0x8] sm:$0xf] %v62_v2  ;;  %v66_v4 = vld [vmem:[%s11713_s7 + $0x8] sm:$0xf]  ;;  %v68_v5 = vld [vmem:[%s11713_s7 + $0x18] sm:$0xf] }
   0x4   :  { %65 = vst [vmem:[#allocation2 + $0xc] sm:$0xf] %v64_v3  ;;  %67 = vst [vmem:[#allocation2 + $0x10] sm:$0xf] %v66_v4  ;;  %v70_v6 = vld [vmem:[%s11713_s7 + $0xc] sm:$0xf] }
   0x5   :  { %69 = vst [vmem:[#allocation2 + $0x14] sm:$0xf] %v68_v5  ;;  %v72_v7 = vld [vmem:[%s11713_s7 + $0x1c] sm:$0xff]   ;;  %v76_v8 = vld [vmem:[%s11713_s7 + $0x30] sm:$0xf] }
   0x6   :  { %71 = vst [vmem:[#allocation2 + $0x18] sm:$0xf] %v70_v6  ;;  %73 = vst [vmem:[#allocation2 + $0x1c] sm:$0xff] %v72_v7   ;;  %v78_v9 = vld [vmem:[%s11713_s7 + $0x24] sm:$0xf] }
   0x7   :  { %77 = vst [vmem:[#allocation2 + $0x24] sm:$0xf] %v76_v8  ;;  %v80_v10 = vld [vmem:[%s11713_s7 + $0x34] sm:$0xf]  ;;  %v82_v11 = vld [vmem:[%s11713_s7 + $0x28] sm:$0xf] }
   0x8   :  { %79 = vst [vmem:[#allocation2 + $0x28] sm:$0xf] %v78_v9  ;;  %81 = vst [vmem:[#allocation2 + $0x2c] sm:$0xf] %v80_v10  ;;  %v84_v12 = vld [vmem:[%s11713_s7 + $0x38] sm:$0xf] }
   0x9   :  { %83 = vst [vmem:[#allocation2 + $0x30] sm:$0xf] %v82_v11  ;;  %v86_v13 = vld [vmem:[%s11713_s7 + $0x2c] sm:$0xf]  ;;  %v88_v14 = vld [vmem:[%s11713_s7 + $0x3c] sm:$0xf] }
   0xa   :  { %85 = vst [vmem:[#allocation2 + $0x34] sm:$0xf] %v84_v12  ;;  %87 = vst [vmem:[#allocation2 + $0x38] sm:$0xf] %v86_v13 }
   0xb   :  { %89 = vst [vmem:[#allocation2 + $0x3c] sm:$0xf] %v88_v14 }
   0xc   :  { %152 = vsyncadd [#allocation7], 1024  ;;  %v171_v15 = vld [vmem:[%s11714_s8] sm:$0xf]  ;;  %v173_v16 = vld [vmem:[%s11714_s8 + $0x10] sm:$0xf] }
   0xd   :  { %172 = vst [vmem:[#allocation3] sm:$0xf] %v171_v15  ;;  %174 = vst [vmem:[#allocation3 + $0x4] sm:$0xf] %v173_v16  ;;  %v175_v17 = vld [vmem:[%s11714_s8 + $0x4] sm:$0xf] }
   0xe   :  { %v177_v18 = vld [vmem:[%s11714_s8 + $0x14] sm:$0xf]  ;;  %v179_v19 = vld [vmem:[%s11714_s8 + $0x8] sm:$0xf]  ;;  %176 = vst [vmem:[#allocation3 + $0x8] sm:$0xf] %v175_v17 }
   0xf   :  { %178 = vst [vmem:[#allocation3 + $0xc] sm:$0xf] %v177_v18  ;;  %180 = vst [vmem:[#allocation3 + $0x10] sm:$0xf] %v179_v19  ;;  %v181_v20 = vld [vmem:[%s11714_s8 + $0x18] sm:$0xf] }
  0x10   :  { %v183_v21 = vld [vmem:[%s11714_s8 + $0xc] sm:$0xf]  ;;  %v185_v22 = vld [vmem:[%s11714_s8 + $0x1c] sm:$0xff]   ;;  %182 = vst [vmem:[#allocation3 + $0x14] sm:$0xf] %v181_v20 }
  0x11   :  { %184 = vst [vmem:[#allocation3 + $0x18] sm:$0xf] %v183_v21  ;;  %186 = vst [vmem:[#allocation3 + $0x1c] sm:$0xff] %v185_v22   ;;  %v189_v23 = vld [vmem:[%s11714_s8 + $0x30] sm:$0xf]  ;;  %v201_v29 = vld [vmem:[%s11714_s8 + $0x3c] sm:$0xff]  }
  0x12   :  { %v191_v24 = vld [vmem:[%s11714_s8 + $0x24] sm:$0xf]  ;;  %v193_v25 = vld [vmem:[%s11714_s8 + $0x34] sm:$0xf]  ;;  %190 = vst [vmem:[#allocation3 + $0x24] sm:$0xf] %v189_v23 }
  0x13   :  { %192 = vst [vmem:[#allocation3 + $0x28] sm:$0xf] %v191_v24  ;;  %194 = vst [vmem:[#allocation3 + $0x2c] sm:$0xf] %v193_v25  ;;  %v195_v26 = vld [vmem:[%s11714_s8 + $0x28] sm:$0xf] }
  0x14   :  { %v197_v27 = vld [vmem:[%s11714_s8 + $0x38] sm:$0xf]  ;;  %v199_v28 = vld [vmem:[%s11714_s8 + $0x2c] sm:$0xf]  ;;  %196 = vst [vmem:[#allocation3 + $0x30] sm:$0xf] %v195_v26 }
  0x15   :  { %198 = vst [vmem:[#allocation3 + $0x34] sm:$0xf] %v197_v27  ;;  %200 = vst [vmem:[#allocation3 + $0x38] sm:$0xf] %v199_v28  ;;  %v205_v30 = vld [vmem:[%s11714_s8 + $0x50] sm:$0xf] }
  0x16   :  { %v207_v31 = vld [vmem:[%s11714_s8 + $0x44] sm:$0xf]  ;;  %202 = vst [vmem:[#allocation3 + $0x3c] sm:$0xff] %v201_v29   ;;  %206 = vst [vmem:[#allocation3 + $0x44] sm:$0xf] %v205_v30  ;;  %v217_v36 = vld [vmem:[%s11714_s8 + $0x5c] sm:$0xff]  }
  0x17   :  { %208 = vst [vmem:[#allocation3 + $0x48] sm:$0xf] %v207_v31  ;;  %v209_v32 = vld [vmem:[%s11714_s8 + $0x54] sm:$0xf]  ;;  %v211_v33 = vld [vmem:[%s11714_s8 + $0x48] sm:$0xf] }
  0x18   :  { %v213_v34 = vld [vmem:[%s11714_s8 + $0x58] sm:$0xf]  ;;  %210 = vst [vmem:[#allocation3 + $0x4c] sm:$0xf] %v209_v32  ;;  %212 = vst [vmem:[#allocation3 + $0x50] sm:$0xf] %v211_v33 }
  0x19   :  { %214 = vst [vmem:[#allocation3 + $0x54] sm:$0xf] %v213_v34  ;;  %v215_v35 = vld [vmem:[%s11714_s8 + $0x4c] sm:$0xf]  ;;  %v221_v37 = vld [vmem:[%s11714_s8 + $0x70] sm:$0xf] }
  0x1a   :  { %216 = vst [vmem:[#allocation3 + $0x58] sm:$0xf] %v215_v35  ;;  %218 = vst [vmem:[#allocation3 + $0x5c] sm:$0xff] %v217_v36   ;;  %v223_v38 = vld [vmem:[%s11714_s8 + $0x64] sm:$0xf]  ;;  %v233_v43 = vld [vmem:[%s11714_s8 + $0x7c] sm:$0xff]  }
  0x1b   :  { %222 = vst [vmem:[#allocation3 + $0x64] sm:$0xf] %v221_v37  ;;  %v225_v39 = vld [vmem:[%s11714_s8 + $0x74] sm:$0xf]  ;;  %v227_v40 = vld [vmem:[%s11714_s8 + $0x68] sm:$0xf] }
  0x1c   :  { %224 = vst [vmem:[#allocation3 + $0x68] sm:$0xf] %v223_v38  ;;  %226 = vst [vmem:[#allocation3 + $0x6c] sm:$0xf] %v225_v39  ;;  %v229_v41 = vld [vmem:[%s11714_s8 + $0x78] sm:$0xf] }
  0x1d   :  { %228 = vst [vmem:[#allocation3 + $0x70] sm:$0xf] %v227_v40  ;;  %v231_v42 = vld [vmem:[%s11714_s8 + $0x6c] sm:$0xf]  ;;  %230 = vst [vmem:[#allocation3 + $0x74] sm:$0xf] %v229_v41 }
  0x1e   :  { %232 = vst [vmem:[#allocation3 + $0x78] sm:$0xf] %v231_v42  ;;  %234 = vst [vmem:[#allocation3 + $0x7c] sm:$0xff] %v233_v43   ;;  %v237_v44 = vld [vmem:[%s11714_s8 + $0x90] sm:$0xf]  ;;  %v249_v50 = vld [vmem:[%s11714_s8 + $0x9c] sm:$0xff]  }
  0x1f   :  { %v239_v45 = vld [vmem:[%s11714_s8 + $0x84] sm:$0xf]  ;;  %v241_v46 = vld [vmem:[%s11714_s8 + $0x94] sm:$0xf]  ;;  %238 = vst [vmem:[#allocation3 + $0x84] sm:$0xf] %v237_v44 }
  0x20   :  { %240 = vst [vmem:[#allocation3 + $0x88] sm:$0xf] %v239_v45  ;;  %242 = vst [vmem:[#allocation3 + $0x8c] sm:$0xf] %v241_v46  ;;  %v243_v47 = vld [vmem:[%s11714_s8 + $0x88] sm:$0xf] }
  0x21   :  { %v245_v48 = vld [vmem:[%s11714_s8 + $0x98] sm:$0xf]  ;;  %v247_v49 = vld [vmem:[%s11714_s8 + $0x8c] sm:$0xf]  ;;  %244 = vst [vmem:[#allocation3 + $0x90] sm:$0xf] %v243_v47 }
  0x22   :  { %246 = vst [vmem:[#allocation3 + $0x94] sm:$0xf] %v245_v48  ;;  %248 = vst [vmem:[#allocation3 + $0x98] sm:$0xf] %v247_v49  ;;  %v253_v51 = vld [vmem:[%s11714_s8 + $0xb0] sm:$0xf] }
  0x23   :  { %v255_v52 = vld [vmem:[%s11714_s8 + $0xa4] sm:$0xf]  ;;  %250 = vst [vmem:[#allocation3 + $0x9c] sm:$0xff] %v249_v50   ;;  %254 = vst [vmem:[#allocation3 + $0xa4] sm:$0xf] %v253_v51  ;;  %v265_v57 = vld [vmem:[%s11714_s8 + $0xbc] sm:$0xff]  }
  0x24   :  { %256 = vst [vmem:[#allocation3 + $0xa8] sm:$0xf] %v255_v52  ;;  %v257_v53 = vld [vmem:[%s11714_s8 + $0xb4] sm:$0xf]  ;;  %v259_v54 = vld [vmem:[%s11714_s8 + $0xa8] sm:$0xf] }
  0x25   :  { %v261_v55 = vld [vmem:[%s11714_s8 + $0xb8] sm:$0xf]  ;;  %258 = vst [vmem:[#allocation3 + $0xac] sm:$0xf] %v257_v53  ;;  %260 = vst [vmem:[#allocation3 + $0xb0] sm:$0xf] %v259_v54 }
  0x26   :  { %262 = vst [vmem:[#allocation3 + $0xb4] sm:$0xf] %v261_v55  ;;  %v263_v56 = vld [vmem:[%s11714_s8 + $0xac] sm:$0xf]  ;;  %v269_v58 = vld [vmem:[%s11714_s8 + $0xd0] sm:$0xf] }
  0x27   :  { %264 = vst [vmem:[#allocation3 + $0xb8] sm:$0xf] %v263_v56  ;;  %266 = vst [vmem:[#allocation3 + $0xbc] sm:$0xff] %v265_v57   ;;  %v271_v59 = vld [vmem:[%s11714_s8 + $0xc4] sm:$0xf]  ;;  %v281_v0 = vld [vmem:[%s11714_s8 + $0xdc] sm:$0xff]  }
  0x28   :  { %270 = vst [vmem:[#allocation3 + $0xc4] sm:$0xf] %v269_v58  ;;  %v273_v60 = vld [vmem:[%s11714_s8 + $0xd4] sm:$0xf]  ;;  %v275_v61 = vld [vmem:[%s11714_s8 + $0xc8] sm:$0xf] }
  0x29   :  { %272 = vst [vmem:[#allocation3 + $0xc8] sm:$0xf] %v271_v59  ;;  %274 = vst [vmem:[#allocation3 + $0xcc] sm:$0xf] %v273_v60  ;;  %v277_v62 = vld [vmem:[%s11714_s8 + $0xd8] sm:$0xf] }
  0x2a   :  { %276 = vst [vmem:[#allocation3 + $0xd0] sm:$0xf] %v275_v61  ;;  %v279_v63 = vld [vmem:[%s11714_s8 + $0xcc] sm:$0xf]  ;;  %278 = vst [vmem:[#allocation3 + $0xd4] sm:$0xf] %v277_v62 }
  0x2b   :  { %280 = vst [vmem:[#allocation3 + $0xd8] sm:$0xf] %v279_v63  ;;  %282 = vst [vmem:[#allocation3 + $0xdc] sm:$0xff] %v281_v0   ;;  %v285_v1 = vld [vmem:[%s11714_s8 + $0xf0] sm:$0xf] }
  0x2c   :  { %v287_v2 = vld [vmem:[%s11714_s8 + $0xe4] sm:$0xf]  ;;  %v289_v3 = vld [vmem:[%s11714_s8 + $0xf4] sm:$0xf]  ;;  %286 = vst [vmem:[#allocation3 + $0xe4] sm:$0xf] %v285_v1 }
  0x2d   :  { %288 = vst [vmem:[#allocation3 + $0xe8] sm:$0xf] %v287_v2  ;;  %290 = vst [vmem:[#allocation3 + $0xec] sm:$0xf] %v289_v3  ;;  %v291_v4 = vld [vmem:[%s11714_s8 + $0xe8] sm:$0xf] }
  0x2e   :  { %v293_v5 = vld [vmem:[%s11714_s8 + $0xf8] sm:$0xf]  ;;  %v295_v6 = vld [vmem:[%s11714_s8 + $0xec] sm:$0xf]  ;;  %292 = vst [vmem:[#allocation3 + $0xf0] sm:$0xf] %v291_v4 }
  0x2f   :  { %294 = vst [vmem:[#allocation3 + $0xf4] sm:$0xf] %v293_v5  ;;  %296 = vst [vmem:[#allocation3 + $0xf8] sm:$0xf] %v295_v6  ;;  %v297_v7 = vld [vmem:[%s11714_s8 + $0xfc] sm:$0xf] }
  0x30   :  { %298 = vst [vmem:[#allocation3 + $0xfc] sm:$0xf] %v297_v7 }
  0x31   :  { %457 = vsyncadd [#allocation7 + $0x1], 4096  ;;  %v476_v8 = vld [vmem:[%s11716_s10] sm:$0xf]  ;;  %v478_v9 = vld [vmem:[%s11716_s10 + $0x10] sm:$0xf] }
  0x32   :  { %477 = vst [vmem:[#allocation4] sm:$0xf] %v476_v8  ;;  %479 = vst [vmem:[#allocation4 + $0x4] sm:$0xf] %v478_v9  ;;  %v480_v10 = vld [vmem:[%s11716_s10 + $0x4] sm:$0xf] }
  0x33   :  { %v482_v11 = vld [vmem:[%s11716_s10 + $0x14] sm:$0xf]  ;;  %v484_v12 = vld [vmem:[%s11716_s10 + $0x8] sm:$0xf]  ;;  %481 = vst [vmem:[#allocation4 + $0x8] sm:$0xf] %v480_v10 }
  0x34   :  { %483 = vst [vmem:[#allocation4 + $0xc] sm:$0xf] %v482_v11  ;;  %485 = vst [vmem:[#allocation4 + $0x10] sm:$0xf] %v484_v12  ;;  %v486_v13 = vld [vmem:[%s11716_s10 + $0x18] sm:$0xf] }
  0x35   :  { %v488_v14 = vld [vmem:[%s11716_s10 + $0xc] sm:$0xf]  ;;  %v490_v15 = vld [vmem:[%s11716_s10 + $0x1c] sm:$0xff]   ;;  %487 = vst [vmem:[#allocation4 + $0x14] sm:$0xf] %v486_v13 }
  0x36   :  { %489 = vst [vmem:[#allocation4 + $0x18] sm:$0xf] %v488_v14  ;;  %491 = vst [vmem:[#allocation4 + $0x1c] sm:$0xff] %v490_v15   ;;  %v494_v16 = vld [vmem:[%s11716_s10 + $0x30] sm:$0xf]  ;;  %v506_v22 = vld [vmem:[%s11716_s10 + $0x3c] sm:$0xff]  }
  0x37   :  { %v496_v17 = vld [vmem:[%s11716_s10 + $0x24] sm:$0xf]  ;;  %v498_v18 = vld [vmem:[%s11716_s10 + $0x34] sm:$0xf]  ;;  %495 = vst [vmem:[#allocation4 + $0x24] sm:$0xf] %v494_v16 }
  0x38   :  { %497 = vst [vmem:[#allocation4 + $0x28] sm:$0xf] %v496_v17  ;;  %499 = vst [vmem:[#allocation4 + $0x2c] sm:$0xf] %v498_v18  ;;  %v500_v19 = vld [vmem:[%s11716_s10 + $0x28] sm:$0xf] }
  0x39   :  { %v502_v20 = vld [vmem:[%s11716_s10 + $0x38] sm:$0xf]  ;;  %v504_v21 = vld [vmem:[%s11716_s10 + $0x2c] sm:$0xf]  ;;  %501 = vst [vmem:[#allocation4 + $0x30] sm:$0xf] %v500_v19 }
  0x3a   :  { %503 = vst [vmem:[#allocation4 + $0x34] sm:$0xf] %v502_v20  ;;  %505 = vst [vmem:[#allocation4 + $0x38] sm:$0xf] %v504_v21  ;;  %v510_v23 = vld [vmem:[%s11716_s10 + $0x50] sm:$0xf] }
  0x3b   :  { %v512_v24 = vld [vmem:[%s11716_s10 + $0x44] sm:$0xf]  ;;  %507 = vst [vmem:[#allocation4 + $0x3c] sm:$0xff] %v506_v22   ;;  %511 = vst [vmem:[#allocation4 + $0x44] sm:$0xf] %v510_v23  ;;  %v522_v29 = vld [vmem:[%s11716_s10 + $0x5c] sm:$0xff]  }
  0x3c   :  { %513 = vst [vmem:[#allocation4 + $0x48] sm:$0xf] %v512_v24  ;;  %v514_v25 = vld [vmem:[%s11716_s10 + $0x54] sm:$0xf]  ;;  %v516_v26 = vld [vmem:[%s11716_s10 + $0x48] sm:$0xf] }
  0x3d   :  { %v518_v27 = vld [vmem:[%s11716_s10 + $0x58] sm:$0xf]  ;;  %515 = vst [vmem:[#allocation4 + $0x4c] sm:$0xf] %v514_v25  ;;  %517 = vst [vmem:[#allocation4 + $0x50] sm:$0xf] %v516_v26 }
  0x3e   :  { %519 = vst [vmem:[#allocation4 + $0x54] sm:$0xf] %v518_v27  ;;  %v520_v28 = vld [vmem:[%s11716_s10 + $0x4c] sm:$0xf]  ;;  %v526_v30 = vld [vmem:[%s11716_s10 + $0x70] sm:$0xf] }
  0x3f   :  { %521 = vst [vmem:[#allocation4 + $0x58] sm:$0xf] %v520_v28  ;;  %523 = vst [vmem:[#allocation4 + $0x5c] sm:$0xff] %v522_v29   ;;  %v528_v31 = vld [vmem:[%s11716_s10 + $0x64] sm:$0xf]  ;;  %v538_v36 = vld [vmem:[%s11716_s10 + $0x7c] sm:$0xff]  }
  0x40   :  { %527 = vst [vmem:[#allocation4 + $0x64] sm:$0xf] %v526_v30  ;;  %v530_v32 = vld [vmem:[%s11716_s10 + $0x74] sm:$0xf]  ;;  %v532_v33 = vld [vmem:[%s11716_s10 + $0x68] sm:$0xf] }
  0x41   :  { %529 = vst [vmem:[#allocation4 + $0x68] sm:$0xf] %v528_v31  ;;  %531 = vst [vmem:[#allocation4 + $0x6c] sm:$0xf] %v530_v32  ;;  %v534_v34 = vld [vmem:[%s11716_s10 + $0x78] sm:$0xf] }
  0x42   :  { %533 = vst [vmem:[#allocation4 + $0x70] sm:$0xf] %v532_v33  ;;  %v536_v35 = vld [vmem:[%s11716_s10 + $0x6c] sm:$0xf]  ;;  %535 = vst [vmem:[#allocation4 + $0x74] sm:$0xf] %v534_v34 }
  0x43   :  { %537 = vst [vmem:[#allocation4 + $0x78] sm:$0xf] %v536_v35  ;;  %539 = vst [vmem:[#allocation4 + $0x7c] sm:$0xff] %v538_v36   ;;  %v542_v37 = vld [vmem:[%s11716_s10 + $0x90] sm:$0xf]  ;;  %v554_v43 = vld [vmem:[%s11716_s10 + $0x9c] sm:$0xff]  }
  0x44   :  { %v544_v38 = vld [vmem:[%s11716_s10 + $0x84] sm:$0xf]  ;;  %v546_v39 = vld [vmem:[%s11716_s10 + $0x94] sm:$0xf]  ;;  %543 = vst [vmem:[#allocation4 + $0x84] sm:$0xf] %v542_v37 }
  0x45   :  { %545 = vst [vmem:[#allocation4 + $0x88] sm:$0xf] %v544_v38  ;;  %547 = vst [vmem:[#allocation4 + $0x8c] sm:$0xf] %v546_v39  ;;  %v548_v40 = vld [vmem:[%s11716_s10 + $0x88] sm:$0xf] }
  0x46   :  { %v550_v41 = vld [vmem:[%s11716_s10 + $0x98] sm:$0xf]  ;;  %v552_v42 = vld [vmem:[%s11716_s10 + $0x8c] sm:$0xf]  ;;  %549 = vst [vmem:[#allocation4 + $0x90] sm:$0xf] %v548_v40 }
  0x47   :  { %551 = vst [vmem:[#allocation4 + $0x94] sm:$0xf] %v550_v41  ;;  %553 = vst [vmem:[#allocation4 + $0x98] sm:$0xf] %v552_v42  ;;  %v558_v44 = vld [vmem:[%s11716_s10 + $0xb0] sm:$0xf] }
  0x48   :  { %v560_v45 = vld [vmem:[%s11716_s10 + $0xa4] sm:$0xf]  ;;  %555 = vst [vmem:[#allocation4 + $0x9c] sm:$0xff] %v554_v43   ;;  %559 = vst [vmem:[#allocation4 + $0xa4] sm:$0xf] %v558_v44  ;;  %v570_v50 = vld [vmem:[%s11716_s10 + $0xbc] sm:$0xff]  }
  0x49   :  { %561 = vst [vmem:[#allocation4 + $0xa8] sm:$0xf] %v560_v45  ;;  %v562_v46 = vld [vmem:[%s11716_s10 + $0xb4] sm:$0xf]  ;;  %v564_v47 = vld [vmem:[%s11716_s10 + $0xa8] sm:$0xf] }
  0x4a   :  { %v566_v48 = vld [vmem:[%s11716_s10 + $0xb8] sm:$0xf]  ;;  %563 = vst [vmem:[#allocation4 + $0xac] sm:$0xf] %v562_v46  ;;  %565 = vst [vmem:[#allocation4 + $0xb0] sm:$0xf] %v564_v47 }
  0x4b   :  { %567 = vst [vmem:[#allocation4 + $0xb4] sm:$0xf] %v566_v48  ;;  %v568_v49 = vld [vmem:[%s11716_s10 + $0xac] sm:$0xf]  ;;  %v574_v51 = vld [vmem:[%s11716_s10 + $0xd0] sm:$0xf] }
  0x4c   :  { %569 = vst [vmem:[#allocation4 + $0xb8] sm:$0xf] %v568_v49  ;;  %571 = vst [vmem:[#allocation4 + $0xbc] sm:$0xff] %v570_v50   ;;  %v576_v52 = vld [vmem:[%s11716_s10 + $0xc4] sm:$0xf]  ;;  %v586_v57 = vld [vmem:[%s11716_s10 + $0xdc] sm:$0xff]  }
  0x4d   :  { %575 = vst [vmem:[#allocation4 + $0xc4] sm:$0xf] %v574_v51  ;;  %v578_v53 = vld [vmem:[%s11716_s10 + $0xd4] sm:$0xf]  ;;  %v580_v54 = vld [vmem:[%s11716_s10 + $0xc8] sm:$0xf] }
  0x4e   :  { %577 = vst [vmem:[#allocation4 + $0xc8] sm:$0xf] %v576_v52  ;;  %579 = vst [vmem:[#allocation4 + $0xcc] sm:$0xf] %v578_v53  ;;  %v582_v55 = vld [vmem:[%s11716_s10 + $0xd8] sm:$0xf] }
  0x4f   :  { %581 = vst [vmem:[#allocation4 + $0xd0] sm:$0xf] %v580_v54  ;;  %v584_v56 = vld [vmem:[%s11716_s10 + $0xcc] sm:$0xf]  ;;  %583 = vst [vmem:[#allocation4 + $0xd4] sm:$0xf] %v582_v55 }
  0x50   :  { %585 = vst [vmem:[#allocation4 + $0xd8] sm:$0xf] %v584_v56  ;;  %587 = vst [vmem:[#allocation4 + $0xdc] sm:$0xff] %v586_v57   ;;  %v590_v58 = vld [vmem:[%s11716_s10 + $0xf0] sm:$0xf] }
  0x51   :  { %v592_v59 = vld [vmem:[%s11716_s10 + $0xe4] sm:$0xf]  ;;  %v594_v60 = vld [vmem:[%s11716_s10 + $0xf4] sm:$0xf]  ;;  %591 = vst [vmem:[#allocation4 + $0xe4] sm:$0xf] %v590_v58 }
  0x52   :  { %593 = vst [vmem:[#allocation4 + $0xe8] sm:$0xf] %v592_v59  ;;  %595 = vst [vmem:[#allocation4 + $0xec] sm:$0xf] %v594_v60  ;;  %v596_v61 = vld [vmem:[%s11716_s10 + $0xe8] sm:$0xf] }
  0x53   :  { %v598_v62 = vld [vmem:[%s11716_s10 + $0xf8] sm:$0xf]  ;;  %v600_v63 = vld [vmem:[%s11716_s10 + $0xec] sm:$0xf]  ;;  %597 = vst [vmem:[#allocation4 + $0xf0] sm:$0xf] %v596_v61 }
  0x54   :  { %599 = vst [vmem:[#allocation4 + $0xf4] sm:$0xf] %v598_v62  ;;  %601 = vst [vmem:[#allocation4 + $0xf8] sm:$0xf] %v600_v63  ;;  %v602_v0 = vld [vmem:[%s11716_s10 + $0xfc] sm:$0xf] }
  0x55   :  { %603 = vst [vmem:[#allocation4 + $0xfc] sm:$0xf] %v602_v0 }
  0x56   :  { %762 = vsyncadd [#allocation7 + $0x2], 4096  ;;  %v781_v1 = vld [vmem:[%s11717_s11] sm:$0xf]  ;;  %v783_v2 = vld [vmem:[%s11717_s11 + $0x10] sm:$0xf] }
  0x57   :  { %782 = vst [vmem:[#allocation5] sm:$0xf] %v781_v1  ;;  %784 = vst [vmem:[#allocation5 + $0x4] sm:$0xf] %v783_v2  ;;  %v785_v3 = vld [vmem:[%s11717_s11 + $0x4] sm:$0xf] }
  0x58   :  { %v787_v4 = vld [vmem:[%s11717_s11 + $0x14] sm:$0xf]  ;;  %v789_v5 = vld [vmem:[%s11717_s11 + $0x8] sm:$0xf]  ;;  %786 = vst [vmem:[#allocation5 + $0x8] sm:$0xf] %v785_v3 }
  0x59   :  { %788 = vst [vmem:[#allocation5 + $0xc] sm:$0xf] %v787_v4  ;;  %790 = vst [vmem:[#allocation5 + $0x10] sm:$0xf] %v789_v5  ;;  %v791_v6 = vld [vmem:[%s11717_s11 + $0x18] sm:$0xf] }
  0x5a   :  { %v793_v7 = vld [vmem:[%s11717_s11 + $0xc] sm:$0xf]  ;;  %v795_v8 = vld [vmem:[%s11717_s11 + $0x1c] sm:$0xff]   ;;  %792 = vst [vmem:[#allocation5 + $0x14] sm:$0xf] %v791_v6 }
  0x5b   :  { %794 = vst [vmem:[#allocation5 + $0x18] sm:$0xf] %v793_v7  ;;  %796 = vst [vmem:[#allocation5 + $0x1c] sm:$0xff] %v795_v8   ;;  %v799_v9 = vld [vmem:[%s11717_s11 + $0x30] sm:$0xf]  ;;  %v811_v15 = vld [vmem:[%s11717_s11 + $0x3c] sm:$0xff]  }
  0x5c   :  { %v801_v10 = vld [vmem:[%s11717_s11 + $0x24] sm:$0xf]  ;;  %v803_v11 = vld [vmem:[%s11717_s11 + $0x34] sm:$0xf]  ;;  %800 = vst [vmem:[#allocation5 + $0x24] sm:$0xf] %v799_v9 }
  0x5d   :  { %802 = vst [vmem:[#allocation5 + $0x28] sm:$0xf] %v801_v10  ;;  %804 = vst [vmem:[#allocation5 + $0x2c] sm:$0xf] %v803_v11  ;;  %v805_v12 = vld [vmem:[%s11717_s11 + $0x28] sm:$0xf] }
  0x5e   :  { %v807_v13 = vld [vmem:[%s11717_s11 + $0x38] sm:$0xf]  ;;  %v809_v14 = vld [vmem:[%s11717_s11 + $0x2c] sm:$0xf]  ;;  %806 = vst [vmem:[#allocation5 + $0x30] sm:$0xf] %v805_v12 }
  0x5f   :  { %808 = vst [vmem:[#allocation5 + $0x34] sm:$0xf] %v807_v13  ;;  %810 = vst [vmem:[#allocation5 + $0x38] sm:$0xf] %v809_v14  ;;  %v815_v16 = vld [vmem:[%s11717_s11 + $0x50] sm:$0xf] }
  0x60   :  { %v817_v17 = vld [vmem:[%s11717_s11 + $0x44] sm:$0xf]  ;;  %812 = vst [vmem:[#allocation5 + $0x3c] sm:$0xff] %v811_v15   ;;  %816 = vst [vmem:[#allocation5 + $0x44] sm:$0xf] %v815_v16  ;;  %v827_v22 = vld [vmem:[%s11717_s11 + $0x5c] sm:$0xff]  }
  0x61   :  { %818 = vst [vmem:[#allocation5 + $0x48] sm:$0xf] %v817_v17  ;;  %v819_v18 = vld [vmem:[%s11717_s11 + $0x54] sm:$0xf]  ;;  %v821_v19 = vld [vmem:[%s11717_s11 + $0x48] sm:$0xf] }
  0x62   :  { %v823_v20 = vld [vmem:[%s11717_s11 + $0x58] sm:$0xf]  ;;  %820 = vst [vmem:[#allocation5 + $0x4c] sm:$0xf] %v819_v18  ;;  %822 = vst [vmem:[#allocation5 + $0x50] sm:$0xf] %v821_v19 }
  0x63   :  { %824 = vst [vmem:[#allocation5 + $0x54] sm:$0xf] %v823_v20  ;;  %v825_v21 = vld [vmem:[%s11717_s11 + $0x4c] sm:$0xf]  ;;  %v831_v23 = vld [vmem:[%s11717_s11 + $0x70] sm:$0xf] }
  0x64   :  { %826 = vst [vmem:[#allocation5 + $0x58] sm:$0xf] %v825_v21  ;;  %828 = vst [vmem:[#allocation5 + $0x5c] sm:$0xff] %v827_v22   ;;  %v833_v24 = vld [vmem:[%s11717_s11 + $0x64] sm:$0xf]  ;;  %v843_v29 = vld [vmem:[%s11717_s11 + $0x7c] sm:$0xff]  }
  0x65   :  { %832 = vst [vmem:[#allocation5 + $0x64] sm:$0xf] %v831_v23  ;;  %v835_v25 = vld [vmem:[%s11717_s11 + $0x74] sm:$0xf]  ;;  %v837_v26 = vld [vmem:[%s11717_s11 + $0x68] sm:$0xf] }
  0x66   :  { %834 = vst [vmem:[#allocation5 + $0x68] sm:$0xf] %v833_v24  ;;  %836 = vst [vmem:[#allocation5 + $0x6c] sm:$0xf] %v835_v25  ;;  %v839_v27 = vld [vmem:[%s11717_s11 + $0x78] sm:$0xf] }
  0x67   :  { %838 = vst [vmem:[#allocation5 + $0x70] sm:$0xf] %v837_v26  ;;  %v841_v28 = vld [vmem:[%s11717_s11 + $0x6c] sm:$0xf]  ;;  %840 = vst [vmem:[#allocation5 + $0x74] sm:$0xf] %v839_v27 }
  0x68   :  { %842 = vst [vmem:[#allocation5 + $0x78] sm:$0xf] %v841_v28  ;;  %844 = vst [vmem:[#allocation5 + $0x7c] sm:$0xff] %v843_v29   ;;  %v847_v30 = vld [vmem:[%s11717_s11 + $0x90] sm:$0xf]  ;;  %v859_v36 = vld [vmem:[%s11717_s11 + $0x9c] sm:$0xff]  }
  0x69   :  { %v849_v31 = vld [vmem:[%s11717_s11 + $0x84] sm:$0xf]  ;;  %v851_v32 = vld [vmem:[%s11717_s11 + $0x94] sm:$0xf]  ;;  %848 = vst [vmem:[#allocation5 + $0x84] sm:$0xf] %v847_v30 }
  0x6a   :  { %850 = vst [vmem:[#allocation5 + $0x88] sm:$0xf] %v849_v31  ;;  %852 = vst [vmem:[#allocation5 + $0x8c] sm:$0xf] %v851_v32  ;;  %v853_v33 = vld [vmem:[%s11717_s11 + $0x88] sm:$0xf] }
  0x6b   :  { %v855_v34 = vld [vmem:[%s11717_s11 + $0x98] sm:$0xf]  ;;  %v857_v35 = vld [vmem:[%s11717_s11 + $0x8c] sm:$0xf]  ;;  %854 = vst [vmem:[#allocation5 + $0x90] sm:$0xf] %v853_v33 }
  0x6c   :  { %856 = vst [vmem:[#allocation5 + $0x94] sm:$0xf] %v855_v34  ;;  %858 = vst [vmem:[#allocation5 + $0x98] sm:$0xf] %v857_v35  ;;  %v863_v37 = vld [vmem:[%s11717_s11 + $0xb0] sm:$0xf] }
  0x6d   :  { %v865_v38 = vld [vmem:[%s11717_s11 + $0xa4] sm:$0xf]  ;;  %860 = vst [vmem:[#allocation5 + $0x9c] sm:$0xff] %v859_v36   ;;  %864 = vst [vmem:[#allocation5 + $0xa4] sm:$0xf] %v863_v37  ;;  %v875_v43 = vld [vmem:[%s11717_s11 + $0xbc] sm:$0xff]  }
  0x6e   :  { %866 = vst [vmem:[#allocation5 + $0xa8] sm:$0xf] %v865_v38  ;;  %v867_v39 = vld [vmem:[%s11717_s11 + $0xb4] sm:$0xf]  ;;  %v869_v40 = vld [vmem:[%s11717_s11 + $0xa8] sm:$0xf] }
  0x6f   :  { %v871_v41 = vld [vmem:[%s11717_s11 + $0xb8] sm:$0xf]  ;;  %868 = vst [vmem:[#allocation5 + $0xac] sm:$0xf] %v867_v39  ;;  %870 = vst [vmem:[#allocation5 + $0xb0] sm:$0xf] %v869_v40 }
  0x70   :  { %872 = vst [vmem:[#allocation5 + $0xb4] sm:$0xf] %v871_v41  ;;  %v873_v42 = vld [vmem:[%s11717_s11 + $0xac] sm:$0xf]  ;;  %v879_v44 = vld [vmem:[%s11717_s11 + $0xd0] sm:$0xf] }
  0x71   :  { %874 = vst [vmem:[#allocation5 + $0xb8] sm:$0xf] %v873_v42  ;;  %876 = vst [vmem:[#allocation5 + $0xbc] sm:$0xff] %v875_v43   ;;  %v881_v45 = vld [vmem:[%s11717_s11 + $0xc4] sm:$0xf]  ;;  %v891_v50 = vld [vmem:[%s11717_s11 + $0xdc] sm:$0xff]  }
  0x72   :  { %880 = vst [vmem:[#allocation5 + $0xc4] sm:$0xf] %v879_v44  ;;  %v883_v46 = vld [vmem:[%s11717_s11 + $0xd4] sm:$0xf]  ;;  %v885_v47 = vld [vmem:[%s11717_s11 + $0xc8] sm:$0xf] }
  0x73   :  { %882 = vst [vmem:[#allocation5 + $0xc8] sm:$0xf] %v881_v45  ;;  %884 = vst [vmem:[#allocation5 + $0xcc] sm:$0xf] %v883_v46  ;;  %v887_v48 = vld [vmem:[%s11717_s11 + $0xd8] sm:$0xf] }
  0x74   :  { %886 = vst [vmem:[#allocation5 + $0xd0] sm:$0xf] %v885_v47  ;;  %v889_v49 = vld [vmem:[%s11717_s11 + $0xcc] sm:$0xf]  ;;  %888 = vst [vmem:[#allocation5 + $0xd4] sm:$0xf] %v887_v48 }
  0x75   :  { %890 = vst [vmem:[#allocation5 + $0xd8] sm:$0xf] %v889_v49  ;;  %892 = vst [vmem:[#allocation5 + $0xdc] sm:$0xff] %v891_v50   ;;  %v895_v51 = vld [vmem:[%s11717_s11 + $0xf0] sm:$0xf] }
  0x76   :  { %v897_v52 = vld [vmem:[%s11717_s11 + $0xe4] sm:$0xf]  ;;  %v899_v53 = vld [vmem:[%s11717_s11 + $0xf4] sm:$0xf]  ;;  %896 = vst [vmem:[#allocation5 + $0xe4] sm:$0xf] %v895_v51 }
  0x77   :  { %898 = vst [vmem:[#allocation5 + $0xe8] sm:$0xf] %v897_v52  ;;  %900 = vst [vmem:[#allocation5 + $0xec] sm:$0xf] %v899_v53  ;;  %v901_v54 = vld [vmem:[%s11717_s11 + $0xe8] sm:$0xf] }
  0x78   :  { %v903_v55 = vld [vmem:[%s11717_s11 + $0xf8] sm:$0xf]  ;;  %v905_v56 = vld [vmem:[%s11717_s11 + $0xec] sm:$0xf]  ;;  %902 = vst [vmem:[#allocation5 + $0xf0] sm:$0xf] %v901_v54 }
  0x79   :  { %904 = vst [vmem:[#allocation5 + $0xf4] sm:$0xf] %v903_v55  ;;  %906 = vst [vmem:[#allocation5 + $0xf8] sm:$0xf] %v905_v56  ;;  %v907_v57 = vld [vmem:[%s11717_s11 + $0xfc] sm:$0xf] }
  0x7a   :  { %908 = vst [vmem:[#allocation5 + $0xfc] sm:$0xf] %v907_v57 }
  0x7b   :  { %1067 = vsyncadd [#allocation7 + $0x3], 4096  ;;  %v1086_v58 = vld [vmem:[%s11719_s13] sm:$0xf]  ;;  %v1088_v59 = vld [vmem:[%s11719_s13 + $0x8] sm:$0xf] }
  0x7c   :  { %1087 = vst [vmem:[#allocation6] sm:$0xf] %v1086_v58  ;;  %1089 = vst [vmem:[#allocation6 + $0x4] sm:$0xf] %v1088_v59  ;;  %v1090_v60 = vld [vmem:[%s11719_s13 + $0x4] sm:$0xf] }
  0x7d   :  { %v1092_v61 = vld [vmem:[%s11719_s13 + $0xc] sm:$0xff]   ;;  %v1096_v62 = vld [vmem:[%s11719_s13 + $0x18] sm:$0xf]  ;;  %1091 = vst [vmem:[#allocation6 + $0x8] sm:$0xf] %v1090_v60  ;;  %v1100_v0 = vld [vmem:[%s11719_s13 + $0x1c] sm:$0xff]  }
  0x7e   :  { %1093 = vst [vmem:[#allocation6 + $0xc] sm:$0xff] %v1092_v61   ;;  %1097 = vst [vmem:[#allocation6 + $0x14] sm:$0xf] %v1096_v62  ;;  %v1098_v63 = vld [vmem:[%s11719_s13 + $0x14] sm:$0xf]  ;;  %v1108_v3 = vld [vmem:[%s11719_s13 + $0x2c] sm:$0xff]  }
  0x7f   :  { %v1104_v1 = vld [vmem:[%s11719_s13 + $0x28] sm:$0xf]  ;;  %1099 = vst [vmem:[#allocation6 + $0x18] sm:$0xf] %v1098_v63  ;;  %1101 = vst [vmem:[#allocation6 + $0x1c] sm:$0xff] %v1100_v0   ;;  %v1116_v6 = vld [vmem:[%s11719_s13 + $0x3c] sm:$0xff]  }
  0x80   :  { %1105 = vst [vmem:[#allocation6 + $0x24] sm:$0xf] %v1104_v1  ;;  %v1106_v2 = vld [vmem:[%s11719_s13 + $0x24] sm:$0xf]  ;;  %v1112_v4 = vld [vmem:[%s11719_s13 + $0x38] sm:$0xf] }
  0x81   :  { %1107 = vst [vmem:[#allocation6 + $0x28] sm:$0xf] %v1106_v2  ;;  %1109 = vst [vmem:[#allocation6 + $0x2c] sm:$0xff] %v1108_v3   ;;  %v1114_v5 = vld [vmem:[%s11719_s13 + $0x34] sm:$0xf]  ;;  %v1124_v9 = vld [vmem:[%s11719_s13 + $0x4c] sm:$0xff]  }
  0x82   :  { %1113 = vst [vmem:[#allocation6 + $0x34] sm:$0xf] %v1112_v4  ;;  %v1120_v7 = vld [vmem:[%s11719_s13 + $0x48] sm:$0xf]  ;;  %1115 = vst [vmem:[#allocation6 + $0x38] sm:$0xf] %v1114_v5 }
  0x83   :  { %1117 = vst [vmem:[#allocation6 + $0x3c] sm:$0xff] %v1116_v6   ;;  %1121 = vst [vmem:[#allocation6 + $0x44] sm:$0xf] %v1120_v7  ;;  %v1122_v8 = vld [vmem:[%s11719_s13 + $0x44] sm:$0xf]  ;;  %v1132_v12 = vld [vmem:[%s11719_s13 + $0x5c] sm:$0xff]  }
  0x84   :  { %v1128_v10 = vld [vmem:[%s11719_s13 + $0x58] sm:$0xf]  ;;  %1123 = vst [vmem:[#allocation6 + $0x48] sm:$0xf] %v1122_v8  ;;  %1125 = vst [vmem:[#allocation6 + $0x4c] sm:$0xff] %v1124_v9   ;;  %v1140_v15 = vld [vmem:[%s11719_s13 + $0x6c] sm:$0xff]  }
  0x85   :  { %1129 = vst [vmem:[#allocation6 + $0x54] sm:$0xf] %v1128_v10  ;;  %v1130_v11 = vld [vmem:[%s11719_s13 + $0x54] sm:$0xf]  ;;  %v1136_v13 = vld [vmem:[%s11719_s13 + $0x68] sm:$0xf] }
  0x86   :  { %1131 = vst [vmem:[#allocation6 + $0x58] sm:$0xf] %v1130_v11  ;;  %1133 = vst [vmem:[#allocation6 + $0x5c] sm:$0xff] %v1132_v12   ;;  %v1138_v14 = vld [vmem:[%s11719_s13 + $0x64] sm:$0xf] }
  0x87   :  { %1137 = vst [vmem:[#allocation6 + $0x64] sm:$0xf] %v1136_v13  ;;  %v1144_v16 = vld [vmem:[%s11719_s13 + $0x78] sm:$0xf]  ;;  %1139 = vst [vmem:[#allocation6 + $0x68] sm:$0xf] %v1138_v14 }
  0x88   :  { %1141 = vst [vmem:[#allocation6 + $0x6c] sm:$0xff] %v1140_v15   ;;  %1145 = vst [vmem:[#allocation6 + $0x74] sm:$0xf] %v1144_v16  ;;  %v1146_v17 = vld [vmem:[%s11719_s13 + $0x74] sm:$0xf] }
  0x89   :  { %v1148_v18 = vld [vmem:[%s11719_s13 + $0x7c] sm:$0xf]  ;;  %1147 = vst [vmem:[#allocation6 + $0x78] sm:$0xf] %v1146_v17 }
  0x8a   :  { %1149 = vst [vmem:[#allocation6 + $0x7c] sm:$0xf] %v1148_v18 }
  0x8b   :  { %1244 = vsyncadd [#allocation7 + $0x4], 2048  ;;  %v1383_v19 = vlaneseq  ;;  %v8060_v20 = vld [vmem:[%s11707_s1] sm:$0xff]   ;;  %v8061_v21 = vld [vmem:[%s11707_s1 + $0x8] sm:$0xff]   ;;  %v11722_v23 = vmov 0.0   ;;  %vm8378_vm0 = vmmov 0  }
  0x8c   :  { %7863 = vmatprep.subr.bf16.mxu1 %v11722_v23  ;;  %7847 = vmatprep.subr.bf16.mxu0 %v8060_v20  ;;  %v8062_v24 = vld [vmem:[%s11707_s1 + $0x10] sm:$0xff]   ;;  %v1381_v25 = vld [vmem:[%s11715_s9] sm:$0xf]  ;;  %v8065_v41 = vld [vmem:[%s11708_s2 + $0x8] sm:$0xff]   ;;  %vm1296_vm1 = vcmask 523264   ;;  %v11724_v50 = vmov 0  }
  0x8d   :  { %v1384_v22 = vshrl.u32 %v1383_v19, 7  ;;  %v1403_v26 = vld [vmem:[%s11718_s12] sm:$0xf]  ;;  %7848 = vmatpush3.bf16.msra.mxu0 %v8060_v20  ;;  %7867 = vmatprep.mubr.msk.bf16.mxu1 %vm8378_vm0, %v11722_v23  ;;  %v1246_v45 = vld [vmem:[%s11706_s0 + $0x8] sm:$0xff]  ;;  %v8064_v46 = vld [vmem:[%s11707_s1 + $0x18] sm:$0xff]   ;;  %s8380_s18 = smov 32  }
  0x8e   :  { %v1425_v31 = vld [vmem:[%s11720_s14] sm:$0x3]  ;;  %7849 = vmatprep.subr.bf16.mxu0 %v8061_v21  ;;  %v1247_v48 = vld [vmem:[%s11706_s0 + $0x10] sm:$0xff]  ;;  %v1248_v49 = vld [vmem:[%s11706_s0 + $0x18] sm:$0xff]  ;;  %vm1453_vm2 = vcmask 261120  }
  0x8f   :  { %v1385_v27 = vsub.s32 0, %v1384_v22  ;;  %v1389_v28 = vsub.s32 1, %v1384_v22  ;;  %v1393_v29 = vsub.s32 2, %v1384_v22  ;;  %v1397_v30 = vsub.s32 3, %v1384_v22  ;;  %v8063_v32 = vld [vmem:[%s11708_s2] sm:$0xff]   ;;  %v1250_v12 = vld [vmem:[%s11706_s0 + $0x28] sm:$0xff] }
  0x90   :  { %7864 = vmatpush3.bf16.msra.mxu1 %v8063_v32  ;;  %v1245_v44 = vld [vmem:[%s11706_s0] sm:$0xff]  ;;  %v1254_v51 = vpack.c.bf16 %v1248_v49, %v1247_v48  ;;  %v1251_v13 = vld [vmem:[%s11706_s0 + $0x30] sm:$0xff]  ;;  %v1252_v15 = vld [vmem:[%s11706_s0 + $0x38] sm:$0xff] }
  0x91   :  { %v9117_v33 = vrot.slane %v1381_v25, %v1385_v27  ;;  %v9119_v34 = vrot.slane %v1381_v25, %v1389_v28  ;;  %v9121_v35 = vrot.slane %v1381_v25, %v1393_v29  ;;  %v9123_v36 = vrot.slane %v1381_v25, %v1397_v30  ;;  %7850 = vmatpush3.bf16.msra.mxu0 %v8061_v21  ;;  %v9170_v55 = vld [vmem:[%s11709_s3] ss:$0 sm:$0xff]  ;;  %v8067_v18 = vld [vmem:[%s11710_s4 + $0x8] sm:$0xff]  }
  0x92   :  { %v9127_v37 = vrot.slane %v1403_v26, %v1385_v27  ;;  %v9129_v38 = vrot.slane %v1403_v26, %v1389_v28  ;;  %v9131_v39 = vrot.slane %v1403_v26, %v1393_v29  ;;  %v9133_v40 = vrot.slane %v1403_v26, %v1397_v30  ;;  %7865 = vmatprep.subr.bf16.mxu1 %v11722_v23  ;;  %v1249_v11 = vld [vmem:[%s11706_s0 + $0x20] sm:$0xff]  ;;  %s8381_s0 = smov 64  }
  0x93   :  { %11996 = vst [vmem:[#allocation18_spill] sm:$0xff] %v9117_v33  ;;  %11997 = vst [vmem:[#allocation19_spill] sm:$0xff] %v9119_v34  ;;  %v9138_v42 = vrot.slane %v1425_v31, %v1385_v27  ;;  %v9140_v43 = vrot.slane %v1425_v31, %v1389_v28  ;;  %7851 = vmatprep.subr.bf16.mxu0 %v8062_v24  ;;  %v1253_v47 = vpack.c.bf16 %v1246_v45, %v1245_v44  ;;  %v8066_v16 = vld [vmem:[%s11710_s4] sm:$0xff]   ;;  %v8069_v44 = vld [vmem:[%s11711_s5 + $0x8] sm:$0xff]  }
  0x94   :  { %11998 = vst [vmem:[#allocation20_spill] sm:$0xff] %v9123_v36  ;;  %7866 = vmatpush3.bf16.msra.mxu1 %v8065_v41  ;;  %v1255_v14 = vpack.c.bf16 %v1250_v12, %v1249_v11  ;;  %v1256_v17 = vpack.c.bf16 %v1252_v15, %v1251_v13 }
  0x95   :  { %11999 = vst [vmem:[#allocation21_spill] sm:$0xff] %v9138_v42  ;;  %12000 = vst [vmem:[#allocation22_spill] sm:$0xff] %v9140_v43  ;;  %7855 = vmatprep.mubr.msk.bf16.mxu0 %vm1296_vm1, %v1253_v47  ;;  %7852 = vmatpush3.bf16.msra.mxu0 %v8062_v24 }
  0x96   :  { %7871 = vmatprep.subr.bf16.mxu1 %v11722_v23  ;;  %7853 = vmatprep.subr.bf16.mxu0 %v8064_v46 }
  0x97   :  { %7868 = vmatmul.mubr.bf16.vlgmr.msra.gmra.mrb[0].mxu1 %v11724_v50 }
  0x98   :  { %7872 = vmatpush3.bf16.msra.mxu1 %v8063_v32  ;;  %7875 = vmatprep.mubr.msk.bf16.mxu1 %vm8378_vm0, %v11722_v23  ;;  %v8068_v32 = vld [vmem:[%s11711_s5] sm:$0xff]  }
  0x99   :  { %7854 = vmatpush3.bf16.msra.mxu0 %v8064_v46  ;;  %7873 = vmatprep.subr.bf16.mxu1 %v11722_v23 }
  0x9a   :  { %7887 = vmatprep.subr.bf16.mxu0 %v11722_v23 }
  0x9c   :  { %7856 = vmatmul.mubr.msk.bf16.vlgmr.msra.gmra.mrb[0].mxu0 %vm1296_vm1, %v1254_v51  ;;  %7874 = vmatpush3.bf16.msra.mxu1 %v8065_v41 }
  0x9d   :  { %7879 = vmatprep.subr.bf16.mxu1 %v11722_v23  ;;  %7859 = vmatprep.mubr.msk.bf16.mxu0 %vm1296_vm1, %v1255_v14 }
  0x9e   :  { %7888 = vmatpush3.bf16.msra.mxu0 %v8066_v16 }
  0x9f   :  { %7889 = vmatprep.subr.bf16.mxu0 %v11722_v23 }
  0xa2   :  { %7890 = vmatpush3.bf16.msra.mxu0 %v8067_v18 }
  0xa4   :  { %7860 = vmatmul.mubr.msk.bf16.gmra.mrb[4].mxu0 %vm1296_vm1, %v1256_v17 }
  0xa5   :  { %7891 = vmatprep.mubr.msk.bf16.mxu0 %vm8378_vm0, %v11722_v23 }
 0x16a   :  { %v1491_v52 = vpop.f32.mrb[0].mxu1 }
 0x16b   :  { %v7869_v53 = vpop.f32.mrb[1].mxu1 }
 0x16c   :  { %v1494_v54 = vpop.f32.mrb[2].mxu1 }
 0x16d   :  { %v7870_v56 = vpop.f32.mrb[3].mxu1 }
 0x16f   :  { %v7857_v57 = vpop.f32.mrb[0].mxu0 }
 0x170   :  { %v9173_v58 = vadd.f32 %v7857_v57, %v9170_v55  ;;  %v1343_v59 = vpop.f32.mrb[1].mxu0  ;;  %v9237_v57 = vld [vmem:[%s11712_s6] ss:$0 sm:$0xff] }
 0x171   :  { %v1344_v60 = vadd.f32 %v9170_v55, %v1343_v59  ;;  %v7858_v61 = vpop.f32.mrb[2].mxu0  ;;  %12005 = vst [vmem:[#allocation27_spill] sm:$0xff] %v9237_v57 }
 0x172   :  { %v9177_v62 = vadd.f32 %v7858_v61, %v9170_v55  ;;  %v1346_v63 = vpop.f32.mrb[3].mxu0 }
 0x173   :  { %v1497_v0 = vadd.f32 %v1491_v52, %v1344_v60  ;;  %v1347_v45 = vadd.f32 %v9170_v55, %v1346_v63 }
 0x175   :  { %8070 = vtanh.f32 %v1497_v0  ;;  %v1498_v2 = vmul.f32 0.5, %v1497_v0 }
 0x177   :  { %8072 = vtanh.f32 %v1498_v2  ;;  %v7861_v24 = vpop.f32.mrb[4].mxu0 }
 0x178   :  { %v9210_v25 = vadd.f32 %v7861_v24, %v9170_v55  ;;  %v1359_v26 = vpop.f32.mrb[5].mxu0 }
 0x179   :  { %v9213_v27 = vadd.f32 %v9170_v55, %v1359_v26  ;;  %v7862_v28 = vpop.f32.mrb[6].mxu0 }
 0x17a   :  { %12001 = vst [vmem:[#allocation23_spill] sm:$0xff] %v9210_v25  ;;  %v9216_v29 = vadd.f32 %v7862_v28, %v9170_v55  ;;  %v1362_v30 = vpop.f32.mrb[7].mxu0 }
 0x17b   :  { %12002 = vst [vmem:[#allocation24_spill] sm:$0xff] %v9213_v27  ;;  %v9219_v31 = vadd.f32 %v9170_v55, %v1362_v30 }
 0x17c   :  { %12003 = vst [vmem:[#allocation25_spill] sm:$0xff] %v9216_v29 }
 0x17d   :  { %12004 = vst [vmem:[#allocation26_spill] sm:$0xff] %v9219_v31 }
 0x17f   :  { %v8071_v1 = vpop.eup %8070 }
 0x180   :  { %1505 = vrot.lane.b32.xlu0 %v8071_v1, %s8380_s18 }
 0x181   :  { %v8073_v3 = vpop.eup %8072 }
 0x182   :  { %v1500_v4 = vadd.f32 1.0, %v8073_v3 }
 0x184   :  { %v1501_v5 = vmul.f32 0.5, %v1500_v4 }
 0x186   :  { %v1503_v8 = vmul.f32 0.0, %v1501_v5 }
 0x1f2   :  { %v1506_v6 = vpop.permute.xlu0 %1505 }
 0x1f3   :  { %v1508_v7 = vmul.f32 %v1506_v6, %v1501_v5 }
 0x1f5   :  { %1510 = vrot.lane.b32.xlu0 %v1508_v7, %s8380_s18 }
 0x267   :  { %v1511_v9 = vpop.permute.xlu0 %1510 }
 0x268   :  { %v9181_v10 = vadd.f32 %v1511_v9, %v1503_v8 }
 0x26a   :  { %8074 = vtanh.f32 %v9181_v10 }
 0x274   :  { %v8075_v19 = vpop.eup %8074 }
 0x275   :  { %1516 = vrot.lane.b32.xlu1 %v8075_v19, %s8380_s18 }
 0x2e7   :  { %v1517_v20 = vpop.permute.xlu1 %1516 }
 0x2e8   :  { %v1519_v21 = vmul.f32 %v1517_v20, %v1501_v5 }
 0x2ea   :  { %v1520_v22 = vpack.c.bf16 %v1519_v21, %v1519_v21 }
 0x2ec   :  { %1522 = vrot.lane.b32.xlu1 %v1520_v22, %s8381_s0 }
 0x35e   :  { %v1523_v41 = vpop.permute.xlu1 %1522 }
 0x35f   :  { %7876 = vmatmul.mubr.msk.bf16.vlgmr.msra.gmra.mrb[4].mxu1 %vm1453_vm2, %v1523_v41  ;;  %7892 = vmatmul.mubr.msk.bf16.vlgmr.msra.gmra.mrb[8].mxu0 %vm1453_vm2, %v1523_v41 }
 0x360   :  { %7880 = vmatpush3.bf16.msra.mxu1 %v8068_v32  ;;  %7883 = vmatprep.mubr.msk.bf16.mxu1 %vm8378_vm0, %v11722_v23 }
 0x361   :  { %7881 = vmatprep.subr.bf16.mxu1 %v11722_v23 }
 0x364   :  { %7882 = vmatpush3.bf16.msra.mxu1 %v8069_v44 }
 0x367   :  { %7884 = vmatmul.mubr.bf16.vlgmr.msra.gmra.mrb[8].mxu1 %v11724_v50 }
 0x432   :  { %v1561_v46 = vpop.f32.mrb[4].mxu1  ;;  %v1696_v47 = vpop.f32.mrb[8].mxu0 }
 0x433   :  { %v1567_v48 = vadd.f32 %v1561_v46, %v1347_v45  ;;  %v7877_v49 = vpop.f32.mrb[5].mxu1  ;;  %v7893_v51 = vpop.f32.mrb[9].mxu0 }
 0x434   :  { %v1564_v52 = vpop.f32.mrb[6].mxu1  ;;  %v1699_v53 = vpop.f32.mrb[10].mxu0 }
 0x435   :  { %8076 = vtanh.f32 %v1567_v48  ;;  %v7878_v54 = vpop.f32.mrb[7].mxu1  ;;  %v7894_v56 = vpop.f32.mrb[11].mxu0  ;;  %v1568_v3 = vmul.f32 0.5, %v1567_v48 }
 0x43a   :  { %v1644_v59 = vpop.f32.mrb[8].mxu1 }
 0x43b   :  { %v1697_v60 = vadd.f32 %v1696_v47, %v1644_v59  ;;  %v7885_v61 = vpop.f32.mrb[9].mxu1 }
 0x43c   :  { %v1647_v0 = vpop.f32.mrb[10].mxu1 }
 0x43d   :  { %v1702_v55 = vadd.f32 %v9237_v57, %v1697_v60  ;;  %v7886_v63 = vpop.f32.mrb[11].mxu1 }
 0x43f   :  { %v8077_v1 = vpop.eup %8076  ;;  %8078 = vtanh.f32 %v1702_v55  ;;  %v1703_v4 = vmul.f32 0.5, %v1702_v55 }
 0x440   :  { %1575 = vrot.lane.b32.xlu0 %v8077_v1, %s8380_s18  ;;  %8080 = vtanh.f32 %v1568_v3 }
 0x441   :  { %8082 = vtanh.f32 %v1703_v4 }
 0x449   :  { %v8079_v2 = vpop.eup %8078 }
 0x44a   :  { %1710 = vrot.lane.b32.xlu1 %v8079_v2, %s8380_s18  ;;  %v8081_v5 = vpop.eup %8080 }
 0x44b   :  { %v1570_v6 = vadd.f32 1.0, %v8081_v5  ;;  %v8083_v11 = vpop.eup %8082 }
 0x44c   :  { %v1705_v12 = vadd.f32 1.0, %v8083_v11 }
 0x44d   :  { %v1571_v7 = vmul.f32 0.5, %v1570_v6 }
 0x44e   :  { %v1706_v13 = vmul.f32 0.5, %v1705_v12 }
 0x44f   :  { %v1573_v16 = vmul.f32 %v1571_v7, %v9181_v10 }
 0x450   :  { %v1708_v19 = vmul.f32 0.0, %v1706_v13 }
 0x4b2   :  { %v1576_v8 = vpop.permute.xlu0 %1575 }
 0x4b3   :  { %v1578_v9 = vmul.f32 %v1576_v8, %v1571_v7 }
 0x4b5   :  { %1580 = vrot.lane.b32.xlu0 %v1578_v9, %s8380_s18 }
 0x4bc   :  { %v1711_v14 = vpop.permute.xlu1 %1710 }
 0x4bd   :  { %v1713_v15 = vmul.f32 %v1711_v14, %v1706_v13 }
 0x4bf   :  { %1715 = vrot.lane.b32.xlu1 %v1713_v15, %s8380_s18 }
 0x527   :  { %v1581_v17 = vpop.permute.xlu0 %1580 }
 0x528   :  { %v9245_v18 = vadd.f32 %v1581_v17, %v1573_v16 }
 0x52a   :  { %8084 = vtanh.f32 %v9245_v18 }
 0x531   :  { %v1716_v20 = vpop.permute.xlu1 %1715 }
 0x532   :  { %v9248_v21 = vadd.f32 %v1716_v20, %v1708_v19 }
 0x534   :  { %v8085_v22 = vpop.eup %8084  ;;  %8086 = vtanh.f32 %v9248_v21 }
 0x535   :  { %1586 = vrot.lane.b32.xlu0 %v8085_v22, %s8380_s18 }
 0x53e   :  { %v8087_v24 = vpop.eup %8086 }
 0x53f   :  { %1721 = vrot.lane.b32.xlu1 %v8087_v24, %s8380_s18 }
 0x5a7   :  { %v1587_v26 = vpop.permute.xlu0 %1586 }
 0x5a8   :  { %v1589_v28 = vmul.f32 %v1587_v26, %v1571_v7 }
 0x5b1   :  { %v1722_v10 = vpop.permute.xlu1 %1721 }
 0x5b2   :  { %v1724_v30 = vmul.f32 %v1722_v10, %v1706_v13 }
 0x5b3   :  { %8367 = dma.done.wait [#allocation7], 1024 }
 0x5b4   :  { %8368 = vsyncadd [#allocation7], 4294966272  ;;  %v1733_v32 = vpack.c.bf16 %v1589_v28, %v1589_v28 }
 0x5b5   :  { %8369 = dma.done.wait [#allocation7 + $0x1], 4096 }
 0x5b6   :  { %8370 = vsyncadd [#allocation7 + $0x1], 4294963200  ;;  %7895 = vmatprep.subr.bf16.mxu1 %v11722_v23  ;;  %7903 = vmatprep.subr.bf16.mxu0 %v11722_v23  ;;  %v1823_v41 = vpack.c.bf16 %v1724_v30, %v1724_v30  ;;  %v8088_v44 = vld [vmem:[%s11708_s2] sm:$0xff]   ;;  %v8089_v45 = vld [vmem:[%s11708_s2 + $0x8] sm:$0xff]  }
 0x5b7   :  { %7899 = vmatprep.mubr.msk.bf16.mxu1 %vm8378_vm0, %v11722_v23  ;;  %7907 = vmatprep.mubr.msk.bf16.mxu0 %vm8378_vm0, %v11722_v23  ;;  %v8090_v46 = vld [vmem:[%s11711_s5] sm:$0xff]   ;;  %v8091_v47 = vld [vmem:[%s11711_s5 + $0x8] sm:$0xff]   ;;  %v1972_v59 = vld [vmem:[#allocation3 + $0x18] sm:$0xff] }
 0x5b8   :  { %1739 = vrot.lane.b32.xlu0 %v1733_v32, %s8381_s0  ;;  %7896 = vmatpush3.bf16.msra.mxu1 %v8088_v44  ;;  %v1970_v48 = vld [vmem:[#allocation3 + $0x8] sm:$0xff]  ;;  %v8092_v49 = vld [vmem:[%s11710_s4] sm:$0xff]   ;;  %v1971_v61 = vld [vmem:[#allocation3 + $0x10] sm:$0xff] }
 0x5b9   :  { %7897 = vmatprep.subr.bf16.mxu1 %v11722_v23  ;;  %7904 = vmatpush3.bf16.msra.mxu0 %v8090_v46  ;;  %v8093_v52 = vld [vmem:[%s11710_s4 + $0x8] sm:$0xff]   ;;  %v1969_v53 = vld [vmem:[#allocation3] sm:$0xff]  ;;  %v1976_v55 = vld [vmem:[#allocation3 + $0x38] sm:$0xff] }
 0x5ba   :  { %7905 = vmatprep.subr.bf16.mxu0 %v11722_v23  ;;  %v1974_v56 = vld [vmem:[#allocation3 + $0x28] sm:$0xff]  ;;  %v1973_v60 = vld [vmem:[#allocation3 + $0x20] sm:$0xff]  ;;  %v1975_v1 = vld [vmem:[#allocation3 + $0x30] sm:$0xff] }
 0x5bb   :  { %v1978_v0 = vld [vmem:[#allocation3 + $0x48] sm:$0xff]  ;;  %v1977_v63 = vld [vmem:[#allocation3 + $0x40] sm:$0xff]  ;;  %v1980_v3 = vld [vmem:[#allocation3 + $0x58] sm:$0xff] }
 0x5bc   :  { %1829 = vrot.lane.b32.xlu0 %v1823_v41, %s8381_s0  ;;  %7898 = vmatpush3.bf16.msra.mxu1 %v8089_v45  ;;  %v1982_v2 = vld [vmem:[#allocation3 + $0x68] sm:$0xff]  ;;  %v1981_v4 = vld [vmem:[#allocation3 + $0x60] sm:$0xff]  ;;  %v1979_v5 = vld [vmem:[#allocation3 + $0x50] sm:$0xff] }
 0x5bd   :  { %7911 = vmatprep.subr.bf16.mxu1 %v11722_v23  ;;  %7906 = vmatpush3.bf16.msra.mxu0 %v8091_v47  ;;  %v1986_v6 = vld [vmem:[#allocation3 + $0x88] sm:$0xff]  ;;  %v1984_v7 = vld [vmem:[#allocation3 + $0x78] sm:$0xff]  ;;  %v1985_v8 = vld [vmem:[#allocation3 + $0x80] sm:$0xff] }
 0x5be   :  { %2001 = vmatprep.subr.bf16.mxu0 %v1970_v48  ;;  %v1983_v9 = vld [vmem:[#allocation3 + $0x70] sm:$0xff]  ;;  %v1990_v11 = vld [vmem:[#allocation3 + $0xa8] sm:$0xff]  ;;  %v1988_v12 = vld [vmem:[#allocation3 + $0x98] sm:$0xff] }
 0x5bf   :  { %v1989_v13 = vld [vmem:[#allocation3 + $0xa0] sm:$0xff]  ;;  %v1987_v14 = vld [vmem:[#allocation3 + $0x90] sm:$0xff]  ;;  %v1994_v15 = vld [vmem:[#allocation3 + $0xc8] sm:$0xff] }
 0x5c0   :  { %v1992_v16 = vld [vmem:[#allocation3 + $0xb8] sm:$0xff]  ;;  %v1993_v17 = vld [vmem:[#allocation3 + $0xc0] sm:$0xff]  ;;  %v1991_v19 = vld [vmem:[#allocation3 + $0xb0] sm:$0xff] }
 0x5c1   :  { %v1998_v20 = vld [vmem:[#allocation3 + $0xe8] sm:$0xff]  ;;  %v1996_v22 = vld [vmem:[#allocation3 + $0xd8] sm:$0xff]  ;;  %v1997_v24 = vld [vmem:[#allocation3 + $0xe0] sm:$0xff] }
 0x5c2   :  { %v1995_v26 = vld [vmem:[#allocation3 + $0xd0] sm:$0xff]  ;;  %v2000_v28 = vld [vmem:[#allocation3 + $0xf8] sm:$0xff]  ;;  %v1962_v10 = vld [vmem:[#allocation2 + $0x8] sm:$0xff] }
 0x5c3   :  { %v1999_v30 = vld [vmem:[#allocation3 + $0xf0] sm:$0xff]  ;;  %v1961_v32 = vld [vmem:[#allocation2] sm:$0xff]  ;;  %v1966_v41 = vld [vmem:[#allocation2 + $0x28] sm:$0xff] }
 0x5c4   :  { %v1964_v44 = vld [vmem:[#allocation2 + $0x18] sm:$0xff]  ;;  %v1965_v45 = vld [vmem:[#allocation2 + $0x20] sm:$0xff]  ;;  %v1963_v46 = vld [vmem:[#allocation2 + $0x10] sm:$0xff] }
 0x5c5   :  { %v1968_v47 = vld [vmem:[#allocation2 + $0x38] sm:$0xff]  ;;  %v1967_v48 = vld [vmem:[#allocation2 + $0x30] sm:$0xff] }
 0x62a   :  { %v1740_v51 = vpop.permute.xlu0 %1739 }
 0x62b   :  { %7900 = vmatmul.mubr.msk.bf16.vlgmr.msra.gmra.mrb[12].mxu1 %vm1453_vm2, %v1740_v51 }
 0x62c   :  { %7912 = vmatpush3.bf16.msra.mxu1 %v8092_v49  ;;  %7915 = vmatprep.mubr.msk.bf16.mxu1 %vm8378_vm0, %v11722_v23 }
 0x62d   :  { %7913 = vmatprep.subr.bf16.mxu1 %v11722_v23 }
 0x62e   :  { %v9286_v54 = vpop.permute.xlu0 %1829 }
 0x62f   :  { %7908 = vmatmul.mubr.msk.bf16.vlgmr.msra.gmra.mrb[12].mxu0 %vm1453_vm2, %v9286_v54 }
 0x630   :  { %7914 = vmatpush3.bf16.msra.mxu1 %v8093_v52  ;;  %2002 = vmatpush1.bf16.msra.mxu0 %v1969_v53 }
 0x631   :  { %2003 = vmatprep.subr.bf16.mxu0 %v1974_v56  ;;  %2042 = vmatprep.subr.bf16.mxu1 %v1972_v59 }
 0x632   :  { %2033 = vmatprep.mubr.bf16.mxu0 %v11724_v50 }
 0x633   :  { %7916 = vmatmul.mubr.msk.bf16.vlgmr.msra.gmra.mrb[16].mxu1 %vm1453_vm2, %v1740_v51 }
 0x634   :  { %2004 = vmatpush1.bf16.msra.mxu0 %v1973_v60  ;;  %2043 = vmatpush1.bf16.msra.mxu1 %v1971_v61 }
 0x635   :  { %2005 = vmatprep.subr.bf16.mxu0 %v1978_v0  ;;  %2044 = vmatprep.subr.bf16.mxu1 %v1976_v55 }
 0x636   :  { %2074 = vmatprep.mubr.bf16.mxu1 %v11724_v50 }
 0x638   :  { %2006 = vmatpush1.bf16.msra.mxu0 %v1977_v63  ;;  %2045 = vmatpush1.bf16.msra.mxu1 %v1975_v1 }
 0x639   :  { %2007 = vmatprep.subr.bf16.mxu0 %v1982_v2  ;;  %2046 = vmatprep.subr.bf16.mxu1 %v1980_v3 }
 0x63c   :  { %2008 = vmatpush1.bf16.msra.mxu0 %v1981_v4  ;;  %2047 = vmatpush1.bf16.msra.mxu1 %v1979_v5 }
 0x63d   :  { %2009 = vmatprep.subr.bf16.mxu0 %v1986_v6  ;;  %2048 = vmatprep.subr.bf16.mxu1 %v1984_v7 }
 0x640   :  { %2010 = vmatpush1.bf16.msra.mxu0 %v1985_v8  ;;  %2049 = vmatpush1.bf16.msra.mxu1 %v1983_v9 }
 0x641   :  { %2011 = vmatprep.subr.bf16.mxu0 %v1990_v11  ;;  %2050 = vmatprep.subr.bf16.mxu1 %v1988_v12 }
 0x644   :  { %2012 = vmatpush1.bf16.msra.mxu0 %v1989_v13  ;;  %2051 = vmatpush1.bf16.msra.mxu1 %v1987_v14 }
 0x645   :  { %2013 = vmatprep.subr.bf16.mxu0 %v1994_v15  ;;  %2052 = vmatprep.subr.bf16.mxu1 %v1992_v16 }
 0x648   :  { %2014 = vmatpush1.bf16.msra.mxu0 %v1993_v17  ;;  %2053 = vmatpush1.bf16.msra.mxu1 %v1991_v19 }
 0x649   :  { %2015 = vmatprep.subr.bf16.mxu0 %v1998_v20  ;;  %2054 = vmatprep.subr.bf16.mxu1 %v1996_v22 }
 0x64c   :  { %2016 = vmatpush1.bf16.msra.mxu0 %v1997_v24  ;;  %2055 = vmatpush1.bf16.msra.mxu1 %v1995_v26 }
 0x64d   :  { %2056 = vmatprep.subr.bf16.mxu1 %v2000_v28  ;;  %2083 = vmatprep.subr.bf16.mxu0 %v1962_v10 }
 0x64f   :  { %2034 = vmatmul.mubr.bf16.vlgmr.msra.gmra.mrb[16].mxu0 %v11724_v50 }
 0x650   :  { %2057 = vmatpush1.bf16.msra.mxu1 %v1999_v30  ;;  %2084 = vmatpush1.bf16.msra.mxu0 %v1961_v32 }
 0x651   :  { %2085 = vmatprep.subr.bf16.mxu0 %v1966_v41  ;;  %2124 = vmatprep.subr.bf16.mxu1 %v1964_v44 }
 0x652   :  { %2115 = vmatprep.mubr.bf16.mxu0 %v11724_v50 }
 0x653   :  { %2075 = vmatmul.mubr.bf16.vlgmr.msra.gmra.mrb[20].mxu1 %v11724_v50 }
 0x654   :  { %2086 = vmatpush1.bf16.msra.mxu0 %v1965_v45  ;;  %2125 = vmatpush1.bf16.msra.mxu1 %v1963_v46 }
 0x655   :  { %2126 = vmatprep.subr.bf16.mxu1 %v1968_v47  ;;  %2156 = vmatprep.mubr.bf16.mxu1 %v11724_v50 }
 0x657   :  { %7695 = vmatmul.mubr.msk.bf16.vlgmr.msra.gmra.mrb[20].mxu0 %vm1453_vm2, %v9286_v54 }
 0x658   :  { %2127 = vmatpush1.bf16.msra.mxu1 %v1967_v48 }
 0x65b   :  { %7696 = vmatmul.mubr.msk.bf16.vlgmr.msra.gmra.mrb[24].mxu1 %vm1453_vm2, %v9286_v54 }
 0x6fe   :  { %v1790_v49 = vpop.f32.mrb[12].mxu1 }
 0x6ff   :  { %v9302_v51 = vadd.f32 %v1790_v49, %v9173_v58  ;;  %v7901_v52 = vpop.f32.mrb[13].mxu1 }
 0x700   :  { %v1793_v53 = vpop.f32.mrb[14].mxu1 }
 0x701   :  { %v7902_v56 = vpop.f32.mrb[15].mxu1  ;;  %8094 = vtanh.f32 %v9302_v51 }
 0x702   :  { %v1880_v59 = vpop.f32.mrb[12].mxu0 }
 0x703   :  { %v7909_v60 = vpop.f32.mrb[13].mxu0 }
 0x704   :  { %v1883_v61 = vpop.f32.mrb[14].mxu0 }
 0x705   :  { %v7910_v0 = vpop.f32.mrb[15].mxu0 }
 0x706   :  { %v1932_v55 = vpop.f32.mrb[16].mxu1 }
 0x707   :  { %v1933_v63 = vadd.f32 %v1932_v55, %v1880_v59  ;;  %v7917_v1 = vpop.f32.mrb[17].mxu1 }
 0x708   :  { %v1935_v2 = vpop.f32.mrb[18].mxu1 }
 0x709   :  { %v1938_v3 = vadd.f32 %v9237_v57, %v1933_v63  ;;  %v7918_v54 = vpop.f32.mrb[19].mxu1 }
 0x70b   :  { %v8095_v4 = vpop.eup %8094  ;;  %8096 = vtanh.f32 %v1938_v3 }
 0x70c   :  { %1804 = vrot.lane.b32.xlu1 %v8095_v4, %s8380_s18 }
 0x715   :  { %v8097_v58 = vpop.eup %8096 }
 0x716   :  { %1946 = vrot.lane.b32.xlu1 %v8097_v58, %s8380_s18 }
 0x722   :  { %v2035_v5 = vpop.f32.mrb[16].mxu0 }
 0x723   :  { %v2037_v6 = vpop.f32.mrb[17].mxu0 }
 0x724   :  { %v2039_v7 = vpop.f32.mrb[18].mxu0 }
 0x725   :  { %v2040_v8 = vpop.f32.mrb[19].mxu0 }
 0x726   :  { %v2076_v9 = vpop.f32.mrb[20].mxu1 }
 0x727   :  { %v2078_v11 = vpop.f32.mrb[21].mxu1 }
 0x728   :  { %v2080_v12 = vpop.f32.mrb[22].mxu1 }
 0x729   :  { %v2081_v13 = vpop.f32.mrb[23].mxu1 }
 0x72a   :  { %v2117_v14 = vpop.f32.mrb[20].mxu0 }
 0x72b   :  { %v2118_v15 = vadd.f32 %v2117_v14, %v2035_v5  ;;  %v2119_v16 = vpop.f32.mrb[21].mxu0  ;;  %v1797_v5 = vmul.f32 0.5, %v9302_v51 }
 0x72c   :  { %v2120_v17 = vadd.f32 %v2119_v16, %v2037_v6  ;;  %v2121_v19 = vpop.f32.mrb[22].mxu0  ;;  %v1939_v6 = vmul.f32 0.5, %v1938_v3 }
 0x72d   :  { %v2165_v20 = vadd.f32 %v2118_v15, %v9117_v33  ;;  %v2122_v22 = vpop.f32.mrb[23].mxu0 }
 0x72e   :  { %v2166_v24 = vadd.f32 %v2120_v17, %v9119_v34  ;;  %v2158_v26 = vpop.f32.mrb[24].mxu1 }
 0x72f   :  { %v2169_v28 = vmul.f32 0.5, %v2165_v20  ;;  %v2159_v10 = vadd.f32 %v2158_v26, %v2076_v9  ;;  %v2160_v30 = vpop.f32.mrb[25].mxu1 }
 0x730   :  { %v2170_v32 = vmul.f32 0.5, %v2166_v24  ;;  %v2161_v41 = vadd.f32 %v2160_v30, %v2078_v11  ;;  %v2162_v44 = vpop.f32.mrb[26].mxu1 }
 0x731   :  { %8098 = vtanh.f32 %v2169_v28  ;;  %v2163_v45 = vpop.f32.mrb[27].mxu1  ;;  %v2167_v47 = vadd.f32 %v2159_v10, %v9121_v35 }
 0x732   :  { %8100 = vtanh.f32 %v2170_v32  ;;  %v2168_v46 = vadd.f32 %v2161_v41, %v9123_v36 }
 0x733   :  { %v2171_v48 = vmul.f32 0.5, %v2167_v47 }
 0x734   :  { %8102 = vtanh.f32 %v2168_v46 }
 0x735   :  { %8104 = vtanh.f32 %v2171_v48 }
 0x73b   :  { %v8099_v49 = vpop.eup %8098 }
 0x73c   :  { %v8101_v52 = vpop.eup %8100  ;;  %v2175_v53 = vadd.f32 1.0, %v8099_v49 }
 0x73d   :  { %v2176_v56 = vadd.f32 1.0, %v8101_v52 }
 0x73e   :  { %v8103_v59 = vpop.eup %8102  ;;  %v2178_v60 = vmul.f32 0.5, %v2175_v53 }
 0x73f   :  { %v2179_v61 = vmul.f32 0.5, %v2176_v56  ;;  %v8105_v1 = vpop.eup %8104 }
 0x740   :  { %v2183_v0 = vmul.f32 %v8103_v59, %v2178_v60  ;;  %v2177_v2 = vadd.f32 1.0, %v8105_v1 }
 0x741   :  { %v2182_v55 = vmul.f32 0.0, %v2179_v61 }
 0x742   :  { %v2180_v54 = vmul.f32 0.5, %v2177_v2 }
 0x743   :  { %v9312_v63 = vadd.f32 %v2183_v0, %v2182_v55 }
 0x745   :  { %8106 = vtanh.f32 %v9312_v63 }
 0x746   :  { %8108 = vtanh.f32 %v1797_v5 }
 0x747   :  { %8110 = vtanh.f32 %v1939_v6 }
 0x74f   :  { %v8107_v4 = vpop.eup %8106 }
 0x750   :  { %v9315_v58 = vmul.f32 %v8107_v4, %v2180_v54  ;;  %v8109_v7 = vpop.eup %8108 }
 0x751   :  { %v1799_v8 = vadd.f32 1.0, %v8109_v7  ;;  %v8111_v13 = vpop.eup %8110 }
 0x752   :  { %v1941_v14 = vadd.f32 1.0, %v8111_v13 }
 0x753   :  { %v1800_v9 = vmul.f32 0.5, %v1799_v8 }
 0x754   :  { %v1942_v15 = vmul.f32 0.5, %v1941_v14 }
 0x755   :  { %v1802_v19 = vmul.f32 %v1800_v9, %v9245_v18 }
 0x756   :  { %v1944_v3 = vmul.f32 %v1942_v15, %v9248_v21 }
 0x77e   :  { %v1805_v11 = vpop.permute.xlu1 %1804 }
 0x77f   :  { %v1807_v12 = vmul.f32 %v1805_v11, %v1800_v9 }
 0x781   :  { %1809 = vrot.lane.b32.xlu0 %v1807_v12, %s8380_s18 }
 0x788   :  { %v1947_v16 = vpop.permute.xlu1 %1946 }
 0x789   :  { %v1949_v17 = vmul.f32 %v1947_v16, %v1942_v15 }
 0x78b   :  { %1951 = vrot.lane.b32.xlu1 %v1949_v17, %s8380_s18 }
 0x7f3   :  { %v1810_v51 = vpop.permute.xlu0 %1809 }
 0x7f4   :  { %v9321_v20 = vadd.f32 %v1810_v51, %v1802_v19 }
 0x7f6   :  { %8112 = vtanh.f32 %v9321_v20 }
 0x7fd   :  { %v1952_v22 = vpop.permute.xlu1 %1951 }
 0x7fe   :  { %v9325_v24 = vadd.f32 %v1952_v22, %v1944_v3 }
 0x800   :  { %v8113_v26 = vpop.eup %8112  ;;  %8114 = vtanh.f32 %v9325_v24 }
 0x801   :  { %1815 = vrot.lane.b32.xlu0 %v8113_v26, %s8380_s18 }
 0x80a   :  { %v8115_v28 = vpop.eup %8114 }
 0x80b   :  { %1957 = vrot.lane.b32.xlu1 %v8115_v28, %s8380_s18 }
 0x873   :  { %v1816_v10 = vpop.permute.xlu0 %1815 }
 0x874   :  { %v1818_v18 = vmul.f32 %v1816_v10, %v1800_v9 }
 0x87d   :  { %v1958_v30 = vpop.permute.xlu1 %1957 }
 0x87e   :  { %v1960_v32 = vmul.f32 %v1958_v30, %v1942_v15 }
 0x87f   :  { %8371 = dma.done.wait [#allocation7 + $0x2], 4096 }
 0x880   :  { %8372 = vsyncadd [#allocation7 + $0x2], 4294963200 }
 0x881   :  { %8373 = dma.done.wait [#allocation7 + $0x3], 4096 }
 0x882   :  { %8374 = vsyncadd [#allocation7 + $0x3], 4294963200  ;;  %v2194_v21 = vpack.c.bf16 %v1818_v18, %v1818_v18 }
 0x883   :  { %8375 = dma.done.wait [#allocation7 + $0x4], 2048 }
 0x884   :  { %8376 = vsyncadd [#allocation7 + $0x4], 4294965248  ;;  %7919 = vmatprep.subr.bf16.mxu0 %v11722_v23  ;;  %7927 = vmatprep.subr.bf16.mxu1 %v11722_v23  ;;  %v2284_v41 = vpack.c.bf16 %v1960_v32, %v1960_v32  ;;  %v8116_v44 = vld [vmem:[%s11708_s2] sm:$0xff]   ;;  %v8117_v45 = vld [vmem:[%s11708_s2 + $0x8] sm:$0xff]  }
 0x885   :  { %7923 = vmatprep.mubr.msk.bf16.mxu0 %vm8378_vm0, %v11722_v23  ;;  %7931 = vmatprep.mubr.msk.bf16.mxu1 %vm8378_vm0, %v11722_v23  ;;  %v8118_v46 = vld [vmem:[%s11711_s5] sm:$0xff]   ;;  %v8119_v47 = vld [vmem:[%s11711_s5 + $0x8] sm:$0xff]   ;;  %v9369_v61 = vld [vmem:[#allocation3 + $0x18] sm:$0xff] }
 0x886   :  { %2200 = vrot.lane.b32.xlu0 %v2194_v21, %s8381_s0  ;;  %7920 = vmatpush3.bf16.msra.mxu0 %v8116_v44  ;;  %v2432_v48 = vld [vmem:[#allocation3 + $0x8] sm:$0xff]  ;;  %v8120_v49 = vld [vmem:[%s11710_s4] sm:$0xff]   ;;  %v9378_v55 = vld [vmem:[#allocation3 + $0x10] sm:$0xff]  ;;  %v9461_v21 = vpack.c.bf16 %v9315_v58, %v9315_v58 }
 0x887   :  { %7921 = vmatprep.subr.bf16.mxu0 %v11722_v23  ;;  %7928 = vmatpush3.bf16.msra.mxu1 %v8118_v46  ;;  %v8121_v53 = vld [vmem:[%s11710_s4 + $0x8] sm:$0xff]   ;;  %v9363_v56 = vld [vmem:[#allocation3] sm:$0xff]  ;;  %v9382_v2 = vld [vmem:[#allocation3 + $0x38] sm:$0xff] }
 0x888   :  { %7929 = vmatprep.subr.bf16.mxu1 %v11722_v23  ;;  %v9367_v60 = vld [vmem:[#allocation3 + $0x28] sm:$0xff]  ;;  %v9376_v0 = vld [vmem:[#allocation3 + $0x20] sm:$0xff]  ;;  %v9392_v4 = vld [vmem:[#allocation3 + $0x30] sm:$0xff] }
 0x889   :  { %12006 = vst [vmem:[#allocation28_spill] sm:$0xff] %v9367_v60  ;;  %12007 = vst [vmem:[#allocation29_spill] sm:$0xff] %v9376_v0  ;;  %v9380_v1 = vld [vmem:[#allocation3 + $0x48] sm:$0xff]  ;;  %v9390_v54 = vld [vmem:[#allocation3 + $0x40] sm:$0xff] }
 0x88a   :  { %2290 = vrot.lane.b32.xlu0 %v2284_v41, %s8381_s0  ;;  %7922 = vmatpush3.bf16.msra.mxu0 %v8117_v45  ;;  %12008 = vst [vmem:[#allocation30_spill] sm:$0xff] %v9380_v1  ;;  %12009 = vst [vmem:[#allocation31_spill] sm:$0xff] %v9390_v54  ;;  %v9394_v5 = vld [vmem:[#allocation3 + $0x68] sm:$0xff]  ;;  %v9396_v6 = vld [vmem:[#allocation3 + $0x58] sm:$0xff] }
 0x88b   :  { %7935 = vmatprep.subr.bf16.mxu0 %v11722_v23  ;;  %7930 = vmatpush3.bf16.msra.mxu1 %v8119_v47  ;;  %12010 = vst [vmem:[#allocation32_spill] sm:$0xff] %v9394_v5  ;;  %v9403_v7 = vld [vmem:[#allocation3 + $0x60] sm:$0xff]  ;;  %v9405_v8 = vld [vmem:[#allocation3 + $0x50] sm:$0xff]  ;;  %v9407_v9 = vld [vmem:[#allocation3 + $0x88] sm:$0xff] }
 0x88c   :  { %2463 = vmatprep.subr.bf16.mxu1 %v2432_v48  ;;  %12011 = vst [vmem:[#allocation33_spill] sm:$0xff] %v9403_v7  ;;  %12012 = vst [vmem:[#allocation34_spill] sm:$0xff] %v9407_v9  ;;  %v9409_v11 = vld [vmem:[#allocation3 + $0x78] sm:$0xff]  ;;  %v9415_v12 = vld [vmem:[#allocation3 + $0x80] sm:$0xff] }
 0x88d   :  { %12013 = vst [vmem:[#allocation35_spill] sm:$0xff] %v9415_v12  ;;  %v9417_v13 = vld [vmem:[#allocation3 + $0x70] sm:$0xff]  ;;  %v9419_v14 = vld [vmem:[#allocation3 + $0xa8] sm:$0xff]  ;;  %v9421_v15 = vld [vmem:[#allocation3 + $0x98] sm:$0xff] }
 0x88e   :  { %12014 = vst [vmem:[#allocation36_spill] sm:$0xff] %v9419_v14  ;;  %v9427_v16 = vld [vmem:[#allocation3 + $0xa0] sm:$0xff]  ;;  %v9429_v17 = vld [vmem:[#allocation3 + $0x90] sm:$0xff]  ;;  %v9431_v19 = vld [vmem:[#allocation3 + $0xc8] sm:$0xff] }
 0x88f   :  { %12015 = vst [vmem:[#allocation37_spill] sm:$0xff] %v9427_v16  ;;  %12016 = vst [vmem:[#allocation38_spill] sm:$0xff] %v9431_v19  ;;  %v9433_v51 = vld [vmem:[#allocation3 + $0xb8] sm:$0xff]  ;;  %v9439_v3 = vld [vmem:[#allocation3 + $0xc0] sm:$0xff] }
 0x890   :  { %12017 = vst [vmem:[#allocation39_spill] sm:$0xff] %v9439_v3  ;;  %v9441_v22 = vld [vmem:[#allocation3 + $0xb0] sm:$0xff]  ;;  %v9443_v26 = vld [vmem:[#allocation3 + $0xe8] sm:$0xff]  ;;  %v9445_v28 = vld [vmem:[#allocation3 + $0xd8] sm:$0xff] }
 0x891   :  { %12018 = vst [vmem:[#allocation40_spill] sm:$0xff] %v9443_v26  ;;  %v9451_v10 = vld [vmem:[#allocation3 + $0xe0] sm:$0xff]  ;;  %v9453_v18 = vld [vmem:[#allocation3 + $0xd0] sm:$0xff]  ;;  %v9455_v30 = vld [vmem:[#allocation3 + $0xf8] sm:$0xff] }
 0x892   :  { %12019 = vst [vmem:[#allocation41_spill] sm:$0xff] %v9451_v10  ;;  %v9457_v32 = vld [vmem:[#allocation2 + $0x8] sm:$0xff]  ;;  %v9467_v41 = vld [vmem:[#allocation3 + $0xf0] sm:$0xff]  ;;  %v9469_v44 = vld [vmem:[#allocation2] sm:$0xff] }
 0x893   :  { %12020 = vst [vmem:[#allocation42_spill] sm:$0xff] %v9457_v32  ;;  %12021 = vst [vmem:[#allocation43_spill] sm:$0xff] %v9469_v44  ;;  %v9471_v45 = vld [vmem:[#allocation2 + $0x28] sm:$0xff]  ;;  %v9473_v46 = vld [vmem:[#allocation2 + $0x18] sm:$0xff] }
 0x894   :  { %12022 = vst [vmem:[#allocation44_spill] sm:$0xff] %v9471_v45  ;;  %v9480_v58 = vld [vmem:[#allocation2 + $0x20] sm:$0xff]  ;;  %v9482_v47 = vld [vmem:[#allocation2 + $0x10] sm:$0xff]  ;;  %v9485_v48 = vld [vmem:[#allocation2 + $0x38] sm:$0xff] }
 0x895   :  { %12023 = vst [vmem:[#allocation45_spill] sm:$0xff] %v9480_v58  ;;  %v9501_v29 = vld [vmem:[#allocation5 + $0x18] sm:$0xff]  ;;  %v9508_v25 = vld [vmem:[#allocation5 + $0x20] sm:$0xff]  ;;  %v9511_v31 = vld [vmem:[#allocation5 + $0x10] sm:$0xff] }
 0x896   :  { %12027 = vst [vmem:[#allocation49_spill] sm:$0xff] %v9508_v25  ;;  %v9515_v27 = vld [vmem:[#allocation5 + $0x38] sm:$0xff] }
 0x8f8   :  { %v2201_v52 = vpop.permute.xlu0 %2200 }
 0x8f9   :  { %7924 = vmatmul.mubr.msk.bf16.vlgmr.msra.gmra.mrb[24].mxu0 %vm1453_vm2, %v2201_v52 }
 0x8fa   :  { %7936 = vmatpush3.bf16.msra.mxu0 %v8120_v49  ;;  %7939 = vmatprep.mubr.msk.bf16.mxu0 %vm8378_vm0, %v11722_v23  ;;  %v9487_v49 = vld [vmem:[#allocation5 + $0x8] sm:$0xff] }
 0x8fb   :  { %7937 = vmatprep.subr.bf16.mxu0 %v11722_v23  ;;  %12024 = vst [vmem:[#allocation46_spill] sm:$0xff] %v9487_v49  ;;  %v9499_v23 = vld [vmem:[#allocation5 + $0x28] sm:$0xff] }
 0x8fc   :  { %v9365_v59 = vpop.permute.xlu0 %2290  ;;  %12026 = vst [vmem:[#allocation48_spill] sm:$0xff] %v9499_v23 }
 0x8fd   :  { %7932 = vmatmul.mubr.msk.bf16.vlgmr.msra.gmra.mrb[28].mxu1 %vm1453_vm2, %v9365_v59 }
 0x8fe   :  { %7938 = vmatpush3.bf16.msra.mxu0 %v8121_v53  ;;  %2464 = vmatpush1.bf16.msra.mxu1 %v9363_v56  ;;  %v9496_v53 = vld [vmem:[#allocation5] sm:$0xff] }
 0x8ff   :  { %2465 = vmatprep.subr.bf16.mxu1 %v9367_v60  ;;  %2504 = vmatprep.subr.bf16.mxu0 %v9369_v61  ;;  %12025 = vst [vmem:[#allocation47_spill] sm:$0xff] %v9496_v53 }
 0x900   :  { %2495 = vmatprep.mubr.bf16.mxu1 %v11724_v50 }
 0x901   :  { %7940 = vmatmul.mubr.msk.bf16.vlgmr.msra.gmra.mrb[28].mxu0 %vm1453_vm2, %v2201_v52  ;;  %v9494_v52 = vld [vmem:[#allocation2 + $0x30] sm:$0xff] }
 0x902   :  { %2466 = vmatpush1.bf16.msra.mxu1 %v9376_v0  ;;  %2505 = vmatpush1.bf16.msra.mxu0 %v9378_v55 }
 0x903   :  { %2467 = vmatprep.subr.bf16.mxu1 %v9380_v1  ;;  %2506 = vmatprep.subr.bf16.mxu0 %v9382_v2 }
 0x904   :  { %2536 = vmatprep.mubr.bf16.mxu0 %v11724_v50 }
 0x906   :  { %2468 = vmatpush1.bf16.msra.mxu1 %v9390_v54  ;;  %2507 = vmatpush1.bf16.msra.mxu0 %v9392_v4 }
 0x907   :  { %2469 = vmatprep.subr.bf16.mxu1 %v9394_v5  ;;  %2508 = vmatprep.subr.bf16.mxu0 %v9396_v6 }
 0x90a   :  { %2470 = vmatpush1.bf16.msra.mxu1 %v9403_v7  ;;  %2509 = vmatpush1.bf16.msra.mxu0 %v9405_v8  ;;  %v9731_v7 = vld [vmem:[#allocation6 + $0x48] sm:$0xff] }
 0x90b   :  { %2471 = vmatprep.subr.bf16.mxu1 %v9407_v9  ;;  %2510 = vmatprep.subr.bf16.mxu0 %v9409_v11  ;;  %v9601_v9 = vld [vmem:[#allocation4 + $0x28] sm:$0xff]  ;;  %12092 = vst [vmem:[#allocation112_spill] sm:$0xff] %v9731_v7 }
 0x90c   :  { %12053 = vst [vmem:[#allocation74_spill] sm:$0xff] %v9601_v9 }
 0x90e   :  { %2472 = vmatpush1.bf16.msra.mxu1 %v9415_v12  ;;  %2511 = vmatpush1.bf16.msra.mxu0 %v9417_v13  ;;  %v9591_v12 = vld [vmem:[#allocation5 + $0xf8] sm:$0xff] }
 0x90f   :  { %2473 = vmatprep.subr.bf16.mxu1 %v9419_v14  ;;  %2512 = vmatprep.subr.bf16.mxu0 %v9421_v15  ;;  %v9589_v14 = vld [vmem:[#allocation4 + $0x8] sm:$0xff]  ;;  %12050 = vst [vmem:[#allocation71_spill] sm:$0xff] %v9591_v12 }
 0x910   :  { %12049 = vst [vmem:[#allocation70_spill] sm:$0xff] %v9589_v14 }
 0x912   :  { %2474 = vmatpush1.bf16.msra.mxu1 %v9427_v16  ;;  %2513 = vmatpush1.bf16.msra.mxu0 %v9429_v17  ;;  %v9579_v16 = vld [vmem:[#allocation5 + $0xd8] sm:$0xff] }
 0x913   :  { %2475 = vmatprep.subr.bf16.mxu1 %v9431_v19  ;;  %2514 = vmatprep.subr.bf16.mxu0 %v9433_v51  ;;  %v9577_v19 = vld [vmem:[#allocation5 + $0xe8] sm:$0xff]  ;;  %12046 = vst [vmem:[#allocation67_spill] sm:$0xff] %v9579_v16 }
 0x914   :  { %12045 = vst [vmem:[#allocation66_spill] sm:$0xff] %v9577_v19 }
 0x916   :  { %2476 = vmatpush1.bf16.msra.mxu1 %v9439_v3  ;;  %2515 = vmatpush1.bf16.msra.mxu0 %v9441_v22  ;;  %v9567_v3 = vld [vmem:[#allocation5 + $0xb8] sm:$0xff] }
 0x917   :  { %2477 = vmatprep.subr.bf16.mxu1 %v9443_v26  ;;  %2516 = vmatprep.subr.bf16.mxu0 %v9445_v28  ;;  %v9565_v26 = vld [vmem:[#allocation5 + $0xc8] sm:$0xff]  ;;  %12042 = vst [vmem:[#allocation63_spill] sm:$0xff] %v9567_v3 }
 0x918   :  { %12041 = vst [vmem:[#allocation62_spill] sm:$0xff] %v9565_v26 }
 0x91a   :  { %2478 = vmatpush1.bf16.msra.mxu1 %v9451_v10  ;;  %2517 = vmatpush1.bf16.msra.mxu0 %v9453_v18  ;;  %v9555_v10 = vld [vmem:[#allocation5 + $0x98] sm:$0xff] }
 0x91b   :  { %2518 = vmatprep.subr.bf16.mxu0 %v9455_v30  ;;  %2545 = vmatprep.subr.bf16.mxu1 %v9457_v32  ;;  %v9553_v32 = vld [vmem:[#allocation5 + $0xa8] sm:$0xff]  ;;  %12038 = vst [vmem:[#allocation59_spill] sm:$0xff] %v9555_v10 }
 0x91c   :  { %12037 = vst [vmem:[#allocation58_spill] sm:$0xff] %v9553_v32 }
 0x91d   :  { %2496 = vmatmul.mubr.bf16.vlgmr.msra.gmra.mrb[32].mxu1 %v9461_v21 }
 0x91e   :  { %2519 = vmatpush1.bf16.msra.mxu0 %v9467_v41  ;;  %2546 = vmatpush1.bf16.msra.mxu1 %v9469_v44  ;;  %v9543_v44 = vld [vmem:[#allocation5 + $0x78] sm:$0xff] }
 0x91f   :  { %2547 = vmatprep.subr.bf16.mxu1 %v9471_v45  ;;  %2586 = vmatprep.subr.bf16.mxu0 %v9473_v46  ;;  %v9530_v45 = vld [vmem:[#allocation5 + $0x58] sm:$0xff]  ;;  %12034 = vst [vmem:[#allocation55_spill] sm:$0xff] %v9543_v44 }
 0x920   :  { %2577 = vmatprep.mubr.bf16.mxu1 %v11724_v50 }
 0x921   :  { %2537 = vmatmul.mubr.bf16.vlgmr.msra.gmra.mrb[32].mxu0 %v9461_v21 }
 0x922   :  { %2548 = vmatpush1.bf16.msra.mxu1 %v9480_v58  ;;  %2587 = vmatpush1.bf16.msra.mxu0 %v9482_v47  ;;  %v9528_v58 = vld [vmem:[#allocation5 + $0x68] sm:$0xff] }
 0x923   :  { %2588 = vmatprep.subr.bf16.mxu0 %v9485_v48  ;;  %2713 = vmatprep.subr.bf16.mxu1 %v9487_v49  ;;  %v12029_v49 = vmov 0   ;;  %12031 = vst [vmem:[#allocation52_spill] sm:$0xff] %v9528_v58 }
 0x924   :  { %2618 = vmatprep.mubr.bf16.mxu0 %v11724_v50  ;;  %v9513_v50 = vld [vmem:[#allocation5 + $0x48] sm:$0xff] }
 0x925   :  { %7706 = vmatmul.mubr.msk.bf16.vlgmr.msra.gmra.mrb[36].mxu1 %vm1453_vm2, %v9365_v59  ;;  %12028 = vst [vmem:[#allocation50_spill] sm:$0xff] %v9513_v50 }
 0x926   :  { %2589 = vmatpush1.bf16.msra.mxu0 %v9494_v52  ;;  %2714 = vmatpush1.bf16.msra.mxu1 %v9496_v53  ;;  %v9526_v53 = vld [vmem:[#allocation5 + $0x30] sm:$0xff] }
 0x927   :  { %2715 = vmatprep.subr.bf16.mxu1 %v9499_v23  ;;  %2754 = vmatprep.subr.bf16.mxu0 %v9501_v29  ;;  %v9523_v23 = vld [vmem:[#allocation5 + $0x40] sm:$0xff] }
 0x928   :  { %2745 = vmatprep.mubr.bf16.mxu1 %v12029_v49  ;;  %12030 = vst [vmem:[#allocation51_spill] sm:$0xff] %v9523_v23 }
 0x929   :  { %7707 = vmatmul.mubr.msk.bf16.vlgmr.msra.gmra.mrb[36].mxu0 %vm1453_vm2, %v9365_v59  ;;  %v9536_v59 = vld [vmem:[#allocation5 + $0x60] sm:$0xff] }
 0x92a   :  { %2716 = vmatpush1.bf16.msra.mxu1 %v9508_v25  ;;  %2755 = vmatpush1.bf16.msra.mxu0 %v9511_v31  ;;  %12032 = vst [vmem:[#allocation53_spill] sm:$0xff] %v9536_v59  ;;  %v9541_v25 = vld [vmem:[#allocation5 + $0x88] sm:$0xff] }
 0x92b   :  { %2717 = vmatprep.subr.bf16.mxu1 %v9513_v50  ;;  %2756 = vmatprep.subr.bf16.mxu0 %v9515_v27  ;;  %v9539_v50 = vld [vmem:[#allocation5 + $0x50] sm:$0xff]  ;;  %12033 = vst [vmem:[#allocation54_spill] sm:$0xff] %v9541_v25 }
 0x92c   :  { %2786 = vmatprep.mubr.bf16.mxu0 %v12029_v49 }
 0x92e   :  { %2718 = vmatpush1.bf16.msra.mxu1 %v9523_v23  ;;  %2757 = vmatpush1.bf16.msra.mxu0 %v9526_v53  ;;  %v9548_v23 = vld [vmem:[#allocation5 + $0x80] sm:$0xff] }
 0x92f   :  { %2719 = vmatprep.subr.bf16.mxu1 %v9528_v58  ;;  %2758 = vmatprep.subr.bf16.mxu0 %v9530_v45  ;;  %12035 = vst [vmem:[#allocation56_spill] sm:$0xff] %v9548_v23  ;;  %v9551_v58 = vld [vmem:[#allocation5 + $0x70] sm:$0xff] }
 0x930   :  { %12036 = vst [vmem:[#allocation57_spill] sm:$0xff] %v9551_v58 }
 0x932   :  { %2720 = vmatpush1.bf16.msra.mxu1 %v9536_v59  ;;  %2759 = vmatpush1.bf16.msra.mxu0 %v9539_v50  ;;  %v9560_v59 = vld [vmem:[#allocation5 + $0xa0] sm:$0xff] }
 0x933   :  { %2721 = vmatprep.subr.bf16.mxu1 %v9541_v25  ;;  %2760 = vmatprep.subr.bf16.mxu0 %v9543_v44  ;;  %12039 = vst [vmem:[#allocation60_spill] sm:$0xff] %v9560_v59  ;;  %v9563_v25 = vld [vmem:[#allocation5 + $0x90] sm:$0xff] }
 0x934   :  { %12040 = vst [vmem:[#allocation61_spill] sm:$0xff] %v9563_v25 }
 0x936   :  { %2722 = vmatpush1.bf16.msra.mxu1 %v9548_v23  ;;  %2761 = vmatpush1.bf16.msra.mxu0 %v9551_v58  ;;  %v9572_v23 = vld [vmem:[#allocation5 + $0xc0] sm:$0xff] }
 0x937   :  { %2723 = vmatprep.subr.bf16.mxu1 %v9553_v32  ;;  %2762 = vmatprep.subr.bf16.mxu0 %v9555_v10  ;;  %12043 = vst [vmem:[#allocation64_spill] sm:$0xff] %v9572_v23  ;;  %v9575_v32 = vld [vmem:[#allocation5 + $0xb0] sm:$0xff] }
 0x938   :  { %12044 = vst [vmem:[#allocation65_spill] sm:$0xff] %v9575_v32 }
 0x93a   :  { %2724 = vmatpush1.bf16.msra.mxu1 %v9560_v59  ;;  %2763 = vmatpush1.bf16.msra.mxu0 %v9563_v25  ;;  %v9584_v59 = vld [vmem:[#allocation5 + $0xe0] sm:$0xff]  ;;  %v9752_v25 = vld [vmem:[#allocation6 + $0x78] sm:$0xff] }
 0x93b   :  { %2725 = vmatprep.subr.bf16.mxu1 %v9565_v26  ;;  %2764 = vmatprep.subr.bf16.mxu0 %v9567_v3  ;;  %12047 = vst [vmem:[#allocation68_spill] sm:$0xff] %v9584_v59  ;;  %v9587_v26 = vld [vmem:[#allocation5 + $0xd0] sm:$0xff]  ;;  %v9734_v3 = vld [vmem:[#allocation6 + $0x40] sm:$0xff]  ;;  %12098 = vst [vmem:[#allocation118_spill] sm:$0xff] %v9752_v25 }
 0x93c   :  { %12048 = vst [vmem:[#allocation69_spill] sm:$0xff] %v9587_v26  ;;  %12093 = vst [vmem:[#allocation113_spill] sm:$0xff] %v9734_v3 }
 0x93e   :  { %2726 = vmatpush1.bf16.msra.mxu1 %v9572_v23  ;;  %2765 = vmatpush1.bf16.msra.mxu0 %v9575_v32  ;;  %v9596_v23 = vld [vmem:[#allocation4] sm:$0xff] }
 0x93f   :  { %2727 = vmatprep.subr.bf16.mxu1 %v9577_v19  ;;  %2766 = vmatprep.subr.bf16.mxu0 %v9579_v16  ;;  %12051 = vst [vmem:[#allocation72_spill] sm:$0xff] %v9596_v23  ;;  %v9599_v19 = vld [vmem:[#allocation5 + $0xf0] sm:$0xff]  ;;  %v9603_v16 = vld [vmem:[#allocation4 + $0x18] sm:$0xff] }
 0x940   :  { %12052 = vst [vmem:[#allocation73_spill] sm:$0xff] %v9599_v19  ;;  %12054 = vst [vmem:[#allocation75_spill] sm:$0xff] %v9603_v16 }
 0x942   :  { %2728 = vmatpush1.bf16.msra.mxu1 %v9584_v59  ;;  %2767 = vmatpush1.bf16.msra.mxu0 %v9587_v26  ;;  %v9609_v59 = vld [vmem:[#allocation4 + $0x20] sm:$0xff]  ;;  %v9616_v26 = vld [vmem:[#allocation4 + $0x38] sm:$0xff] }
 0x943   :  { %2795 = vmatprep.subr.bf16.mxu1 %v9589_v14  ;;  %2768 = vmatprep.subr.bf16.mxu0 %v9591_v12  ;;  %12055 = vst [vmem:[#allocation76_spill] sm:$0xff] %v9609_v59  ;;  %v9612_v14 = vld [vmem:[#allocation4 + $0x10] sm:$0xff]  ;;  %v9614_v12 = vld [vmem:[#allocation4 + $0x48] sm:$0xff]  ;;  %12058 = vst [vmem:[#allocation79_spill] sm:$0xff] %v9616_v26 }
 0x944   :  { %12056 = vst [vmem:[#allocation77_spill] sm:$0xff] %v9612_v14  ;;  %12057 = vst [vmem:[#allocation78_spill] sm:$0xff] %v9614_v12 }
 0x945   :  { %2746 = vmatmul.mubr.bf16.vlgmr.msra.gmra.mrb[40].mxu1 %v12029_v49 }
 0x946   :  { %2796 = vmatpush1.bf16.msra.mxu1 %v9596_v23  ;;  %2769 = vmatpush1.bf16.msra.mxu0 %v9599_v19  ;;  %v9626_v23 = vld [vmem:[#allocation4 + $0x30] sm:$0xff]  ;;  %v9630_v19 = vld [vmem:[#allocation4 + $0x58] sm:$0xff] }
 0x947   :  { %2797 = vmatprep.subr.bf16.mxu1 %v9601_v9  ;;  %2836 = vmatprep.subr.bf16.mxu0 %v9603_v16  ;;  %v9623_v9 = vld [vmem:[#allocation4 + $0x40] sm:$0xff]  ;;  %12060 = vst [vmem:[#allocation81_spill] sm:$0xff] %v9626_v23  ;;  %v9628_v16 = vld [vmem:[#allocation4 + $0x68] sm:$0xff]  ;;  %12062 = vst [vmem:[#allocation83_spill] sm:$0xff] %v9630_v19 }
 0x948   :  { %2827 = vmatprep.mubr.bf16.mxu1 %v12029_v49  ;;  %12059 = vst [vmem:[#allocation80_spill] sm:$0xff] %v9623_v9  ;;  %12061 = vst [vmem:[#allocation82_spill] sm:$0xff] %v9628_v16 }
 0x949   :  { %2787 = vmatmul.mubr.bf16.vlgmr.msra.gmra.mrb[40].mxu0 %v12029_v49 }
 0x94a   :  { %2798 = vmatpush1.bf16.msra.mxu1 %v9609_v59  ;;  %2837 = vmatpush1.bf16.msra.mxu0 %v9612_v14  ;;  %v9636_v59 = vld [vmem:[#allocation4 + $0x60] sm:$0xff]  ;;  %v9643_v14 = vld [vmem:[#allocation4 + $0x78] sm:$0xff] }
 0x94b   :  { %2799 = vmatprep.subr.bf16.mxu1 %v9614_v12  ;;  %2838 = vmatprep.subr.bf16.mxu0 %v9616_v26  ;;  %12063 = vst [vmem:[#allocation84_spill] sm:$0xff] %v9636_v59  ;;  %v9639_v12 = vld [vmem:[#allocation4 + $0x50] sm:$0xff]  ;;  %v9641_v26 = vld [vmem:[#allocation4 + $0x88] sm:$0xff]  ;;  %12066 = vst [vmem:[#allocation87_spill] sm:$0xff] %v9643_v14 }
 0x94c   :  { %2868 = vmatprep.mubr.bf16.mxu0 %v12029_v49  ;;  %12064 = vst [vmem:[#allocation85_spill] sm:$0xff] %v9639_v12  ;;  %12065 = vst [vmem:[#allocation86_spill] sm:$0xff] %v9641_v26 }
 0x94e   :  { %2800 = vmatpush1.bf16.msra.mxu1 %v9623_v9  ;;  %2839 = vmatpush1.bf16.msra.mxu0 %v9626_v23  ;;  %v9648_v9 = vld [vmem:[#allocation4 + $0x80] sm:$0xff]  ;;  %v9653_v23 = vld [vmem:[#allocation4 + $0xa8] sm:$0xff] }
 0x94f   :  { %2801 = vmatprep.subr.bf16.mxu1 %v9628_v16  ;;  %2840 = vmatprep.subr.bf16.mxu0 %v9630_v19  ;;  %12067 = vst [vmem:[#allocation88_spill] sm:$0xff] %v9648_v9  ;;  %v9651_v16 = vld [vmem:[#allocation4 + $0x70] sm:$0xff]  ;;  %12069 = vst [vmem:[#allocation90_spill] sm:$0xff] %v9653_v23  ;;  %v9655_v19 = vld [vmem:[#allocation4 + $0x98] sm:$0xff] }
 0x950   :  { %12068 = vst [vmem:[#allocation89_spill] sm:$0xff] %v9651_v16  ;;  %12070 = vst [vmem:[#allocation91_spill] sm:$0xff] %v9655_v19 }
 0x952   :  { %2802 = vmatpush1.bf16.msra.mxu1 %v9636_v59  ;;  %2841 = vmatpush1.bf16.msra.mxu0 %v9639_v12  ;;  %v9660_v59 = vld [vmem:[#allocation4 + $0xa0] sm:$0xff]  ;;  %v9665_v12 = vld [vmem:[#allocation4 + $0xc8] sm:$0xff] }
 0x953   :  { %2803 = vmatprep.subr.bf16.mxu1 %v9641_v26  ;;  %2842 = vmatprep.subr.bf16.mxu0 %v9643_v14  ;;  %12071 = vst [vmem:[#allocation92_spill] sm:$0xff] %v9660_v59  ;;  %v9663_v26 = vld [vmem:[#allocation4 + $0x90] sm:$0xff]  ;;  %12073 = vst [vmem:[#allocation94_spill] sm:$0xff] %v9665_v12  ;;  %v9667_v14 = vld [vmem:[#allocation4 + $0xb8] sm:$0xff] }
 0x954   :  { %12072 = vst [vmem:[#allocation93_spill] sm:$0xff] %v9663_v26  ;;  %12074 = vst [vmem:[#allocation95_spill] sm:$0xff] %v9667_v14 }
 0x956   :  { %2804 = vmatpush1.bf16.msra.mxu1 %v9648_v9  ;;  %2843 = vmatpush1.bf16.msra.mxu0 %v9651_v16  ;;  %v9672_v9 = vld [vmem:[#allocation4 + $0xc0] sm:$0xff]  ;;  %v9677_v16 = vld [vmem:[#allocation4 + $0xe8] sm:$0xff] }
 0x957   :  { %2805 = vmatprep.subr.bf16.mxu1 %v9653_v23  ;;  %2844 = vmatprep.subr.bf16.mxu0 %v9655_v19  ;;  %12075 = vst [vmem:[#allocation96_spill] sm:$0xff] %v9672_v9  ;;  %v9675_v23 = vld [vmem:[#allocation4 + $0xb0] sm:$0xff]  ;;  %12077 = vst [vmem:[#allocation98_spill] sm:$0xff] %v9677_v16  ;;  %v9679_v19 = vld [vmem:[#allocation4 + $0xd8] sm:$0xff] }
 0x958   :  { %12076 = vst [vmem:[#allocation97_spill] sm:$0xff] %v9675_v23  ;;  %12078 = vst [vmem:[#allocation99_spill] sm:$0xff] %v9679_v19 }
 0x95a   :  { %2806 = vmatpush1.bf16.msra.mxu1 %v9660_v59  ;;  %2845 = vmatpush1.bf16.msra.mxu0 %v9663_v26  ;;  %v9684_v59 = vld [vmem:[#allocation4 + $0xe0] sm:$0xff]  ;;  %v9689_v26 = vld [vmem:[#allocation4 + $0xf8] sm:$0xff] }
 0x95b   :  { %2807 = vmatprep.subr.bf16.mxu1 %v9665_v12  ;;  %2846 = vmatprep.subr.bf16.mxu0 %v9667_v14  ;;  %12079 = vst [vmem:[#allocation100_spill] sm:$0xff] %v9684_v59  ;;  %v9687_v12 = vld [vmem:[#allocation4 + $0xd0] sm:$0xff]  ;;  %12081 = vst [vmem:[#allocation102_spill] sm:$0xff] %v9689_v26 }
 0x95c   :  { %12080 = vst [vmem:[#allocation101_spill] sm:$0xff] %v9687_v12  ;;  %v9694_v14 = vld [vmem:[#allocation4 + $0xf0] sm:$0xff] }
 0x95d   :  { %12082 = vst [vmem:[#allocation103_spill] sm:$0xff] %v9694_v14 }
 0x95e   :  { %2808 = vmatpush1.bf16.msra.mxu1 %v9672_v9  ;;  %2847 = vmatpush1.bf16.msra.mxu0 %v9675_v23  ;;  %v9706_v9 = vld [vmem:[#allocation6] sm:$0xff] }
 0x95f   :  { %2809 = vmatprep.subr.bf16.mxu1 %v9677_v16  ;;  %2848 = vmatprep.subr.bf16.mxu0 %v9679_v19  ;;  %v12083_v16 = vmov 0.0   ;;  %12085 = vst [vmem:[#allocation105_spill] sm:$0xff] %v9706_v9  ;;  %v9721_v19 = vld [vmem:[#allocation6 + $0x38] sm:$0xff] }
 0x960   :  { %12090 = vst [vmem:[#allocation110_spill] sm:$0xff] %v9721_v19 }
 0x962   :  { %2810 = vmatpush1.bf16.msra.mxu1 %v9684_v59  ;;  %2849 = vmatpush1.bf16.msra.mxu0 %v9687_v12  ;;  %v9703_v59 = vld [vmem:[#allocation6 + $0x8] sm:$0xff]  ;;  %v9718_v12 = vld [vmem:[#allocation6 + $0x20] sm:$0xff] }
 0x963   :  { %2850 = vmatprep.subr.bf16.mxu0 %v9689_v26  ;;  %12084 = vst [vmem:[#allocation104_spill] sm:$0xff] %v9703_v59  ;;  %2916 = vmatprep.subr.bf16.mxu1 %v9703_v59  ;;  %v9709_v26 = vld [vmem:[#allocation6 + $0x18] sm:$0xff]  ;;  %12089 = vst [vmem:[#allocation109_spill] sm:$0xff] %v9718_v12 }
 0x964   :  { %12086 = vst [vmem:[#allocation106_spill] sm:$0xff] %v9709_v26 }
 0x965   :  { %2828 = vmatmul.mubr.bf16.vlgmr.msra.gmra.mrb[44].mxu1 %v9461_v21 }
 0x966   :  { %2851 = vmatpush1.bf16.msra.mxu0 %v9694_v14  ;;  %2948 = vmatprep.mubr.bf16.mxu1 %v12029_v49  ;;  %v9712_v14 = vld [vmem:[#allocation6 + $0x10] sm:$0xff] }
 0x967   :  { %7943 = vmatprep.subr.bf16.mxu0 %v12083_v16  ;;  %2917 = vmatpush1.bf16.msra.mxu1 %v9706_v9  ;;  %12087 = vst [vmem:[#allocation107_spill] sm:$0xff] %v9712_v14 }
 0x968   :  { %2918 = vmatprep.subr.bf16.mxu1 %v9709_v26  ;;  %v9727_v26 = vld [vmem:[#allocation6 + $0x30] sm:$0xff] }
 0x969   :  { %2869 = vmatmul.mubr.bf16.vlgmr.msra.gmra.mrb[44].mxu0 %v9461_v21  ;;  %v9715_v21 = vld [vmem:[#allocation6 + $0x28] sm:$0xff]  ;;  %12091 = vst [vmem:[#allocation111_spill] sm:$0xff] %v9727_v26 }
 0x96a   :  { %7947 = vmatprep.mubr.msk.bf16.mxu0 %vm8378_vm0, %v12083_v16  ;;  %12088 = vst [vmem:[#allocation108_spill] sm:$0xff] %v9715_v21 }
 0x96b   :  { %2919 = vmatpush1.bf16.msra.mxu1 %v9712_v14 }
 0x96c   :  { %2920 = vmatprep.subr.bf16.mxu1 %v9715_v21 }
 0x96f   :  { %2921 = vmatpush1.bf16.msra.mxu1 %v9718_v12 }
 0x970   :  { %2922 = vmatprep.subr.bf16.mxu1 %v9721_v19 }
 0x973   :  { %2923 = vmatpush1.bf16.msra.mxu1 %v9727_v26 }
 0x974   :  { %2924 = vmatprep.subr.bf16.mxu1 %v9731_v7 }
 0x977   :  { %2925 = vmatpush1.bf16.msra.mxu1 %v9734_v3  ;;  %v9748_v3 = vld [vmem:[#allocation6 + $0x60] sm:$0xff] }
 0x978   :  { %12097 = vst [vmem:[#allocation117_spill] sm:$0xff] %v9748_v3 }
 0x9cc   :  { %v2251_v59 = vpop.f32.mrb[24].mxu0 }
 0x9cd   :  { %v9724_v9 = vadd.f32 %v2251_v59, %v9177_v62  ;;  %v7925_v23 = vpop.f32.mrb[25].mxu0  ;;  %v9737_v59 = vld [vmem:[#allocation6 + $0x58] sm:$0xff] }
 0x9ce   :  { %v2254_v14 = vpop.f32.mrb[26].mxu0  ;;  %12094 = vst [vmem:[#allocation114_spill] sm:$0xff] %v9737_v59  ;;  %2926 = vmatprep.subr.bf16.mxu1 %v9737_v59 }
 0x9cf   :  { %v7926_v32 = vpop.f32.mrb[27].mxu0  ;;  %8150 = vtanh.f32 %v9724_v9  ;;  %v9739_v14 = vld [vmem:[#allocation6 + $0x50] sm:$0xff] }
 0x9d0   :  { %v2341_v21 = vpop.f32.mrb[28].mxu1  ;;  %12095 = vst [vmem:[#allocation115_spill] sm:$0xff] %v9739_v14  ;;  %2927 = vmatpush1.bf16.msra.mxu1 %v9739_v14 }
 0x9d1   :  { %v7933_v12 = vpop.f32.mrb[29].mxu1 }
 0x9d2   :  { %v2344_v62 = vpop.f32.mrb[30].mxu1 }
 0x9d3   :  { %v7934_v23 = vpop.f32.mrb[31].mxu1  ;;  %v9746_v62 = vld [vmem:[#allocation6 + $0x68] sm:$0xff] }
 0x9d4   :  { %v2393_v26 = vpop.f32.mrb[28].mxu0  ;;  %12096 = vst [vmem:[#allocation116_spill] sm:$0xff] %v9746_v62  ;;  %2928 = vmatprep.subr.bf16.mxu1 %v9746_v62 }
 0x9d5   :  { %v2394_v32 = vadd.f32 %v2393_v26, %v2341_v21  ;;  %v7941_v19 = vpop.f32.mrb[29].mxu0  ;;  %2929 = vmatpush1.bf16.msra.mxu1 %v9748_v3 }
 0x9d6   :  { %v2396_v5 = vpop.f32.mrb[30].mxu0  ;;  %2930 = vmatprep.subr.bf16.mxu1 %v9752_v25 }
 0x9d7   :  { %v9744_v12 = vadd.f32 %v9237_v57, %v2394_v32  ;;  %v7942_v7 = vpop.f32.mrb[31].mxu0  ;;  %v9757_v5 = vld [vmem:[#allocation6 + $0x70] sm:$0xff] }
 0x9d8   :  { %12099 = vst [vmem:[#allocation119_spill] sm:$0xff] %v9757_v5 }
 0x9d9   :  { %v8151_v23 = vpop.eup %8150  ;;  %8152 = vtanh.f32 %v9744_v12  ;;  %2931 = vmatpush1.bf16.msra.mxu1 %v9757_v5 }
 0x9da   :  { %2265 = vrot.lane.b32.xlu1 %v8151_v23, %s8380_s18  ;;  %3269 = vmatprep.subr.bf16.mxu1 %v9369_v61 }
 0x9e3   :  { %v8153_v7 = vpop.eup %8152 }
 0x9e4   :  { %2407 = vrot.lane.b32.xlu1 %v8153_v7, %s8380_s18 }
 0x9f0   :  { %v2497_v19 = vpop.f32.mrb[32].mxu1 }
 0x9f1   :  { %v2499_v26 = vpop.f32.mrb[33].mxu1 }
 0x9f2   :  { %v2501_v21 = vpop.f32.mrb[34].mxu1 }
 0x9f3   :  { %v2502_v32 = vpop.f32.mrb[35].mxu1 }
 0x9f4   :  { %v2538_v57 = vpop.f32.mrb[32].mxu0 }
 0x9f5   :  { %v2540_v62 = vpop.f32.mrb[33].mxu0 }
 0x9f6   :  { %v2542_v23 = vpop.f32.mrb[34].mxu0 }
 0x9f7   :  { %v2543_v14 = vpop.f32.mrb[35].mxu0 }
 0x9f8   :  { %v2579_v3 = vpop.f32.mrb[36].mxu1 }
 0x9f9   :  { %v2580_v59 = vadd.f32 %v2579_v3, %v2497_v19  ;;  %v2581_v25 = vpop.f32.mrb[37].mxu1 }
 0x9fa   :  { %v2582_v54 = vadd.f32 %v2581_v25, %v2499_v26  ;;  %v2583_v10 = vpop.f32.mrb[38].mxu1 }
 0x9fb   :  { %v2627_v5 = vadd.f32 %v2580_v59, %v9117_v33  ;;  %v2584_v1 = vpop.f32.mrb[39].mxu1 }
 0x9fc   :  { %v2628_v61 = vadd.f32 %v2582_v54, %v9119_v34  ;;  %v2620_v58 = vpop.f32.mrb[36].mxu0 }
 0x9fd   :  { %v2631_v7 = vmul.f32 0.5, %v2627_v5  ;;  %v9764_v0 = vadd.f32 %v2620_v58, %v2538_v57  ;;  %v2622_v21 = vpop.f32.mrb[37].mxu0 }
 0x9fe   :  { %v2632_v32 = vmul.f32 0.5, %v2628_v61  ;;  %v2623_v44 = vadd.f32 %v2622_v21, %v2540_v62  ;;  %v2624_v60 = vpop.f32.mrb[38].mxu0 }
 0x9ff   :  { %8154 = vtanh.f32 %v2631_v7  ;;  %v2625_v14 = vpop.f32.mrb[39].mxu0 }
 0xa00   :  { %8156 = vtanh.f32 %v2632_v32  ;;  %v2630_v3 = vadd.f32 %v2623_v44, %v9123_v36  ;;  %v2258_v14 = vmul.f32 0.5, %v9724_v9 }
 0xa02   :  { %8158 = vtanh.f32 %v2630_v3 }
 0xa03   :  { %8160 = vtanh.f32 %v2258_v14 }
 0xa09   :  { %v8155_v25 = vpop.eup %8154 }
 0xa0a   :  { %v8157_v10 = vpop.eup %8156  ;;  %v2637_v59 = vadd.f32 1.0, %v8155_v25 }
 0xa0b   :  { %v2638_v1 = vadd.f32 1.0, %v8157_v10 }
 0xa0c   :  { %v8159_v19 = vpop.eup %8158  ;;  %v2640_v54 = vmul.f32 0.5, %v2637_v59 }
 0xa0d   :  { %v2641_v26 = vmul.f32 0.5, %v2638_v1 }
 0xa0e   :  { %v2645_v5 = vmul.f32 %v8159_v19, %v2640_v54 }
 0xa0f   :  { %v2644_v57 = vmul.f32 %v2641_v26, %v9312_v63 }
 0xa11   :  { %v9768_v58 = vadd.f32 %v2645_v5, %v2644_v57 }
 0xa18   :  { %v2747_v62 = vpop.f32.mrb[40].mxu1 }
 0xa19   :  { %v2749_v60 = vpop.f32.mrb[41].mxu1 }
 0xa1a   :  { %v2751_v23 = vpop.f32.mrb[42].mxu1 }
 0xa1b   :  { %v2752_v61 = vpop.f32.mrb[43].mxu1 }
 0xa1c   :  { %v2788_v7 = vpop.f32.mrb[40].mxu0 }
 0xa1d   :  { %v2790_v21 = vpop.f32.mrb[41].mxu0 }
 0xa1e   :  { %v2792_v44 = vpop.f32.mrb[42].mxu0 }
 0xa1f   :  { %v2793_v32 = vpop.f32.mrb[43].mxu0 }
 0xa38   :  { %v2829_v3 = vpop.f32.mrb[44].mxu1 }
 0xa39   :  { %v2830_v25 = vadd.f32 %v2829_v3, %v2747_v62  ;;  %v2831_v10 = vpop.f32.mrb[45].mxu1  ;;  %v2400_v62 = vmul.f32 0.5, %v9744_v12  ;;  %v8161_v3 = vpop.eup %8160 }
 0xa3a   :  { %v2832_v59 = vadd.f32 %v2831_v10, %v2749_v60  ;;  %v2833_v1 = vpop.f32.mrb[46].mxu1  ;;  %v2260_v10 = vadd.f32 1.0, %v8161_v3 }
 0xa3b   :  { %v2877_v63 = vadd.f32 %v2830_v25, %v9127_v37  ;;  %v2834_v19 = vpop.f32.mrb[47].mxu1 }
 0xa3c   :  { %v2878_v54 = vadd.f32 %v2832_v59, %v9129_v38  ;;  %v2870_v26 = vpop.f32.mrb[44].mxu0 }
 0xa3d   :  { %v2881_v5 = vmul.f32 0.5, %v2877_v63  ;;  %v2871_v57 = vadd.f32 %v2870_v26, %v2788_v7  ;;  %v2872_v23 = vpop.f32.mrb[45].mxu0  ;;  %v9776_v63 = vmul.f32 0.5, %v2260_v10 }
 0xa3e   :  { %v2882_v61 = vmul.f32 0.5, %v2878_v54  ;;  %v2873_v44 = vadd.f32 %v2872_v23, %v2790_v21  ;;  %v2874_v32 = vpop.f32.mrb[46].mxu0 }
 0xa3f   :  { %8162 = vtanh.f32 %v2881_v5  ;;  %v2875_v9 = vpop.f32.mrb[47].mxu0  ;;  %v2879_v14 = vadd.f32 %v2871_v57, %v9131_v39 }
 0xa40   :  { %8164 = vtanh.f32 %v2882_v61  ;;  %v2880_v60 = vadd.f32 %v2873_v44, %v9133_v40 }
 0xa41   :  { %v2883_v25 = vmul.f32 0.5, %v2879_v14 }
 0xa42   :  { %8166 = vtanh.f32 %v2880_v60 }
 0xa43   :  { %8168 = vtanh.f32 %v2400_v62 }
 0xa44   :  { %8170 = vtanh.f32 %v2883_v25 }
 0xa49   :  { %v8163_v59 = vpop.eup %8162 }
 0xa4a   :  { %v8165_v7 = vpop.eup %8164  ;;  %v2887_v1 = vadd.f32 1.0, %v8163_v59 }
 0xa4b   :  { %v2888_v21 = vadd.f32 1.0, %v8165_v7 }
 0xa4c   :  { %v8167_v19 = vpop.eup %8166  ;;  %v2890_v54 = vmul.f32 0.5, %v2887_v1  ;;  %v2266_v12 = vpop.permute.xlu1 %2265  ;;  %v2629_v1 = vadd.f32 %v9764_v0, %v9121_v35 }
 0xa4d   :  { %v2891_v26 = vmul.f32 0.5, %v2888_v21  ;;  %v2268_v5 = vmul.f32 %v2266_v12, %v9776_v63  ;;  %v8169_v23 = vpop.eup %8168 }
 0xa4e   :  { %v2895_v57 = vmul.f32 %v8167_v19, %v2890_v54  ;;  %v2402_v32 = vadd.f32 1.0, %v8169_v23  ;;  %v8171_v9 = vpop.eup %8170  ;;  %v2633_v21 = vmul.f32 0.5, %v2629_v1  ;;  %v12105_v1 = vld [vmem:[#allocation59_spill] sm:$0xff] }
 0xa4f   :  { %v2894_v61 = vmul.f32 0.0, %v2891_v26  ;;  %2270 = vrot.lane.b32.xlu0 %v2268_v5, %s8380_s18  ;;  %v2889_v60 = vadd.f32 1.0, %v8171_v9  ;;  %v8124_v9 = vld [vmem:[%s11711_s5] sm:$0xff]  }
 0xa50   :  { %v9783_v62 = vmul.f32 0.5, %v2402_v32 }
 0xa51   :  { %v9780_v44 = vadd.f32 %v2895_v57, %v2894_v61  ;;  %v2892_v25 = vmul.f32 0.5, %v2889_v60  ;;  %v8126_v60 = vld [vmem:[%s11710_s4] sm:$0xff]  }
 0xa53   :  { %8172 = vtanh.f32 %v9780_v44 }
 0xa54   :  { %8174 = vtanh.f32 %v2633_v21  ;;  %v12107_v21 = vld [vmem:[#allocation61_spill] sm:$0xff] }
 0xa55   :  { %8176 = vtanh.f32 %v9768_v58 }
 0xa56   :  { %v2408_v14 = vpop.permute.xlu1 %2407 }
 0xa57   :  { %v2410_v3 = vmul.f32 %v2408_v14, %v9783_v62 }
 0xa59   :  { %2412 = vrot.lane.b32.xlu1 %v2410_v3, %s8380_s18  ;;  %v8127_v3 = vld [vmem:[%s11710_s4 + $0x8] sm:$0xff]  }
 0xa5d   :  { %v8173_v10 = vpop.eup %8172 }
 0xa5e   :  { %v2898_v59 = vmul.f32 %v8173_v10, %v2892_v25  ;;  %v8175_v0 = vpop.eup %8174  ;;  %v8366_v25 = vld [vmem:[#allocation3 + $0x8] sm:$0xff]  ;;  %v12102_v10 = vld [vmem:[#allocation29_spill] sm:$0xff] }
 0xa60   :  { %v9787_v7 = vpack.c.bf16 %v2898_v59, %v2898_v59  ;;  %v12103_v59 = vld [vmem:[#allocation57_spill] sm:$0xff] }
 0xa62   :  { %2949 = vmatmul.mubr.bf16.vlgmr.msra.gmra.mrb[48].mxu1 %v9787_v7 }
 0xa63   :  { %3270 = vmatpush1.bf16.msra.mxu1 %v9378_v55  ;;  %3301 = vmatprep.mubr.bf16.mxu1 %v12029_v49  ;;  %v2639_v55 = vadd.f32 1.0, %v8175_v0  ;;  %v12110_v0 = vld [vmem:[#allocation33_spill] sm:$0xff] }
 0xa64   :  { %3271 = vmatprep.subr.bf16.mxu1 %v9382_v2  ;;  %v8177_v2 = vpop.eup %8176 }
 0xa67   :  { %3272 = vmatpush1.bf16.msra.mxu1 %v9392_v4  ;;  %v2642_v4 = vmul.f32 0.5, %v2639_v55  ;;  %v12111_v55 = vld [vmem:[#allocation65_spill] sm:$0xff] }
 0xa68   :  { %3273 = vmatprep.subr.bf16.mxu1 %v9396_v6 }
 0xa69   :  { %v2648_v6 = vmul.f32 %v8177_v2, %v2642_v4  ;;  %v12112_v2 = vld [vmem:[#allocation34_spill] sm:$0xff]  ;;  %v12113_v4 = vld [vmem:[#allocation67_spill] sm:$0xff] }
 0xa6b   :  { %3274 = vmatpush1.bf16.msra.mxu1 %v9405_v8  ;;  %v9809_v8 = vpack.c.bf16 %v2648_v6, %v2648_v6  ;;  %v12114_v6 = vld [vmem:[#allocation35_spill] sm:$0xff] }
 0xa6c   :  { %3275 = vmatprep.subr.bf16.mxu1 %v9409_v11  ;;  %v2263_v11 = vmul.f32 %v9776_v63, %v9321_v20  ;;  %v8122_v20 = vld [vmem:[%s11708_s2] sm:$0xff]  }
 0xa6d   :  { %7944 = vmatpush3.bf16.msra.mxu0 %v8122_v20  ;;  %v12121_v20 = vld [vmem:[#allocation75_spill] sm:$0xff] }
 0xa6e   :  { %7945 = vmatprep.subr.bf16.mxu0 %v12083_v16 }
 0xa6f   :  { %3276 = vmatpush1.bf16.msra.mxu1 %v9417_v13 }
 0xa70   :  { %3277 = vmatprep.subr.bf16.mxu1 %v9421_v15 }
 0xa73   :  { %3278 = vmatpush1.bf16.msra.mxu1 %v9429_v17  ;;  %v2405_v17 = vmul.f32 %v9783_v62, %v9325_v24  ;;  %v8123_v24 = vld [vmem:[%s11708_s2 + $0x8] sm:$0xff]  }
 0xa74   :  { %3279 = vmatprep.subr.bf16.mxu1 %v9433_v51  ;;  %7946 = vmatpush3.bf16.msra.mxu0 %v8123_v24  ;;  %v12122_v24 = vld [vmem:[#allocation39_spill] sm:$0xff] }
 0xa75   :  { %7951 = vmatprep.subr.bf16.mxu0 %v12083_v16 }
 0xa77   :  { %3280 = vmatpush1.bf16.msra.mxu1 %v9441_v22 }
 0xa78   :  { %3281 = vmatprep.subr.bf16.mxu1 %v9445_v28 }
 0xa7b   :  { %3282 = vmatpush1.bf16.msra.mxu1 %v9453_v18 }
 0xa7c   :  { %3283 = vmatprep.subr.bf16.mxu1 %v9455_v30 }
 0xa7f   :  { %3284 = vmatpush1.bf16.msra.mxu1 %v9467_v41 }
 0xa80   :  { %3351 = vmatprep.subr.bf16.mxu1 %v9473_v46 }
 0xa82   :  { %3302 = vmatmul.mubr.bf16.vlgmr.msra.gmra.mrb[52].mxu1 %v9809_v8 }
 0xa83   :  { %3352 = vmatpush1.bf16.msra.mxu1 %v9482_v47  ;;  %3383 = vmatprep.mubr.bf16.mxu1 %v12029_v49 }
 0xa84   :  { %3353 = vmatprep.subr.bf16.mxu1 %v9485_v48 }
 0xa87   :  { %3354 = vmatpush1.bf16.msra.mxu1 %v9494_v52 }
 0xa88   :  { %3519 = vmatprep.subr.bf16.mxu1 %v9501_v29 }
 0xac1   :  { %v2271_v13 = vpop.permute.xlu0 %2270 }
 0xac2   :  { %v9820_v15 = vadd.f32 %v2271_v13, %v2263_v11  ;;  %v12115_v11 = vld [vmem:[#allocation69_spill] sm:$0xff]  ;;  %v12116_v13 = vld [vmem:[#allocation36_spill] sm:$0xff] }
 0xac4   :  { %8178 = vtanh.f32 %v9820_v15 }
 0xacb   :  { %v2413_v51 = vpop.permute.xlu1 %2412 }
 0xacc   :  { %v9825_v22 = vadd.f32 %v2413_v51, %v2405_v17  ;;  %v12117_v17 = vld [vmem:[#allocation71_spill] sm:$0xff]  ;;  %v12118_v51 = vld [vmem:[#allocation37_spill] sm:$0xff] }
 0xace   :  { %v8179_v28 = vpop.eup %8178  ;;  %8180 = vtanh.f32 %v9825_v22 }
 0xacf   :  { %2276 = vrot.lane.b32.xlu0 %v8179_v28, %s8380_s18  ;;  %v12119_v28 = vld [vmem:[#allocation73_spill] sm:$0xff] }
 0xad8   :  { %v8181_v29 = vpop.eup %8180 }
 0xad9   :  { %2418 = vrot.lane.b32.xlu1 %v8181_v29, %s8380_s18  ;;  %v12120_v29 = vld [vmem:[#allocation38_spill] sm:$0xff] }
 0xb35   :  { %v2950_v18 = vpop.f32.mrb[48].mxu1 }
 0xb36   :  { %v2951_v30 = vadd.f32 %v2950_v18, %v9138_v42  ;;  %v2952_v41 = vpop.f32.mrb[49].mxu1  ;;  %v12123_v18 = vld [vmem:[#allocation77_spill] sm:$0xff] }
 0xb37   :  { %v2953_v46 = vadd.f32 %v2952_v41, %v9140_v43  ;;  %v2954_v47 = vpop.f32.mrb[50].mxu1  ;;  %v12125_v41 = vld [vmem:[#allocation79_spill] sm:$0xff] }
 0xb38   :  { %2957 = vst [vmem:[%s11721_s15] sm:$0xff] %v2951_v30  ;;  %v2955_v48 = vpop.f32.mrb[51].mxu1  ;;  %v12124_v30 = vld [vmem:[#allocation40_spill] sm:$0xff]  ;;  %v12127_v47 = vld [vmem:[#allocation81_spill] sm:$0xff] }
 0xb39   :  { %2958 = vst [vmem:[%s11721_s15 + $0x8] sm:$0xff] %v2953_v46  ;;  %v12126_v46 = vld [vmem:[#allocation41_spill] sm:$0xff]  ;;  %v12128_v48 = vld [vmem:[#allocation42_spill] sm:$0xff] }
 0xb41   :  { %v2277_v52 = vpop.permute.xlu0 %2276 }
 0xb42   :  { %v2279_v19 = vmul.f32 %v2277_v52, %v9776_v63  ;;  %v12129_v52 = vld [vmem:[#allocation83_spill] sm:$0xff] }
 0xb44   :  { %v2959_v54 = vpack.c.bf16 %v2279_v19, %v2279_v19  ;;  %v12130_v19 = vld [vmem:[#allocation43_spill] sm:$0xff] }
 0xb46   :  { %2965 = vrot.lane.b32.xlu0 %v2959_v54, %s8381_s0  ;;  %v12131_v54 = vld [vmem:[#allocation85_spill] sm:$0xff] }
 0xb4b   :  { %v2419_v12 = vpop.permute.xlu1 %2418 }
 0xb4c   :  { %v2421_v26 = vmul.f32 %v2419_v12, %v9783_v62  ;;  %v8125_v62 = vld [vmem:[%s11711_s5 + $0x8] sm:$0xff]   ;;  %v12132_v12 = vld [vmem:[#allocation44_spill] sm:$0xff] }
 0xb4e   :  { %v3049_v5 = vpack.c.bf16 %v2421_v26, %v2421_v26  ;;  %v12133_v26 = vld [vmem:[#allocation87_spill] sm:$0xff] }
 0xb50   :  { %3055 = vrot.lane.b32.xlu1 %v3049_v5, %s8381_s0  ;;  %v12134_v5 = vld [vmem:[#allocation45_spill] sm:$0xff] }
 0xb55   :  { %v9850_v23 = vpop.f32.mrb[52].mxu1 }
 0xb56   :  { %v9852_v57 = vpop.f32.mrb[53].mxu1 }
 0xb57   :  { %v3307_v61 = vpop.f32.mrb[54].mxu1 }
 0xb58   :  { %v3308_v32 = vpop.f32.mrb[55].mxu1  ;;  %v12135_v61 = vld [vmem:[#allocation89_spill] sm:$0xff] }
 0xb59   :  { %v12136_v32 = vld [vmem:[#allocation46_spill] sm:$0xff] }
 0xbb8   :  { %v2966_v63 = vpop.permute.xlu0 %2965 }
 0xbb9   :  { %7948 = vmatmul.mubr.msk.bf16.vlgmr.msra.gmra.mrb[48].mxu0 %vm1453_vm2, %v2966_v63 }
 0xbba   :  { %7952 = vmatpush3.bf16.msra.mxu0 %v8124_v9  ;;  %7955 = vmatprep.mubr.msk.bf16.mxu0 %vm8378_vm0, %v12083_v16  ;;  %v12137_v9 = vld [vmem:[#allocation91_spill] sm:$0xff] }
 0xbbb   :  { %7953 = vmatprep.subr.bf16.mxu0 %v12083_v16 }
 0xbbe   :  { %7954 = vmatpush3.bf16.msra.mxu0 %v8125_v62  ;;  %v12139_v62 = vld [vmem:[#allocation93_spill] sm:$0xff] }
 0xbbf   :  { %7959 = vmatprep.subr.bf16.mxu0 %v12083_v16 }
 0xbc2   :  { %v3056_v14 = vpop.permute.xlu1 %3055 }
 0xbc3   :  { %7956 = vmatmul.mubr.msk.bf16.vlgmr.msra.gmra.mrb[52].mxu0 %vm1453_vm2, %v3056_v14  ;;  %7718 = vmatmul.mubr.msk.bf16.vlgmr.msra.gmra.mrb[56].mxu1 %vm1453_vm2, %v3056_v14 }
 0xbc4   :  { %7960 = vmatpush3.bf16.msra.mxu0 %v8126_v60  ;;  %3520 = vmatpush1.bf16.msra.mxu1 %v9511_v31  ;;  %v12100_v31 = vld [vmem:[#allocation28_spill] sm:$0xff] }
 0xbc5   :  { %7961 = vmatprep.subr.bf16.mxu0 %v12083_v16  ;;  %3521 = vmatprep.subr.bf16.mxu1 %v9515_v27  ;;  %v12101_v27 = vld [vmem:[#allocation55_spill] sm:$0xff]  ;;  %v12140_v60 = vld [vmem:[#allocation48_spill] sm:$0xff] }
 0xbc6   :  { %7963 = vmatprep.mubr.msk.bf16.mxu0 %vm8378_vm0, %v12083_v16  ;;  %3551 = vmatprep.mubr.bf16.mxu1 %v12029_v49 }
 0xbc8   :  { %7962 = vmatpush3.bf16.msra.mxu0 %v8127_v3  ;;  %3522 = vmatpush1.bf16.msra.mxu1 %v9526_v53  ;;  %v12104_v53 = vld [vmem:[#allocation30_spill] sm:$0xff]  ;;  %v12141_v3 = vld [vmem:[#allocation95_spill] sm:$0xff] }
 0xbc9   :  { %3228 = vmatprep.subr.bf16.mxu0 %v8366_v25  ;;  %3523 = vmatprep.subr.bf16.mxu1 %v9530_v45  ;;  %v12106_v45 = vld [vmem:[#allocation31_spill] sm:$0xff]  ;;  %v12142_v25 = vld [vmem:[#allocation49_spill] sm:$0xff] }
 0xbcb   :  { %7964 = vmatmul.mubr.msk.bf16.vlgmr.msra.gmra.mrb[56].mxu0 %vm1453_vm2, %v2966_v63  ;;  %v12138_v63 = vld [vmem:[#allocation47_spill] sm:$0xff] }
 0xbcc   :  { %3229 = vmatpush1.bf16.msra.mxu0 %v9363_v56  ;;  %3524 = vmatpush1.bf16.msra.mxu1 %v9539_v50  ;;  %v12108_v56 = vld [vmem:[#allocation32_spill] sm:$0xff]  ;;  %v12109_v50 = vld [vmem:[#allocation63_spill] sm:$0xff] }
 0xbcd   :  { %3230 = vmatprep.subr.bf16.mxu0 %v12100_v31  ;;  %3525 = vmatprep.subr.bf16.mxu1 %v12101_v27  ;;  %v12143_v31 = vld [vmem:[#allocation97_spill] sm:$0xff]  ;;  %v12144_v27 = vld [vmem:[#allocation50_spill] sm:$0xff] }
 0xbce   :  { %3260 = vmatprep.mubr.bf16.mxu0 %v12029_v49 }
 0xbd0   :  { %3231 = vmatpush1.bf16.msra.mxu0 %v12102_v10  ;;  %3526 = vmatpush1.bf16.msra.mxu1 %v12103_v59  ;;  %v12145_v10 = vld [vmem:[#allocation99_spill] sm:$0xff] }
 0xbd1   :  { %3232 = vmatprep.subr.bf16.mxu0 %v12104_v53  ;;  %3527 = vmatprep.subr.bf16.mxu1 %v12105_v1  ;;  %v12146_v59 = vld [vmem:[#allocation51_spill] sm:$0xff]  ;;  %v12148_v53 = vld [vmem:[#allocation52_spill] sm:$0xff]  ;;  %v12149_v1 = vld [vmem:[#allocation102_spill] sm:$0xff] }
 0xbd4   :  { %3233 = vmatpush1.bf16.msra.mxu0 %v12106_v45  ;;  %3528 = vmatpush1.bf16.msra.mxu1 %v12107_v21  ;;  %v12150_v45 = vld [vmem:[#allocation53_spill] sm:$0xff]  ;;  %v12151_v21 = vld [vmem:[#allocation103_spill] sm:$0xff] }
 0xbd5   :  { %3234 = vmatprep.subr.bf16.mxu0 %v12108_v56  ;;  %3529 = vmatprep.subr.bf16.mxu1 %v12109_v50  ;;  %v12152_v56 = vld [vmem:[#allocation54_spill] sm:$0xff]  ;;  %v12153_v50 = vld [vmem:[#allocation56_spill] sm:$0xff] }
 0xbd8   :  { %3235 = vmatpush1.bf16.msra.mxu0 %v12110_v0  ;;  %3530 = vmatpush1.bf16.msra.mxu1 %v12111_v55  ;;  %v12154_v0 = vld [vmem:[#allocation58_spill] sm:$0xff]  ;;  %v12155_v55 = vld [vmem:[#allocation60_spill] sm:$0xff] }
 0xbd9   :  { %3236 = vmatprep.subr.bf16.mxu0 %v12112_v2  ;;  %3531 = vmatprep.subr.bf16.mxu1 %v12113_v4  ;;  %v12156_v2 = vld [vmem:[#allocation62_spill] sm:$0xff]  ;;  %v12157_v4 = vld [vmem:[#allocation64_spill] sm:$0xff] }
 0xbdc   :  { %3237 = vmatpush1.bf16.msra.mxu0 %v12114_v6  ;;  %3532 = vmatpush1.bf16.msra.mxu1 %v12115_v11  ;;  %v12158_v6 = vld [vmem:[#allocation66_spill] sm:$0xff]  ;;  %v12159_v11 = vld [vmem:[#allocation68_spill] sm:$0xff] }
 0xbdd   :  { %3238 = vmatprep.subr.bf16.mxu0 %v12116_v13  ;;  %3533 = vmatprep.subr.bf16.mxu1 %v12117_v17  ;;  %v12160_v13 = vld [vmem:[#allocation70_spill] sm:$0xff]  ;;  %v12161_v17 = vld [vmem:[#allocation72_spill] sm:$0xff] }
 0xbe0   :  { %3239 = vmatpush1.bf16.msra.mxu0 %v12118_v51  ;;  %3534 = vmatpush1.bf16.msra.mxu1 %v12119_v28  ;;  %v12162_v51 = vld [vmem:[#allocation74_spill] sm:$0xff]  ;;  %v12163_v28 = vld [vmem:[#allocation76_spill] sm:$0xff] }
 0xbe1   :  { %3240 = vmatprep.subr.bf16.mxu0 %v12120_v29  ;;  %3601 = vmatprep.subr.bf16.mxu1 %v12121_v20  ;;  %v12164_v29 = vld [vmem:[#allocation78_spill] sm:$0xff]  ;;  %v12165_v20 = vld [vmem:[#allocation80_spill] sm:$0xff] }
 0xbe3   :  { %3552 = vmatmul.mubr.bf16.vlgmr.msra.gmra.mrb[60].mxu1 %v9787_v7 }
 0xbe4   :  { %3241 = vmatpush1.bf16.msra.mxu0 %v12122_v24  ;;  %3602 = vmatpush1.bf16.msra.mxu1 %v12123_v18  ;;  %v12166_v24 = vld [vmem:[#allocation82_spill] sm:$0xff]  ;;  %v12167_v18 = vld [vmem:[#allocation84_spill] sm:$0xff] }
 0xbe5   :  { %3242 = vmatprep.subr.bf16.mxu0 %v12124_v30  ;;  %3603 = vmatprep.subr.bf16.mxu1 %v12125_v41  ;;  %v12168_v30 = vld [vmem:[#allocation86_spill] sm:$0xff]  ;;  %v12169_v41 = vld [vmem:[#allocation88_spill] sm:$0xff] }
 0xbe6   :  { %3633 = vmatprep.mubr.bf16.mxu1 %v12029_v49 }
 0xbe8   :  { %3243 = vmatpush1.bf16.msra.mxu0 %v12126_v46  ;;  %3604 = vmatpush1.bf16.msra.mxu1 %v12127_v47  ;;  %v12171_v46 = vld [vmem:[#allocation92_spill] sm:$0xff]  ;;  %v12172_v47 = vld [vmem:[#allocation94_spill] sm:$0xff] }
 0xbe9   :  { %3310 = vmatprep.subr.bf16.mxu0 %v12128_v48  ;;  %3605 = vmatprep.subr.bf16.mxu1 %v12129_v52  ;;  %v12173_v48 = vld [vmem:[#allocation96_spill] sm:$0xff]  ;;  %v12174_v52 = vld [vmem:[#allocation98_spill] sm:$0xff] }
 0xbeb   :  { %3261 = vmatmul.mubr.bf16.vlgmr.msra.gmra.mrb[60].mxu0 %v9809_v8 }
 0xbec   :  { %3311 = vmatpush1.bf16.msra.mxu0 %v12130_v19  ;;  %3606 = vmatpush1.bf16.msra.mxu1 %v12131_v54  ;;  %v12175_v19 = vld [vmem:[#allocation100_spill] sm:$0xff] }
 0xbed   :  { %3312 = vmatprep.subr.bf16.mxu0 %v12132_v12  ;;  %3607 = vmatprep.subr.bf16.mxu1 %v12133_v26  ;;  %v12176_v54 = vld [vmem:[#allocation104_spill] sm:$0xff]  ;;  %v12177_v12 = vld [vmem:[#allocation105_spill] sm:$0xff]  ;;  %v12178_v26 = vld [vmem:[#allocation106_spill] sm:$0xff] }
 0xbee   :  { %3342 = vmatprep.mubr.bf16.mxu0 %v12029_v49 }
 0xbf0   :  { %3313 = vmatpush1.bf16.msra.mxu0 %v12134_v5  ;;  %3608 = vmatpush1.bf16.msra.mxu1 %v12135_v61  ;;  %v12179_v5 = vld [vmem:[#allocation107_spill] sm:$0xff]  ;;  %v12180_v61 = vld [vmem:[#allocation108_spill] sm:$0xff] }
 0xbf1   :  { %3478 = vmatprep.subr.bf16.mxu0 %v12136_v32  ;;  %3609 = vmatprep.subr.bf16.mxu1 %v12137_v9  ;;  %v12181_v32 = vld [vmem:[#allocation109_spill] sm:$0xff]  ;;  %v12182_v9 = vld [vmem:[#allocation110_spill] sm:$0xff] }
 0xbf3   :  { %7717 = vmatmul.mubr.msk.bf16.vlgmr.msra.gmra.mrb[64].mxu0 %vm1453_vm2, %v3056_v14  ;;  %v12147_v14 = vld [vmem:[#allocation101_spill] sm:$0xff] }
 0xbf4   :  { %3479 = vmatpush1.bf16.msra.mxu0 %v12138_v63  ;;  %3610 = vmatpush1.bf16.msra.mxu1 %v12139_v62  ;;  %v12183_v63 = vld [vmem:[#allocation111_spill] sm:$0xff]  ;;  %v12184_v62 = vld [vmem:[#allocation112_spill] sm:$0xff] }
 0xbf5   :  { %3480 = vmatprep.subr.bf16.mxu0 %v12140_v60  ;;  %3611 = vmatprep.subr.bf16.mxu1 %v12141_v3  ;;  %v12185_v60 = vld [vmem:[#allocation113_spill] sm:$0xff]  ;;  %v12187_v3 = vld [vmem:[#allocation115_spill] sm:$0xff] }
 0xbf6   :  { %3510 = vmatprep.mubr.bf16.mxu0 %v12029_v49 }
 0xbf8   :  { %3481 = vmatpush1.bf16.msra.mxu0 %v12142_v25  ;;  %3612 = vmatpush1.bf16.msra.mxu1 %v12143_v31  ;;  %v12188_v25 = vld [vmem:[#allocation116_spill] sm:$0xff]  ;;  %v12189_v31 = vld [vmem:[#allocation117_spill] sm:$0xff] }
 0xbf9   :  { %3482 = vmatprep.subr.bf16.mxu0 %v12144_v27  ;;  %3613 = vmatprep.subr.bf16.mxu1 %v12145_v10  ;;  %v12190_v27 = vld [vmem:[#allocation118_spill] sm:$0xff]  ;;  %v12191_v10 = vld [vmem:[#allocation119_spill] sm:$0xff] }
 0xbfc   :  { %3483 = vmatpush1.bf16.msra.mxu0 %v12146_v59  ;;  %3614 = vmatpush1.bf16.msra.mxu1 %v12147_v14  ;;  %v12192_v14 = vld [vmem:[#allocation24_spill] sm:$0xff] }
 0xbfd   :  { %3484 = vmatprep.subr.bf16.mxu0 %v12148_v53  ;;  %3615 = vmatprep.subr.bf16.mxu1 %v12149_v1 }
 0xc00   :  { %3485 = vmatpush1.bf16.msra.mxu0 %v12150_v45  ;;  %3616 = vmatpush1.bf16.msra.mxu1 %v12151_v21 }
 0xc01   :  { %3486 = vmatprep.subr.bf16.mxu0 %v12152_v56  ;;  %7967 = vmatprep.subr.bf16.mxu1 %v12083_v16 }
 0xc03   :  { %3634 = vmatmul.mubr.bf16.vlgmr.msra.gmra.mrb[64].mxu1 %v9809_v8 }
 0xc04   :  { %3487 = vmatpush1.bf16.msra.mxu0 %v12153_v50  ;;  %7971 = vmatprep.mubr.msk.bf16.mxu1 %vm8378_vm0, %v12083_v16 }
 0xc05   :  { %3488 = vmatprep.subr.bf16.mxu0 %v12154_v0 }
 0xc08   :  { %3489 = vmatpush1.bf16.msra.mxu0 %v12155_v55 }
 0xc09   :  { %3490 = vmatprep.subr.bf16.mxu0 %v12156_v2 }
 0xc0c   :  { %3491 = vmatpush1.bf16.msra.mxu0 %v12157_v4 }
 0xc0d   :  { %3492 = vmatprep.subr.bf16.mxu0 %v12158_v6 }
 0xc10   :  { %3493 = vmatpush1.bf16.msra.mxu0 %v12159_v11 }
 0xc11   :  { %3560 = vmatprep.subr.bf16.mxu0 %v12160_v13 }
 0xc13   :  { %3511 = vmatmul.mubr.bf16.vlgmr.msra.gmra.mrb[68].mxu0 %v9787_v7  ;;  %v12170_v7 = vld [vmem:[#allocation90_spill] sm:$0xff] }
 0xc14   :  { %3561 = vmatpush1.bf16.msra.mxu0 %v12161_v17  ;;  %3592 = vmatprep.mubr.bf16.mxu0 %v12029_v49 }
 0xc15   :  { %3562 = vmatprep.subr.bf16.mxu0 %v12162_v51 }
 0xc18   :  { %3563 = vmatpush1.bf16.msra.mxu0 %v12163_v28 }
 0xc19   :  { %3564 = vmatprep.subr.bf16.mxu0 %v12164_v29 }
 0xc1c   :  { %3565 = vmatpush1.bf16.msra.mxu0 %v12165_v20 }
 0xc1d   :  { %3566 = vmatprep.subr.bf16.mxu0 %v12166_v24 }
 0xc20   :  { %3567 = vmatpush1.bf16.msra.mxu0 %v12167_v18  ;;  %v12193_v18 = vld [vmem:[#allocation27_spill] sm:$0xff] }
 0xc21   :  { %3568 = vmatprep.subr.bf16.mxu0 %v12168_v30 }
 0xc24   :  { %3569 = vmatpush1.bf16.msra.mxu0 %v12169_v41 }
 0xc25   :  { %3570 = vmatprep.subr.bf16.mxu0 %v12170_v7 }
 0xc28   :  { %3571 = vmatpush1.bf16.msra.mxu0 %v12171_v46 }
 0xc29   :  { %3572 = vmatprep.subr.bf16.mxu0 %v12172_v47 }
 0xc2c   :  { %3573 = vmatpush1.bf16.msra.mxu0 %v12173_v48 }
 0xc2d   :  { %3574 = vmatprep.subr.bf16.mxu0 %v12174_v52 }
 0xc30   :  { %3575 = vmatpush1.bf16.msra.mxu0 %v12175_v19 }
 0xc31   :  { %3681 = vmatprep.subr.bf16.mxu0 %v12176_v54 }
 0xc33   :  { %3593 = vmatmul.mubr.bf16.vlgmr.msra.gmra.mrb[72].mxu0 %v9809_v8  ;;  %v12186_v8 = vld [vmem:[#allocation114_spill] sm:$0xff] }
 0xc34   :  { %3682 = vmatpush1.bf16.msra.mxu0 %v12177_v12  ;;  %3713 = vmatprep.mubr.bf16.mxu0 %v12029_v49 }
 0xc35   :  { %3683 = vmatprep.subr.bf16.mxu0 %v12178_v26 }
 0xc38   :  { %3684 = vmatpush1.bf16.msra.mxu0 %v12179_v5 }
 0xc39   :  { %3685 = vmatprep.subr.bf16.mxu0 %v12180_v61 }
 0xc3c   :  { %3686 = vmatpush1.bf16.msra.mxu0 %v12181_v32 }
 0xc3d   :  { %3687 = vmatprep.subr.bf16.mxu0 %v12182_v9 }
 0xc40   :  { %3688 = vmatpush1.bf16.msra.mxu0 %v12183_v63 }
 0xc41   :  { %3689 = vmatprep.subr.bf16.mxu0 %v12184_v62 }
 0xc44   :  { %3690 = vmatpush1.bf16.msra.mxu0 %v12185_v60 }
 0xc45   :  { %3691 = vmatprep.subr.bf16.mxu0 %v12186_v8 }
 0xc48   :  { %3692 = vmatpush1.bf16.msra.mxu0 %v12187_v3 }
 0xc49   :  { %3693 = vmatprep.subr.bf16.mxu0 %v12188_v25 }
 0xc4c   :  { %3694 = vmatpush1.bf16.msra.mxu0 %v12189_v31 }
 0xc4d   :  { %3695 = vmatprep.subr.bf16.mxu0 %v12190_v27 }
 0xc50   :  { %3696 = vmatpush1.bf16.msra.mxu0 %v12191_v10 }
 0xc8c   :  { %v3016_v59 = vpop.f32.mrb[48].mxu0 }
 0xc8d   :  { %v9992_v53 = vadd.f32 %v3016_v59, %v12192_v14  ;;  %v7949_v1 = vpop.f32.mrb[49].mxu0 }
 0xc8e   :  { %v3019_v45 = vpop.f32.mrb[50].mxu0 }
 0xc8f   :  { %8182 = vtanh.f32 %v9992_v53  ;;  %v7950_v21 = vpop.f32.mrb[51].mxu0 }
 0xc96   :  { %v3106_v56 = vpop.f32.mrb[52].mxu0  ;;  %v3385_v50 = vpop.f32.mrb[56].mxu1 }
 0xc97   :  { %v9996_v0 = vadd.f32 %v3385_v50, %v9850_v23  ;;  %v7957_v55 = vpop.f32.mrb[53].mxu0  ;;  %v3387_v2 = vpop.f32.mrb[57].mxu1  ;;  %v10001_v23 = vld [vmem:[#allocation3 + $0x18] sm:$0xff] }
 0xc98   :  { %v3388_v4 = vadd.f32 %v3387_v2, %v9852_v57  ;;  %v3109_v6 = vpop.f32.mrb[54].mxu0  ;;  %v3389_v11 = vpop.f32.mrb[58].mxu1  ;;  %4034 = vmatprep.subr.bf16.mxu0 %v10001_v23 }
 0xc99   :  { %v8183_v13 = vpop.eup %8182  ;;  %v7958_v17 = vpop.f32.mrb[55].mxu0 }
 0xc9a   :  { %v3390_v51 = vpop.f32.mrb[59].mxu1  ;;  %3030 = vrot.lane.b32.xlu0 %v8183_v13, %s8380_s18  ;;  %v3395_v25 = vadd.f32 %v3388_v4, %v9123_v36 }
 0xc9e   :  { %v3158_v28 = vpop.f32.mrb[56].mxu0 }
 0xc9f   :  { %v3159_v29 = vadd.f32 %v3158_v28, %v3106_v56  ;;  %v7965_v20 = vpop.f32.mrb[57].mxu0 }
 0xca0   :  { %v3161_v24 = vpop.f32.mrb[58].mxu0  ;;  %v3023_v20 = vmul.f32 0.5, %v9992_v53 }
 0xca1   :  { %v3164_v30 = vadd.f32 %v12193_v18, %v3159_v29  ;;  %v7966_v41 = vpop.f32.mrb[59].mxu0 }
 0xca3   :  { %8184 = vtanh.f32 %v3164_v30 }
 0xcad   :  { %v8185_v57 = vpop.eup %8184 }
 0xcae   :  { %3172 = vrot.lane.b32.xlu1 %v8185_v57, %s8380_s18 }
 0xcb6   :  { %v3553_v7 = vpop.f32.mrb[60].mxu1 }
 0xcb7   :  { %v3555_v46 = vpop.f32.mrb[61].mxu1 }
 0xcb8   :  { %v3557_v47 = vpop.f32.mrb[62].mxu1 }
 0xcb9   :  { %v3558_v48 = vpop.f32.mrb[63].mxu1  ;;  %v3165_v47 = vmul.f32 0.5, %v3164_v30 }
 0xcbe   :  { %v3262_v52 = vpop.f32.mrb[60].mxu0 }
 0xcbf   :  { %v3264_v19 = vpop.f32.mrb[61].mxu0 }
 0xcc0   :  { %v3266_v54 = vpop.f32.mrb[62].mxu0 }
 0xcc1   :  { %v3267_v12 = vpop.f32.mrb[63].mxu0 }
 0xcc6   :  { %v3344_v26 = vpop.f32.mrb[64].mxu0 }
 0xcc7   :  { %v3345_v5 = vadd.f32 %v3344_v26, %v3262_v52  ;;  %v3346_v61 = vpop.f32.mrb[65].mxu0 }
 0xcc8   :  { %v3347_v32 = vadd.f32 %v3346_v61, %v3264_v19  ;;  %v3348_v9 = vpop.f32.mrb[66].mxu0 }
 0xcc9   :  { %v3392_v63 = vadd.f32 %v3345_v5, %v9117_v33  ;;  %v3349_v62 = vpop.f32.mrb[67].mxu0 }
 0xcca   :  { %v3393_v60 = vadd.f32 %v3347_v32, %v9119_v34 }
 0xccb   :  { %v3396_v8 = vmul.f32 0.5, %v3392_v63 }
 0xccc   :  { %v3397_v3 = vmul.f32 0.5, %v3393_v60 }
 0xccd   :  { %8186 = vtanh.f32 %v3396_v8 }
 0xcce   :  { %8188 = vtanh.f32 %v3397_v3 }
 0xccf   :  { %8190 = vtanh.f32 %v3395_v25 }
 0xcd0   :  { %8192 = vtanh.f32 %v3023_v20  ;;  %v10042_v20 = vld [vmem:[#allocation3 + $0x58] sm:$0xff] }
 0xcd1   :  { %8194 = vtanh.f32 %v3165_v47 }
 0xcd6   :  { %v3635_v31 = vpop.f32.mrb[64].mxu1 }
 0xcd7   :  { %v8187_v27 = vpop.eup %8186  ;;  %v3636_v10 = vadd.f32 %v3635_v31, %v3553_v7  ;;  %v3637_v59 = vpop.f32.mrb[65].mxu1 }
 0xcd8   :  { %v8189_v14 = vpop.eup %8188  ;;  %v3402_v1 = vadd.f32 1.0, %v8187_v27  ;;  %v3638_v45 = vadd.f32 %v3637_v59, %v3555_v46  ;;  %v3639_v21 = vpop.f32.mrb[66].mxu1 }
 0xcd9   :  { %v3403_v56 = vadd.f32 1.0, %v8189_v14  ;;  %v3640_v50 = vpop.f32.mrb[67].mxu1  ;;  %v8191_v2 = vpop.eup %8190  ;;  %v3644_v30 = vadd.f32 %v3636_v10, %v9131_v39 }
 0xcda   :  { %v3405_v55 = vmul.f32 0.5, %v3402_v1  ;;  %v8193_v24 = vpop.eup %8192  ;;  %v3645_v61 = vadd.f32 %v3638_v45, %v9133_v40 }
 0xcdb   :  { %v3406_v6 = vmul.f32 0.5, %v3403_v56  ;;  %v3025_v46 = vadd.f32 1.0, %v8193_v24  ;;  %v3648_v9 = vmul.f32 0.5, %v3644_v30  ;;  %v8195_v63 = vpop.eup %8194  ;;  %v10048_v24 = vld [vmem:[#allocation3 + $0x78] sm:$0xff] }
 0xcdc   :  { %v3410_v11 = vmul.f32 %v8191_v2, %v3405_v55  ;;  %v3167_v59 = vadd.f32 1.0, %v8195_v63 }
 0xcdd   :  { %v3409_v13 = vmul.f32 %v3406_v6, %v9768_v58  ;;  %v10014_v26 = vmul.f32 0.5, %v3025_v46  ;;  %v10061_v46 = vld [vmem:[#allocation3 + $0xb8] sm:$0xff] }
 0xcde   :  { %v10023_v21 = vmul.f32 0.5, %v3167_v59  ;;  %v10110_v59 = vld [vmem:[#allocation2 + $0x38] sm:$0xff] }
 0xcdf   :  { %v10009_v4 = vadd.f32 %v3410_v11, %v3409_v13  ;;  %v3028_v30 = vmul.f32 %v10014_v26, %v9820_v15  ;;  %v8128_v15 = vld [vmem:[%s11708_s2] sm:$0xff]  }
 0xce0   :  { %7968 = vmatpush3.bf16.msra.mxu1 %v8128_v15  ;;  %v10153_v15 = vld [vmem:[#allocation5 + $0x38] sm:$0xff] }
 0xce1   :  { %7969 = vmatprep.subr.bf16.mxu1 %v12083_v16 }
 0xce6   :  { %v3512_v17 = vpop.f32.mrb[68].mxu0 }
 0xce7   :  { %v3514_v51 = vpop.f32.mrb[69].mxu0 }
 0xce8   :  { %v3516_v28 = vpop.f32.mrb[70].mxu0 }
 0xce9   :  { %v3517_v29 = vpop.f32.mrb[71].mxu0  ;;  %v10040_v28 = vld [vmem:[#allocation3 + $0x30] sm:$0xff] }
 0xd06   :  { %v3594_v41 = vpop.f32.mrb[72].mxu0 }
 0xd07   :  { %v3595_v57 = vadd.f32 %v3594_v41, %v3512_v17  ;;  %v3596_v7 = vpop.f32.mrb[73].mxu0  ;;  %v10030_v17 = vld [vmem:[#allocation3 + $0x10] sm:$0xff] }
 0xd08   :  { %v3597_v48 = vadd.f32 %v3596_v7, %v3514_v51  ;;  %v3598_v52 = vpop.f32.mrb[74].mxu0  ;;  %v10034_v51 = vld [vmem:[#allocation3 + $0x38] sm:$0xff]  ;;  %v10052_v41 = vld [vmem:[#allocation3 + $0x70] sm:$0xff] }
 0xd09   :  { %v3642_v19 = vadd.f32 %v3595_v57, %v9127_v37  ;;  %v3599_v58 = vpop.f32.mrb[75].mxu0  ;;  %v10054_v57 = vld [vmem:[#allocation3 + $0x98] sm:$0xff]  ;;  %v10059_v7 = vld [vmem:[#allocation3 + $0x90] sm:$0xff] }
 0xd0a   :  { %v3643_v54 = vadd.f32 %v3597_v48, %v9129_v38  ;;  %v10065_v48 = vld [vmem:[#allocation3 + $0xb0] sm:$0xff]  ;;  %v10067_v52 = vld [vmem:[#allocation3 + $0xd8] sm:$0xff] }
 0xd0b   :  { %v3646_v12 = vmul.f32 0.5, %v3642_v19  ;;  %v10071_v58 = vld [vmem:[#allocation3 + $0xd0] sm:$0xff] }
 0xd0c   :  { %v3647_v5 = vmul.f32 0.5, %v3643_v54  ;;  %v3031_v53 = vpop.permute.xlu0 %3030 }
 0xd0d   :  { %8196 = vtanh.f32 %v3646_v12  ;;  %v3033_v32 = vmul.f32 %v3031_v53, %v10014_v26  ;;  %v10073_v12 = vld [vmem:[#allocation3 + $0xf8] sm:$0xff]  ;;  %v10077_v53 = vld [vmem:[#allocation3 + $0xf0] sm:$0xff] }
 0xd0e   :  { %8198 = vtanh.f32 %v3647_v5 }
 0xd0f   :  { %3035 = vrot.lane.b32.xlu0 %v3033_v32, %s8380_s18  ;;  %8200 = vtanh.f32 %v3645_v61 }
 0xd10   :  { %8202 = vtanh.f32 %v3648_v9 }
 0xd17   :  { %v8197_v62 = vpop.eup %8196 }
 0xd18   :  { %v8199_v60 = vpop.eup %8198  ;;  %v3652_v8 = vadd.f32 1.0, %v8197_v62 }
 0xd19   :  { %v3653_v3 = vadd.f32 1.0, %v8199_v60  ;;  %v8201_v31 = vpop.eup %8200  ;;  %v3170_v60 = vmul.f32 %v10023_v21, %v9825_v22  ;;  %v10104_v22 = vld [vmem:[#allocation2 + $0x18] sm:$0xff] }
 0xd1a   :  { %v3655_v25 = vmul.f32 0.5, %v3652_v8  ;;  %v8203_v50 = vpop.eup %8202 }
 0xd1b   :  { %v3656_v27 = vmul.f32 0.5, %v3653_v3  ;;  %v3654_v55 = vadd.f32 1.0, %v8203_v50 }
 0xd1c   :  { %v3660_v14 = vmul.f32 %v8201_v31, %v3655_v25  ;;  %v8129_v31 = vld [vmem:[%s11708_s2 + $0x8] sm:$0xff]  }
 0xd1d   :  { %v3659_v1 = vmul.f32 %v3656_v27, %v9780_v44  ;;  %v3657_v2 = vmul.f32 0.5, %v3654_v55  ;;  %v3394_v44 = vadd.f32 %v9996_v0, %v9121_v35  ;;  %v10046_v0 = vld [vmem:[#allocation3 + $0x50] sm:$0xff]  ;;  %7970 = vmatpush3.bf16.msra.mxu1 %v8129_v31  ;;  %v8133_v31 = vld [vmem:[%s11710_s4 + $0x8] sm:$0xff]  }
 0xd1e   :  { %7975 = vmatprep.subr.bf16.mxu1 %v12083_v16  ;;  %v10107_v27 = vld [vmem:[#allocation2 + $0x10] sm:$0xff] }
 0xd1f   :  { %v10021_v45 = vadd.f32 %v3660_v14, %v3659_v1  ;;  %v3398_v29 = vmul.f32 0.5, %v3394_v44  ;;  %v10113_v14 = vld [vmem:[#allocation2 + $0x30] sm:$0xff] }
 0xd20   :  { %v3173_v10 = vpop.permute.xlu1 %3172 }
 0xd21   :  { %8204 = vtanh.f32 %v10021_v45  ;;  %v3175_v56 = vmul.f32 %v3173_v10, %v10023_v21 }
 0xd22   :  { %8206 = vtanh.f32 %v3398_v29 }
 0xd23   :  { %3177 = vrot.lane.b32.xlu1 %v3175_v56, %s8380_s18  ;;  %8208 = vtanh.f32 %v10009_v4 }
 0xd2b   :  { %v8205_v6 = vpop.eup %8204 }
 0xd2c   :  { %v3663_v11 = vmul.f32 %v8205_v6, %v3657_v2  ;;  %v8207_v47 = vpop.eup %8206 }
 0xd2d   :  { %v3404_v19 = vadd.f32 1.0, %v8207_v47  ;;  %v8209_v54 = vpop.eup %8208 }
 0xd2e   :  { %v10028_v13 = vpack.c.bf16 %v3663_v11, %v3663_v11 }
 0xd2f   :  { %v3407_v5 = vmul.f32 0.5, %v3404_v19 }
 0xd30   :  { %3714 = vmatmul.mubr.bf16.vlgmr.msra.gmra.mrb[76].mxu0 %v10028_v13 }
 0xd31   :  { %4035 = vmatpush1.bf16.msra.mxu0 %v10030_v17  ;;  %4066 = vmatprep.mubr.bf16.mxu0 %v12029_v49  ;;  %v3413_v61 = vmul.f32 %v8209_v54, %v3407_v5 }
 0xd32   :  { %4036 = vmatprep.subr.bf16.mxu0 %v10034_v51 }
 0xd33   :  { %v10080_v32 = vpack.c.bf16 %v3413_v61, %v3413_v61 }
 0xd35   :  { %4037 = vmatpush1.bf16.msra.mxu0 %v10040_v28 }
 0xd36   :  { %4038 = vmatprep.subr.bf16.mxu0 %v10042_v20 }
 0xd39   :  { %4039 = vmatpush1.bf16.msra.mxu0 %v10046_v0 }
 0xd3a   :  { %4040 = vmatprep.subr.bf16.mxu0 %v10048_v24 }
 0xd3d   :  { %4041 = vmatpush1.bf16.msra.mxu0 %v10052_v41 }
 0xd3e   :  { %4042 = vmatprep.subr.bf16.mxu0 %v10054_v57 }
 0xd41   :  { %4043 = vmatpush1.bf16.msra.mxu0 %v10059_v7 }
 0xd42   :  { %4044 = vmatprep.subr.bf16.mxu0 %v10061_v46 }
 0xd45   :  { %4045 = vmatpush1.bf16.msra.mxu0 %v10065_v48 }
 0xd46   :  { %4046 = vmatprep.subr.bf16.mxu0 %v10067_v52 }
 0xd49   :  { %4047 = vmatpush1.bf16.msra.mxu0 %v10071_v58 }
 0xd4a   :  { %4048 = vmatprep.subr.bf16.mxu0 %v10073_v12 }
 0xd4d   :  { %4049 = vmatpush1.bf16.msra.mxu0 %v10077_v53 }
 0xd4e   :  { %4116 = vmatprep.subr.bf16.mxu0 %v10104_v22 }
 0xd50   :  { %4067 = vmatmul.mubr.bf16.vlgmr.msra.gmra.mrb[80].mxu0 %v10080_v32 }
 0xd51   :  { %4148 = vmatprep.mubr.bf16.mxu0 %v12029_v49  ;;  %4117 = vmatpush1.bf16.msra.mxu0 %v10107_v27 }
 0xd52   :  { %4118 = vmatprep.subr.bf16.mxu0 %v10110_v59 }
 0xd55   :  { %4119 = vmatpush1.bf16.msra.mxu0 %v10113_v14 }
 0xd81   :  { %v3036_v9 = vpop.permute.xlu0 %3035 }
 0xd82   :  { %v10086_v63 = vadd.f32 %v3036_v9, %v3028_v30  ;;  %v8130_v9 = vld [vmem:[%s11711_s5] sm:$0xff]  }
 0xd84   :  { %8210 = vtanh.f32 %v10086_v63 }
 0xd8e   :  { %v8211_v62 = vpop.eup %8210 }
 0xd8f   :  { %3041 = vrot.lane.b32.xlu0 %v8211_v62, %s8380_s18 }
 0xd95   :  { %v3178_v8 = vpop.permute.xlu1 %3177 }
 0xd96   :  { %v10092_v3 = vadd.f32 %v3178_v8, %v3170_v60  ;;  %v8132_v60 = vld [vmem:[%s11710_s4] sm:$0xff]   ;;  %v10149_v8 = vld [vmem:[#allocation5 + $0x10] sm:$0xff] }
 0xd98   :  { %8212 = vtanh.f32 %v10092_v3 }
 0xda2   :  { %v8213_v25 = vpop.eup %8212 }
 0xda3   :  { %3183 = vrot.lane.b32.xlu1 %v8213_v25, %s8380_s18 }
 0xe01   :  { %v3042_v1 = vpop.permute.xlu0 %3041 }
 0xe02   :  { %v3044_v10 = vmul.f32 %v3042_v1, %v10014_v26  ;;  %v10126_v26 = vld [vmem:[#allocation5 + $0x18] sm:$0xff]  ;;  %v10165_v1 = vld [vmem:[#allocation5 + $0x30] sm:$0xff] }
 0xe03   :  { %v3715_v56 = vpop.f32.mrb[76].mxu0  ;;  %4284 = vmatprep.subr.bf16.mxu0 %v10126_v26 }
 0xe04   :  { %v3724_v50 = vpack.c.bf16 %v3044_v10, %v3044_v10  ;;  %v3716_v55 = vadd.f32 %v3715_v56, %v9138_v42  ;;  %v3717_v2 = vpop.f32.mrb[77].mxu0  ;;  %v10169_v10 = vld [vmem:[#allocation3 + $0x8] sm:$0xff]  ;;  %v10171_v56 = vld [vmem:[#allocation5 + $0x58] sm:$0xff] }
 0xe05   :  { %v3718_v6 = vadd.f32 %v3717_v2, %v9140_v43  ;;  %v3719_v11 = vpop.f32.mrb[78].mxu0  ;;  %v10181_v2 = vld [vmem:[#allocation3 + $0x28] sm:$0xff] }
 0xe06   :  { %3722 = vst [vmem:[%s11721_s15 + $0x10] sm:$0xff] %v3716_v55  ;;  %v3720_v44 = vpop.f32.mrb[79].mxu0  ;;  %3730 = vrot.lane.b32.xlu0 %v3724_v50, %s8381_s0  ;;  %v10177_v50 = vld [vmem:[#allocation3] sm:$0xff]  ;;  %v10179_v55 = vld [vmem:[#allocation5 + $0x50] sm:$0xff]  ;;  %12196 = vst [vmem:[#allocation29_spill] sm:$0xff] %v10181_v2 }
 0xe07   :  { %3723 = vst [vmem:[%s11721_s15 + $0x18] sm:$0xff] %v3718_v6  ;;  %12194 = vst [vmem:[#allocation28_spill] sm:$0xff] %v10177_v50  ;;  %v10183_v6 = vld [vmem:[#allocation5 + $0x78] sm:$0xff]  ;;  %v10190_v11 = vld [vmem:[#allocation3 + $0x20] sm:$0xff] }
 0xe08   :  { %12195 = vst [vmem:[#allocation55_spill] sm:$0xff] %v10179_v55  ;;  %12197 = vst [vmem:[#allocation57_spill] sm:$0xff] %v10183_v6  ;;  %v10192_v44 = vld [vmem:[#allocation5 + $0x70] sm:$0xff] }
 0xe09   :  { %12198 = vst [vmem:[#allocation30_spill] sm:$0xff] %v10190_v11  ;;  %12199 = vst [vmem:[#allocation59_spill] sm:$0xff] %v10192_v44 }
 0xe15   :  { %v3184_v29 = vpop.permute.xlu1 %3183 }
 0xe16   :  { %v3186_v47 = vmul.f32 %v3184_v29, %v10023_v21  ;;  %v8131_v21 = vld [vmem:[%s11711_s5 + $0x8] sm:$0xff]  }
 0xe17   :  { %v10194_v29 = vld [vmem:[#allocation3 + $0x48] sm:$0xff] }
 0xe18   :  { %v3814_v19 = vpack.c.bf16 %v3186_v47, %v3186_v47  ;;  %12200 = vst [vmem:[#allocation31_spill] sm:$0xff] %v10194_v29  ;;  %v10196_v47 = vld [vmem:[#allocation5 + $0x98] sm:$0xff] }
 0xe19   :  { %12201 = vst [vmem:[#allocation61_spill] sm:$0xff] %v10196_v47 }
 0xe1a   :  { %3820 = vrot.lane.b32.xlu1 %v3814_v19, %s8381_s0  ;;  %v10203_v19 = vld [vmem:[#allocation3 + $0x40] sm:$0xff] }
 0xe1b   :  { %12202 = vst [vmem:[#allocation32_spill] sm:$0xff] %v10203_v19 }
 0xe23   :  { %v10131_v54 = vpop.f32.mrb[80].mxu0 }
 0xe24   :  { %v10133_v5 = vpop.f32.mrb[81].mxu0 }
 0xe25   :  { %v4072_v61 = vpop.f32.mrb[82].mxu0 }
 0xe26   :  { %v4073_v30 = vpop.f32.mrb[83].mxu0  ;;  %v10205_v61 = vld [vmem:[#allocation5 + $0x90] sm:$0xff] }
 0xe27   :  { %12203 = vst [vmem:[#allocation63_spill] sm:$0xff] %v10205_v61  ;;  %v10207_v30 = vld [vmem:[#allocation3 + $0x68] sm:$0xff] }
 0xe28   :  { %12204 = vst [vmem:[#allocation33_spill] sm:$0xff] %v10207_v30 }
 0xe78   :  { %v3731_v62 = vpop.permute.xlu0 %3730 }
 0xe79   :  { %7972 = vmatmul.mubr.msk.bf16.vlgmr.msra.gmra.mrb[68].mxu1 %vm1453_vm2, %v3731_v62 }
 0xe7a   :  { %7976 = vmatpush3.bf16.msra.mxu1 %v8130_v9  ;;  %7979 = vmatprep.mubr.msk.bf16.mxu1 %vm8378_vm0, %v12083_v16  ;;  %v10209_v9 = vld [vmem:[#allocation5 + $0xb8] sm:$0xff] }
 0xe7b   :  { %7977 = vmatprep.subr.bf16.mxu1 %v12083_v16  ;;  %12205 = vst [vmem:[#allocation65_spill] sm:$0xff] %v10209_v9 }
 0xe7e   :  { %7978 = vmatpush3.bf16.msra.mxu1 %v8131_v21  ;;  %v10217_v21 = vld [vmem:[#allocation5 + $0xb0] sm:$0xff] }
 0xe7f   :  { %7983 = vmatprep.subr.bf16.mxu1 %v12083_v16  ;;  %12207 = vst [vmem:[#allocation67_spill] sm:$0xff] %v10217_v21 }
 0xe8c   :  { %v10151_v25 = vpop.permute.xlu1 %3820 }
 0xe8d   :  { %7980 = vmatmul.mubr.msk.bf16.vlgmr.msra.gmra.mrb[72].mxu1 %vm1453_vm2, %v10151_v25  ;;  %7729 = vmatmul.mubr.msk.bf16.vlgmr.msra.gmra.mrb[84].mxu0 %vm1453_vm2, %v10151_v25 }
 0xe8e   :  { %7984 = vmatpush3.bf16.msra.mxu1 %v8132_v60  ;;  %4285 = vmatpush1.bf16.msra.mxu0 %v10149_v8  ;;  %v10219_v60 = vld [vmem:[#allocation3 + $0x88] sm:$0xff] }
 0xe8f   :  { %7985 = vmatprep.subr.bf16.mxu1 %v12083_v16  ;;  %4286 = vmatprep.subr.bf16.mxu0 %v10153_v15  ;;  %12208 = vst [vmem:[#allocation35_spill] sm:$0xff] %v10219_v60 }
 0xe90   :  { %7987 = vmatprep.mubr.msk.bf16.mxu1 %vm8378_vm0, %v12083_v16  ;;  %4316 = vmatprep.mubr.bf16.mxu0 %v12029_v49 }
 0xe92   :  { %7986 = vmatpush3.bf16.msra.mxu1 %v8133_v31  ;;  %4287 = vmatpush1.bf16.msra.mxu0 %v10165_v1  ;;  %v10221_v31 = vld [vmem:[#allocation5 + $0xd8] sm:$0xff] }
 0xe93   :  { %3993 = vmatprep.subr.bf16.mxu1 %v10169_v10  ;;  %4288 = vmatprep.subr.bf16.mxu0 %v10171_v56  ;;  %12209 = vst [vmem:[#allocation69_spill] sm:$0xff] %v10221_v31 }
 0xe95   :  { %7988 = vmatmul.mubr.msk.bf16.vlgmr.msra.gmra.mrb[76].mxu1 %vm1453_vm2, %v3731_v62  ;;  %v10215_v62 = vld [vmem:[#allocation3 + $0x60] sm:$0xff] }
 0xe96   :  { %3994 = vmatpush1.bf16.msra.mxu1 %v10177_v50  ;;  %4289 = vmatpush1.bf16.msra.mxu0 %v10179_v55  ;;  %12206 = vst [vmem:[#allocation34_spill] sm:$0xff] %v10215_v62 }
 0xe97   :  { %3995 = vmatprep.subr.bf16.mxu1 %v10181_v2  ;;  %4290 = vmatprep.subr.bf16.mxu0 %v10183_v6 }
 0xe98   :  { %4025 = vmatprep.mubr.bf16.mxu1 %v12029_v49 }
 0xe9a   :  { %3996 = vmatpush1.bf16.msra.mxu1 %v10190_v11  ;;  %4291 = vmatpush1.bf16.msra.mxu0 %v10192_v44 }
 0xe9b   :  { %3997 = vmatprep.subr.bf16.mxu1 %v10194_v29  ;;  %4292 = vmatprep.subr.bf16.mxu0 %v10196_v47 }
 0xe9e   :  { %3998 = vmatpush1.bf16.msra.mxu1 %v10203_v19  ;;  %4293 = vmatpush1.bf16.msra.mxu0 %v10205_v61  ;;  %v10227_v61 = vld [vmem:[#allocation3 + $0x80] sm:$0xff]  ;;  %v10233_v19 = vld [vmem:[#allocation5 + $0xf8] sm:$0xff] }
 0xe9f   :  { %3999 = vmatprep.subr.bf16.mxu1 %v10207_v30  ;;  %4294 = vmatprep.subr.bf16.mxu0 %v10209_v9  ;;  %12210 = vst [vmem:[#allocation36_spill] sm:$0xff] %v10227_v61  ;;  %v10229_v30 = vld [vmem:[#allocation5 + $0xd0] sm:$0xff]  ;;  %v10231_v9 = vld [vmem:[#allocation3 + $0xa8] sm:$0xff]  ;;  %12213 = vst [vmem:[#allocation73_spill] sm:$0xff] %v10233_v19 }
 0xea0   :  { %12211 = vst [vmem:[#allocation71_spill] sm:$0xff] %v10229_v30  ;;  %12212 = vst [vmem:[#allocation37_spill] sm:$0xff] %v10231_v9 }
 0xea2   :  { %4000 = vmatpush1.bf16.msra.mxu1 %v10215_v62  ;;  %4295 = vmatpush1.bf16.msra.mxu0 %v10217_v21  ;;  %v10239_v21 = vld [vmem:[#allocation3 + $0xa0] sm:$0xff]  ;;  %v10245_v62 = vld [vmem:[#allocation4 + $0x18] sm:$0xff] }
 0xea3   :  { %4001 = vmatprep.subr.bf16.mxu1 %v10219_v60  ;;  %4296 = vmatprep.subr.bf16.mxu0 %v10221_v31  ;;  %12214 = vst [vmem:[#allocation38_spill] sm:$0xff] %v10239_v21  ;;  %v10241_v60 = vld [vmem:[#allocation5 + $0xf0] sm:$0xff]  ;;  %v10243_v31 = vld [vmem:[#allocation3 + $0xc8] sm:$0xff]  ;;  %12217 = vst [vmem:[#allocation77_spill] sm:$0xff] %v10245_v62 }
 0xea4   :  { %12215 = vst [vmem:[#allocation75_spill] sm:$0xff] %v10241_v60  ;;  %12216 = vst [vmem:[#allocation39_spill] sm:$0xff] %v10243_v31 }
 0xea6   :  { %4002 = vmatpush1.bf16.msra.mxu1 %v10227_v61  ;;  %4297 = vmatpush1.bf16.msra.mxu0 %v10229_v30  ;;  %v10251_v30 = vld [vmem:[#allocation3 + $0xc0] sm:$0xff]  ;;  %v10257_v61 = vld [vmem:[#allocation4 + $0x38] sm:$0xff] }
 0xea7   :  { %4003 = vmatprep.subr.bf16.mxu1 %v10231_v9  ;;  %4298 = vmatprep.subr.bf16.mxu0 %v10233_v19  ;;  %12218 = vst [vmem:[#allocation40_spill] sm:$0xff] %v10251_v30  ;;  %v10253_v9 = vld [vmem:[#allocation4 + $0x10] sm:$0xff]  ;;  %v10255_v19 = vld [vmem:[#allocation3 + $0xe8] sm:$0xff]  ;;  %12221 = vst [vmem:[#allocation81_spill] sm:$0xff] %v10257_v61 }
 0xea8   :  { %12219 = vst [vmem:[#allocation79_spill] sm:$0xff] %v10253_v9  ;;  %12220 = vst [vmem:[#allocation41_spill] sm:$0xff] %v10255_v19 }
 0xeaa   :  { %4004 = vmatpush1.bf16.msra.mxu1 %v10239_v21  ;;  %4299 = vmatpush1.bf16.msra.mxu0 %v10241_v60  ;;  %v10268_v60 = vld [vmem:[#allocation2 + $0x8] sm:$0xff]  ;;  %v10270_v21 = vld [vmem:[#allocation4 + $0x58] sm:$0xff] }
 0xeab   :  { %4005 = vmatprep.subr.bf16.mxu1 %v10243_v31  ;;  %4366 = vmatprep.subr.bf16.mxu0 %v10245_v62  ;;  %v10264_v31 = vld [vmem:[#allocation3 + $0xe0] sm:$0xff]  ;;  %v10266_v62 = vld [vmem:[#allocation4 + $0x30] sm:$0xff]  ;;  %12224 = vst [vmem:[#allocation43_spill] sm:$0xff] %v10268_v60  ;;  %12225 = vst [vmem:[#allocation85_spill] sm:$0xff] %v10270_v21 }
 0xeac   :  { %12222 = vst [vmem:[#allocation42_spill] sm:$0xff] %v10264_v31  ;;  %12223 = vst [vmem:[#allocation83_spill] sm:$0xff] %v10266_v62 }
 0xead   :  { %4317 = vmatmul.mubr.bf16.vlgmr.msra.gmra.mrb[88].mxu0 %v10028_v13 }
 0xeae   :  { %4006 = vmatpush1.bf16.msra.mxu1 %v10251_v30  ;;  %4367 = vmatpush1.bf16.msra.mxu0 %v10253_v9  ;;  %v10281_v9 = vld [vmem:[#allocation2 + $0x28] sm:$0xff]  ;;  %v10283_v30 = vld [vmem:[#allocation4 + $0x78] sm:$0xff] }
 0xeaf   :  { %4007 = vmatprep.subr.bf16.mxu1 %v10255_v19  ;;  %4368 = vmatprep.subr.bf16.mxu0 %v10257_v61  ;;  %v10277_v19 = vld [vmem:[#allocation2] sm:$0xff]  ;;  %v10279_v61 = vld [vmem:[#allocation4 + $0x50] sm:$0xff]  ;;  %12228 = vst [vmem:[#allocation45_spill] sm:$0xff] %v10281_v9  ;;  %12229 = vst [vmem:[#allocation89_spill] sm:$0xff] %v10283_v30 }
 0xeb0   :  { %4398 = vmatprep.mubr.bf16.mxu0 %v12029_v49  ;;  %12226 = vst [vmem:[#allocation44_spill] sm:$0xff] %v10277_v19  ;;  %12227 = vst [vmem:[#allocation87_spill] sm:$0xff] %v10279_v61 }
 0xeb2   :  { %4008 = vmatpush1.bf16.msra.mxu1 %v10264_v31  ;;  %4369 = vmatpush1.bf16.msra.mxu0 %v10266_v62  ;;  %v10295_v62 = vld [vmem:[#allocation5 + $0x8] sm:$0xff]  ;;  %v10297_v31 = vld [vmem:[#allocation4 + $0x98] sm:$0xff] }
 0xeb3   :  { %4075 = vmatprep.subr.bf16.mxu1 %v10268_v60  ;;  %4370 = vmatprep.subr.bf16.mxu0 %v10270_v21  ;;  %v10290_v60 = vld [vmem:[#allocation2 + $0x20] sm:$0xff]  ;;  %v10292_v21 = vld [vmem:[#allocation4 + $0x70] sm:$0xff]  ;;  %12232 = vst [vmem:[#allocation47_spill] sm:$0xff] %v10295_v62  ;;  %12233 = vst [vmem:[#allocation93_spill] sm:$0xff] %v10297_v31 }
 0xeb4   :  { %12230 = vst [vmem:[#allocation46_spill] sm:$0xff] %v10290_v60  ;;  %12231 = vst [vmem:[#allocation91_spill] sm:$0xff] %v10292_v21 }
 0xeb5   :  { %4026 = vmatmul.mubr.bf16.vlgmr.msra.gmra.mrb[80].mxu1 %v10080_v32 }
 0xeb6   :  { %4076 = vmatpush1.bf16.msra.mxu1 %v10277_v19  ;;  %4371 = vmatpush1.bf16.msra.mxu0 %v10279_v61  ;;  %v10307_v61 = vld [vmem:[#allocation5 + $0x28] sm:$0xff]  ;;  %v10309_v19 = vld [vmem:[#allocation4 + $0xb8] sm:$0xff] }
 0xeb7   :  { %4077 = vmatprep.subr.bf16.mxu1 %v10281_v9  ;;  %4372 = vmatprep.subr.bf16.mxu0 %v10283_v30  ;;  %v10303_v9 = vld [vmem:[#allocation5] sm:$0xff]  ;;  %v10305_v30 = vld [vmem:[#allocation4 + $0x90] sm:$0xff]  ;;  %12236 = vst [vmem:[#allocation49_spill] sm:$0xff] %v10307_v61  ;;  %12237 = vst [vmem:[#allocation97_spill] sm:$0xff] %v10309_v19 }
 0xeb8   :  { %4107 = vmatprep.mubr.bf16.mxu1 %v12029_v49  ;;  %12234 = vst [vmem:[#allocation48_spill] sm:$0xff] %v10303_v9  ;;  %12235 = vst [vmem:[#allocation95_spill] sm:$0xff] %v10305_v30 }
 0xeba   :  { %4078 = vmatpush1.bf16.msra.mxu1 %v10290_v60  ;;  %4373 = vmatpush1.bf16.msra.mxu0 %v10292_v21  ;;  %v10321_v21 = vld [vmem:[#allocation5 + $0x48] sm:$0xff]  ;;  %v10323_v60 = vld [vmem:[#allocation4 + $0xd8] sm:$0xff] }
 0xebb   :  { %4243 = vmatprep.subr.bf16.mxu1 %v10295_v62  ;;  %4374 = vmatprep.subr.bf16.mxu0 %v10297_v31  ;;  %v10317_v31 = vld [vmem:[#allocation5 + $0x20] sm:$0xff]  ;;  %v10319_v62 = vld [vmem:[#allocation4 + $0xb0] sm:$0xff]  ;;  %12240 = vst [vmem:[#allocation51_spill] sm:$0xff] %v10321_v21  ;;  %12241 = vst [vmem:[#allocation101_spill] sm:$0xff] %v10323_v60 }
 0xebc   :  { %12238 = vst [vmem:[#allocation50_spill] sm:$0xff] %v10317_v31  ;;  %12239 = vst [vmem:[#allocation99_spill] sm:$0xff] %v10319_v62 }
 0xebd   :  { %7728 = vmatmul.mubr.msk.bf16.vlgmr.msra.gmra.mrb[84].mxu1 %vm1453_vm2, %v10151_v25  ;;  %v10330_v25 = vld [vmem:[#allocation5 + $0x40] sm:$0xff] }
 0xebe   :  { %4244 = vmatpush1.bf16.msra.mxu1 %v10303_v9  ;;  %4375 = vmatpush1.bf16.msra.mxu0 %v10305_v30  ;;  %12242 = vst [vmem:[#allocation52_spill] sm:$0xff] %v10330_v25  ;;  %v10336_v30 = vld [vmem:[#allocation4 + $0xf8] sm:$0xff]  ;;  %v10432_v9 = vld [vmem:[#allocation6 + $0x8] sm:$0xff] }
 0xebf   :  { %4245 = vmatprep.subr.bf16.mxu1 %v10307_v61  ;;  %4376 = vmatprep.subr.bf16.mxu0 %v10309_v19  ;;  %v10332_v19 = vld [vmem:[#allocation4 + $0xd0] sm:$0xff]  ;;  %v10334_v61 = vld [vmem:[#allocation5 + $0x68] sm:$0xff]  ;;  %12245 = vst [vmem:[#allocation103_spill] sm:$0xff] %v10336_v30  ;;  %12273 = vst [vmem:[#allocation106_spill] sm:$0xff] %v10432_v9 }
 0xec0   :  { %4275 = vmatprep.mubr.bf16.mxu1 %v12029_v49  ;;  %12243 = vst [vmem:[#allocation102_spill] sm:$0xff] %v10332_v19  ;;  %12244 = vst [vmem:[#allocation53_spill] sm:$0xff] %v10334_v61 }
 0xec2   :  { %4246 = vmatpush1.bf16.msra.mxu1 %v10317_v31  ;;  %4377 = vmatpush1.bf16.msra.mxu0 %v10319_v62  ;;  %v10342_v62 = vld [vmem:[#allocation5 + $0x60] sm:$0xff] }
 0xec3   :  { %4247 = vmatprep.subr.bf16.mxu1 %v10321_v21  ;;  %4378 = vmatprep.subr.bf16.mxu0 %v10323_v60  ;;  %12246 = vst [vmem:[#allocation54_spill] sm:$0xff] %v10342_v62  ;;  %v10344_v21 = vld [vmem:[#allocation4 + $0xf0] sm:$0xff]  ;;  %v10346_v60 = vld [vmem:[#allocation5 + $0x88] sm:$0xff]  ;;  %v10351_v31 = vld [vmem:[#allocation5 + $0x80] sm:$0xff] }
 0xec4   :  { %12247 = vst [vmem:[#allocation56_spill] sm:$0xff] %v10344_v21  ;;  %12248 = vst [vmem:[#allocation58_spill] sm:$0xff] %v10346_v60 }
 0xec5   :  { %12249 = vst [vmem:[#allocation60_spill] sm:$0xff] %v10351_v31 }
 0xec6   :  { %4248 = vmatpush1.bf16.msra.mxu1 %v10330_v25  ;;  %4379 = vmatpush1.bf16.msra.mxu0 %v10332_v19  ;;  %v10354_v19 = vld [vmem:[#allocation5 + $0xa8] sm:$0xff] }
 0xec7   :  { %4249 = vmatprep.subr.bf16.mxu1 %v10334_v61  ;;  %4380 = vmatprep.subr.bf16.mxu0 %v10336_v30  ;;  %12250 = vst [vmem:[#allocation62_spill] sm:$0xff] %v10354_v19  ;;  %v10369_v30 = vld [vmem:[#allocation5 + $0xe8] sm:$0xff] }
 0xec8   :  { %12254 = vst [vmem:[#allocation70_spill] sm:$0xff] %v10369_v30  ;;  %v10375_v61 = vld [vmem:[#allocation4 + $0x8] sm:$0xff] }
 0xec9   :  { %12256 = vst [vmem:[#allocation74_spill] sm:$0xff] %v10375_v61 }
 0xeca   :  { %4250 = vmatpush1.bf16.msra.mxu1 %v10342_v62  ;;  %4381 = vmatpush1.bf16.msra.mxu0 %v10344_v21  ;;  %v10361_v62 = vld [vmem:[#allocation5 + $0xa0] sm:$0xff]  ;;  %v10363_v21 = vld [vmem:[#allocation5 + $0xc8] sm:$0xff] }
 0xecb   :  { %4251 = vmatprep.subr.bf16.mxu1 %v10346_v60  ;;  %7991 = vmatprep.subr.bf16.mxu0 %v12083_v16  ;;  %12251 = vst [vmem:[#allocation64_spill] sm:$0xff] %v10361_v62  ;;  %12252 = vst [vmem:[#allocation66_spill] sm:$0xff] %v10363_v21  ;;  %v10367_v60 = vld [vmem:[#allocation5 + $0xc0] sm:$0xff] }
 0xecc   :  { %12253 = vst [vmem:[#allocation68_spill] sm:$0xff] %v10367_v60 }
 0xecd   :  { %4399 = vmatmul.mubr.bf16.vlgmr.msra.gmra.mrb[92].mxu0 %v10080_v32 }
 0xece   :  { %4252 = vmatpush1.bf16.msra.mxu1 %v10351_v31  ;;  %7995 = vmatprep.mubr.msk.bf16.mxu0 %vm8378_vm0, %v12083_v16  ;;  %v10373_v31 = vld [vmem:[#allocation5 + $0xe0] sm:$0xff] }
 0xecf   :  { %4253 = vmatprep.subr.bf16.mxu1 %v10354_v19  ;;  %12255 = vst [vmem:[#allocation72_spill] sm:$0xff] %v10373_v31  ;;  %v10379_v19 = vld [vmem:[#allocation4] sm:$0xff] }
 0xed0   :  { %12257 = vst [vmem:[#allocation76_spill] sm:$0xff] %v10379_v19 }
 0xed2   :  { %4254 = vmatpush1.bf16.msra.mxu1 %v10361_v62  ;;  %v10381_v62 = vld [vmem:[#allocation4 + $0x28] sm:$0xff] }
 0xed3   :  { %4255 = vmatprep.subr.bf16.mxu1 %v10363_v21  ;;  %12258 = vst [vmem:[#allocation78_spill] sm:$0xff] %v10381_v62 }
 0xed6   :  { %4256 = vmatpush1.bf16.msra.mxu1 %v10367_v60  ;;  %v10389_v60 = vld [vmem:[#allocation4 + $0x48] sm:$0xff] }
 0xed7   :  { %4257 = vmatprep.subr.bf16.mxu1 %v10369_v30  ;;  %v10387_v30 = vld [vmem:[#allocation4 + $0x20] sm:$0xff]  ;;  %12260 = vst [vmem:[#allocation82_spill] sm:$0xff] %v10389_v60 }
 0xed8   :  { %12259 = vst [vmem:[#allocation80_spill] sm:$0xff] %v10387_v30 }
 0xeda   :  { %4258 = vmatpush1.bf16.msra.mxu1 %v10373_v31  ;;  %v10395_v31 = vld [vmem:[#allocation4 + $0x68] sm:$0xff] }
 0xedb   :  { %4325 = vmatprep.subr.bf16.mxu1 %v10375_v61  ;;  %v10393_v61 = vld [vmem:[#allocation4 + $0x40] sm:$0xff]  ;;  %12262 = vst [vmem:[#allocation86_spill] sm:$0xff] %v10395_v31 }
 0xedc   :  { %12261 = vst [vmem:[#allocation84_spill] sm:$0xff] %v10393_v61 }
 0xedd   :  { %4276 = vmatmul.mubr.bf16.vlgmr.msra.gmra.mrb[88].mxu1 %v10028_v13  ;;  %v10399_v13 = vld [vmem:[#allocation4 + $0x60] sm:$0xff] }
 0xede   :  { %4326 = vmatpush1.bf16.msra.mxu1 %v10379_v19  ;;  %4357 = vmatprep.mubr.bf16.mxu1 %v12029_v49  ;;  %12263 = vst [vmem:[#allocation88_spill] sm:$0xff] %v10399_v13  ;;  %v10401_v19 = vld [vmem:[#allocation4 + $0x88] sm:$0xff] }
 0xedf   :  { %4327 = vmatprep.subr.bf16.mxu1 %v10381_v62  ;;  %12264 = vst [vmem:[#allocation90_spill] sm:$0xff] %v10401_v19  ;;  %v10405_v62 = vld [vmem:[#allocation4 + $0x80] sm:$0xff] }
 0xee0   :  { %12265 = vst [vmem:[#allocation92_spill] sm:$0xff] %v10405_v62 }
 0xee2   :  { %4328 = vmatpush1.bf16.msra.mxu1 %v10387_v30  ;;  %v10407_v30 = vld [vmem:[#allocation4 + $0xa8] sm:$0xff] }
 0xee3   :  { %4329 = vmatprep.subr.bf16.mxu1 %v10389_v60  ;;  %12266 = vst [vmem:[#allocation94_spill] sm:$0xff] %v10407_v30  ;;  %v10411_v60 = vld [vmem:[#allocation4 + $0xa0] sm:$0xff] }
 0xee4   :  { %12267 = vst [vmem:[#allocation96_spill] sm:$0xff] %v10411_v60 }
 0xee6   :  { %4330 = vmatpush1.bf16.msra.mxu1 %v10393_v61  ;;  %v10413_v61 = vld [vmem:[#allocation4 + $0xc8] sm:$0xff] }
 0xee7   :  { %4331 = vmatprep.subr.bf16.mxu1 %v10395_v31  ;;  %12268 = vst [vmem:[#allocation98_spill] sm:$0xff] %v10413_v61  ;;  %v10417_v31 = vld [vmem:[#allocation4 + $0xc0] sm:$0xff] }
 0xee8   :  { %12269 = vst [vmem:[#allocation100_spill] sm:$0xff] %v10417_v31 }
 0xeea   :  { %4332 = vmatpush1.bf16.msra.mxu1 %v10399_v13  ;;  %v10419_v13 = vld [vmem:[#allocation4 + $0xe8] sm:$0xff] }
 0xeeb   :  { %4333 = vmatprep.subr.bf16.mxu1 %v10401_v19  ;;  %12270 = vst [vmem:[#allocation104_spill] sm:$0xff] %v10419_v13  ;;  %v10423_v19 = vld [vmem:[#allocation4 + $0xe0] sm:$0xff] }
 0xeec   :  { %12271 = vst [vmem:[#allocation105_spill] sm:$0xff] %v10423_v19 }
 0xeee   :  { %4334 = vmatpush1.bf16.msra.mxu1 %v10405_v62 }
 0xeef   :  { %4335 = vmatprep.subr.bf16.mxu1 %v10407_v30 }
 0xef2   :  { %4336 = vmatpush1.bf16.msra.mxu1 %v10411_v60  ;;  %v12272_v60 = vld [vmem:[#allocation26_spill] sm:$0xff] }
 0xef3   :  { %4337 = vmatprep.subr.bf16.mxu1 %v10413_v61 }
 0xef6   :  { %4338 = vmatpush1.bf16.msra.mxu1 %v10417_v31 }
 0xef7   :  { %4339 = vmatprep.subr.bf16.mxu1 %v10419_v13 }
 0xefa   :  { %4340 = vmatpush1.bf16.msra.mxu1 %v10423_v19  ;;  %v10436_v19 = vld [vmem:[#allocation6] sm:$0xff] }
 0xefb   :  { %4446 = vmatprep.subr.bf16.mxu1 %v10432_v9  ;;  %12274 = vst [vmem:[#allocation107_spill] sm:$0xff] %v10436_v19  ;;  %v10448_v9 = vld [vmem:[#allocation6 + $0x28] sm:$0xff] }
 0xefc   :  { %12277 = vst [vmem:[#allocation110_spill] sm:$0xff] %v10448_v9 }
 0xefd   :  { %4358 = vmatmul.mubr.bf16.vlgmr.msra.gmra.mrb[92].mxu1 %v10080_v32  ;;  %v10439_v32 = vld [vmem:[#allocation6 + $0x18] sm:$0xff] }
 0xefe   :  { %4478 = vmatprep.mubr.bf16.mxu1 %v12029_v49  ;;  %4447 = vmatpush1.bf16.msra.mxu1 %v10436_v19  ;;  %12275 = vst [vmem:[#allocation108_spill] sm:$0xff] %v10439_v32 }
 0xeff   :  { %4448 = vmatprep.subr.bf16.mxu1 %v10439_v32  ;;  %v10452_v32 = vld [vmem:[#allocation6 + $0x20] sm:$0xff] }
 0xf00   :  { %12278 = vst [vmem:[#allocation111_spill] sm:$0xff] %v10452_v32 }
 0xf4c   :  { %v3781_v30 = vpop.f32.mrb[68].mxu1 }
 0xf4d   :  { %v10429_v62 = vadd.f32 %v3781_v30, %v12272_v60  ;;  %v7973_v61 = vpop.f32.mrb[69].mxu1 }
 0xf4e   :  { %v3784_v21 = vpop.f32.mrb[70].mxu1  ;;  %v10442_v61 = vld [vmem:[#allocation6 + $0x10] sm:$0xff] }
 0xf4f   :  { %8214 = vtanh.f32 %v10429_v62  ;;  %v7974_v25 = vpop.f32.mrb[71].mxu1  ;;  %12276 = vst [vmem:[#allocation109_spill] sm:$0xff] %v10442_v61  ;;  %4449 = vmatpush1.bf16.msra.mxu1 %v10442_v61  ;;  %v10455_v61 = vld [vmem:[#allocation6 + $0x38] sm:$0xff] }
 0xf50   :  { %4450 = vmatprep.subr.bf16.mxu1 %v10448_v9  ;;  %12279 = vst [vmem:[#allocation112_spill] sm:$0xff] %v10455_v61 }
 0xf53   :  { %4451 = vmatpush1.bf16.msra.mxu1 %v10452_v32 }
 0xf54   :  { %4452 = vmatprep.subr.bf16.mxu1 %v10455_v61  ;;  %v10470_v61 = vld [vmem:[#allocation6 + $0x58] sm:$0xff] }
 0xf55   :  { %12283 = vst [vmem:[#allocation116_spill] sm:$0xff] %v10470_v61 }
 0xf59   :  { %v8215_v31 = vpop.eup %8214 }
 0xf5a   :  { %3795 = vrot.lane.b32.xlu0 %v8215_v31, %s8380_s18 }
 0xf60   :  { %v3871_v30 = vpop.f32.mrb[72].mxu1  ;;  %v4150_v21 = vpop.f32.mrb[84].mxu0 }
 0xf61   :  { %v10446_v60 = vadd.f32 %v4150_v21, %v10131_v54  ;;  %v7981_v31 = vpop.f32.mrb[73].mxu1  ;;  %v4152_v25 = vpop.f32.mrb[85].mxu0  ;;  %v10458_v54 = vld [vmem:[#allocation6 + $0x30] sm:$0xff] }
 0xf62   :  { %v4153_v13 = vadd.f32 %v4152_v25, %v10133_v5  ;;  %v3874_v19 = vpop.f32.mrb[74].mxu1  ;;  %v4154_v47 = vpop.f32.mrb[86].mxu0  ;;  %12280 = vst [vmem:[#allocation113_spill] sm:$0xff] %v10458_v54  ;;  %4453 = vmatpush1.bf16.msra.mxu1 %v10458_v54 }
 0xf63   :  { %v7982_v29 = vpop.f32.mrb[75].mxu1  ;;  %v4155_v44 = vpop.f32.mrb[87].mxu0  ;;  %v10461_v47 = vld [vmem:[#allocation6 + $0x48] sm:$0xff] }
 0xf64   :  { %12281 = vst [vmem:[#allocation114_spill] sm:$0xff] %v10461_v47  ;;  %4454 = vmatprep.subr.bf16.mxu1 %v10461_v47  ;;  %v10464_v29 = vld [vmem:[#allocation6 + $0x40] sm:$0xff]  ;;  %v4160_v50 = vadd.f32 %v4153_v13, %v9123_v36 }
 0xf65   :  { %12282 = vst [vmem:[#allocation115_spill] sm:$0xff] %v10464_v29 }
 0xf66   :  { %4455 = vmatpush1.bf16.msra.mxu1 %v10464_v29 }
 0xf67   :  { %4456 = vmatprep.subr.bf16.mxu1 %v10470_v61 }
 0xf68   :  { %v3923_v21 = vpop.f32.mrb[76].mxu1 }
 0xf69   :  { %v3924_v5 = vadd.f32 %v3923_v21, %v3871_v30  ;;  %v7989_v19 = vpop.f32.mrb[77].mxu1  ;;  %v10474_v30 = vld [vmem:[#allocation6 + $0x50] sm:$0xff]  ;;  %v10476_v21 = vld [vmem:[#allocation6 + $0x68] sm:$0xff] }
 0xf6a   :  { %v3926_v31 = vpop.f32.mrb[78].mxu1  ;;  %12284 = vst [vmem:[#allocation117_spill] sm:$0xff] %v10474_v30  ;;  %12285 = vst [vmem:[#allocation118_spill] sm:$0xff] %v10476_v21  ;;  %4457 = vmatpush1.bf16.msra.mxu1 %v10474_v30  ;;  %v10480_v19 = vld [vmem:[#allocation6 + $0x60] sm:$0xff] }
 0xf6b   :  { %v10467_v44 = vadd.f32 %v12193_v18, %v3924_v5  ;;  %v7990_v25 = vpop.f32.mrb[79].mxu1  ;;  %4458 = vmatprep.subr.bf16.mxu1 %v10476_v21  ;;  %12286 = vst [vmem:[#allocation119_spill] sm:$0xff] %v10480_v19  ;;  %v10482_v5 = vld [vmem:[#allocation6 + $0x78] sm:$0xff]  ;;  %v10486_v31 = vld [vmem:[#allocation6 + $0x70] sm:$0xff] }
 0xf6c   :  { %12287 = vst [vmem:[#allocation24_spill] sm:$0xff] %v10482_v5  ;;  %12288 = vst [vmem:[#allocation26_spill] sm:$0xff] %v10486_v31 }
 0xf6d   :  { %8216 = vtanh.f32 %v10467_v44 }
 0xf6e   :  { %4459 = vmatpush1.bf16.msra.mxu1 %v10480_v19 }
 0xf6f   :  { %4460 = vmatprep.subr.bf16.mxu1 %v10482_v5 }
 0xf72   :  { %4461 = vmatpush1.bf16.msra.mxu1 %v10486_v31 }
 0xf73   :  { %4799 = vmatprep.subr.bf16.mxu1 %v10001_v23 }
 0xf77   :  { %v8217_v25 = vpop.eup %8216 }
 0xf78   :  { %3937 = vrot.lane.b32.xlu1 %v8217_v25, %s8380_s18 }
 0xf80   :  { %v4318_v18 = vpop.f32.mrb[88].mxu0 }
 0xf81   :  { %v4320_v30 = vpop.f32.mrb[89].mxu0 }
 0xf82   :  { %v4322_v21 = vpop.f32.mrb[90].mxu0 }
 0xf83   :  { %v4323_v61 = vpop.f32.mrb[91].mxu0 }
 0xf88   :  { %v4027_v29 = vpop.f32.mrb[80].mxu1 }
 0xf89   :  { %v4029_v47 = vpop.f32.mrb[81].mxu1 }
 0xf8a   :  { %v4031_v54 = vpop.f32.mrb[82].mxu1 }
 0xf8b   :  { %v4032_v32 = vpop.f32.mrb[83].mxu1 }
 0xf90   :  { %v4109_v19 = vpop.f32.mrb[84].mxu1 }
 0xf91   :  { %v4110_v9 = vadd.f32 %v4109_v19, %v4027_v29  ;;  %v4111_v5 = vpop.f32.mrb[85].mxu1 }
 0xf92   :  { %v4112_v11 = vadd.f32 %v4111_v5, %v4029_v47  ;;  %v4113_v6 = vpop.f32.mrb[86].mxu1 }
 0xf93   :  { %v4157_v2 = vadd.f32 %v4110_v9, %v9117_v33  ;;  %v4114_v31 = vpop.f32.mrb[87].mxu1 }
 0xf94   :  { %v4158_v25 = vadd.f32 %v4112_v11, %v9119_v34 }
 0xf95   :  { %v4161_v55 = vmul.f32 0.5, %v4157_v2 }
 0xf96   :  { %v4162_v23 = vmul.f32 0.5, %v4158_v25 }
 0xf97   :  { %8218 = vtanh.f32 %v4161_v55 }
 0xf98   :  { %8220 = vtanh.f32 %v4162_v23 }
 0xf99   :  { %8222 = vtanh.f32 %v4160_v50 }
 0xfa0   :  { %v4400_v61 = vpop.f32.mrb[92].mxu0 }
 0xfa1   :  { %v8219_v54 = vpop.eup %8218  ;;  %v4401_v32 = vadd.f32 %v4400_v61, %v4318_v18  ;;  %v4402_v21 = vpop.f32.mrb[93].mxu0  ;;  %v3788_v18 = vmul.f32 0.5, %v10429_v62 }
 0xfa2   :  { %v8221_v29 = vpop.eup %8220  ;;  %v4167_v19 = vadd.f32 1.0, %v8219_v54  ;;  %v4403_v47 = vadd.f32 %v4402_v21, %v4320_v30  ;;  %v4404_v6 = vpop.f32.mrb[94].mxu0 }
 0xfa3   :  { %v4168_v5 = vadd.f32 1.0, %v8221_v29  ;;  %v4405_v9 = vpop.f32.mrb[95].mxu0  ;;  %v8223_v33 = vpop.eup %8222  ;;  %8224 = vtanh.f32 %v3788_v18  ;;  %v3930_v6 = vmul.f32 0.5, %v10467_v44 }
 0xfa4   :  { %v4170_v31 = vmul.f32 0.5, %v4167_v19 }
 0xfa5   :  { %v4171_v11 = vmul.f32 0.5, %v4168_v5  ;;  %8226 = vtanh.f32 %v3930_v6 }
 0xfa6   :  { %v4175_v2 = vmul.f32 %v8223_v33, %v4170_v31 }
 0xfa7   :  { %v4174_v25 = vmul.f32 %v4171_v11, %v10009_v4 }
 0xfa9   :  { %v10495_v13 = vadd.f32 %v4175_v2, %v4174_v25  ;;  %v4410_v25 = vadd.f32 %v4403_v47, %v9133_v40 }
 0xfad   :  { %v8225_v61 = vpop.eup %8224 }
 0xfae   :  { %v3790_v30 = vadd.f32 1.0, %v8225_v61 }
 0xfaf   :  { %v8227_v18 = vpop.eup %8226 }
 0xfb0   :  { %v4277_v55 = vpop.f32.mrb[88].mxu1  ;;  %v10498_v54 = vmul.f32 0.5, %v3790_v30 }
 0xfb1   :  { %v4279_v50 = vpop.f32.mrb[89].mxu1 }
 0xfb2   :  { %v4281_v23 = vpop.f32.mrb[90].mxu1 }
 0xfb3   :  { %v4282_v36 = vpop.f32.mrb[91].mxu1  ;;  %v4409_v23 = vadd.f32 %v4401_v32, %v9131_v39 }
 0xfcc   :  { %v3796_v21 = vpop.permute.xlu0 %3795 }
 0xfcd   :  { %v3798_v29 = vmul.f32 %v3796_v21, %v10498_v54 }
 0xfcf   :  { %3800 = vrot.lane.b32.xlu0 %v3798_v29, %s8380_s18 }
 0xfd0   :  { %v4359_v33 = vpop.f32.mrb[92].mxu1 }
 0xfd1   :  { %v4360_v4 = vadd.f32 %v4359_v33, %v4277_v55  ;;  %v4361_v19 = vpop.f32.mrb[93].mxu1  ;;  %v4413_v55 = vmul.f32 0.5, %v4409_v23 }
 0xfd2   :  { %v4362_v5 = vadd.f32 %v4361_v19, %v4279_v50  ;;  %v4363_v9 = vpop.f32.mrb[94].mxu1 }
 0xfd3   :  { %v4407_v36 = vadd.f32 %v4360_v4, %v9127_v37  ;;  %v4364_v62 = vpop.f32.mrb[95].mxu1  ;;  %v3932_v4 = vadd.f32 1.0, %v8227_v18 }
 0xfd4   :  { %v4408_v31 = vadd.f32 %v4362_v5, %v9129_v38 }
 0xfd5   :  { %v4411_v11 = vmul.f32 0.5, %v4407_v36  ;;  %v10510_v5 = vmul.f32 0.5, %v3932_v4 }
 0xfd6   :  { %v4412_v2 = vmul.f32 0.5, %v4408_v31 }
 0xfd7   :  { %8228 = vtanh.f32 %v4411_v11 }
 0xfd8   :  { %8230 = vtanh.f32 %v4412_v2 }
 0xfd9   :  { %8232 = vtanh.f32 %v4410_v25 }
 0xfda   :  { %8234 = vtanh.f32 %v4413_v55 }
 0xfe1   :  { %v8229_v44 = vpop.eup %8228 }
 0xfe2   :  { %v8231_v50 = vpop.eup %8230  ;;  %v4417_v61 = vadd.f32 1.0, %v8229_v44 }
 0xfe3   :  { %v4418_v30 = vadd.f32 1.0, %v8231_v50  ;;  %v8233_v29 = vpop.eup %8232 }
 0xfe4   :  { %v4420_v21 = vmul.f32 0.5, %v4417_v61  ;;  %v8235_v36 = vpop.eup %8234 }
 0xfe5   :  { %v4421_v33 = vmul.f32 0.5, %v4418_v30  ;;  %v4419_v62 = vadd.f32 1.0, %v8235_v36  ;;  %v12291_v36 = vld [vmem:[#allocation29_spill] sm:$0xff] }
 0xfe6   :  { %v4425_v19 = vmul.f32 %v8233_v29, %v4420_v21 }
 0xfe7   :  { %v4424_v6 = vmul.f32 %v4421_v33, %v10021_v45  ;;  %v4422_v31 = vmul.f32 0.5, %v4419_v62  ;;  %v4159_v45 = vadd.f32 %v10446_v60, %v9121_v35  ;;  %v8136_v33 = vld [vmem:[%s11711_s5] sm:$0xff]  }
 0xfe8   :  { %v12293_v62 = vld [vmem:[#allocation30_spill] sm:$0xff] }
 0xfe9   :  { %v10508_v47 = vadd.f32 %v4425_v19, %v4424_v6  ;;  %v4163_v23 = vmul.f32 0.5, %v4159_v45  ;;  %v8137_v19 = vld [vmem:[%s11711_s5 + $0x8] sm:$0xff]   ;;  %v8138_v6 = vld [vmem:[%s11710_s4] sm:$0xff]   ;;  %v12300_v45 = vld [vmem:[#allocation65_spill] sm:$0xff] }
 0xfea   :  { %v3938_v32 = vpop.permute.xlu1 %3937 }
 0xfeb   :  { %8236 = vtanh.f32 %v10508_v47  ;;  %v3940_v9 = vmul.f32 %v3938_v32, %v10510_v5  ;;  %v8139_v32 = vld [vmem:[%s11710_s4 + $0x8] sm:$0xff]  }
 0xfec   :  { %8238 = vtanh.f32 %v4163_v23  ;;  %v12301_v23 = vld [vmem:[#allocation34_spill] sm:$0xff] }
 0xfed   :  { %3942 = vrot.lane.b32.xlu1 %v3940_v9, %s8380_s18  ;;  %8240 = vtanh.f32 %v10495_v13  ;;  %v12290_v9 = vld [vmem:[#allocation55_spill] sm:$0xff] }
 0xff5   :  { %v8237_v11 = vpop.eup %8236 }
 0xff6   :  { %v4428_v2 = vmul.f32 %v8237_v11, %v4422_v31  ;;  %v12294_v31 = vld [vmem:[#allocation59_spill] sm:$0xff] }
 0xff7   :  { %v12298_v11 = vld [vmem:[#allocation63_spill] sm:$0xff] }
 0xff8   :  { %v10515_v25 = vpack.c.bf16 %v4428_v2, %v4428_v2  ;;  %v12299_v2 = vld [vmem:[#allocation33_spill] sm:$0xff] }
 0xffa   :  { %4479 = vmatmul.mubr.bf16.vlgmr.msra.gmra.mrb[96].mxu1 %v10515_v25 }
 0xffb   :  { %4800 = vmatpush1.bf16.msra.mxu1 %v10030_v17  ;;  %4831 = vmatprep.mubr.bf16.mxu1 %v12029_v49  ;;  %v8239_v17 = vpop.eup %8238 }
 0xffc   :  { %4801 = vmatprep.subr.bf16.mxu1 %v10034_v51  ;;  %v4169_v51 = vadd.f32 1.0, %v8239_v17  ;;  %v12302_v17 = vld [vmem:[#allocation67_spill] sm:$0xff] }
 0xfff   :  { %4802 = vmatpush1.bf16.msra.mxu1 %v10040_v28  ;;  %v8241_v28 = vpop.eup %8240 }
0x1000   :  { %4803 = vmatprep.subr.bf16.mxu1 %v10042_v20  ;;  %v4172_v20 = vmul.f32 0.5, %v4169_v51  ;;  %v12303_v51 = vld [vmem:[#allocation35_spill] sm:$0xff] }
0x1003   :  { %4804 = vmatpush1.bf16.msra.mxu1 %v10046_v0  ;;  %v4178_v0 = vmul.f32 %v8241_v28, %v4172_v20  ;;  %v12304_v28 = vld [vmem:[#allocation69_spill] sm:$0xff]  ;;  %v12305_v20 = vld [vmem:[#allocation36_spill] sm:$0xff] }
0x1004   :  { %4805 = vmatprep.subr.bf16.mxu1 %v10048_v24 }
0x1005   :  { %v10537_v24 = vpack.c.bf16 %v4178_v0, %v4178_v0  ;;  %v12306_v0 = vld [vmem:[#allocation71_spill] sm:$0xff] }
0x1007   :  { %4806 = vmatpush1.bf16.msra.mxu1 %v10052_v41  ;;  %v3793_v41 = vmul.f32 %v10498_v54, %v10086_v63  ;;  %v8135_v63 = vld [vmem:[%s11708_s2 + $0x8] sm:$0xff]  }
0x1008   :  { %4807 = vmatprep.subr.bf16.mxu1 %v10054_v57 }
0x100b   :  { %4808 = vmatpush1.bf16.msra.mxu1 %v10059_v7 }
0x100c   :  { %4809 = vmatprep.subr.bf16.mxu1 %v10061_v46 }
0x100f   :  { %4810 = vmatpush1.bf16.msra.mxu1 %v10065_v48  ;;  %v3935_v48 = vmul.f32 %v10510_v5, %v10092_v3 }
0x1010   :  { %4811 = vmatprep.subr.bf16.mxu1 %v10067_v52 }
0x1013   :  { %4812 = vmatpush1.bf16.msra.mxu1 %v10071_v58 }
0x1014   :  { %4813 = vmatprep.subr.bf16.mxu1 %v10073_v12 }
0x1017   :  { %4814 = vmatpush1.bf16.msra.mxu1 %v10077_v53  ;;  %v8134_v53 = vld [vmem:[%s11708_s2] sm:$0xff]  }
0x1018   :  { %4881 = vmatprep.subr.bf16.mxu1 %v10104_v22  ;;  %7992 = vmatpush3.bf16.msra.mxu0 %v8134_v53  ;;  %v12313_v53 = vld [vmem:[#allocation40_spill] sm:$0xff] }
0x1019   :  { %7993 = vmatprep.subr.bf16.mxu0 %v12083_v16 }
0x101a   :  { %4832 = vmatmul.mubr.bf16.vlgmr.msra.gmra.mrb[100].mxu1 %v10537_v24 }
0x101b   :  { %4882 = vmatpush1.bf16.msra.mxu1 %v10107_v27  ;;  %4913 = vmatprep.mubr.bf16.mxu1 %v12029_v49 }
0x101c   :  { %4883 = vmatprep.subr.bf16.mxu1 %v10110_v59  ;;  %7994 = vmatpush3.bf16.msra.mxu0 %v8135_v63  ;;  %v12314_v63 = vld [vmem:[#allocation79_spill] sm:$0xff] }
0x101d   :  { %7999 = vmatprep.subr.bf16.mxu0 %v12083_v16 }
0x101f   :  { %4884 = vmatpush1.bf16.msra.mxu1 %v10113_v14 }
0x1020   :  { %5049 = vmatprep.subr.bf16.mxu1 %v10126_v26 }
0x1041   :  { %v3801_v57 = vpop.permute.xlu0 %3800 }
0x1042   :  { %v10548_v7 = vadd.f32 %v3801_v57, %v3793_v41  ;;  %v12307_v41 = vld [vmem:[#allocation37_spill] sm:$0xff] }
0x1043   :  { %v12308_v57 = vld [vmem:[#allocation73_spill] sm:$0xff] }
0x1044   :  { %8242 = vtanh.f32 %v10548_v7 }
0x104e   :  { %v8243_v46 = vpop.eup %8242 }
0x104f   :  { %3806 = vrot.lane.b32.xlu0 %v8243_v46, %s8380_s18  ;;  %v12309_v46 = vld [vmem:[#allocation38_spill] sm:$0xff] }
0x105f   :  { %v3943_v52 = vpop.permute.xlu1 %3942 }
0x1060   :  { %v10554_v58 = vadd.f32 %v3943_v52, %v3935_v48  ;;  %v12310_v48 = vld [vmem:[#allocation75_spill] sm:$0xff] }
0x1061   :  { %v12311_v52 = vld [vmem:[#allocation39_spill] sm:$0xff] }
0x1062   :  { %8244 = vtanh.f32 %v10554_v58 }
0x106c   :  { %v8245_v12 = vpop.eup %8244 }
0x106d   :  { %3948 = vrot.lane.b32.xlu1 %v8245_v12, %s8380_s18  ;;  %v12312_v12 = vld [vmem:[#allocation77_spill] sm:$0xff] }
0x10c1   :  { %v3807_v3 = vpop.permute.xlu0 %3806 }
0x10c2   :  { %v3809_v22 = vmul.f32 %v3807_v3, %v10498_v54  ;;  %v12315_v3 = vld [vmem:[#allocation41_spill] sm:$0xff] }
0x10c4   :  { %v4489_v27 = vpack.c.bf16 %v3809_v22, %v3809_v22  ;;  %v12316_v22 = vld [vmem:[#allocation81_spill] sm:$0xff] }
0x10c6   :  { %4495 = vrot.lane.b32.xlu0 %v4489_v27, %s8381_s0  ;;  %v12317_v27 = vld [vmem:[#allocation42_spill] sm:$0xff] }
0x10cd   :  { %v4480_v59 = vpop.f32.mrb[96].mxu1 }
0x10ce   :  { %v4481_v14 = vadd.f32 %v4480_v59, %v9138_v42  ;;  %v4482_v26 = vpop.f32.mrb[97].mxu1  ;;  %v12318_v59 = vld [vmem:[#allocation83_spill] sm:$0xff] }
0x10cf   :  { %v4483_v60 = vadd.f32 %v4482_v26, %v9140_v43  ;;  %v4484_v55 = vpop.f32.mrb[98].mxu1  ;;  %v12320_v26 = vld [vmem:[#allocation85_spill] sm:$0xff] }
0x10d0   :  { %4487 = vst [vmem:[%s11721_s15 + $0x20] sm:$0xff] %v4481_v14  ;;  %v4485_v18 = vpop.f32.mrb[99].mxu1  ;;  %v12319_v14 = vld [vmem:[#allocation43_spill] sm:$0xff] }
0x10d1   :  { %4488 = vst [vmem:[%s11721_s15 + $0x28] sm:$0xff] %v4483_v60  ;;  %v12321_v60 = vld [vmem:[#allocation44_spill] sm:$0xff]  ;;  %v12322_v55 = vld [vmem:[#allocation87_spill] sm:$0xff]  ;;  %v12323_v18 = vld [vmem:[#allocation45_spill] sm:$0xff] }
0x10df   :  { %v3949_v54 = vpop.permute.xlu1 %3948 }
0x10e0   :  { %v3951_v44 = vmul.f32 %v3949_v54, %v10510_v5  ;;  %v12324_v54 = vld [vmem:[#allocation89_spill] sm:$0xff] }
0x10e2   :  { %v4579_v50 = vpack.c.bf16 %v3951_v44, %v3951_v44  ;;  %v12325_v44 = vld [vmem:[#allocation46_spill] sm:$0xff] }
0x10e4   :  { %4585 = vrot.lane.b32.xlu1 %v4579_v50, %s8381_s0  ;;  %v12326_v50 = vld [vmem:[#allocation91_spill] sm:$0xff] }
0x10ed   :  { %v10578_v61 = vpop.f32.mrb[100].mxu1 }
0x10ee   :  { %v10580_v30 = vpop.f32.mrb[101].mxu1 }
0x10ef   :  { %v4837_v21 = vpop.f32.mrb[102].mxu1 }
0x10f0   :  { %v4838_v29 = vpop.f32.mrb[103].mxu1  ;;  %v12327_v21 = vld [vmem:[#allocation47_spill] sm:$0xff] }
0x10f1   :  { %v12328_v29 = vld [vmem:[#allocation93_spill] sm:$0xff] }
0x1138   :  { %v4496_v4 = vpop.permute.xlu0 %4495 }
0x1139   :  { %7996 = vmatmul.mubr.msk.bf16.vlgmr.msra.gmra.mrb[96].mxu0 %vm1453_vm2, %v4496_v4 }
0x113a   :  { %8000 = vmatpush3.bf16.msra.mxu0 %v8136_v33  ;;  %8003 = vmatprep.mubr.msk.bf16.mxu0 %vm8378_vm0, %v12083_v16  ;;  %v12329_v33 = vld [vmem:[#allocation48_spill] sm:$0xff] }
0x113b   :  { %8001 = vmatprep.subr.bf16.mxu0 %v12083_v16 }
0x113e   :  { %8002 = vmatpush3.bf16.msra.mxu0 %v8137_v19  ;;  %v12331_v19 = vld [vmem:[#allocation49_spill] sm:$0xff] }
0x113f   :  { %8007 = vmatprep.subr.bf16.mxu0 %v12083_v16 }
0x1156   :  { %v4586_v5 = vpop.permute.xlu1 %4585 }
0x1157   :  { %8004 = vmatmul.mubr.msk.bf16.vlgmr.msra.gmra.mrb[100].mxu0 %vm1453_vm2, %v4586_v5  ;;  %7740 = vmatmul.mubr.msk.bf16.vlgmr.msra.gmra.mrb[104].mxu1 %vm1453_vm2, %v4586_v5 }
0x1158   :  { %8008 = vmatpush3.bf16.msra.mxu0 %v8138_v6  ;;  %5050 = vmatpush1.bf16.msra.mxu1 %v10149_v8  ;;  %v12289_v8 = vld [vmem:[#allocation28_spill] sm:$0xff]  ;;  %v12332_v6 = vld [vmem:[#allocation97_spill] sm:$0xff] }
0x1159   :  { %8009 = vmatprep.subr.bf16.mxu0 %v12083_v16  ;;  %5051 = vmatprep.subr.bf16.mxu1 %v10153_v15  ;;  %v12292_v15 = vld [vmem:[#allocation57_spill] sm:$0xff] }
0x115a   :  { %8011 = vmatprep.mubr.msk.bf16.mxu0 %vm8378_vm0, %v12083_v16  ;;  %5081 = vmatprep.mubr.bf16.mxu1 %v12029_v49 }
0x115c   :  { %8010 = vmatpush3.bf16.msra.mxu0 %v8139_v32  ;;  %5052 = vmatpush1.bf16.msra.mxu1 %v10165_v1  ;;  %v12295_v1 = vld [vmem:[#allocation31_spill] sm:$0xff]  ;;  %v12333_v32 = vld [vmem:[#allocation50_spill] sm:$0xff] }
0x115d   :  { %4758 = vmatprep.subr.bf16.mxu0 %v10169_v10  ;;  %5053 = vmatprep.subr.bf16.mxu1 %v10171_v56  ;;  %v12296_v10 = vld [vmem:[#allocation61_spill] sm:$0xff]  ;;  %v12297_v56 = vld [vmem:[#allocation32_spill] sm:$0xff] }
0x115f   :  { %8012 = vmatmul.mubr.msk.bf16.vlgmr.msra.gmra.mrb[104].mxu0 %vm1453_vm2, %v4496_v4  ;;  %v12330_v4 = vld [vmem:[#allocation95_spill] sm:$0xff] }
0x1160   :  { %4759 = vmatpush1.bf16.msra.mxu0 %v12289_v8  ;;  %5054 = vmatpush1.bf16.msra.mxu1 %v12290_v9  ;;  %v12334_v8 = vld [vmem:[#allocation99_spill] sm:$0xff] }
0x1161   :  { %4760 = vmatprep.subr.bf16.mxu0 %v12291_v36  ;;  %5055 = vmatprep.subr.bf16.mxu1 %v12292_v15  ;;  %v12335_v9 = vld [vmem:[#allocation51_spill] sm:$0xff]  ;;  %v12336_v36 = vld [vmem:[#allocation101_spill] sm:$0xff]  ;;  %v12337_v15 = vld [vmem:[#allocation52_spill] sm:$0xff] }
0x1162   :  { %4790 = vmatprep.mubr.bf16.mxu0 %v12029_v49 }
0x1164   :  { %4761 = vmatpush1.bf16.msra.mxu0 %v12293_v62  ;;  %5056 = vmatpush1.bf16.msra.mxu1 %v12294_v31  ;;  %v12339_v62 = vld [vmem:[#allocation53_spill] sm:$0xff]  ;;  %v12340_v31 = vld [vmem:[#allocation103_spill] sm:$0xff] }
0x1165   :  { %4762 = vmatprep.subr.bf16.mxu0 %v12295_v1  ;;  %5057 = vmatprep.subr.bf16.mxu1 %v12296_v10  ;;  %v12341_v1 = vld [vmem:[#allocation54_spill] sm:$0xff]  ;;  %v12342_v10 = vld [vmem:[#allocation56_spill] sm:$0xff] }
0x1168   :  { %4763 = vmatpush1.bf16.msra.mxu0 %v12297_v56  ;;  %5058 = vmatpush1.bf16.msra.mxu1 %v12298_v11  ;;  %v12343_v56 = vld [vmem:[#allocation58_spill] sm:$0xff]  ;;  %v12344_v11 = vld [vmem:[#allocation60_spill] sm:$0xff] }
0x1169   :  { %4764 = vmatprep.subr.bf16.mxu0 %v12299_v2  ;;  %5059 = vmatprep.subr.bf16.mxu1 %v12300_v45  ;;  %v12345_v2 = vld [vmem:[#allocation62_spill] sm:$0xff]  ;;  %v12346_v45 = vld [vmem:[#allocation64_spill] sm:$0xff] }
0x116c   :  { %4765 = vmatpush1.bf16.msra.mxu0 %v12301_v23  ;;  %5060 = vmatpush1.bf16.msra.mxu1 %v12302_v17  ;;  %v12347_v23 = vld [vmem:[#allocation66_spill] sm:$0xff]  ;;  %v12348_v17 = vld [vmem:[#allocation68_spill] sm:$0xff] }
0x116d   :  { %4766 = vmatprep.subr.bf16.mxu0 %v12303_v51  ;;  %5061 = vmatprep.subr.bf16.mxu1 %v12304_v28  ;;  %v12349_v51 = vld [vmem:[#allocation70_spill] sm:$0xff]  ;;  %v12350_v28 = vld [vmem:[#allocation72_spill] sm:$0xff] }
0x1170   :  { %4767 = vmatpush1.bf16.msra.mxu0 %v12305_v20  ;;  %5062 = vmatpush1.bf16.msra.mxu1 %v12306_v0  ;;  %v12351_v20 = vld [vmem:[#allocation74_spill] sm:$0xff]  ;;  %v12352_v0 = vld [vmem:[#allocation76_spill] sm:$0xff] }
0x1171   :  { %4768 = vmatprep.subr.bf16.mxu0 %v12307_v41  ;;  %5063 = vmatprep.subr.bf16.mxu1 %v12308_v57  ;;  %v12353_v41 = vld [vmem:[#allocation78_spill] sm:$0xff]  ;;  %v12354_v57 = vld [vmem:[#allocation80_spill] sm:$0xff] }
0x1174   :  { %4769 = vmatpush1.bf16.msra.mxu0 %v12309_v46  ;;  %5064 = vmatpush1.bf16.msra.mxu1 %v12310_v48  ;;  %v12355_v46 = vld [vmem:[#allocation82_spill] sm:$0xff]  ;;  %v12356_v48 = vld [vmem:[#allocation84_spill] sm:$0xff] }
0x1175   :  { %4770 = vmatprep.subr.bf16.mxu0 %v12311_v52  ;;  %5131 = vmatprep.subr.bf16.mxu1 %v12312_v12  ;;  %v12357_v52 = vld [vmem:[#allocation86_spill] sm:$0xff]  ;;  %v12358_v12 = vld [vmem:[#allocation88_spill] sm:$0xff] }
0x1177   :  { %5082 = vmatmul.mubr.bf16.vlgmr.msra.gmra.mrb[108].mxu1 %v10515_v25 }
0x1178   :  { %4771 = vmatpush1.bf16.msra.mxu0 %v12313_v53  ;;  %5132 = vmatpush1.bf16.msra.mxu1 %v12314_v63  ;;  %v12359_v53 = vld [vmem:[#allocation90_spill] sm:$0xff]  ;;  %v12360_v63 = vld [vmem:[#allocation92_spill] sm:$0xff] }
0x1179   :  { %4772 = vmatprep.subr.bf16.mxu0 %v12315_v3  ;;  %5133 = vmatprep.subr.bf16.mxu1 %v12316_v22  ;;  %v12362_v3 = vld [vmem:[#allocation96_spill] sm:$0xff]  ;;  %v12363_v22 = vld [vmem:[#allocation98_spill] sm:$0xff] }
0x117a   :  { %5163 = vmatprep.mubr.bf16.mxu1 %v12029_v49 }
0x117c   :  { %4773 = vmatpush1.bf16.msra.mxu0 %v12317_v27  ;;  %5134 = vmatpush1.bf16.msra.mxu1 %v12318_v59  ;;  %v12364_v27 = vld [vmem:[#allocation100_spill] sm:$0xff] }
0x117d   :  { %4840 = vmatprep.subr.bf16.mxu0 %v12319_v14  ;;  %5135 = vmatprep.subr.bf16.mxu1 %v12320_v26  ;;  %v12365_v59 = vld [vmem:[#allocation104_spill] sm:$0xff]  ;;  %v12366_v14 = vld [vmem:[#allocation105_spill] sm:$0xff]  ;;  %v12367_v26 = vld [vmem:[#allocation106_spill] sm:$0xff] }
0x117f   :  { %4791 = vmatmul.mubr.bf16.vlgmr.msra.gmra.mrb[108].mxu0 %v10537_v24 }
0x1180   :  { %4841 = vmatpush1.bf16.msra.mxu0 %v12321_v60  ;;  %5136 = vmatpush1.bf16.msra.mxu1 %v12322_v55  ;;  %v12368_v60 = vld [vmem:[#allocation107_spill] sm:$0xff]  ;;  %v12369_v55 = vld [vmem:[#allocation108_spill] sm:$0xff] }
0x1181   :  { %4842 = vmatprep.subr.bf16.mxu0 %v12323_v18  ;;  %5137 = vmatprep.subr.bf16.mxu1 %v12324_v54  ;;  %v12370_v18 = vld [vmem:[#allocation109_spill] sm:$0xff]  ;;  %v12371_v54 = vld [vmem:[#allocation110_spill] sm:$0xff] }
0x1182   :  { %4872 = vmatprep.mubr.bf16.mxu0 %v12029_v49 }
0x1184   :  { %4843 = vmatpush1.bf16.msra.mxu0 %v12325_v44  ;;  %5138 = vmatpush1.bf16.msra.mxu1 %v12326_v50  ;;  %v12372_v44 = vld [vmem:[#allocation111_spill] sm:$0xff]  ;;  %v12373_v50 = vld [vmem:[#allocation112_spill] sm:$0xff] }
0x1185   :  { %5008 = vmatprep.subr.bf16.mxu0 %v12327_v21  ;;  %5139 = vmatprep.subr.bf16.mxu1 %v12328_v29  ;;  %v12374_v21 = vld [vmem:[#allocation113_spill] sm:$0xff]  ;;  %v12375_v29 = vld [vmem:[#allocation114_spill] sm:$0xff] }
0x1187   :  { %7739 = vmatmul.mubr.msk.bf16.vlgmr.msra.gmra.mrb[112].mxu0 %vm1453_vm2, %v4586_v5  ;;  %v12338_v5 = vld [vmem:[#allocation102_spill] sm:$0xff] }
0x1188   :  { %5009 = vmatpush1.bf16.msra.mxu0 %v12329_v33  ;;  %5140 = vmatpush1.bf16.msra.mxu1 %v12330_v4  ;;  %v12376_v33 = vld [vmem:[#allocation115_spill] sm:$0xff]  ;;  %v12378_v4 = vld [vmem:[#allocation117_spill] sm:$0xff] }
0x1189   :  { %5010 = vmatprep.subr.bf16.mxu0 %v12331_v19  ;;  %5141 = vmatprep.subr.bf16.mxu1 %v12332_v6  ;;  %v12379_v19 = vld [vmem:[#allocation118_spill] sm:$0xff]  ;;  %v12380_v6 = vld [vmem:[#allocation119_spill] sm:$0xff] }
0x118a   :  { %5040 = vmatprep.mubr.bf16.mxu0 %v12029_v49 }
0x118c   :  { %5011 = vmatpush1.bf16.msra.mxu0 %v12333_v32  ;;  %5142 = vmatpush1.bf16.msra.mxu1 %v12334_v8  ;;  %v12381_v32 = vld [vmem:[#allocation24_spill] sm:$0xff]  ;;  %v12382_v8 = vld [vmem:[#allocation26_spill] sm:$0xff] }
0x118d   :  { %5012 = vmatprep.subr.bf16.mxu0 %v12335_v9  ;;  %5143 = vmatprep.subr.bf16.mxu1 %v12336_v36  ;;  %v12383_v36 = vld [vmem:[#allocation23_spill] sm:$0xff] }
0x1190   :  { %5013 = vmatpush1.bf16.msra.mxu0 %v12337_v15  ;;  %5144 = vmatpush1.bf16.msra.mxu1 %v12338_v5 }
0x1191   :  { %5014 = vmatprep.subr.bf16.mxu0 %v12339_v62  ;;  %5145 = vmatprep.subr.bf16.mxu1 %v12340_v31 }
0x1194   :  { %5015 = vmatpush1.bf16.msra.mxu0 %v12341_v1  ;;  %5146 = vmatpush1.bf16.msra.mxu1 %v12342_v10 }
0x1195   :  { %5016 = vmatprep.subr.bf16.mxu0 %v12343_v56  ;;  %8015 = vmatprep.subr.bf16.mxu1 %v12083_v16 }
0x1197   :  { %5164 = vmatmul.mubr.bf16.vlgmr.msra.gmra.mrb[112].mxu1 %v10537_v24 }
0x1198   :  { %5017 = vmatpush1.bf16.msra.mxu0 %v12344_v11  ;;  %8019 = vmatprep.mubr.msk.bf16.mxu1 %vm8378_vm0, %v12083_v16 }
0x1199   :  { %5018 = vmatprep.subr.bf16.mxu0 %v12345_v2 }
0x119c   :  { %5019 = vmatpush1.bf16.msra.mxu0 %v12346_v45 }
0x119d   :  { %5020 = vmatprep.subr.bf16.mxu0 %v12347_v23 }
0x11a0   :  { %5021 = vmatpush1.bf16.msra.mxu0 %v12348_v17 }
0x11a1   :  { %5022 = vmatprep.subr.bf16.mxu0 %v12349_v51 }
0x11a4   :  { %5023 = vmatpush1.bf16.msra.mxu0 %v12350_v28 }
0x11a5   :  { %5090 = vmatprep.subr.bf16.mxu0 %v12351_v20 }
0x11a7   :  { %5041 = vmatmul.mubr.bf16.vlgmr.msra.gmra.mrb[116].mxu0 %v10515_v25  ;;  %v12361_v25 = vld [vmem:[#allocation94_spill] sm:$0xff] }
0x11a8   :  { %5091 = vmatpush1.bf16.msra.mxu0 %v12352_v0  ;;  %5122 = vmatprep.mubr.bf16.mxu0 %v12029_v49 }
0x11a9   :  { %5092 = vmatprep.subr.bf16.mxu0 %v12353_v41 }
0x11ac   :  { %5093 = vmatpush1.bf16.msra.mxu0 %v12354_v57 }
0x11ad   :  { %5094 = vmatprep.subr.bf16.mxu0 %v12355_v46 }
0x11b0   :  { %5095 = vmatpush1.bf16.msra.mxu0 %v12356_v48  ;;  %v12384_v48 = vld [vmem:[#allocation27_spill] sm:$0xff] }
0x11b1   :  { %5096 = vmatprep.subr.bf16.mxu0 %v12357_v52 }
0x11b4   :  { %5097 = vmatpush1.bf16.msra.mxu0 %v12358_v12 }
0x11b5   :  { %5098 = vmatprep.subr.bf16.mxu0 %v12359_v53  ;;  %v10730_v53 = vld [vmem:[#allocation3 + $0x18] sm:$0xff] }
0x11b8   :  { %5099 = vmatpush1.bf16.msra.mxu0 %v12360_v63 }
0x11b9   :  { %5100 = vmatprep.subr.bf16.mxu0 %v12361_v25 }
0x11bc   :  { %5101 = vmatpush1.bf16.msra.mxu0 %v12362_v3 }
0x11bd   :  { %5102 = vmatprep.subr.bf16.mxu0 %v12363_v22 }
0x11c0   :  { %5103 = vmatpush1.bf16.msra.mxu0 %v12364_v27 }
0x11c1   :  { %5104 = vmatprep.subr.bf16.mxu0 %v12365_v59 }
0x11c4   :  { %5105 = vmatpush1.bf16.msra.mxu0 %v12366_v14 }
0x11c5   :  { %5211 = vmatprep.subr.bf16.mxu0 %v12367_v26 }
0x11c7   :  { %5123 = vmatmul.mubr.bf16.vlgmr.msra.gmra.mrb[120].mxu0 %v10537_v24  ;;  %v12377_v24 = vld [vmem:[#allocation116_spill] sm:$0xff] }
0x11c8   :  { %5212 = vmatpush1.bf16.msra.mxu0 %v12368_v60  ;;  %5243 = vmatprep.mubr.bf16.mxu0 %v12029_v49 }
0x11c9   :  { %5213 = vmatprep.subr.bf16.mxu0 %v12369_v55 }
0x11cc   :  { %5214 = vmatpush1.bf16.msra.mxu0 %v12370_v18 }
0x11cd   :  { %5215 = vmatprep.subr.bf16.mxu0 %v12371_v54 }
0x11d0   :  { %5216 = vmatpush1.bf16.msra.mxu0 %v12372_v44  ;;  %v12385_v44 = vld [vmem:[#allocation18_spill] sm:$0xff] }
0x11d1   :  { %5217 = vmatprep.subr.bf16.mxu0 %v12373_v50 }
0x11d4   :  { %5218 = vmatpush1.bf16.msra.mxu0 %v12374_v21 }
0x11d5   :  { %5219 = vmatprep.subr.bf16.mxu0 %v12375_v29 }
0x11d8   :  { %5220 = vmatpush1.bf16.msra.mxu0 %v12376_v33 }
0x11d9   :  { %5221 = vmatprep.subr.bf16.mxu0 %v12377_v24 }
0x11dc   :  { %5222 = vmatpush1.bf16.msra.mxu0 %v12378_v4  ;;  %v12386_v4 = vld [vmem:[#allocation20_spill] sm:$0xff] }
0x11dd   :  { %5223 = vmatprep.subr.bf16.mxu0 %v12379_v19 }
0x11e0   :  { %5224 = vmatpush1.bf16.msra.mxu0 %v12380_v6 }
0x11e1   :  { %5225 = vmatprep.subr.bf16.mxu0 %v12381_v32 }
0x11e4   :  { %5226 = vmatpush1.bf16.msra.mxu0 %v12382_v8 }
0x11e5   :  { %5564 = vmatprep.subr.bf16.mxu0 %v10730_v53 }
0x120c   :  { %v4546_v9 = vpop.f32.mrb[96].mxu0 }
0x120d   :  { %v10721_v15 = vadd.f32 %v4546_v9, %v12383_v36  ;;  %v7997_v5 = vpop.f32.mrb[97].mxu0 }
0x120e   :  { %v4549_v62 = vpop.f32.mrb[98].mxu0 }
0x120f   :  { %8246 = vtanh.f32 %v10721_v15  ;;  %v7998_v31 = vpop.f32.mrb[99].mxu0 }
0x1219   :  { %v8247_v1 = vpop.eup %8246 }
0x121a   :  { %4560 = vrot.lane.b32.xlu0 %v8247_v1, %s8380_s18 }
0x122a   :  { %v4636_v10 = vpop.f32.mrb[100].mxu0  ;;  %v4915_v56 = vpop.f32.mrb[104].mxu1 }
0x122b   :  { %v10726_v11 = vadd.f32 %v4915_v56, %v10578_v61  ;;  %v8005_v2 = vpop.f32.mrb[101].mxu0  ;;  %v4917_v45 = vpop.f32.mrb[105].mxu1 }
0x122c   :  { %v4918_v23 = vadd.f32 %v4917_v45, %v10580_v30  ;;  %v4639_v17 = vpop.f32.mrb[102].mxu0  ;;  %v4919_v51 = vpop.f32.mrb[106].mxu1 }
0x122d   :  { %v8006_v28 = vpop.f32.mrb[103].mxu0  ;;  %v4920_v20 = vpop.f32.mrb[107].mxu1 }
0x122e   :  { %v4925_v19 = vadd.f32 %v4918_v23, %v12386_v4  ;;  %v4553_v28 = vmul.f32 0.5, %v10721_v15 }
0x1232   :  { %v4688_v0 = vpop.f32.mrb[104].mxu0 }
0x1233   :  { %v4689_v41 = vadd.f32 %v4688_v0, %v4636_v10  ;;  %v8013_v57 = vpop.f32.mrb[105].mxu0 }
0x1234   :  { %v4691_v46 = vpop.f32.mrb[106].mxu0 }
0x1235   :  { %v4694_v52 = vadd.f32 %v12384_v48, %v4689_v41  ;;  %v8014_v12 = vpop.f32.mrb[107].mxu0 }
0x1237   :  { %8248 = vtanh.f32 %v4694_v52 }
0x1241   :  { %v8249_v61 = vpop.eup %8248 }
0x1242   :  { %4702 = vrot.lane.b32.xlu1 %v8249_v61, %s8380_s18 }
0x124a   :  { %v5083_v30 = vpop.f32.mrb[108].mxu1 }
0x124b   :  { %v5085_v63 = vpop.f32.mrb[109].mxu1 }
0x124c   :  { %v5087_v25 = vpop.f32.mrb[110].mxu1 }
0x124d   :  { %v5088_v3 = vpop.f32.mrb[111].mxu1 }
0x1252   :  { %v4792_v22 = vpop.f32.mrb[108].mxu0 }
0x1253   :  { %v4794_v27 = vpop.f32.mrb[109].mxu0 }
0x1254   :  { %v4796_v59 = vpop.f32.mrb[110].mxu0 }
0x1255   :  { %v4797_v14 = vpop.f32.mrb[111].mxu0 }
0x125a   :  { %v4874_v26 = vpop.f32.mrb[112].mxu0 }
0x125b   :  { %v4875_v60 = vadd.f32 %v4874_v26, %v4792_v22  ;;  %v4876_v55 = vpop.f32.mrb[113].mxu0  ;;  %v4695_v22 = vmul.f32 0.5, %v4694_v52 }
0x125c   :  { %v4877_v18 = vadd.f32 %v4876_v55, %v4794_v27  ;;  %v4878_v54 = vpop.f32.mrb[114].mxu0 }
0x125d   :  { %v4922_v50 = vadd.f32 %v4875_v60, %v12385_v44  ;;  %v4879_v21 = vpop.f32.mrb[115].mxu0 }
0x125e   :  { %v4923_v29 = vadd.f32 %v4877_v18, %v9119_v34 }
0x125f   :  { %v4926_v33 = vmul.f32 0.5, %v4922_v50 }
0x1260   :  { %v4927_v24 = vmul.f32 0.5, %v4923_v29 }
0x1261   :  { %8250 = vtanh.f32 %v4926_v33 }
0x1262   :  { %8252 = vtanh.f32 %v4927_v24 }
0x1263   :  { %8254 = vtanh.f32 %v4925_v19 }
0x1264   :  { %8256 = vtanh.f32 %v4553_v28  ;;  %v10759_v28 = vld [vmem:[#allocation3 + $0x10] sm:$0xff] }
0x1265   :  { %8258 = vtanh.f32 %v4695_v22  ;;  %v10796_v22 = vld [vmem:[#allocation3 + $0xd8] sm:$0xff] }
0x126a   :  { %v5165_v6 = vpop.f32.mrb[112].mxu1 }
0x126b   :  { %v8251_v32 = vpop.eup %8250  ;;  %v5166_v8 = vadd.f32 %v5165_v6, %v5083_v30  ;;  %v5167_v9 = vpop.f32.mrb[113].mxu1 }
0x126c   :  { %v8253_v36 = vpop.eup %8252  ;;  %v4932_v5 = vadd.f32 1.0, %v8251_v32  ;;  %v5168_v62 = vadd.f32 %v5167_v9, %v5085_v63  ;;  %v5169_v31 = vpop.f32.mrb[114].mxu1 }
0x126d   :  { %v4933_v1 = vadd.f32 1.0, %v8253_v36  ;;  %v5170_v10 = vpop.f32.mrb[115].mxu1  ;;  %v8255_v2 = vpop.eup %8254  ;;  %v5174_v54 = vadd.f32 %v5166_v8, %v9131_v39 }
0x126e   :  { %v4935_v56 = vmul.f32 0.5, %v4932_v5  ;;  %v8257_v46 = vpop.eup %8256  ;;  %v5175_v18 = vadd.f32 %v5168_v62, %v9133_v40 }
0x126f   :  { %v4936_v45 = vmul.f32 0.5, %v4933_v1  ;;  %v4555_v12 = vadd.f32 1.0, %v8257_v46  ;;  %v5178_v50 = vmul.f32 0.5, %v5174_v54  ;;  %v8259_v21 = vpop.eup %8258  ;;  %v10777_v46 = vld [vmem:[#allocation3 + $0x78] sm:$0xff] }
0x1270   :  { %v4940_v17 = vmul.f32 %v8255_v2, %v4935_v56  ;;  %v4697_v9 = vadd.f32 1.0, %v8259_v21 }
0x1271   :  { %v4939_v51 = vmul.f32 %v4936_v45, %v10495_v13  ;;  %v10741_v61 = vmul.f32 0.5, %v4555_v12  ;;  %v10781_v12 = vld [vmem:[#allocation3 + $0x70] sm:$0xff] }
0x1272   :  { %v10752_v31 = vmul.f32 0.5, %v4697_v9  ;;  %v5489_v9 = vld [vmem:[#allocation2 + $0x38] sm:$0xff] }
0x1273   :  { %v10738_v23 = vadd.f32 %v4940_v17, %v4939_v51  ;;  %v4558_v54 = vmul.f32 %v10741_v61, %v10548_v7  ;;  %v8140_v7 = vld [vmem:[%s11708_s2] sm:$0xff]  }
0x1274   :  { %8016 = vmatpush3.bf16.msra.mxu1 %v8140_v7  ;;  %v5748_v7 = vld [vmem:[#allocation5 + $0x38] sm:$0xff] }
0x1275   :  { %8017 = vmatprep.subr.bf16.mxu1 %v12083_v16 }
0x127a   :  { %v5042_v20 = vpop.f32.mrb[116].mxu0 }
0x127b   :  { %v5044_v0 = vpop.f32.mrb[117].mxu0 }
0x127c   :  { %v5046_v41 = vpop.f32.mrb[118].mxu0 }
0x127d   :  { %v5047_v57 = vpop.f32.mrb[119].mxu0 }
0x127e   :  { %v10771_v57 = vld [vmem:[#allocation3 + $0x58] sm:$0xff] }
0x128c   :  { %v4561_v30 = vpop.permute.xlu0 %4560 }
0x128d   :  { %v4563_v63 = vmul.f32 %v4561_v30, %v10741_v61  ;;  %v10783_v30 = vld [vmem:[#allocation3 + $0x98] sm:$0xff] }
0x128f   :  { %4565 = vrot.lane.b32.xlu0 %v4563_v63, %s8380_s18  ;;  %v10788_v63 = vld [vmem:[#allocation3 + $0x90] sm:$0xff] }
0x129a   :  { %v5124_v25 = vpop.f32.mrb[120].mxu0 }
0x129b   :  { %v5125_v13 = vadd.f32 %v5124_v25, %v5042_v20  ;;  %v5126_v3 = vpop.f32.mrb[121].mxu0  ;;  %v10763_v20 = vld [vmem:[#allocation3 + $0x38] sm:$0xff] }
0x129c   :  { %v5127_v27 = vadd.f32 %v5126_v3, %v5044_v0  ;;  %v5128_v15 = vpop.f32.mrb[122].mxu0  ;;  %v10769_v0 = vld [vmem:[#allocation3 + $0x30] sm:$0xff]  ;;  %v10790_v25 = vld [vmem:[#allocation3 + $0xb8] sm:$0xff] }
0x129d   :  { %v5172_v59 = vadd.f32 %v5125_v13, %v9127_v37  ;;  %v5129_v14 = vpop.f32.mrb[123].mxu0  ;;  %v10794_v3 = vld [vmem:[#allocation3 + $0xb0] sm:$0xff] }
0x129e   :  { %v5173_v26 = vadd.f32 %v5127_v27, %v9129_v38  ;;  %v10800_v15 = vld [vmem:[#allocation3 + $0xd0] sm:$0xff]  ;;  %v10802_v14 = vld [vmem:[#allocation3 + $0xf8] sm:$0xff] }
0x129f   :  { %v5176_v60 = vmul.f32 0.5, %v5172_v59 }
0x12a0   :  { %v5177_v55 = vmul.f32 0.5, %v5173_v26 }
0x12a1   :  { %8260 = vtanh.f32 %v5176_v60  ;;  %v10806_v60 = vld [vmem:[#allocation3 + $0xf0] sm:$0xff] }
0x12a2   :  { %8262 = vtanh.f32 %v5177_v55 }
0x12a3   :  { %8264 = vtanh.f32 %v5175_v18 }
0x12a4   :  { %8266 = vtanh.f32 %v5178_v50 }
0x12ab   :  { %v8261_v52 = vpop.eup %8260 }
0x12ac   :  { %v8263_v29 = vpop.eup %8262  ;;  %v5182_v33 = vadd.f32 1.0, %v8261_v52 }
0x12ad   :  { %v5183_v24 = vadd.f32 1.0, %v8263_v29  ;;  %v8265_v6 = vpop.eup %8264  ;;  %v4700_v29 = vmul.f32 %v10752_v31, %v10554_v58  ;;  %v5485_v58 = vld [vmem:[#allocation2 + $0x18] sm:$0xff] }
0x12ae   :  { %v5185_v19 = vmul.f32 0.5, %v5182_v33  ;;  %v8267_v10 = vpop.eup %8266 }
0x12af   :  { %v5186_v32 = vmul.f32 0.5, %v5183_v24  ;;  %v5184_v56 = vadd.f32 1.0, %v8267_v10 }
0x12b0   :  { %v5190_v36 = vmul.f32 %v8265_v6, %v5185_v19  ;;  %v8141_v6 = vld [vmem:[%s11708_s2 + $0x8] sm:$0xff]  }
0x12b1   :  { %v5189_v5 = vmul.f32 %v5186_v32, %v10508_v47  ;;  %v5187_v2 = vmul.f32 0.5, %v5184_v56  ;;  %v4924_v47 = vadd.f32 %v10726_v11, %v9121_v35  ;;  %v10775_v11 = vld [vmem:[#allocation3 + $0x50] sm:$0xff]  ;;  %8018 = vmatpush3.bf16.msra.mxu1 %v8141_v6  ;;  %v8145_v6 = vld [vmem:[%s11710_s4 + $0x8] sm:$0xff]  }
0x12b2   :  { %8023 = vmatprep.subr.bf16.mxu1 %v12083_v16  ;;  %v5484_v32 = vld [vmem:[#allocation2 + $0x10] sm:$0xff] }
0x12b3   :  { %v10750_v62 = vadd.f32 %v5190_v36, %v5189_v5  ;;  %v4928_v41 = vmul.f32 0.5, %v4924_v47  ;;  %v5488_v36 = vld [vmem:[#allocation2 + $0x30] sm:$0xff] }
0x12b4   :  { %v4703_v8 = vpop.permute.xlu1 %4702 }
0x12b5   :  { %8268 = vtanh.f32 %v10750_v62  ;;  %v4705_v1 = vmul.f32 %v4703_v8, %v10752_v31 }
0x12b6   :  { %8270 = vtanh.f32 %v4928_v41 }
0x12b7   :  { %4707 = vrot.lane.b32.xlu1 %v4705_v1, %s8380_s18  ;;  %8272 = vtanh.f32 %v10738_v23 }
0x12bf   :  { %v8269_v45 = vpop.eup %8268 }
0x12c0   :  { %v5193_v17 = vmul.f32 %v8269_v45, %v5187_v2  ;;  %v8271_v13 = vpop.eup %8270 }
0x12c1   :  { %v4934_v27 = vadd.f32 1.0, %v8271_v13  ;;  %v8273_v59 = vpop.eup %8272 }
0x12c2   :  { %v10757_v51 = vpack.c.bf16 %v5193_v17, %v5193_v17 }
0x12c3   :  { %v4937_v26 = vmul.f32 0.5, %v4934_v27 }
0x12c4   :  { %5244 = vmatmul.mubr.bf16.vlgmr.msra.gmra.mrb[124].mxu0 %v10757_v51 }
0x12c5   :  { %5565 = vmatpush1.bf16.msra.mxu0 %v10759_v28  ;;  %5596 = vmatprep.mubr.bf16.mxu0 %v12029_v49  ;;  %v4943_v55 = vmul.f32 %v8273_v59, %v4937_v26 }
0x12c6   :  { %5566 = vmatprep.subr.bf16.mxu0 %v10763_v20 }
0x12c7   :  { %v10809_v18 = vpack.c.bf16 %v4943_v55, %v4943_v55 }
0x12c9   :  { %5567 = vmatpush1.bf16.msra.mxu0 %v10769_v0 }
0x12ca   :  { %5568 = vmatprep.subr.bf16.mxu0 %v10771_v57 }
0x12cd   :  { %5569 = vmatpush1.bf16.msra.mxu0 %v10775_v11 }
0x12ce   :  { %5570 = vmatprep.subr.bf16.mxu0 %v10777_v46 }
0x12d1   :  { %5571 = vmatpush1.bf16.msra.mxu0 %v10781_v12 }
0x12d2   :  { %5572 = vmatprep.subr.bf16.mxu0 %v10783_v30 }
0x12d5   :  { %5573 = vmatpush1.bf16.msra.mxu0 %v10788_v63 }
0x12d6   :  { %5574 = vmatprep.subr.bf16.mxu0 %v10790_v25 }
0x12d9   :  { %5575 = vmatpush1.bf16.msra.mxu0 %v10794_v3 }
0x12da   :  { %5576 = vmatprep.subr.bf16.mxu0 %v10796_v22 }
0x12dd   :  { %5577 = vmatpush1.bf16.msra.mxu0 %v10800_v15 }
0x12de   :  { %5578 = vmatprep.subr.bf16.mxu0 %v10802_v14 }
0x12e1   :  { %5579 = vmatpush1.bf16.msra.mxu0 %v10806_v60 }
0x12e2   :  { %5646 = vmatprep.subr.bf16.mxu0 %v5485_v58  ;;  %v5747_v58 = vld [vmem:[#allocation5 + $0x30] sm:$0xff] }
0x12e4   :  { %5597 = vmatmul.mubr.bf16.vlgmr.msra.gmra.mrb[128].mxu0 %v10809_v18 }
0x12e5   :  { %5678 = vmatprep.mubr.bf16.mxu0 %v12029_v49  ;;  %5647 = vmatpush1.bf16.msra.mxu0 %v5484_v32  ;;  %v10875_v32 = vld [vmem:[#allocation3 + $0x8] sm:$0xff] }
0x12e6   :  { %5648 = vmatprep.subr.bf16.mxu0 %v5489_v9  ;;  %12388 = vst [vmem:[#allocation55_spill] sm:$0xff] %v10875_v32  ;;  %v5752_v9 = vld [vmem:[#allocation5 + $0x58] sm:$0xff] }
0x12e9   :  { %5649 = vmatpush1.bf16.msra.mxu0 %v5488_v36  ;;  %v10879_v36 = vld [vmem:[#allocation3] sm:$0xff] }
0x12ea   :  { %12389 = vst [vmem:[#allocation29_spill] sm:$0xff] %v10879_v36 }
0x1301   :  { %v4566_v50 = vpop.permute.xlu0 %4565 }
0x1302   :  { %v10815_v21 = vadd.f32 %v4566_v50, %v4558_v54  ;;  %v8142_v50 = vld [vmem:[%s11711_s5] sm:$0xff]  }
0x1304   :  { %8274 = vtanh.f32 %v10815_v21 }
0x130e   :  { %v8275_v52 = vpop.eup %8274 }
0x130f   :  { %4571 = vrot.lane.b32.xlu0 %v8275_v52, %s8380_s18 }
0x1329   :  { %v4708_v33 = vpop.permute.xlu1 %4707 }
0x132a   :  { %v10821_v24 = vadd.f32 %v4708_v33, %v4700_v29  ;;  %v8144_v29 = vld [vmem:[%s11710_s4] sm:$0xff]   ;;  %v5743_v33 = vld [vmem:[#allocation5 + $0x10] sm:$0xff] }
0x132c   :  { %12387 = vst [vmem:[#allocation28_spill] sm:$0xff] %v10821_v24  ;;  %8276 = vtanh.f32 %v10821_v24  ;;  %v11062_v24 = vld [vmem:[#allocation4 + $0xe0] sm:$0xff] }
0x132d   :  { %12431 = vst [vmem:[#allocation50_spill] sm:$0xff] %v11062_v24 }
0x1336   :  { %v8277_v19 = vpop.eup %8276 }
0x1337   :  { %4713 = vrot.lane.b32.xlu1 %v8277_v19, %s8380_s18 }
0x1381   :  { %v4572_v5 = vpop.permute.xlu0 %4571 }
0x1382   :  { %v4574_v8 = vmul.f32 %v4572_v5, %v10741_v61  ;;  %v5744_v61 = vld [vmem:[#allocation5 + $0x18] sm:$0xff]  ;;  %v5751_v5 = vld [vmem:[#allocation5 + $0x50] sm:$0xff] }
0x1383   :  { %5814 = vmatprep.subr.bf16.mxu0 %v5744_v61  ;;  %v10895_v61 = vld [vmem:[#allocation3 + $0x68] sm:$0xff] }
0x1384   :  { %v5254_v1 = vpack.c.bf16 %v4574_v8, %v4574_v8  ;;  %v10881_v8 = vld [vmem:[#allocation3 + $0x28] sm:$0xff]  ;;  %12394 = vst [vmem:[#allocation61_spill] sm:$0xff] %v10895_v61 }
0x1385   :  { %12390 = vst [vmem:[#allocation57_spill] sm:$0xff] %v10881_v8 }
0x1386   :  { %5260 = vrot.lane.b32.xlu0 %v5254_v1, %s8381_s0  ;;  %v5756_v1 = vld [vmem:[#allocation5 + $0x78] sm:$0xff] }
0x1397   :  { %v5245_v10 = vpop.f32.mrb[124].mxu0 }
0x1398   :  { %v5246_v56 = vadd.f32 %v5245_v10, %v9138_v42  ;;  %v5247_v2 = vpop.f32.mrb[125].mxu0  ;;  %v10886_v10 = vld [vmem:[#allocation3 + $0x20] sm:$0xff] }
0x1399   :  { %v5248_v45 = vadd.f32 %v5247_v2, %v9140_v43  ;;  %v5249_v17 = vpop.f32.mrb[126].mxu0  ;;  %12391 = vst [vmem:[#allocation30_spill] sm:$0xff] %v10886_v10  ;;  %v10888_v2 = vld [vmem:[#allocation3 + $0x48] sm:$0xff]  ;;  %v11056_v42 = vld [vmem:[#allocation4 + $0xc0] sm:$0xff] }
0x139a   :  { %5252 = vst [vmem:[%s11721_s15 + $0x30] sm:$0xff] %v5246_v56  ;;  %v5250_v47 = vpop.f32.mrb[127].mxu0  ;;  %v5755_v56 = vld [vmem:[#allocation5 + $0x70] sm:$0xff]  ;;  %12392 = vst [vmem:[#allocation59_spill] sm:$0xff] %v10888_v2  ;;  %v10893_v17 = vld [vmem:[#allocation3 + $0x40] sm:$0xff] }
0x139b   :  { %5253 = vst [vmem:[%s11721_s15 + $0x38] sm:$0xff] %v5248_v45  ;;  %v5760_v45 = vld [vmem:[#allocation5 + $0x98] sm:$0xff]  ;;  %12393 = vst [vmem:[#allocation31_spill] sm:$0xff] %v10893_v17  ;;  %v5759_v47 = vld [vmem:[#allocation5 + $0x90] sm:$0xff] }
0x139c   :  { %v11052_v43 = vld [vmem:[#allocation4 + $0xc8] sm:$0xff]  ;;  %12429 = vst [vmem:[#allocation49_spill] sm:$0xff] %v11056_v42 }
0x139d   :  { %12428 = vst [vmem:[#allocation95_spill] sm:$0xff] %v11052_v43 }
0x13a9   :  { %v4714_v41 = vpop.permute.xlu1 %4713 }
0x13aa   :  { %v4716_v13 = vmul.f32 %v4714_v41, %v10752_v31  ;;  %v8143_v31 = vld [vmem:[%s11711_s5 + $0x8] sm:$0xff]   ;;  %v5764_v41 = vld [vmem:[#allocation5 + $0xb8] sm:$0xff] }
0x13ac   :  { %v5344_v27 = vpack.c.bf16 %v4716_v13, %v4716_v13  ;;  %v10899_v13 = vld [vmem:[#allocation3 + $0x60] sm:$0xff] }
0x13ad   :  { %12395 = vst [vmem:[#allocation32_spill] sm:$0xff] %v10899_v13 }
0x13ae   :  { %5350 = vrot.lane.b32.xlu1 %v5344_v27, %s8381_s0  ;;  %v5763_v27 = vld [vmem:[#allocation5 + $0xb0] sm:$0xff] }
0x13b7   :  { %v10845_v59 = vpop.f32.mrb[128].mxu0 }
0x13b8   :  { %v10847_v26 = vpop.f32.mrb[129].mxu0 }
0x13b9   :  { %v5602_v55 = vpop.f32.mrb[130].mxu0 }
0x13ba   :  { %v5603_v54 = vpop.f32.mrb[131].mxu0  ;;  %v10901_v55 = vld [vmem:[#allocation3 + $0x88] sm:$0xff] }
0x13bb   :  { %12396 = vst [vmem:[#allocation63_spill] sm:$0xff] %v10901_v55  ;;  %v5768_v54 = vld [vmem:[#allocation5 + $0xd8] sm:$0xff] }
0x13f8   :  { %v5261_v52 = vpop.permute.xlu0 %5260 }
0x13f9   :  { %8020 = vmatmul.mubr.msk.bf16.vlgmr.msra.gmra.mrb[116].mxu1 %vm1453_vm2, %v5261_v52 }
0x13fa   :  { %8024 = vmatpush3.bf16.msra.mxu1 %v8142_v50  ;;  %8027 = vmatprep.mubr.msk.bf16.mxu1 %vm8378_vm0, %v12083_v16  ;;  %v10905_v50 = vld [vmem:[#allocation3 + $0x80] sm:$0xff] }
0x13fb   :  { %8025 = vmatprep.subr.bf16.mxu1 %v12083_v16  ;;  %12397 = vst [vmem:[#allocation33_spill] sm:$0xff] %v10905_v50 }
0x13fe   :  { %8026 = vmatpush3.bf16.msra.mxu1 %v8143_v31  ;;  %v10907_v31 = vld [vmem:[#allocation3 + $0xa8] sm:$0xff] }
0x13ff   :  { %8031 = vmatprep.subr.bf16.mxu1 %v12083_v16  ;;  %12398 = vst [vmem:[#allocation65_spill] sm:$0xff] %v10907_v31 }
0x1420   :  { %v10863_v19 = vpop.permute.xlu1 %5350 }
0x1421   :  { %8028 = vmatmul.mubr.msk.bf16.vlgmr.msra.gmra.mrb[120].mxu1 %vm1453_vm2, %v10863_v19  ;;  %7751 = vmatmul.mubr.msk.bf16.vlgmr.msra.gmra.mrb[132].mxu0 %vm1453_vm2, %v10863_v19 }
0x1422   :  { %8032 = vmatpush3.bf16.msra.mxu1 %v8144_v29  ;;  %5815 = vmatpush1.bf16.msra.mxu0 %v5743_v33  ;;  %v5772_v29 = vld [vmem:[#allocation5 + $0xf8] sm:$0xff]  ;;  %v10911_v33 = vld [vmem:[#allocation3 + $0xa0] sm:$0xff] }
0x1423   :  { %8033 = vmatprep.subr.bf16.mxu1 %v12083_v16  ;;  %5816 = vmatprep.subr.bf16.mxu0 %v5748_v7  ;;  %12399 = vst [vmem:[#allocation34_spill] sm:$0xff] %v10911_v33  ;;  %v5771_v7 = vld [vmem:[#allocation5 + $0xf0] sm:$0xff] }
0x1424   :  { %8035 = vmatprep.mubr.msk.bf16.mxu1 %vm8378_vm0, %v12083_v16  ;;  %5846 = vmatprep.mubr.bf16.mxu0 %v12029_v49 }
0x1426   :  { %8034 = vmatpush3.bf16.msra.mxu1 %v8145_v6  ;;  %5817 = vmatpush1.bf16.msra.mxu0 %v5747_v58  ;;  %v10913_v6 = vld [vmem:[#allocation3 + $0xc8] sm:$0xff]  ;;  %v5712_v58 = vld [vmem:[#allocation4 + $0x18] sm:$0xff] }
0x1427   :  { %5523 = vmatprep.subr.bf16.mxu1 %v10875_v32  ;;  %5818 = vmatprep.subr.bf16.mxu0 %v5752_v9  ;;  %12400 = vst [vmem:[#allocation67_spill] sm:$0xff] %v10913_v6  ;;  %v10917_v9 = vld [vmem:[#allocation3 + $0xc0] sm:$0xff] }
0x1428   :  { %12401 = vst [vmem:[#allocation35_spill] sm:$0xff] %v10917_v9  ;;  %v11050_v32 = vld [vmem:[#allocation4 + $0xa0] sm:$0xff] }
0x1429   :  { %8036 = vmatmul.mubr.msk.bf16.vlgmr.msra.gmra.mrb[124].mxu1 %vm1453_vm2, %v5261_v52  ;;  %v5767_v52 = vld [vmem:[#allocation5 + $0xd0] sm:$0xff]  ;;  %12427 = vst [vmem:[#allocation48_spill] sm:$0xff] %v11050_v32 }
0x142a   :  { %5524 = vmatpush1.bf16.msra.mxu1 %v10879_v36  ;;  %5819 = vmatpush1.bf16.msra.mxu0 %v5751_v5  ;;  %v5711_v5 = vld [vmem:[#allocation4 + $0x10] sm:$0xff]  ;;  %v11046_v36 = vld [vmem:[#allocation4 + $0xa8] sm:$0xff] }
0x142b   :  { %5525 = vmatprep.subr.bf16.mxu1 %v10881_v8  ;;  %5820 = vmatprep.subr.bf16.mxu0 %v5756_v1  ;;  %v10919_v1 = vld [vmem:[#allocation3 + $0xe8] sm:$0xff]  ;;  %v11044_v8 = vld [vmem:[#allocation4 + $0x80] sm:$0xff]  ;;  %12426 = vst [vmem:[#allocation93_spill] sm:$0xff] %v11046_v36 }
0x142c   :  { %5555 = vmatprep.mubr.bf16.mxu1 %v12029_v49  ;;  %12402 = vst [vmem:[#allocation69_spill] sm:$0xff] %v10919_v1  ;;  %12425 = vst [vmem:[#allocation47_spill] sm:$0xff] %v11044_v8 }
0x142e   :  { %5526 = vmatpush1.bf16.msra.mxu1 %v10886_v10  ;;  %5821 = vmatpush1.bf16.msra.mxu0 %v5755_v56  ;;  %v5716_v56 = vld [vmem:[#allocation4 + $0x38] sm:$0xff]  ;;  %v11040_v10 = vld [vmem:[#allocation4 + $0x88] sm:$0xff] }
0x142f   :  { %5527 = vmatprep.subr.bf16.mxu1 %v10888_v2  ;;  %5822 = vmatprep.subr.bf16.mxu0 %v5760_v45  ;;  %v10924_v45 = vld [vmem:[#allocation3 + $0xe0] sm:$0xff]  ;;  %v11034_v2 = vld [vmem:[#allocation4 + $0x68] sm:$0xff]  ;;  %12424 = vst [vmem:[#allocation91_spill] sm:$0xff] %v11040_v10 }
0x1430   :  { %12403 = vst [vmem:[#allocation36_spill] sm:$0xff] %v10924_v45  ;;  %12422 = vst [vmem:[#allocation89_spill] sm:$0xff] %v11034_v2 }
0x1432   :  { %5528 = vmatpush1.bf16.msra.mxu1 %v10893_v17  ;;  %5823 = vmatpush1.bf16.msra.mxu0 %v5759_v47  ;;  %v5715_v47 = vld [vmem:[#allocation4 + $0x30] sm:$0xff]  ;;  %v11032_v17 = vld [vmem:[#allocation4 + $0x40] sm:$0xff] }
0x1433   :  { %5529 = vmatprep.subr.bf16.mxu1 %v10895_v61  ;;  %5824 = vmatprep.subr.bf16.mxu0 %v5764_v41  ;;  %v10926_v41 = vld [vmem:[#allocation2 + $0x8] sm:$0xff]  ;;  %12421 = vst [vmem:[#allocation45_spill] sm:$0xff] %v11032_v17 }
0x1434   :  { %12404 = vst [vmem:[#allocation71_spill] sm:$0xff] %v10926_v41  ;;  %v11028_v61 = vld [vmem:[#allocation4 + $0x48] sm:$0xff] }
0x1435   :  { %12420 = vst [vmem:[#allocation87_spill] sm:$0xff] %v11028_v61 }
0x1436   :  { %5530 = vmatpush1.bf16.msra.mxu1 %v10899_v13  ;;  %5825 = vmatpush1.bf16.msra.mxu0 %v5763_v27  ;;  %v5720_v27 = vld [vmem:[#allocation4 + $0x58] sm:$0xff]  ;;  %v11026_v13 = vld [vmem:[#allocation4 + $0x20] sm:$0xff] }
0x1437   :  { %5531 = vmatprep.subr.bf16.mxu1 %v10901_v55  ;;  %5826 = vmatprep.subr.bf16.mxu0 %v5768_v54  ;;  %v10931_v54 = vld [vmem:[#allocation2] sm:$0xff]  ;;  %v11020_v55 = vld [vmem:[#allocation4 + $0x28] sm:$0xff]  ;;  %12419 = vst [vmem:[#allocation44_spill] sm:$0xff] %v11026_v13 }
0x1438   :  { %12405 = vst [vmem:[#allocation37_spill] sm:$0xff] %v10931_v54  ;;  %12418 = vst [vmem:[#allocation85_spill] sm:$0xff] %v11020_v55 }
0x143a   :  { %5532 = vmatpush1.bf16.msra.mxu1 %v10905_v50  ;;  %5827 = vmatpush1.bf16.msra.mxu0 %v5767_v52  ;;  %v5719_v52 = vld [vmem:[#allocation4 + $0x50] sm:$0xff]  ;;  %v11018_v50 = vld [vmem:[#allocation4] sm:$0xff] }
0x143b   :  { %5533 = vmatprep.subr.bf16.mxu1 %v10907_v31  ;;  %5828 = vmatprep.subr.bf16.mxu0 %v5772_v29  ;;  %v10933_v29 = vld [vmem:[#allocation2 + $0x28] sm:$0xff]  ;;  %12417 = vst [vmem:[#allocation43_spill] sm:$0xff] %v11018_v50 }
0x143c   :  { %12406 = vst [vmem:[#allocation73_spill] sm:$0xff] %v10933_v29  ;;  %v11014_v31 = vld [vmem:[#allocation4 + $0x8] sm:$0xff] }
0x143d   :  { %12416 = vst [vmem:[#allocation83_spill] sm:$0xff] %v11014_v31 }
0x143e   :  { %5534 = vmatpush1.bf16.msra.mxu1 %v10911_v33  ;;  %5829 = vmatpush1.bf16.msra.mxu0 %v5771_v7  ;;  %v5724_v7 = vld [vmem:[#allocation4 + $0x78] sm:$0xff]  ;;  %v11012_v33 = vld [vmem:[#allocation5 + $0xe0] sm:$0xff] }
0x143f   :  { %5535 = vmatprep.subr.bf16.mxu1 %v10913_v6  ;;  %5896 = vmatprep.subr.bf16.mxu0 %v5712_v58  ;;  %v10938_v58 = vld [vmem:[#allocation2 + $0x20] sm:$0xff]  ;;  %v11008_v6 = vld [vmem:[#allocation5 + $0xe8] sm:$0xff]  ;;  %12415 = vst [vmem:[#allocation42_spill] sm:$0xff] %v11012_v33 }
0x1440   :  { %12407 = vst [vmem:[#allocation38_spill] sm:$0xff] %v10938_v58  ;;  %12414 = vst [vmem:[#allocation81_spill] sm:$0xff] %v11008_v6 }
0x1441   :  { %5847 = vmatmul.mubr.bf16.vlgmr.msra.gmra.mrb[136].mxu0 %v10757_v51 }
0x1442   :  { %5536 = vmatpush1.bf16.msra.mxu1 %v10917_v9  ;;  %5897 = vmatpush1.bf16.msra.mxu0 %v5711_v5  ;;  %v5723_v5 = vld [vmem:[#allocation4 + $0x70] sm:$0xff]  ;;  %v11006_v9 = vld [vmem:[#allocation5 + $0xc0] sm:$0xff] }
0x1443   :  { %5537 = vmatprep.subr.bf16.mxu1 %v10919_v1  ;;  %5898 = vmatprep.subr.bf16.mxu0 %v5716_v56  ;;  %v10941_v56 = vld [vmem:[#allocation5 + $0x8] sm:$0xff]  ;;  %v10990_v1 = vld [vmem:[#allocation5 + $0x80] sm:$0xff] }
0x1444   :  { %5928 = vmatprep.mubr.bf16.mxu0 %v12029_v49 }
0x1446   :  { %5538 = vmatpush1.bf16.msra.mxu1 %v10924_v45  ;;  %5899 = vmatpush1.bf16.msra.mxu0 %v5715_v47  ;;  %v5728_v47 = vld [vmem:[#allocation4 + $0x98] sm:$0xff]  ;;  %v10983_v45 = vld [vmem:[#allocation4 + $0xf0] sm:$0xff] }
0x1447   :  { %5605 = vmatprep.subr.bf16.mxu1 %v10926_v41  ;;  %5900 = vmatprep.subr.bf16.mxu0 %v5720_v27  ;;  %v10945_v27 = vld [vmem:[#allocation5] sm:$0xff]  ;;  %v10975_v41 = vld [vmem:[#allocation4 + $0xf8] sm:$0xff]  ;;  %12413 = vst [vmem:[#allocation41_spill] sm:$0xff] %v10983_v45 }
0x1448   :  { %12412 = vst [vmem:[#allocation79_spill] sm:$0xff] %v10975_v41 }
0x1449   :  { %5556 = vmatmul.mubr.bf16.vlgmr.msra.gmra.mrb[128].mxu1 %v10809_v18 }
0x144a   :  { %5606 = vmatpush1.bf16.msra.mxu1 %v10931_v54  ;;  %5901 = vmatpush1.bf16.msra.mxu0 %v5719_v52  ;;  %v5727_v52 = vld [vmem:[#allocation4 + $0x90] sm:$0xff]  ;;  %v10947_v54 = vld [vmem:[#allocation5 + $0x28] sm:$0xff] }
0x144b   :  { %5607 = vmatprep.subr.bf16.mxu1 %v10933_v29  ;;  %5902 = vmatprep.subr.bf16.mxu0 %v5724_v7  ;;  %v10949_v7 = vld [vmem:[#allocation4 + $0xb8] sm:$0xff] }
0x144c   :  { %5637 = vmatprep.mubr.bf16.mxu1 %v12029_v49  ;;  %12408 = vst [vmem:[#allocation75_spill] sm:$0xff] %v10949_v7  ;;  %v10962_v29 = vld [vmem:[#allocation4 + $0xd8] sm:$0xff] }
0x144d   :  { %12410 = vst [vmem:[#allocation77_spill] sm:$0xff] %v10962_v29 }
0x144e   :  { %5608 = vmatpush1.bf16.msra.mxu1 %v10938_v58  ;;  %5903 = vmatpush1.bf16.msra.mxu0 %v5723_v5  ;;  %v10956_v5 = vld [vmem:[#allocation5 + $0x20] sm:$0xff]  ;;  %v10960_v58 = vld [vmem:[#allocation5 + $0x48] sm:$0xff] }
0x144f   :  { %5773 = vmatprep.subr.bf16.mxu1 %v10941_v56  ;;  %5904 = vmatprep.subr.bf16.mxu0 %v5728_v47  ;;  %v10958_v47 = vld [vmem:[#allocation4 + $0xb0] sm:$0xff] }
0x1450   :  { %12409 = vst [vmem:[#allocation39_spill] sm:$0xff] %v10958_v47 }
0x1451   :  { %7750 = vmatmul.mubr.msk.bf16.vlgmr.msra.gmra.mrb[132].mxu1 %vm1453_vm2, %v10863_v19  ;;  %v10969_v19 = vld [vmem:[#allocation5 + $0x40] sm:$0xff] }
0x1452   :  { %5774 = vmatpush1.bf16.msra.mxu1 %v10945_v27  ;;  %5905 = vmatpush1.bf16.msra.mxu0 %v5727_v52  ;;  %v10971_v52 = vld [vmem:[#allocation4 + $0xd0] sm:$0xff] }
0x1453   :  { %5775 = vmatprep.subr.bf16.mxu1 %v10947_v54  ;;  %5906 = vmatprep.subr.bf16.mxu0 %v10949_v7  ;;  %12411 = vst [vmem:[#allocation40_spill] sm:$0xff] %v10971_v52  ;;  %v10973_v7 = vld [vmem:[#allocation5 + $0x68] sm:$0xff] }
0x1454   :  { %5805 = vmatprep.mubr.bf16.mxu1 %v12029_v49 }
0x1456   :  { %5776 = vmatpush1.bf16.msra.mxu1 %v10956_v5  ;;  %5907 = vmatpush1.bf16.msra.mxu0 %v10958_v47  ;;  %v10981_v47 = vld [vmem:[#allocation5 + $0x60] sm:$0xff] }
0x1457   :  { %5777 = vmatprep.subr.bf16.mxu1 %v10960_v58  ;;  %5908 = vmatprep.subr.bf16.mxu0 %v10962_v29  ;;  %v10985_v29 = vld [vmem:[#allocation5 + $0x88] sm:$0xff] }
0x145a   :  { %5778 = vmatpush1.bf16.msra.mxu1 %v10969_v19  ;;  %5909 = vmatpush1.bf16.msra.mxu0 %v10971_v52  ;;  %v10993_v52 = vld [vmem:[#allocation5 + $0xa8] sm:$0xff] }
0x145b   :  { %5779 = vmatprep.subr.bf16.mxu1 %v10973_v7  ;;  %5910 = vmatprep.subr.bf16.mxu0 %v10975_v41  ;;  %v11000_v41 = vld [vmem:[#allocation5 + $0xa0] sm:$0xff] }
0x145e   :  { %5780 = vmatpush1.bf16.msra.mxu1 %v10981_v47  ;;  %5911 = vmatpush1.bf16.msra.mxu0 %v10983_v45  ;;  %v11002_v45 = vld [vmem:[#allocation5 + $0xc8] sm:$0xff] }
0x145f   :  { %5781 = vmatprep.subr.bf16.mxu1 %v10985_v29  ;;  %8039 = vmatprep.subr.bf16.mxu0 %v12083_v16 }
0x1461   :  { %5929 = vmatmul.mubr.bf16.vlgmr.msra.gmra.mrb[140].mxu0 %v10809_v18 }
0x1462   :  { %5782 = vmatpush1.bf16.msra.mxu1 %v10990_v1  ;;  %8043 = vmatprep.mubr.msk.bf16.mxu0 %vm8378_vm0, %v12083_v16  ;;  %v11058_v16 = vld [vmem:[#allocation4 + $0xe8] sm:$0xff] }
0x1463   :  { %5783 = vmatprep.subr.bf16.mxu1 %v10993_v52  ;;  %12430 = vst [vmem:[#allocation97_spill] sm:$0xff] %v11058_v16 }
0x1466   :  { %5784 = vmatpush1.bf16.msra.mxu1 %v11000_v41 }
0x1467   :  { %5785 = vmatprep.subr.bf16.mxu1 %v11002_v45 }
0x146a   :  { %5786 = vmatpush1.bf16.msra.mxu1 %v11006_v9 }
0x146b   :  { %5787 = vmatprep.subr.bf16.mxu1 %v11008_v6 }
0x146e   :  { %5788 = vmatpush1.bf16.msra.mxu1 %v11012_v33 }
0x146f   :  { %5855 = vmatprep.subr.bf16.mxu1 %v11014_v31 }
0x1471   :  { %5806 = vmatmul.mubr.bf16.vlgmr.msra.gmra.mrb[136].mxu1 %v10757_v51  ;;  %v11038_v51 = vld [vmem:[#allocation4 + $0x60] sm:$0xff] }
0x1472   :  { %5856 = vmatpush1.bf16.msra.mxu1 %v11018_v50  ;;  %5887 = vmatprep.mubr.bf16.mxu1 %v12029_v49  ;;  %12423 = vst [vmem:[#allocation46_spill] sm:$0xff] %v11038_v51 }
0x1473   :  { %5857 = vmatprep.subr.bf16.mxu1 %v11020_v55 }
0x1476   :  { %5858 = vmatpush1.bf16.msra.mxu1 %v11026_v13 }
0x1477   :  { %5859 = vmatprep.subr.bf16.mxu1 %v11028_v61 }
0x147a   :  { %5860 = vmatpush1.bf16.msra.mxu1 %v11032_v17 }
0x147b   :  { %5861 = vmatprep.subr.bf16.mxu1 %v11034_v2 }
0x147e   :  { %5862 = vmatpush1.bf16.msra.mxu1 %v11038_v51 }
0x147f   :  { %5863 = vmatprep.subr.bf16.mxu1 %v11040_v10 }
0x1482   :  { %5864 = vmatpush1.bf16.msra.mxu1 %v11044_v8 }
0x1483   :  { %5865 = vmatprep.subr.bf16.mxu1 %v11046_v36 }
0x1486   :  { %5866 = vmatpush1.bf16.msra.mxu1 %v11050_v32  ;;  %v12432_v32 = vld [vmem:[#allocation25_spill] sm:$0xff] }
0x1487   :  { %5867 = vmatprep.subr.bf16.mxu1 %v11052_v43 }
0x148a   :  { %5868 = vmatpush1.bf16.msra.mxu1 %v11056_v42 }
0x148b   :  { %5869 = vmatprep.subr.bf16.mxu1 %v11058_v16  ;;  %v11072_v16 = vld [vmem:[#allocation6 + $0x8] sm:$0xff] }
0x148c   :  { %12433 = vst [vmem:[#allocation99_spill] sm:$0xff] %v11072_v16 }
0x148e   :  { %5870 = vmatpush1.bf16.msra.mxu1 %v11062_v24  ;;  %v11075_v24 = vld [vmem:[#allocation6] sm:$0xff] }
0x148f   :  { %5976 = vmatprep.subr.bf16.mxu1 %v11072_v16  ;;  %12434 = vst [vmem:[#allocation51_spill] sm:$0xff] %v11075_v24  ;;  %v11087_v16 = vld [vmem:[#allocation6 + $0x28] sm:$0xff] }
0x1490   :  { %12437 = vst [vmem:[#allocation102_spill] sm:$0xff] %v11087_v16 }
0x1491   :  { %5888 = vmatmul.mubr.bf16.vlgmr.msra.gmra.mrb[140].mxu1 %v10809_v18  ;;  %v11078_v18 = vld [vmem:[#allocation6 + $0x18] sm:$0xff] }
0x1492   :  { %6008 = vmatprep.mubr.bf16.mxu1 %v12029_v49  ;;  %5977 = vmatpush1.bf16.msra.mxu1 %v11075_v24  ;;  %12435 = vst [vmem:[#allocation101_spill] sm:$0xff] %v11078_v18 }
0x1493   :  { %5978 = vmatprep.subr.bf16.mxu1 %v11078_v18  ;;  %v11091_v18 = vld [vmem:[#allocation6 + $0x20] sm:$0xff] }
0x1494   :  { %12438 = vst [vmem:[#allocation53_spill] sm:$0xff] %v11091_v18 }
0x14cc   :  { %v5311_v36 = vpop.f32.mrb[116].mxu1 }
0x14cd   :  { %v11068_v8 = vadd.f32 %v5311_v36, %v12432_v32  ;;  %v8021_v43 = vpop.f32.mrb[117].mxu1 }
0x14ce   :  { %v5314_v10 = vpop.f32.mrb[118].mxu1  ;;  %v11081_v43 = vld [vmem:[#allocation6 + $0x10] sm:$0xff] }
0x14cf   :  { %8278 = vtanh.f32 %v11068_v8  ;;  %v8022_v51 = vpop.f32.mrb[119].mxu1  ;;  %12436 = vst [vmem:[#allocation52_spill] sm:$0xff] %v11081_v43  ;;  %5979 = vmatpush1.bf16.msra.mxu1 %v11081_v43  ;;  %v11094_v43 = vld [vmem:[#allocation6 + $0x38] sm:$0xff] }
0x14d0   :  { %5980 = vmatprep.subr.bf16.mxu1 %v11087_v16  ;;  %12439 = vst [vmem:[#allocation103_spill] sm:$0xff] %v11094_v43 }
0x14d3   :  { %5981 = vmatpush1.bf16.msra.mxu1 %v11091_v18 }
0x14d4   :  { %5982 = vmatprep.subr.bf16.mxu1 %v11094_v43  ;;  %v11109_v43 = vld [vmem:[#allocation6 + $0x58] sm:$0xff] }
0x14d5   :  { %12443 = vst [vmem:[#allocation60_spill] sm:$0xff] %v11109_v43 }
0x14d9   :  { %v8279_v42 = vpop.eup %8278 }
0x14da   :  { %5325 = vrot.lane.b32.xlu1 %v8279_v42, %s8380_s18 }
0x14f4   :  { %v5401_v32 = vpop.f32.mrb[120].mxu1  ;;  %v5680_v36 = vpop.f32.mrb[132].mxu0 }
0x14f5   :  { %v11085_v42 = vadd.f32 %v5680_v36, %v10845_v59  ;;  %v8029_v10 = vpop.f32.mrb[121].mxu1  ;;  %v5682_v51 = vpop.f32.mrb[133].mxu0  ;;  %v11097_v59 = vld [vmem:[#allocation6 + $0x30] sm:$0xff] }
0x14f6   :  { %v5683_v2 = vadd.f32 %v5682_v51, %v10847_v26  ;;  %v5404_v24 = vpop.f32.mrb[122].mxu1  ;;  %v5684_v17 = vpop.f32.mrb[134].mxu0  ;;  %12440 = vst [vmem:[#allocation54_spill] sm:$0xff] %v11097_v59  ;;  %5983 = vmatpush1.bf16.msra.mxu1 %v11097_v59 }
0x14f7   :  { %v8030_v61 = vpop.f32.mrb[123].mxu1  ;;  %v5685_v13 = vpop.f32.mrb[135].mxu0  ;;  %v11100_v17 = vld [vmem:[#allocation6 + $0x48] sm:$0xff] }
0x14f8   :  { %12441 = vst [vmem:[#allocation56_spill] sm:$0xff] %v11100_v17  ;;  %5984 = vmatprep.subr.bf16.mxu1 %v11100_v17  ;;  %v11103_v61 = vld [vmem:[#allocation6 + $0x40] sm:$0xff]  ;;  %v5690_v6 = vadd.f32 %v5683_v2, %v12386_v4 }
0x14f9   :  { %12442 = vst [vmem:[#allocation58_spill] sm:$0xff] %v11103_v61 }
0x14fa   :  { %5985 = vmatpush1.bf16.msra.mxu1 %v11103_v61 }
0x14fb   :  { %5986 = vmatprep.subr.bf16.mxu1 %v11109_v43 }
0x14fc   :  { %v5453_v36 = vpop.f32.mrb[124].mxu1 }
0x14fd   :  { %v5454_v26 = vadd.f32 %v5453_v36, %v5401_v32  ;;  %v8037_v24 = vpop.f32.mrb[125].mxu1  ;;  %v11113_v32 = vld [vmem:[#allocation6 + $0x50] sm:$0xff]  ;;  %v11115_v36 = vld [vmem:[#allocation6 + $0x68] sm:$0xff] }
0x14fe   :  { %v5456_v10 = vpop.f32.mrb[126].mxu1  ;;  %12444 = vst [vmem:[#allocation62_spill] sm:$0xff] %v11113_v32  ;;  %12445 = vst [vmem:[#allocation64_spill] sm:$0xff] %v11115_v36  ;;  %5987 = vmatpush1.bf16.msra.mxu1 %v11113_v32  ;;  %v11119_v24 = vld [vmem:[#allocation6 + $0x60] sm:$0xff] }
0x14ff   :  { %v11106_v13 = vadd.f32 %v12384_v48, %v5454_v26  ;;  %v8038_v51 = vpop.f32.mrb[127].mxu1  ;;  %5988 = vmatprep.subr.bf16.mxu1 %v11115_v36  ;;  %12446 = vst [vmem:[#allocation66_spill] sm:$0xff] %v11119_v24  ;;  %v11121_v26 = vld [vmem:[#allocation6 + $0x78] sm:$0xff]  ;;  %v11125_v10 = vld [vmem:[#allocation6 + $0x70] sm:$0xff] }
0x1500   :  { %12447 = vst [vmem:[#allocation68_spill] sm:$0xff] %v11121_v26  ;;  %12448 = vst [vmem:[#allocation70_spill] sm:$0xff] %v11125_v10 }
0x1501   :  { %8280 = vtanh.f32 %v11106_v13 }
0x1502   :  { %5989 = vmatpush1.bf16.msra.mxu1 %v11119_v24 }
0x1503   :  { %5990 = vmatprep.subr.bf16.mxu1 %v11121_v26 }
0x1506   :  { %5991 = vmatpush1.bf16.msra.mxu1 %v11125_v10 }
0x1507   :  { %6250 = vmatprep.subr.bf16.mxu1 %v10730_v53 }
0x150b   :  { %v8281_v51 = vpop.eup %8280 }
0x150c   :  { %5467 = vrot.lane.b32.xlu0 %v8281_v51, %s8380_s18 }
0x1514   :  { %v5848_v48 = vpop.f32.mrb[136].mxu0 }
0x1515   :  { %v5850_v32 = vpop.f32.mrb[137].mxu0 }
0x1516   :  { %v5852_v36 = vpop.f32.mrb[138].mxu0 }
0x1517   :  { %v5853_v43 = vpop.f32.mrb[139].mxu0 }
0x151c   :  { %v5557_v61 = vpop.f32.mrb[128].mxu1 }
0x151d   :  { %v5559_v17 = vpop.f32.mrb[129].mxu1 }
0x151e   :  { %v5561_v59 = vpop.f32.mrb[130].mxu1 }
0x151f   :  { %v5562_v18 = vpop.f32.mrb[131].mxu1 }
0x1524   :  { %v5639_v24 = vpop.f32.mrb[132].mxu1 }
0x1525   :  { %v5640_v16 = vadd.f32 %v5639_v24, %v5557_v61  ;;  %v5641_v26 = vpop.f32.mrb[133].mxu1 }
0x1526   :  { %v5642_v55 = vadd.f32 %v5641_v26, %v5559_v17  ;;  %v5643_v50 = vpop.f32.mrb[134].mxu1  ;;  %v5318_v17 = vmul.f32 0.5, %v11068_v8 }
0x1527   :  { %v5687_v31 = vadd.f32 %v5640_v16, %v12385_v44  ;;  %v5644_v10 = vpop.f32.mrb[135].mxu1 }
0x1528   :  { %v5688_v51 = vadd.f32 %v5642_v55, %v9119_v34 }
0x1529   :  { %v5691_v33 = vmul.f32 0.5, %v5687_v31 }
0x152a   :  { %v5692_v53 = vmul.f32 0.5, %v5688_v51 }
0x152b   :  { %8282 = vtanh.f32 %v5691_v33 }
0x152c   :  { %8284 = vtanh.f32 %v5692_v53 }
0x152d   :  { %8286 = vtanh.f32 %v5690_v6 }
0x152e   :  { %8288 = vtanh.f32 %v5318_v17 }
0x1534   :  { %v5930_v43 = vpop.f32.mrb[140].mxu0 }
0x1535   :  { %v8283_v59 = vpop.eup %8282  ;;  %v5931_v18 = vadd.f32 %v5930_v43, %v5848_v48  ;;  %v5932_v36 = vpop.f32.mrb[141].mxu0 }
0x1536   :  { %v8285_v61 = vpop.eup %8284  ;;  %v5697_v50 = vadd.f32 1.0, %v8283_v59  ;;  %v5933_v24 = vadd.f32 %v5932_v36, %v5850_v32  ;;  %v5934_v16 = vpop.f32.mrb[142].mxu0 }
0x1537   :  { %v5698_v26 = vadd.f32 1.0, %v8285_v61  ;;  %v5935_v10 = vpop.f32.mrb[143].mxu0  ;;  %v8287_v31 = vpop.eup %8286 }
0x1538   :  { %v5700_v55 = vmul.f32 0.5, %v5697_v50  ;;  %v8289_v53 = vpop.eup %8288 }
0x1539   :  { %v5701_v51 = vmul.f32 0.5, %v5698_v26  ;;  %v5320_v8 = vadd.f32 1.0, %v8289_v53 }
0x153a   :  { %v5705_v2 = vmul.f32 %v8287_v31, %v5700_v55 }
0x153b   :  { %v5704_v33 = vmul.f32 %v5701_v51, %v10738_v23  ;;  %v11137_v59 = vmul.f32 0.5, %v5320_v8  ;;  %v5460_v23 = vmul.f32 0.5, %v11106_v13  ;;  %v5940_v51 = vadd.f32 %v5933_v24, %v9133_v40 }
0x153d   :  { %v11135_v6 = vadd.f32 %v5705_v2, %v5704_v33  ;;  %8290 = vtanh.f32 %v5460_v23  ;;  %v5939_v2 = vadd.f32 %v5931_v18, %v9131_v39 }
0x153f   :  { %v5943_v33 = vmul.f32 0.5, %v5939_v2 }
0x1544   :  { %v5807_v48 = vpop.f32.mrb[136].mxu1 }
0x1545   :  { %v5809_v43 = vpop.f32.mrb[137].mxu1 }
0x1546   :  { %v5811_v4 = vpop.f32.mrb[138].mxu1 }
0x1547   :  { %v5812_v34 = vpop.f32.mrb[139].mxu1  ;;  %v8291_v53 = vpop.eup %8290 }
0x154c   :  { %v5326_v32 = vpop.permute.xlu1 %5325 }
0x154d   :  { %v5328_v36 = vmul.f32 %v5326_v32, %v11137_v59 }
0x154f   :  { %5330 = vrot.lane.b32.xlu1 %v5328_v36, %s8380_s18 }
0x1564   :  { %v5889_v61 = vpop.f32.mrb[140].mxu1 }
0x1565   :  { %v5890_v17 = vadd.f32 %v5889_v61, %v5807_v48  ;;  %v5891_v50 = vpop.f32.mrb[141].mxu1 }
0x1566   :  { %v5892_v16 = vadd.f32 %v5891_v50, %v5809_v43  ;;  %v5893_v26 = vpop.f32.mrb[142].mxu1 }
0x1567   :  { %v5937_v10 = vadd.f32 %v5890_v17, %v9127_v37  ;;  %v5894_v55 = vpop.f32.mrb[143].mxu1  ;;  %v5462_v17 = vadd.f32 1.0, %v8291_v53 }
0x1568   :  { %v5938_v34 = vadd.f32 %v5892_v16, %v9129_v38 }
0x1569   :  { %v5941_v4 = vmul.f32 0.5, %v5937_v10  ;;  %v11149_v16 = vmul.f32 0.5, %v5462_v17  ;;  %v12476_v17 = vld [vmem:[#allocation56_spill] sm:$0xff] }
0x156a   :  { %v5942_v31 = vmul.f32 0.5, %v5938_v34 }
0x156b   :  { %8292 = vtanh.f32 %v5941_v4 }
0x156c   :  { %8294 = vtanh.f32 %v5942_v31 }
0x156d   :  { %8296 = vtanh.f32 %v5940_v51 }
0x156e   :  { %8298 = vtanh.f32 %v5943_v33  ;;  %v12470_v33 = vld [vmem:[#allocation28_spill] sm:$0xff] }
0x156f   :  { %v5465_v53 = vmul.f32 %v11149_v16, %v12470_v33 }
0x1575   :  { %v8293_v13 = vpop.eup %8292 }
0x1576   :  { %v8295_v48 = vpop.eup %8294  ;;  %v5947_v43 = vadd.f32 1.0, %v8293_v13 }
0x1577   :  { %v5948_v8 = vadd.f32 1.0, %v8295_v48  ;;  %v8297_v36 = vpop.eup %8296  ;;  %v12471_v48 = vld [vmem:[#allocation52_spill] sm:$0xff] }
0x1578   :  { %v5950_v32 = vmul.f32 0.5, %v5947_v43  ;;  %v8299_v10 = vpop.eup %8298 }
0x1579   :  { %v5951_v61 = vmul.f32 0.5, %v5948_v8  ;;  %v5949_v55 = vadd.f32 1.0, %v8299_v10  ;;  %v12472_v8 = vld [vmem:[#allocation102_spill] sm:$0xff]  ;;  %v12480_v10 = vld [vmem:[#allocation64_spill] sm:$0xff] }
0x157a   :  { %v5955_v50 = vmul.f32 %v8297_v36, %v5950_v32  ;;  %v12473_v32 = vld [vmem:[#allocation53_spill] sm:$0xff]  ;;  %v12474_v36 = vld [vmem:[#allocation103_spill] sm:$0xff] }
0x157b   :  { %v5954_v23 = vmul.f32 %v5951_v61, %v10750_v62  ;;  %v5952_v34 = vmul.f32 0.5, %v5949_v55  ;;  %v5689_v62 = vadd.f32 %v11085_v42, %v9121_v35  ;;  %v12469_v42 = vld [vmem:[#allocation101_spill] sm:$0xff]  ;;  %v12475_v61 = vld [vmem:[#allocation54_spill] sm:$0xff] }
0x157c   :  { %v12481_v55 = vld [vmem:[#allocation66_spill] sm:$0xff] }
0x157d   :  { %v11147_v24 = vadd.f32 %v5955_v50, %v5954_v23  ;;  %v5693_v2 = vmul.f32 0.5, %v5689_v62  ;;  %v12477_v50 = vld [vmem:[#allocation58_spill] sm:$0xff] }
0x157e   :  { %v5468_v18 = vpop.permute.xlu0 %5467 }
0x157f   :  { %8300 = vtanh.f32 %v11147_v24  ;;  %v5470_v26 = vmul.f32 %v5468_v18, %v11149_v16  ;;  %v12478_v18 = vld [vmem:[#allocation60_spill] sm:$0xff] }
0x1580   :  { %8302 = vtanh.f32 %v5693_v2 }
0x1581   :  { %5472 = vrot.lane.b32.xlu0 %v5470_v26, %s8380_s18  ;;  %8304 = vtanh.f32 %v11135_v6  ;;  %v12479_v26 = vld [vmem:[#allocation62_spill] sm:$0xff] }
0x1589   :  { %v8301_v4 = vpop.eup %8300 }
0x158a   :  { %v5958_v31 = vmul.f32 %v8301_v4, %v5952_v34  ;;  %v12482_v34 = vld [vmem:[#allocation68_spill] sm:$0xff]  ;;  %v12483_v4 = vld [vmem:[#allocation70_spill] sm:$0xff] }
0x158c   :  { %v11154_v51 = vpack.c.bf16 %v5958_v31, %v5958_v31 }
0x158e   :  { %6009 = vmatmul.mubr.bf16.vlgmr.msra.gmra.mrb[144].mxu1 %v11154_v51 }
0x158f   :  { %6251 = vmatpush1.bf16.msra.mxu1 %v10759_v28  ;;  %6282 = vmatprep.mubr.bf16.mxu1 %v12029_v49  ;;  %v8303_v28 = vpop.eup %8302 }
0x1590   :  { %6252 = vmatprep.subr.bf16.mxu1 %v10763_v20  ;;  %v5699_v20 = vadd.f32 1.0, %v8303_v28  ;;  %v8146_v28 = vld [vmem:[%s11711_s5] sm:$0xff]  }
0x1591   :  { %8040 = vmatpush3.bf16.msra.mxu0 %v8146_v28  ;;  %v12506_v28 = vld [vmem:[#allocation38_spill] sm:$0xff] }
0x1593   :  { %6253 = vmatpush1.bf16.msra.mxu1 %v10769_v0  ;;  %v8305_v0 = vpop.eup %8304 }
0x1594   :  { %6254 = vmatprep.subr.bf16.mxu1 %v10771_v57  ;;  %v5702_v57 = vmul.f32 0.5, %v5699_v20  ;;  %v8147_v20 = vld [vmem:[%s11711_s5 + $0x8] sm:$0xff]  }
0x1597   :  { %6255 = vmatpush1.bf16.msra.mxu1 %v10775_v11  ;;  %v5708_v11 = vmul.f32 %v8305_v0, %v5702_v57  ;;  %v12484_v0 = vmov 0.0  }
0x1598   :  { %6256 = vmatprep.subr.bf16.mxu1 %v10777_v46  ;;  %8041 = vmatprep.subr.bf16.mxu0 %v12484_v0 }
0x1599   :  { %v11176_v46 = vpack.c.bf16 %v5708_v11, %v5708_v11  ;;  %8042 = vmatpush3.bf16.msra.mxu0 %v8147_v20  ;;  %v12485_v11 = vld [vmem:[#allocation21_spill] sm:$0xff]  ;;  %v11306_v20 = vld [vmem:[#allocation2 + $0x10] sm:$0xff] }
0x159a   :  { %8047 = vmatprep.subr.bf16.mxu0 %v12484_v0 }
0x159b   :  { %6257 = vmatpush1.bf16.msra.mxu1 %v10781_v12  ;;  %v5323_v12 = vmul.f32 %v11137_v59, %v10815_v21  ;;  %v12454_v21 = vld [vmem:[#allocation44_spill] sm:$0xff] }
0x159c   :  { %6258 = vmatprep.subr.bf16.mxu1 %v10783_v30 }
0x159f   :  { %6259 = vmatpush1.bf16.msra.mxu1 %v10788_v63 }
0x15a0   :  { %6260 = vmatprep.subr.bf16.mxu1 %v10790_v25  ;;  %v12449_v25 = vld [vmem:[#allocation81_spill] sm:$0xff] }
0x15a3   :  { %6261 = vmatpush1.bf16.msra.mxu1 %v10794_v3  ;;  %v12450_v3 = vld [vmem:[#allocation42_spill] sm:$0xff] }
0x15a4   :  { %6262 = vmatprep.subr.bf16.mxu1 %v10796_v22  ;;  %v12451_v22 = vld [vmem:[#allocation83_spill] sm:$0xff] }
0x15a7   :  { %6263 = vmatpush1.bf16.msra.mxu1 %v10800_v15 }
0x15a8   :  { %6264 = vmatprep.subr.bf16.mxu1 %v10802_v14  ;;  %v12452_v14 = vld [vmem:[#allocation43_spill] sm:$0xff] }
0x15ab   :  { %6265 = vmatpush1.bf16.msra.mxu1 %v10806_v60  ;;  %v12453_v60 = vld [vmem:[#allocation85_spill] sm:$0xff] }
0x15ac   :  { %6459 = vmatprep.subr.bf16.mxu1 %v10941_v56  ;;  %v12462_v56 = vld [vmem:[#allocation48_spill] sm:$0xff] }
0x15ae   :  { %6283 = vmatmul.mubr.bf16.vlgmr.msra.gmra.mrb[148].mxu1 %v11176_v46 }
0x15af   :  { %6460 = vmatpush1.bf16.msra.mxu1 %v10945_v27  ;;  %6491 = vmatprep.mubr.bf16.mxu1 %v12029_v49  ;;  %v12463_v27 = vld [vmem:[#allocation95_spill] sm:$0xff] }
0x15b0   :  { %6461 = vmatprep.subr.bf16.mxu1 %v10947_v54  ;;  %v12459_v54 = vld [vmem:[#allocation91_spill] sm:$0xff] }
0x15b3   :  { %6462 = vmatpush1.bf16.msra.mxu1 %v10956_v5  ;;  %v12465_v5 = vld [vmem:[#allocation97_spill] sm:$0xff] }
0x15b4   :  { %6463 = vmatprep.subr.bf16.mxu1 %v10960_v58  ;;  %v12461_v58 = vld [vmem:[#allocation93_spill] sm:$0xff] }
0x15b7   :  { %6464 = vmatpush1.bf16.msra.mxu1 %v10969_v19  ;;  %v12467_v19 = vld [vmem:[#allocation99_spill] sm:$0xff] }
0x15b8   :  { %6465 = vmatprep.subr.bf16.mxu1 %v10973_v7  ;;  %v12464_v7 = vld [vmem:[#allocation49_spill] sm:$0xff] }
0x15bb   :  { %6466 = vmatpush1.bf16.msra.mxu1 %v10981_v47  ;;  %v12466_v47 = vld [vmem:[#allocation50_spill] sm:$0xff] }
0x15bc   :  { %6467 = vmatprep.subr.bf16.mxu1 %v10985_v29  ;;  %v12460_v29 = vld [vmem:[#allocation47_spill] sm:$0xff] }
0x15bf   :  { %6468 = vmatpush1.bf16.msra.mxu1 %v10990_v1  ;;  %v12456_v1 = vld [vmem:[#allocation45_spill] sm:$0xff] }
0x15c0   :  { %6469 = vmatprep.subr.bf16.mxu1 %v10993_v52  ;;  %v12468_v52 = vld [vmem:[#allocation51_spill] sm:$0xff] }
0x15c1   :  { %v5331_v30 = vpop.permute.xlu1 %5330 }
0x15c2   :  { %v5333_v63 = vadd.f32 %v5331_v30, %v5323_v12  ;;  %v12486_v30 = vld [vmem:[#allocation22_spill] sm:$0xff] }
0x15c3   :  { %6470 = vmatpush1.bf16.msra.mxu1 %v11000_v41  ;;  %v12458_v41 = vld [vmem:[#allocation46_spill] sm:$0xff] }
0x15c4   :  { %8306 = vtanh.f32 %v5333_v63  ;;  %6471 = vmatprep.subr.bf16.mxu1 %v11002_v45  ;;  %v12457_v45 = vld [vmem:[#allocation89_spill] sm:$0xff] }
0x15c7   :  { %6472 = vmatpush1.bf16.msra.mxu1 %v11006_v9  ;;  %v12455_v9 = vld [vmem:[#allocation87_spill] sm:$0xff] }
0x15c8   :  { %6473 = vmatprep.subr.bf16.mxu1 %v12449_v25 }
0x15cb   :  { %6474 = vmatpush1.bf16.msra.mxu1 %v12450_v3 }
0x15cc   :  { %6541 = vmatprep.subr.bf16.mxu1 %v12451_v22 }
0x15ce   :  { %v8307_v15 = vpop.eup %8306  ;;  %6492 = vmatmul.mubr.bf16.vlgmr.msra.gmra.mrb[152].mxu1 %v11154_v51 }
0x15cf   :  { %6542 = vmatpush1.bf16.msra.mxu1 %v12452_v14  ;;  %5336 = vrot.lane.b32.xlu1 %v8307_v15, %s8380_s18 }
0x15d0   :  { %6543 = vmatprep.subr.bf16.mxu1 %v12453_v60  ;;  %6573 = vmatprep.mubr.bf16.mxu1 %v12029_v49 }
0x15d3   :  { %6544 = vmatpush1.bf16.msra.mxu1 %v12454_v21 }
0x15d4   :  { %6545 = vmatprep.subr.bf16.mxu1 %v12455_v9 }
0x15d7   :  { %6546 = vmatpush1.bf16.msra.mxu1 %v12456_v1 }
0x15d8   :  { %6547 = vmatprep.subr.bf16.mxu1 %v12457_v45 }
0x15db   :  { %6548 = vmatpush1.bf16.msra.mxu1 %v12458_v41 }
0x15dc   :  { %6549 = vmatprep.subr.bf16.mxu1 %v12459_v54 }
0x15df   :  { %6550 = vmatpush1.bf16.msra.mxu1 %v12460_v29 }
0x15e0   :  { %6551 = vmatprep.subr.bf16.mxu1 %v12461_v58 }
0x15e3   :  { %6552 = vmatpush1.bf16.msra.mxu1 %v12462_v56 }
0x15e4   :  { %6553 = vmatprep.subr.bf16.mxu1 %v12463_v27 }
0x15e7   :  { %6554 = vmatpush1.bf16.msra.mxu1 %v12464_v7 }
0x15e8   :  { %6555 = vmatprep.subr.bf16.mxu1 %v12465_v5 }
0x15eb   :  { %6556 = vmatpush1.bf16.msra.mxu1 %v12466_v47  ;;  %v8148_v47 = vld [vmem:[%s11710_s4] sm:$0xff]  }
0x15ec   :  { %6662 = vmatprep.subr.bf16.mxu1 %v12467_v19 }
0x15ee   :  { %6574 = vmatmul.mubr.bf16.vlgmr.msra.gmra.mrb[156].mxu1 %v11176_v46 }
0x15ef   :  { %6663 = vmatpush1.bf16.msra.mxu1 %v12468_v52  ;;  %6694 = vmatprep.mubr.bf16.mxu1 %v12029_v49  ;;  %v8149_v52 = vld [vmem:[%s11710_s4 + $0x8] sm:$0xff]  }
0x15f0   :  { %6664 = vmatprep.subr.bf16.mxu1 %v12469_v42  ;;  %v12487_v42 = vld [vmem:[#allocation55_spill] sm:$0xff] }
0x15f3   :  { %v5473_v13 = vpop.permute.xlu0 %5472  ;;  %6665 = vmatpush1.bf16.msra.mxu1 %v12471_v48  ;;  %v12490_v48 = vld [vmem:[#allocation30_spill] sm:$0xff] }
0x15f4   :  { %v11225_v43 = vadd.f32 %v5473_v13, %v5465_v53  ;;  %6666 = vmatprep.subr.bf16.mxu1 %v12472_v8  ;;  %v12488_v53 = vld [vmem:[#allocation29_spill] sm:$0xff]  ;;  %v12491_v8 = vld [vmem:[#allocation59_spill] sm:$0xff] }
0x15f5   :  { %v12489_v13 = vld [vmem:[#allocation57_spill] sm:$0xff] }
0x15f6   :  { %8308 = vtanh.f32 %v11225_v43 }
0x15f7   :  { %6667 = vmatpush1.bf16.msra.mxu1 %v12473_v32  ;;  %v12492_v32 = vld [vmem:[#allocation31_spill] sm:$0xff] }
0x15f8   :  { %6668 = vmatprep.subr.bf16.mxu1 %v12474_v36  ;;  %v12493_v36 = vld [vmem:[#allocation61_spill] sm:$0xff] }
0x15fb   :  { %6669 = vmatpush1.bf16.msra.mxu1 %v12475_v61  ;;  %v12494_v61 = vld [vmem:[#allocation32_spill] sm:$0xff] }
0x15fc   :  { %6670 = vmatprep.subr.bf16.mxu1 %v12476_v17  ;;  %v12495_v17 = vld [vmem:[#allocation63_spill] sm:$0xff] }
0x15ff   :  { %6671 = vmatpush1.bf16.msra.mxu1 %v12477_v50  ;;  %v12496_v50 = vld [vmem:[#allocation33_spill] sm:$0xff] }
0x1600   :  { %v8309_v23 = vpop.eup %8308  ;;  %6672 = vmatprep.subr.bf16.mxu1 %v12478_v18  ;;  %v12498_v18 = vld [vmem:[#allocation34_spill] sm:$0xff] }
0x1601   :  { %5478 = vrot.lane.b32.xlu0 %v8309_v23, %s8380_s18  ;;  %v12497_v23 = vld [vmem:[#allocation65_spill] sm:$0xff] }
0x1603   :  { %6673 = vmatpush1.bf16.msra.mxu1 %v12479_v26  ;;  %v12499_v26 = vld [vmem:[#allocation67_spill] sm:$0xff] }
0x1604   :  { %6674 = vmatprep.subr.bf16.mxu1 %v12480_v10  ;;  %v12500_v10 = vld [vmem:[#allocation35_spill] sm:$0xff] }
0x1607   :  { %6675 = vmatpush1.bf16.msra.mxu1 %v12481_v55  ;;  %v12501_v55 = vld [vmem:[#allocation69_spill] sm:$0xff] }
0x1608   :  { %6676 = vmatprep.subr.bf16.mxu1 %v12482_v34  ;;  %v12502_v34 = vld [vmem:[#allocation36_spill] sm:$0xff] }
0x160b   :  { %6677 = vmatpush1.bf16.msra.mxu1 %v12483_v4  ;;  %v12503_v4 = vld [vmem:[#allocation71_spill] sm:$0xff] }
0x1641   :  { %v5337_v31 = vpop.permute.xlu1 %5336 }
0x1642   :  { %v5339_v62 = vmul.f32 %v5337_v31, %v11137_v59  ;;  %v12504_v31 = vld [vmem:[#allocation37_spill] sm:$0xff] }
0x1644   :  { %v6019_v2 = vpack.c.bf16 %v5339_v62, %v5339_v62  ;;  %v12505_v62 = vld [vmem:[#allocation73_spill] sm:$0xff] }
0x1646   :  { %6088 = vrot.lane.b32.xlu1 %v6019_v2, %s8381_s0  ;;  %v11302_v2 = vld [vmem:[#allocation2 + $0x18] sm:$0xff] }
0x1661   :  { %v6010_v57 = vpop.f32.mrb[144].mxu1 }
0x1662   :  { %v6011_v59 = vadd.f32 %v6010_v57, %v12485_v11  ;;  %v6012_v12 = vpop.f32.mrb[145].mxu1  ;;  %v11314_v57 = vld [vmem:[#allocation2 + $0x30] sm:$0xff] }
0x1663   :  { %v6013_v63 = vadd.f32 %v6012_v12, %v12486_v30  ;;  %v6014_v25 = vpop.f32.mrb[146].mxu1  ;;  %12507 = vst [vmem:[#allocation72_spill] sm:$0xff] %v11314_v57  ;;  %v11320_v12 = vld [vmem:[#allocation5 + $0x10] sm:$0xff] }
0x1664   :  { %6017 = vst [vmem:[%s11721_s15 + $0x40] sm:$0xff] %v6011_v59  ;;  %v6015_v3 = vpop.f32.mrb[147].mxu1  ;;  %v11316_v59 = vld [vmem:[#allocation5 + $0x18] sm:$0xff]  ;;  %v11328_v25 = vld [vmem:[#allocation5 + $0x30] sm:$0xff] }
0x1665   :  { %6018 = vst [vmem:[%s11721_s15 + $0x48] sm:$0xff] %v6013_v63  ;;  %v11322_v63 = vld [vmem:[#allocation5 + $0x38] sm:$0xff] }
0x1666   :  { %v11330_v3 = vld [vmem:[#allocation5 + $0x58] sm:$0xff] }
0x1673   :  { %v5479_v22 = vpop.permute.xlu0 %5478 }
0x1674   :  { %v5481_v15 = vmul.f32 %v5479_v22, %v11149_v16  ;;  %v11334_v22 = vld [vmem:[#allocation5 + $0x50] sm:$0xff] }
0x1676   :  { %v6024_v14 = vpack.c.bf16 %v5481_v15, %v5481_v15  ;;  %v11336_v15 = vld [vmem:[#allocation5 + $0x78] sm:$0xff] }
0x1678   :  { %6030 = vrot.lane.b32.xlu0 %v6024_v14, %s8381_s0  ;;  %v11340_v14 = vld [vmem:[#allocation5 + $0x70] sm:$0xff] }
0x1681   :  { %v11261_v60 = vpop.f32.mrb[148].mxu1 }
0x1682   :  { %v11263_v21 = vpop.f32.mrb[149].mxu1 }
0x1683   :  { %v6288_v9 = vpop.f32.mrb[150].mxu1 }
0x1684   :  { %v6289_v1 = vpop.f32.mrb[151].mxu1  ;;  %v11342_v9 = vld [vmem:[#allocation5 + $0x98] sm:$0xff] }
0x1685   :  { %v11346_v1 = vld [vmem:[#allocation5 + $0x90] sm:$0xff] }
0x16a1   :  { %v6493_v45 = vpop.f32.mrb[152].mxu1 }
0x16a2   :  { %v6495_v41 = vpop.f32.mrb[153].mxu1 }
0x16a3   :  { %v6497_v54 = vpop.f32.mrb[154].mxu1 }
0x16a4   :  { %v6498_v29 = vpop.f32.mrb[155].mxu1  ;;  %v11354_v54 = vld [vmem:[#allocation5 + $0xd8] sm:$0xff] }
0x16a5   :  { %v11358_v29 = vld [vmem:[#allocation5 + $0xd0] sm:$0xff] }
0x16b8   :  { %v6089_v33 = vpop.permute.xlu1 %6088 }
0x16c1   :  { %v6575_v58 = vpop.f32.mrb[156].mxu1 }
0x16c2   :  { %v11265_v56 = vadd.f32 %v6575_v58, %v6493_v45  ;;  %v6577_v27 = vpop.f32.mrb[157].mxu1  ;;  %v11348_v45 = vld [vmem:[#allocation5 + $0xb8] sm:$0xff] }
0x16c3   :  { %v11267_v7 = vadd.f32 %v6577_v27, %v6495_v41  ;;  %v6579_v16 = vpop.f32.mrb[158].mxu1  ;;  %v11352_v41 = vld [vmem:[#allocation5 + $0xb0] sm:$0xff]  ;;  %v11360_v58 = vld [vmem:[#allocation5 + $0xf8] sm:$0xff] }
0x16c4   :  { %v6580_v5 = vpop.f32.mrb[159].mxu1  ;;  %v11364_v27 = vld [vmem:[#allocation5 + $0xf0] sm:$0xff]  ;;  %v11366_v16 = vld [vmem:[#allocation4 + $0x18] sm:$0xff] }
0x16c5   :  { %v11370_v5 = vld [vmem:[#allocation4 + $0x10] sm:$0xff] }
0x16ea   :  { %v6031_v19 = vpop.permute.xlu0 %6030 }
0x16eb   :  { %8044 = vmatmul.mubr.msk.bf16.vlgmr.msra.gmra.mrb[144].mxu0 %vm1453_vm2, %v6031_v19 }
0x16ec   :  { %8048 = vmatpush3.bf16.msra.mxu0 %v8148_v47  ;;  %8051 = vmatprep.mubr.msk.bf16.mxu0 %vm8378_vm0, %v12484_v0  ;;  %v11372_v47 = vld [vmem:[#allocation4 + $0x38] sm:$0xff] }
0x16ed   :  { %8049 = vmatprep.subr.bf16.mxu0 %v12484_v0  ;;  %v11308_v0 = vld [vmem:[#allocation2 + $0x38] sm:$0xff] }
0x16f0   :  { %8050 = vmatpush3.bf16.msra.mxu0 %v8149_v52  ;;  %v11380_v52 = vld [vmem:[#allocation4 + $0x58] sm:$0xff] }
0x16f1   :  { %6209 = vmatprep.subr.bf16.mxu0 %v12487_v42  ;;  %v11384_v42 = vld [vmem:[#allocation4 + $0x50] sm:$0xff] }
0x16f3   :  { %8052 = vmatmul.mubr.msk.bf16.vlgmr.msra.gmra.mrb[148].mxu0 %vm1453_vm2, %v6089_v33  ;;  %v11386_v33 = vld [vmem:[#allocation4 + $0x78] sm:$0xff] }
0x16f4   :  { %6210 = vmatpush1.bf16.msra.mxu0 %v12488_v53  ;;  %6241 = vmatprep.mubr.bf16.mxu0 %v12029_v49  ;;  %v11392_v53 = vld [vmem:[#allocation4 + $0x98] sm:$0xff] }
0x16f5   :  { %6211 = vmatprep.subr.bf16.mxu0 %v12489_v13  ;;  %v11396_v13 = vld [vmem:[#allocation4 + $0x90] sm:$0xff] }
0x16f8   :  { %6212 = vmatpush1.bf16.msra.mxu0 %v12490_v48  ;;  %v12508_v48 = vld [vmem:[#allocation75_spill] sm:$0xff] }
0x16f9   :  { %6213 = vmatprep.subr.bf16.mxu0 %v12491_v8  ;;  %v12509_v8 = vld [vmem:[#allocation39_spill] sm:$0xff] }
0x16fc   :  { %6214 = vmatpush1.bf16.msra.mxu0 %v12492_v32  ;;  %v12510_v32 = vld [vmem:[#allocation77_spill] sm:$0xff] }
0x16fd   :  { %6215 = vmatprep.subr.bf16.mxu0 %v12493_v36  ;;  %v12511_v36 = vld [vmem:[#allocation40_spill] sm:$0xff] }
0x1700   :  { %6216 = vmatpush1.bf16.msra.mxu0 %v12494_v61  ;;  %v12512_v61 = vld [vmem:[#allocation79_spill] sm:$0xff] }
0x1701   :  { %6217 = vmatprep.subr.bf16.mxu0 %v12495_v17  ;;  %v12513_v17 = vld [vmem:[#allocation41_spill] sm:$0xff] }
0x1704   :  { %6218 = vmatpush1.bf16.msra.mxu0 %v12496_v50  ;;  %v6716_v50 = vld [vmem:[#allocation3 + $0x8] sm:$0xff] }
0x1705   :  { %6219 = vmatprep.subr.bf16.mxu0 %v12497_v23  ;;  %v6715_v23 = vld [vmem:[#allocation3] sm:$0xff] }
0x1708   :  { %6220 = vmatpush1.bf16.msra.mxu0 %v12498_v18  ;;  %v6720_v18 = vld [vmem:[#allocation3 + $0x28] sm:$0xff] }
0x1709   :  { %6221 = vmatprep.subr.bf16.mxu0 %v12499_v26  ;;  %v6719_v26 = vld [vmem:[#allocation3 + $0x20] sm:$0xff] }
0x170c   :  { %6222 = vmatpush1.bf16.msra.mxu0 %v12500_v10  ;;  %v6724_v10 = vld [vmem:[#allocation3 + $0x48] sm:$0xff] }
0x170d   :  { %6223 = vmatprep.subr.bf16.mxu0 %v12501_v55  ;;  %v6723_v55 = vld [vmem:[#allocation3 + $0x40] sm:$0xff] }
0x1710   :  { %6224 = vmatpush1.bf16.msra.mxu0 %v12502_v34  ;;  %v6728_v34 = vld [vmem:[#allocation3 + $0x68] sm:$0xff] }
0x1711   :  { %6291 = vmatprep.subr.bf16.mxu0 %v12503_v4  ;;  %v6727_v4 = vld [vmem:[#allocation3 + $0x60] sm:$0xff] }
0x1713   :  { %6242 = vmatmul.mubr.bf16.vlgmr.msra.gmra.mrb[152].mxu0 %v11176_v46 }
0x1714   :  { %6292 = vmatpush1.bf16.msra.mxu0 %v12504_v31  ;;  %6323 = vmatprep.mubr.bf16.mxu0 %v12029_v49  ;;  %v6732_v31 = vld [vmem:[#allocation3 + $0x88] sm:$0xff] }
0x1715   :  { %6293 = vmatprep.subr.bf16.mxu0 %v12505_v62  ;;  %v6736_v62 = vld [vmem:[#allocation3 + $0xa8] sm:$0xff] }
0x1718   :  { %6294 = vmatpush1.bf16.msra.mxu0 %v12506_v28  ;;  %v6735_v28 = vld [vmem:[#allocation3 + $0xa0] sm:$0xff] }
0x1719   :  { %6332 = vmatprep.subr.bf16.mxu0 %v11302_v2 }
0x171b   :  { %7758 = vmatmul.mubr.msk.bf16.vlgmr.msra.gmra.mrb[156].mxu0 %vm1453_vm2, %v6031_v19 }
0x171c   :  { %6333 = vmatpush1.bf16.msra.mxu0 %v11306_v20  ;;  %6364 = vmatprep.mubr.bf16.mxu0 %v12029_v49 }
0x171d   :  { %6334 = vmatprep.subr.bf16.mxu0 %v11308_v0 }
0x1720   :  { %6335 = vmatpush1.bf16.msra.mxu0 %v11314_v57 }
0x1721   :  { %6500 = vmatprep.subr.bf16.mxu0 %v11316_v59 }
0x1723   :  { %7759 = vmatmul.mubr.msk.bf16.vlgmr.msra.gmra.mrb[160].mxu0 %vm1453_vm2, %v6031_v19  ;;  %v11378_v19 = vld [vmem:[#allocation4 + $0x30] sm:$0xff] }
0x1724   :  { %6501 = vmatpush1.bf16.msra.mxu0 %v11320_v12  ;;  %6532 = vmatprep.mubr.bf16.mxu0 %v12029_v49 }
0x1725   :  { %6502 = vmatprep.subr.bf16.mxu0 %v11322_v63 }
0x1728   :  { %6503 = vmatpush1.bf16.msra.mxu0 %v11328_v25 }
0x1729   :  { %6504 = vmatprep.subr.bf16.mxu0 %v11330_v3 }
0x172c   :  { %6505 = vmatpush1.bf16.msra.mxu0 %v11334_v22 }
0x172d   :  { %6506 = vmatprep.subr.bf16.mxu0 %v11336_v15 }
0x1730   :  { %6507 = vmatpush1.bf16.msra.mxu0 %v11340_v14 }
0x1731   :  { %6508 = vmatprep.subr.bf16.mxu0 %v11342_v9 }
0x1734   :  { %6509 = vmatpush1.bf16.msra.mxu0 %v11346_v1 }
0x1735   :  { %6510 = vmatprep.subr.bf16.mxu0 %v11348_v45 }
0x1738   :  { %6511 = vmatpush1.bf16.msra.mxu0 %v11352_v41 }
0x1739   :  { %6512 = vmatprep.subr.bf16.mxu0 %v11354_v54 }
0x173c   :  { %6513 = vmatpush1.bf16.msra.mxu0 %v11358_v29 }
0x173d   :  { %6514 = vmatprep.subr.bf16.mxu0 %v11360_v58 }
0x1740   :  { %6515 = vmatpush1.bf16.msra.mxu0 %v11364_v27 }
0x1741   :  { %6582 = vmatprep.subr.bf16.mxu0 %v11366_v16 }
0x1743   :  { %6533 = vmatmul.mubr.bf16.vlgmr.msra.gmra.mrb[164].mxu0 %v11154_v51  ;;  %v11390_v51 = vld [vmem:[#allocation4 + $0x70] sm:$0xff] }
0x1744   :  { %6583 = vmatpush1.bf16.msra.mxu0 %v11370_v5  ;;  %6614 = vmatprep.mubr.bf16.mxu0 %v12029_v49 }
0x1745   :  { %6584 = vmatprep.subr.bf16.mxu0 %v11372_v47 }
0x1748   :  { %6585 = vmatpush1.bf16.msra.mxu0 %v11378_v19 }
0x1749   :  { %6586 = vmatprep.subr.bf16.mxu0 %v11380_v52 }
0x174c   :  { %6587 = vmatpush1.bf16.msra.mxu0 %v11384_v42 }
0x174d   :  { %6588 = vmatprep.subr.bf16.mxu0 %v11386_v33 }
0x1750   :  { %6589 = vmatpush1.bf16.msra.mxu0 %v11390_v51 }
0x1751   :  { %6590 = vmatprep.subr.bf16.mxu0 %v11392_v53 }
0x1754   :  { %6591 = vmatpush1.bf16.msra.mxu0 %v11396_v13 }
0x1755   :  { %6592 = vmatprep.subr.bf16.mxu0 %v12508_v48  ;;  %v6740_v48 = vld [vmem:[#allocation3 + $0xc8] sm:$0xff] }
0x1758   :  { %6593 = vmatpush1.bf16.msra.mxu0 %v12509_v8  ;;  %v6739_v8 = vld [vmem:[#allocation3 + $0xc0] sm:$0xff] }
0x1759   :  { %6594 = vmatprep.subr.bf16.mxu0 %v12510_v32  ;;  %v6744_v32 = vld [vmem:[#allocation3 + $0xe8] sm:$0xff] }
0x175c   :  { %6595 = vmatpush1.bf16.msra.mxu0 %v12511_v36  ;;  %v6743_v36 = vld [vmem:[#allocation3 + $0xe0] sm:$0xff] }
0x175d   :  { %6596 = vmatprep.subr.bf16.mxu0 %v12512_v61 }
0x1760   :  { %6597 = vmatpush1.bf16.msra.mxu0 %v12513_v17 }
0x1761   :  { %6747 = vmatprep.subr.bf16.mxu0 %v6716_v50 }
0x1763   :  { %6615 = vmatmul.mubr.bf16.vlgmr.msra.gmra.mrb[168].mxu0 %v11176_v46  ;;  %v6731_v46 = vld [vmem:[#allocation3 + $0x80] sm:$0xff] }
0x1764   :  { %6779 = vmatprep.mubr.bf16.mxu0 %v12029_v49  ;;  %6748 = vmatpush1.bf16.msra.mxu0 %v6715_v23 }
0x1765   :  { %6749 = vmatprep.subr.bf16.mxu0 %v6720_v18 }
0x1768   :  { %6750 = vmatpush1.bf16.msra.mxu0 %v6719_v26 }
0x1769   :  { %6751 = vmatprep.subr.bf16.mxu0 %v6724_v10 }
0x176c   :  { %6752 = vmatpush1.bf16.msra.mxu0 %v6723_v55 }
0x176d   :  { %6753 = vmatprep.subr.bf16.mxu0 %v6728_v34  ;;  %v12514_v34 = vld [vmem:[#allocation27_spill] sm:$0xff] }
0x1770   :  { %6754 = vmatpush1.bf16.msra.mxu0 %v6727_v4 }
0x1771   :  { %6755 = vmatprep.subr.bf16.mxu0 %v6732_v31 }
0x1774   :  { %6756 = vmatpush1.bf16.msra.mxu0 %v6731_v46  ;;  %v6718_v46 = vld [vmem:[#allocation3 + $0x18] sm:$0xff] }
0x1775   :  { %6757 = vmatprep.subr.bf16.mxu0 %v6736_v62  ;;  %6788 = vmatprep.subr.bf16.mxu1 %v6718_v46 }
0x1778   :  { %6758 = vmatpush1.bf16.msra.mxu0 %v6735_v28 }
0x1779   :  { %6759 = vmatprep.subr.bf16.mxu0 %v6740_v48 }
0x177c   :  { %6760 = vmatpush1.bf16.msra.mxu0 %v6739_v8 }
0x177d   :  { %6761 = vmatprep.subr.bf16.mxu0 %v6744_v32 }
0x1780   :  { %6762 = vmatpush1.bf16.msra.mxu0 %v6743_v36 }
0x17be   :  { %v6081_v61 = vpop.f32.mrb[144].mxu0 }
0x17bf   :  { %v8045_v17 = vpop.f32.mrb[145].mxu0 }
0x17c0   :  { %v6084_v50 = vpop.f32.mrb[146].mxu0 }
0x17c1   :  { %v8046_v23 = vpop.f32.mrb[147].mxu0 }
0x17c6   :  { %v6139_v18 = vpop.f32.mrb[148].mxu0 }
0x17c7   :  { %v6140_v26 = vadd.f32 %v6139_v18, %v6081_v61  ;;  %v8053_v10 = vpop.f32.mrb[149].mxu0 }
0x17c8   :  { %v6142_v55 = vpop.f32.mrb[150].mxu0 }
0x17c9   :  { %v6145_v4 = vadd.f32 %v12514_v34, %v6140_v26  ;;  %v8054_v31 = vpop.f32.mrb[151].mxu0  ;;  %v12515_v26 = vld [vmem:[#allocation19_spill] sm:$0xff] }
0x17cb   :  { %8310 = vtanh.f32 %v6145_v4 }
0x17d5   :  { %v8311_v62 = vpop.eup %8310 }
0x17d6   :  { %6153 = vrot.lane.b32.xlu0 %v8311_v62, %s8380_s18 }
0x17e6   :  { %v6243_v28 = vpop.f32.mrb[152].mxu0 }
0x17e7   :  { %v6245_v48 = vpop.f32.mrb[153].mxu0 }
0x17e8   :  { %v6247_v8 = vpop.f32.mrb[154].mxu0 }
0x17e9   :  { %v6248_v32 = vpop.f32.mrb[155].mxu0 }
0x17ee   :  { %v6325_v36 = vpop.f32.mrb[156].mxu0 }
0x17ef   :  { %v6326_v17 = vadd.f32 %v6325_v36, %v6243_v28  ;;  %v6327_v50 = vpop.f32.mrb[157].mxu0  ;;  %v12516_v36 = vld [vmem:[#allocation20_spill] sm:$0xff] }
0x17f0   :  { %v6328_v23 = vadd.f32 %v6327_v50, %v6245_v48  ;;  %v6329_v61 = vpop.f32.mrb[158].mxu0 }
0x17f1   :  { %v6373_v18 = vadd.f32 %v6326_v17, %v12385_v44  ;;  %v6330_v10 = vpop.f32.mrb[159].mxu0 }
0x17f2   :  { %v6374_v55 = vadd.f32 %v6328_v23, %v12515_v26 }
0x17f3   :  { %v6377_v34 = vmul.f32 0.5, %v6373_v18 }
0x17f4   :  { %v6378_v31 = vmul.f32 0.5, %v6374_v55 }
0x17f5   :  { %8312 = vtanh.f32 %v6377_v34 }
0x17f6   :  { %8314 = vtanh.f32 %v6378_v31  ;;  %v6366_v46 = vpop.f32.mrb[160].mxu0 }
0x17f7   :  { %v6367_v62 = vadd.f32 %v6366_v46, %v11261_v60  ;;  %v6368_v57 = vpop.f32.mrb[161].mxu0 }
0x17f8   :  { %v6369_v8 = vadd.f32 %v6368_v57, %v11263_v21  ;;  %v6370_v32 = vpop.f32.mrb[162].mxu0 }
0x17f9   :  { %v6371_v28 = vpop.f32.mrb[163].mxu0  ;;  %v6375_v50 = vadd.f32 %v6367_v62, %v9121_v35 }
0x17fa   :  { %v6376_v48 = vadd.f32 %v6369_v8, %v12516_v36 }
0x17fb   :  { %v6379_v61 = vmul.f32 0.5, %v6375_v50 }
0x17fc   :  { %8316 = vtanh.f32 %v6376_v48 }
0x17fd   :  { %8318 = vtanh.f32 %v6379_v61 }
0x17ff   :  { %v8313_v17 = vpop.eup %8312 }
0x1800   :  { %v8315_v23 = vpop.eup %8314  ;;  %v6383_v18 = vadd.f32 1.0, %v8313_v17 }
0x1801   :  { %v6384_v10 = vadd.f32 1.0, %v8315_v23 }
0x1802   :  { %v6386_v34 = vmul.f32 0.5, %v6383_v18  ;;  %v6623_v18 = vadd.f32 %v11265_v56, %v9127_v37 }
0x1803   :  { %v6387_v55 = vmul.f32 0.5, %v6384_v10 }
0x1805   :  { %v6390_v60 = vmul.f32 %v6387_v55, %v11135_v6  ;;  %v6624_v6 = vadd.f32 %v11267_v7, %v9129_v38  ;;  %v6627_v55 = vmul.f32 0.5, %v6623_v18 }
0x1806   :  { %v8317_v31 = vpop.eup %8316 }
0x1807   :  { %v6391_v46 = vmul.f32 %v8317_v31, %v6386_v34  ;;  %v8319_v57 = vpop.eup %8318  ;;  %v6628_v10 = vmul.f32 0.5, %v6624_v6  ;;  %v6146_v34 = vmul.f32 0.5, %v6145_v4 }
0x1808   :  { %v6385_v8 = vadd.f32 1.0, %v8319_v57 }
0x1809   :  { %v11416_v21 = vadd.f32 %v6391_v46, %v6390_v60 }
0x180a   :  { %v6388_v62 = vmul.f32 0.5, %v6385_v8 }
0x180b   :  { %8320 = vtanh.f32 %v11416_v21 }
0x180c   :  { %8322 = vtanh.f32 %v6628_v10 }
0x180d   :  { %8324 = vtanh.f32 %v6627_v55 }
0x180e   :  { %8326 = vtanh.f32 %v6146_v34 }
0x1815   :  { %v8321_v32 = vpop.eup %8320 }
0x1816   :  { %v6534_v28 = vpop.f32.mrb[164].mxu0  ;;  %v6394_v48 = vmul.f32 %v8321_v32, %v6388_v62  ;;  %v8323_v7 = vpop.eup %8322 }
0x1817   :  { %v6536_v50 = vpop.f32.mrb[165].mxu0  ;;  %v6634_v56 = vadd.f32 1.0, %v8323_v7 }
0x1818   :  { %v6538_v17 = vpop.f32.mrb[166].mxu0  ;;  %v11419_v23 = vpack.c.bf16 %v6394_v48, %v6394_v48 }
0x1819   :  { %v6539_v61 = vpop.f32.mrb[167].mxu0  ;;  %v8325_v17 = vpop.eup %8324  ;;  %v6637_v4 = vmul.f32 0.5, %v6634_v56  ;;  %v6722_v56 = vld [vmem:[#allocation3 + $0x38] sm:$0xff] }
0x181a   :  { %6780 = vmatmul.mubr.bf16.vlgmr.msra.gmra.mrb[172].mxu0 %v11419_v23  ;;  %v8327_v6 = vpop.eup %8326  ;;  %v6633_v18 = vadd.f32 1.0, %v8325_v17 }
0x181b   :  { %6867 = vmatprep.mubr.bf16.mxu0 %v12029_v49  ;;  %v6148_v10 = vadd.f32 1.0, %v8327_v6  ;;  %v6726_v6 = vld [vmem:[#allocation3 + $0x58] sm:$0xff] }
0x181c   :  { %v6636_v55 = vmul.f32 0.5, %v6633_v18  ;;  %v6725_v18 = vld [vmem:[#allocation3 + $0x50] sm:$0xff] }
0x1836   :  { %v6616_v31 = vpop.f32.mrb[168].mxu0 }
0x1837   :  { %v6617_v60 = vadd.f32 %v6616_v31, %v6534_v28  ;;  %v6618_v46 = vpop.f32.mrb[169].mxu0  ;;  %v11430_v31 = vmul.f32 0.5, %v6148_v10  ;;  %v6729_v10 = vld [vmem:[#allocation3 + $0x70] sm:$0xff] }
0x1838   :  { %v6619_v57 = vadd.f32 %v6618_v46, %v6536_v50  ;;  %v6620_v8 = vpop.f32.mrb[170].mxu0  ;;  %v6640_v50 = vmul.f32 %v6637_v4, %v11147_v24  ;;  %v6717_v24 = vld [vmem:[#allocation3 + $0x10] sm:$0xff]  ;;  %v6730_v4 = vld [vmem:[#allocation3 + $0x78] sm:$0xff] }
0x1839   :  { %v6621_v62 = vpop.f32.mrb[171].mxu0  ;;  %v6625_v48 = vadd.f32 %v6617_v60, %v9131_v39 }
0x183a   :  { %v6626_v32 = vadd.f32 %v6619_v57, %v9133_v40 }
0x183b   :  { %v6629_v61 = vmul.f32 0.5, %v6625_v48 }
0x183c   :  { %8328 = vtanh.f32 %v6626_v32 }
0x183d   :  { %8330 = vtanh.f32 %v6629_v61  ;;  %v6721_v61 = vld [vmem:[#allocation3 + $0x30] sm:$0xff] }
0x1846   :  { %v8329_v28 = vpop.eup %8328 }
0x1847   :  { %v6641_v34 = vmul.f32 %v8329_v28, %v6636_v55  ;;  %v8331_v8 = vpop.eup %8330  ;;  %v6734_v55 = vld [vmem:[#allocation3 + $0x98] sm:$0xff]  ;;  %v6733_v28 = vld [vmem:[#allocation3 + $0x90] sm:$0xff] }
0x1848   :  { %v6154_v46 = vpop.permute.xlu0 %6153  ;;  %v6635_v62 = vadd.f32 1.0, %v8331_v8  ;;  %v6746_v8 = vld [vmem:[#allocation3 + $0xf8] sm:$0xff] }
0x1849   :  { %v11432_v57 = vadd.f32 %v6641_v34, %v6640_v50  ;;  %v6156_v60 = vmul.f32 %v6154_v46, %v11430_v31  ;;  %v6738_v50 = vld [vmem:[#allocation3 + $0xb8] sm:$0xff]  ;;  %v6737_v34 = vld [vmem:[#allocation3 + $0xb0] sm:$0xff] }
0x184a   :  { %v6638_v32 = vmul.f32 0.5, %v6635_v62  ;;  %v6742_v46 = vld [vmem:[#allocation3 + $0xd8] sm:$0xff]  ;;  %v6745_v62 = vld [vmem:[#allocation3 + $0xf0] sm:$0xff] }
0x184b   :  { %8332 = vtanh.f32 %v11432_v57  ;;  %6158 = vrot.lane.b32.xlu1 %v6156_v60, %s8380_s18  ;;  %v6741_v60 = vld [vmem:[#allocation3 + $0xd0] sm:$0xff] }
0x1855   :  { %v8333_v48 = vpop.eup %8332 }
0x1856   :  { %v6644_v7 = vmul.f32 %v8333_v48, %v6638_v32  ;;  %v6976_v32 = vld [vmem:[#allocation5 + $0x28] sm:$0xff] }
0x1858   :  { %v11437_v17 = vpack.c.bf16 %v6644_v7, %v6644_v7  ;;  %v6975_v7 = vld [vmem:[#allocation5 + $0x20] sm:$0xff] }
0x185a   :  { %6695 = vmatmul.mubr.bf16.vlgmr.msra.gmra.mrb[160].mxu1 %v11437_v17 }
0x185b   :  { %6789 = vmatpush1.bf16.msra.mxu1 %v6717_v24  ;;  %6820 = vmatprep.mubr.bf16.mxu1 %v12029_v49  ;;  %v6980_v24 = vld [vmem:[#allocation5 + $0x48] sm:$0xff] }
0x185c   :  { %6790 = vmatprep.subr.bf16.mxu1 %v6722_v56  ;;  %v6979_v56 = vld [vmem:[#allocation5 + $0x40] sm:$0xff] }
0x185f   :  { %6791 = vmatpush1.bf16.msra.mxu1 %v6721_v61  ;;  %v6984_v61 = vld [vmem:[#allocation5 + $0x68] sm:$0xff] }
0x1860   :  { %6792 = vmatprep.subr.bf16.mxu1 %v6726_v6  ;;  %v6983_v6 = vld [vmem:[#allocation5 + $0x60] sm:$0xff] }
0x1863   :  { %6793 = vmatpush1.bf16.msra.mxu1 %v6725_v18  ;;  %v6988_v18 = vld [vmem:[#allocation5 + $0x88] sm:$0xff] }
0x1864   :  { %6794 = vmatprep.subr.bf16.mxu1 %v6730_v4 }
0x1867   :  { %6795 = vmatpush1.bf16.msra.mxu1 %v6729_v10 }
0x1868   :  { %6796 = vmatprep.subr.bf16.mxu1 %v6734_v55  ;;  %v6992_v55 = vld [vmem:[#allocation5 + $0xa8] sm:$0xff] }
0x186b   :  { %6797 = vmatpush1.bf16.msra.mxu1 %v6733_v28 }
0x186c   :  { %6798 = vmatprep.subr.bf16.mxu1 %v6738_v50 }
0x186f   :  { %6799 = vmatpush1.bf16.msra.mxu1 %v6737_v34  ;;  %v6991_v34 = vld [vmem:[#allocation5 + $0xa0] sm:$0xff] }
0x1870   :  { %6800 = vmatprep.subr.bf16.mxu1 %v6742_v46  ;;  %v6996_v46 = vld [vmem:[#allocation5 + $0xc8] sm:$0xff] }
0x1873   :  { %6801 = vmatpush1.bf16.msra.mxu1 %v6741_v60  ;;  %v6995_v60 = vld [vmem:[#allocation5 + $0xc0] sm:$0xff] }
0x1874   :  { %6802 = vmatprep.subr.bf16.mxu1 %v6746_v8  ;;  %v7000_v8 = vld [vmem:[#allocation5 + $0xe8] sm:$0xff] }
0x1877   :  { %6803 = vmatpush1.bf16.msra.mxu1 %v6745_v62  ;;  %v6999_v62 = vld [vmem:[#allocation5 + $0xe0] sm:$0xff] }
0x1878   :  { %7044 = vmatprep.subr.bf16.mxu1 %v11316_v59  ;;  %v11470_v59 = vld [vmem:[#allocation4 + $0xb8] sm:$0xff] }
0x187a   :  { %6821 = vmatmul.mubr.bf16.vlgmr.msra.gmra.mrb[164].mxu1 %v11419_v23 }
0x187b   :  { %7045 = vmatpush1.bf16.msra.mxu1 %v11320_v12  ;;  %7076 = vmatprep.mubr.bf16.mxu1 %v12029_v49  ;;  %v11474_v12 = vld [vmem:[#allocation4 + $0xb0] sm:$0xff] }
0x187c   :  { %7046 = vmatprep.subr.bf16.mxu1 %v11322_v63  ;;  %v11476_v63 = vld [vmem:[#allocation4 + $0xd8] sm:$0xff] }
0x187f   :  { %7047 = vmatpush1.bf16.msra.mxu1 %v11328_v25  ;;  %v11480_v25 = vld [vmem:[#allocation4 + $0xd0] sm:$0xff] }
0x1880   :  { %7048 = vmatprep.subr.bf16.mxu1 %v11330_v3  ;;  %v11482_v3 = vld [vmem:[#allocation4 + $0xf8] sm:$0xff] }
0x1883   :  { %7049 = vmatpush1.bf16.msra.mxu1 %v11334_v22  ;;  %v11486_v22 = vld [vmem:[#allocation4 + $0xf0] sm:$0xff] }
0x1884   :  { %7050 = vmatprep.subr.bf16.mxu1 %v11336_v15  ;;  %12517 = vst [vmem:[#allocation74_spill] sm:$0xff] %v11486_v22  ;;  %v6151_v15 = vmul.f32 %v11430_v31, %v11225_v43 }
0x1887   :  { %7051 = vmatpush1.bf16.msra.mxu1 %v11340_v14 }
0x1888   :  { %7052 = vmatprep.subr.bf16.mxu1 %v11342_v9 }
0x188b   :  { %7053 = vmatpush1.bf16.msra.mxu1 %v11346_v1 }
0x188c   :  { %7054 = vmatprep.subr.bf16.mxu1 %v11348_v45 }
0x188f   :  { %7055 = vmatpush1.bf16.msra.mxu1 %v11352_v41 }
0x1890   :  { %7056 = vmatprep.subr.bf16.mxu1 %v11354_v54 }
0x1893   :  { %7057 = vmatpush1.bf16.msra.mxu1 %v11358_v29 }
0x1894   :  { %7058 = vmatprep.subr.bf16.mxu1 %v11360_v58  ;;  %v6707_v58 = vld [vmem:[#allocation2 + $0x8] sm:$0xff] }
0x1895   :  { %6835 = vmatprep.subr.bf16.mxu0 %v6707_v58 }
0x1897   :  { %7059 = vmatpush1.bf16.msra.mxu1 %v11364_v27  ;;  %v6706_v27 = vld [vmem:[#allocation2] sm:$0xff] }
0x1898   :  { %7126 = vmatprep.subr.bf16.mxu1 %v11366_v16  ;;  %v6711_v16 = vld [vmem:[#allocation2 + $0x28] sm:$0xff]  ;;  %6836 = vmatpush1.bf16.msra.mxu0 %v6706_v27 }
0x1899   :  { %6837 = vmatprep.subr.bf16.mxu0 %v6711_v16 }
0x189a   :  { %7077 = vmatmul.mubr.bf16.vlgmr.msra.gmra.mrb[168].mxu1 %v11437_v17 }
0x189b   :  { %7127 = vmatpush1.bf16.msra.mxu1 %v11370_v5  ;;  %7158 = vmatprep.mubr.bf16.mxu1 %v12029_v49  ;;  %v6710_v5 = vld [vmem:[#allocation2 + $0x20] sm:$0xff] }
0x189c   :  { %7128 = vmatprep.subr.bf16.mxu1 %v11372_v47  ;;  %6838 = vmatpush1.bf16.msra.mxu0 %v6710_v5 }
0x189d   :  { %6876 = vmatprep.subr.bf16.mxu0 %v11302_v2  ;;  %v6971_v2 = vld [vmem:[#allocation5] sm:$0xff] }
0x189f   :  { %7129 = vmatpush1.bf16.msra.mxu1 %v11378_v19 }
0x18a0   :  { %7130 = vmatprep.subr.bf16.mxu1 %v11380_v52 }
0x18a3   :  { %7131 = vmatpush1.bf16.msra.mxu1 %v11384_v42 }
0x18a4   :  { %7132 = vmatprep.subr.bf16.mxu1 %v11386_v33 }
0x18a7   :  { %7133 = vmatpush1.bf16.msra.mxu1 %v11390_v51  ;;  %v6972_v51 = vld [vmem:[#allocation5 + $0x8] sm:$0xff] }
0x18a8   :  { %7134 = vmatprep.subr.bf16.mxu1 %v11392_v53 }
0x18ab   :  { %7135 = vmatpush1.bf16.msra.mxu1 %v11396_v13 }
0x18ac   :  { %7136 = vmatprep.subr.bf16.mxu1 %v11470_v59 }
0x18af   :  { %7137 = vmatpush1.bf16.msra.mxu1 %v11474_v12 }
0x18b0   :  { %7138 = vmatprep.subr.bf16.mxu1 %v11476_v63 }
0x18b3   :  { %7139 = vmatpush1.bf16.msra.mxu1 %v11480_v25 }
0x18b4   :  { %7140 = vmatprep.subr.bf16.mxu1 %v11482_v3 }
0x18b7   :  { %7141 = vmatpush1.bf16.msra.mxu1 %v11486_v22 }
0x18b8   :  { %7314 = vmatprep.subr.bf16.mxu1 %v6972_v51 }
0x18ba   :  { %7159 = vmatmul.mubr.bf16.vlgmr.msra.gmra.mrb[172].mxu1 %v11419_v23 }
0x18bb   :  { %7346 = vmatprep.mubr.bf16.mxu1 %v12029_v49  ;;  %7315 = vmatpush1.bf16.msra.mxu1 %v6971_v2 }
0x18bc   :  { %7316 = vmatprep.subr.bf16.mxu1 %v6976_v32 }
0x18bd   :  { %v6159_v14 = vpop.permute.xlu1 %6158 }
0x18be   :  { %v6161_v9 = vadd.f32 %v6159_v14, %v6151_v15  ;;  %v6940_v15 = vld [vmem:[#allocation4 + $0x8] sm:$0xff] }
0x18bf   :  { %7317 = vmatpush1.bf16.msra.mxu1 %v6975_v7 }
0x18c0   :  { %8334 = vtanh.f32 %v6161_v9  ;;  %7318 = vmatprep.subr.bf16.mxu1 %v6980_v24 }
0x18c3   :  { %7319 = vmatpush1.bf16.msra.mxu1 %v6979_v56 }
0x18c4   :  { %7320 = vmatprep.subr.bf16.mxu1 %v6984_v61 }
0x18c7   :  { %7321 = vmatpush1.bf16.msra.mxu1 %v6983_v6 }
0x18c8   :  { %7322 = vmatprep.subr.bf16.mxu1 %v6988_v18 }
0x18ca   :  { %v8335_v1 = vpop.eup %8334 }
0x18cb   :  { %6164 = vrot.lane.b32.xlu0 %v8335_v1, %s8380_s18 }
0x18ed   :  { %v11494_v45 = vpop.f32.mrb[172].mxu0 }
0x18ee   :  { %v11496_v41 = vpop.f32.mrb[173].mxu0 }
0x18ef   :  { %v6785_v54 = vpop.f32.mrb[174].mxu0 }
0x18f0   :  { %v6786_v29 = vpop.f32.mrb[175].mxu0 }
0x192d   :  { %v6696_v43 = vpop.f32.mrb[160].mxu1 }
0x192e   :  { %v6697_v47 = vadd.f32 %v6696_v43, %v12485_v11  ;;  %v6698_v19 = vpop.f32.mrb[161].mxu1 }
0x192f   :  { %v6699_v52 = vadd.f32 %v6698_v19, %v12486_v30  ;;  %v6700_v42 = vpop.f32.mrb[162].mxu1  ;;  %v12518_v19 = vld [vmem:[#allocation72_spill] sm:$0xff] }
0x1930   :  { %6703 = vst [vmem:[%s11721_s15 + $0x50] sm:$0xff] %v6697_v47  ;;  %v6701_v33 = vpop.f32.mrb[163].mxu1  ;;  %v11534_v42 = vld [vmem:[#allocation4 + $0x48] sm:$0xff] }
0x1931   :  { %6704 = vst [vmem:[%s11721_s15 + $0x58] sm:$0xff] %v6699_v52  ;;  %v11532_v52 = vld [vmem:[#allocation4 + $0x20] sm:$0xff] }
0x1932   :  { %v11538_v33 = vld [vmem:[#allocation4 + $0x40] sm:$0xff] }
0x193d   :  { %v6165_v53 = vpop.permute.xlu0 %6164 }
0x193e   :  { %v6167_v13 = vmul.f32 %v6165_v53, %v11430_v31  ;;  %v6987_v31 = vld [vmem:[#allocation5 + $0x80] sm:$0xff]  ;;  %v11546_v53 = vld [vmem:[#allocation4 + $0x88] sm:$0xff] }
0x193f   :  { %7323 = vmatpush1.bf16.msra.mxu1 %v6987_v31 }
0x1940   :  { %v6705_v48 = vpack.c.bf16 %v6167_v13, %v6167_v13  ;;  %7324 = vmatprep.subr.bf16.mxu1 %v6992_v55  ;;  %v11552_v13 = vld [vmem:[#allocation4 + $0xa8] sm:$0xff] }
0x1942   :  { %6830 = vrot.lane.b32.xlu1 %v6705_v48, %s8381_s0  ;;  %v11558_v48 = vld [vmem:[#allocation4 + $0xc8] sm:$0xff] }
0x1943   :  { %7325 = vmatpush1.bf16.msra.mxu1 %v6991_v34 }
0x1944   :  { %7326 = vmatprep.subr.bf16.mxu1 %v6996_v46 }
0x1947   :  { %7327 = vmatpush1.bf16.msra.mxu1 %v6995_v60 }
0x1948   :  { %7328 = vmatprep.subr.bf16.mxu1 %v7000_v8 }
0x194b   :  { %7329 = vmatpush1.bf16.msra.mxu1 %v6999_v62 }
0x194c   :  { %7396 = vmatprep.subr.bf16.mxu1 %v6940_v15 }
0x194d   :  { %v11509_v4 = vpop.f32.mrb[164].mxu1 }
0x194e   :  { %v11511_v10 = vpop.f32.mrb[165].mxu1 }
0x194f   :  { %v6826_v28 = vpop.f32.mrb[166].mxu1 }
0x1950   :  { %v6827_v50 = vpop.f32.mrb[167].mxu1  ;;  %v11591_v28 = vld [vmem:[#allocation6 + $0x38] sm:$0xff] }
0x1951   :  { %v11594_v50 = vld [vmem:[#allocation6 + $0x30] sm:$0xff] }
0x196d   :  { %v7078_v14 = vpop.f32.mrb[168].mxu1 }
0x196e   :  { %v7080_v9 = vpop.f32.mrb[169].mxu1 }
0x196f   :  { %v7082_v1 = vpop.f32.mrb[170].mxu1 }
0x1970   :  { %v7083_v54 = vpop.f32.mrb[171].mxu1  ;;  %v7285_v1 = vld [vmem:[#allocation5 + $0x18] sm:$0xff] }
0x198d   :  { %v7160_v29 = vpop.f32.mrb[172].mxu1 }
0x198e   :  { %v11513_v58 = vadd.f32 %v7160_v29, %v7078_v14  ;;  %v7162_v27 = vpop.f32.mrb[173].mxu1  ;;  %v11614_v14 = vld [vmem:[#allocation6 + $0x78] sm:$0xff] }
0x198f   :  { %v11515_v16 = vadd.f32 %v7162_v27, %v7080_v9  ;;  %v7164_v5 = vpop.f32.mrb[174].mxu1  ;;  %12520 = vst [vmem:[#allocation78_spill] sm:$0xff] %v11614_v14  ;;  %v11618_v9 = vld [vmem:[#allocation6 + $0x70] sm:$0xff] }
0x1990   :  { %v7165_v43 = vpop.f32.mrb[175].mxu1  ;;  %12521 = vst [vmem:[#allocation80_spill] sm:$0xff] %v11618_v9 }
0x19b4   :  { %v6831_v47 = vpop.permute.xlu1 %6830 }
0x19b5   :  { %7760 = vmatmul.mubr.msk.bf16.vlgmr.msra.gmra.mrb[176].mxu0 %vm1453_vm2, %v6831_v47 }
0x19b6   :  { %6877 = vmatpush1.bf16.msra.mxu0 %v11306_v20  ;;  %6908 = vmatprep.mubr.bf16.mxu0 %v12029_v49  ;;  %v11524_v20 = vld [vmem:[#allocation4] sm:$0xff] }
0x19b7   :  { %6878 = vmatprep.subr.bf16.mxu0 %v11308_v0  ;;  %v11526_v0 = vld [vmem:[#allocation4 + $0x28] sm:$0xff] }
0x19ba   :  { %6879 = vmatpush1.bf16.msra.mxu0 %v12518_v19 }
0x19bb   :  { %7003 = vmatprep.subr.bf16.mxu0 %v6972_v51  ;;  %v11540_v51 = vld [vmem:[#allocation4 + $0x68] sm:$0xff] }
0x19bd   :  { %7761 = vmatmul.mubr.msk.bf16.vlgmr.msra.gmra.mrb[180].mxu0 %vm1453_vm2, %v6831_v47 }
0x19be   :  { %7004 = vmatpush1.bf16.msra.mxu0 %v6971_v2  ;;  %7035 = vmatprep.mubr.bf16.mxu0 %v12029_v49  ;;  %v11550_v2 = vld [vmem:[#allocation4 + $0x80] sm:$0xff] }
0x19bf   :  { %7005 = vmatprep.subr.bf16.mxu0 %v6976_v32  ;;  %v11556_v32 = vld [vmem:[#allocation4 + $0xa0] sm:$0xff] }
0x19c2   :  { %7006 = vmatpush1.bf16.msra.mxu0 %v6975_v7  ;;  %v11562_v7 = vld [vmem:[#allocation4 + $0xc0] sm:$0xff] }
0x19c3   :  { %7007 = vmatprep.subr.bf16.mxu0 %v6980_v24  ;;  %v11564_v24 = vld [vmem:[#allocation4 + $0xe8] sm:$0xff] }
0x19c6   :  { %7008 = vmatpush1.bf16.msra.mxu0 %v6979_v56  ;;  %v11568_v56 = vld [vmem:[#allocation4 + $0xe0] sm:$0xff] }
0x19c7   :  { %7009 = vmatprep.subr.bf16.mxu0 %v6984_v61  ;;  %v11573_v61 = vld [vmem:[#allocation6 + $0x8] sm:$0xff] }
0x19ca   :  { %7010 = vmatpush1.bf16.msra.mxu0 %v6983_v6  ;;  %v11576_v6 = vld [vmem:[#allocation6] sm:$0xff] }
0x19cb   :  { %7011 = vmatprep.subr.bf16.mxu0 %v6988_v18  ;;  %v11579_v18 = vld [vmem:[#allocation6 + $0x18] sm:$0xff] }
0x19ce   :  { %7012 = vmatpush1.bf16.msra.mxu0 %v6987_v31  ;;  %v11582_v31 = vld [vmem:[#allocation6 + $0x10] sm:$0xff] }
0x19cf   :  { %7013 = vmatprep.subr.bf16.mxu0 %v6992_v55  ;;  %v11585_v55 = vld [vmem:[#allocation6 + $0x28] sm:$0xff] }
0x19d2   :  { %7014 = vmatpush1.bf16.msra.mxu0 %v6991_v34  ;;  %v11597_v34 = vld [vmem:[#allocation6 + $0x48] sm:$0xff] }
0x19d3   :  { %7015 = vmatprep.subr.bf16.mxu0 %v6996_v46  ;;  %v11600_v46 = vld [vmem:[#allocation6 + $0x40] sm:$0xff] }
0x19d6   :  { %7016 = vmatpush1.bf16.msra.mxu0 %v6995_v60  ;;  %v11603_v60 = vld [vmem:[#allocation6 + $0x58] sm:$0xff] }
0x19d7   :  { %7017 = vmatprep.subr.bf16.mxu0 %v7000_v8  ;;  %v11606_v8 = vld [vmem:[#allocation6 + $0x50] sm:$0xff] }
0x19da   :  { %7018 = vmatpush1.bf16.msra.mxu0 %v6999_v62  ;;  %v11608_v62 = vld [vmem:[#allocation6 + $0x68] sm:$0xff] }
0x19db   :  { %7085 = vmatprep.subr.bf16.mxu0 %v6940_v15  ;;  %v11612_v15 = vld [vmem:[#allocation6 + $0x60] sm:$0xff] }
0x19dc   :  { %12519 = vst [vmem:[#allocation76_spill] sm:$0xff] %v11612_v15 }
0x19dd   :  { %7036 = vmatmul.mubr.bf16.vlgmr.msra.gmra.mrb[184].mxu0 %v11437_v17  ;;  %v11544_v17 = vld [vmem:[#allocation4 + $0x60] sm:$0xff] }
0x19de   :  { %7086 = vmatpush1.bf16.msra.mxu0 %v11524_v20  ;;  %7117 = vmatprep.mubr.bf16.mxu0 %v12029_v49 }
0x19df   :  { %7087 = vmatprep.subr.bf16.mxu0 %v11526_v0 }
0x19e2   :  { %7088 = vmatpush1.bf16.msra.mxu0 %v11532_v52 }
0x19e3   :  { %7089 = vmatprep.subr.bf16.mxu0 %v11534_v42 }
0x19e6   :  { %7090 = vmatpush1.bf16.msra.mxu0 %v11538_v33 }
0x19e7   :  { %7091 = vmatprep.subr.bf16.mxu0 %v11540_v51 }
0x19ea   :  { %7092 = vmatpush1.bf16.msra.mxu0 %v11544_v17 }
0x19eb   :  { %7093 = vmatprep.subr.bf16.mxu0 %v11546_v53 }
0x19ee   :  { %7094 = vmatpush1.bf16.msra.mxu0 %v11550_v2 }
0x19ef   :  { %7095 = vmatprep.subr.bf16.mxu0 %v11552_v13 }
0x19f2   :  { %7096 = vmatpush1.bf16.msra.mxu0 %v11556_v32 }
0x19f3   :  { %7097 = vmatprep.subr.bf16.mxu0 %v11558_v48 }
0x19f6   :  { %7098 = vmatpush1.bf16.msra.mxu0 %v11562_v7 }
0x19f7   :  { %7099 = vmatprep.subr.bf16.mxu0 %v11564_v24 }
0x19fa   :  { %7100 = vmatpush1.bf16.msra.mxu0 %v11568_v56 }
0x19fb   :  { %7206 = vmatprep.subr.bf16.mxu0 %v11573_v61 }
0x19fd   :  { %7118 = vmatmul.mubr.bf16.vlgmr.msra.gmra.mrb[188].mxu0 %v11419_v23  ;;  %v11588_v23 = vld [vmem:[#allocation6 + $0x20] sm:$0xff] }
0x19fe   :  { %7238 = vmatprep.mubr.bf16.mxu0 %v12029_v49  ;;  %7207 = vmatpush1.bf16.msra.mxu0 %v11576_v6 }
0x19ff   :  { %7208 = vmatprep.subr.bf16.mxu0 %v11579_v18 }
0x1a02   :  { %7209 = vmatpush1.bf16.msra.mxu0 %v11582_v31 }
0x1a03   :  { %7210 = vmatprep.subr.bf16.mxu0 %v11585_v55 }
0x1a06   :  { %7211 = vmatpush1.bf16.msra.mxu0 %v11588_v23 }
0x1a07   :  { %7212 = vmatprep.subr.bf16.mxu0 %v11591_v28 }
0x1a0a   :  { %7213 = vmatpush1.bf16.msra.mxu0 %v11594_v50 }
0x1a0b   :  { %7214 = vmatprep.subr.bf16.mxu0 %v11597_v34 }
0x1a0e   :  { %7215 = vmatpush1.bf16.msra.mxu0 %v11600_v46 }
0x1a0f   :  { %7216 = vmatprep.subr.bf16.mxu0 %v11603_v60 }
0x1a12   :  { %7217 = vmatpush1.bf16.msra.mxu0 %v11606_v8 }
0x1a13   :  { %7218 = vmatprep.subr.bf16.mxu0 %v11608_v62 }
0x1a16   :  { %7219 = vmatpush1.bf16.msra.mxu0 %v11612_v15 }
0x1a17   :  { %7220 = vmatprep.subr.bf16.mxu0 %v11614_v14 }
0x1a1a   :  { %7221 = vmatpush1.bf16.msra.mxu0 %v11618_v9 }
0x1a1b   :  { %7355 = vmatprep.subr.bf16.mxu0 %v7285_v1 }
0x1a88   :  { %v6869_v54 = vpop.f32.mrb[176].mxu0 }
0x1a89   :  { %v6870_v29 = vadd.f32 %v6869_v54, %v11494_v45  ;;  %v6871_v27 = vpop.f32.mrb[177].mxu0 }
0x1a8a   :  { %v6872_v5 = vadd.f32 %v6871_v27, %v11496_v41  ;;  %v6873_v43 = vpop.f32.mrb[178].mxu0 }
0x1a8b   :  { %v6917_v47 = vadd.f32 %v6870_v29, %v12385_v44  ;;  %v6874_v19 = vpop.f32.mrb[179].mxu0 }
0x1a8c   :  { %v6918_v30 = vadd.f32 %v6872_v5, %v12515_v26 }
0x1a8d   :  { %v6921_v11 = vmul.f32 0.5, %v6917_v47 }
0x1a8e   :  { %v6922_v22 = vmul.f32 0.5, %v6918_v30 }
0x1a8f   :  { %8336 = vtanh.f32 %v6921_v11 }
0x1a90   :  { %8338 = vtanh.f32 %v6922_v22  ;;  %v6910_v14 = vpop.f32.mrb[180].mxu0 }
0x1a91   :  { %v6911_v9 = vadd.f32 %v6910_v14, %v11509_v4  ;;  %v6912_v1 = vpop.f32.mrb[181].mxu0 }
0x1a92   :  { %v6913_v15 = vadd.f32 %v6912_v1, %v11511_v10  ;;  %v6914_v45 = vpop.f32.mrb[182].mxu0 }
0x1a93   :  { %v6915_v54 = vpop.f32.mrb[183].mxu0  ;;  %v6919_v27 = vadd.f32 %v6911_v9, %v9121_v35 }
0x1a94   :  { %v6920_v41 = vadd.f32 %v6913_v15, %v12516_v36 }
0x1a95   :  { %v6923_v29 = vmul.f32 0.5, %v6919_v27 }
0x1a96   :  { %8340 = vtanh.f32 %v6920_v41 }
0x1a97   :  { %8342 = vtanh.f32 %v6923_v29 }
0x1a99   :  { %v8337_v44 = vpop.eup %8336 }
0x1a9a   :  { %v8339_v26 = vpop.eup %8338  ;;  %v6927_v5 = vadd.f32 1.0, %v8337_v44 }
0x1a9b   :  { %v6928_v30 = vadd.f32 1.0, %v8339_v26 }
0x1a9c   :  { %v6930_v22 = vmul.f32 0.5, %v6927_v5 }
0x1a9d   :  { %v6931_v11 = vmul.f32 0.5, %v6928_v30 }
0x1a9f   :  { %v6934_v4 = vmul.f32 %v6931_v11, %v11416_v21 }
0x1aa0   :  { %v8341_v43 = vpop.eup %8340 }
0x1aa1   :  { %v6935_v14 = vmul.f32 %v8341_v43, %v6930_v22  ;;  %v8343_v47 = vpop.eup %8342  ;;  %v7170_v43 = vadd.f32 %v11515_v16, %v9133_v40 }
0x1aa2   :  { %v6929_v19 = vadd.f32 1.0, %v8343_v47 }
0x1aa3   :  { %v6936_v10 = vadd.f32 %v6935_v14, %v6934_v4  ;;  %v7169_v4 = vadd.f32 %v11513_v58, %v9131_v39 }
0x1aa4   :  { %v6932_v36 = vmul.f32 0.5, %v6929_v19 }
0x1aa5   :  { %8344 = vtanh.f32 %v6936_v10  ;;  %v7173_v14 = vmul.f32 0.5, %v7169_v4  ;;  %v7269_v4 = vld [vmem:[#allocation4 + $0x98] sm:$0xff] }
0x1aaf   :  { %v8345_v15 = vpop.eup %8344 }
0x1ab0   :  { %v7037_v35 = vpop.f32.mrb[184].mxu0  ;;  %v11630_v9 = vmul.f32 %v8345_v15, %v6932_v36 }
0x1ab1   :  { %v7039_v1 = vpop.f32.mrb[185].mxu0 }
0x1ab2   :  { %v7041_v45 = vpop.f32.mrb[186].mxu0 }
0x1ab3   :  { %v7042_v54 = vpop.f32.mrb[187].mxu0 }
0x1ad0   :  { %v7119_v41 = vpop.f32.mrb[188].mxu0 }
0x1ad1   :  { %v7120_v27 = vadd.f32 %v7119_v41, %v7037_v35  ;;  %v7121_v44 = vpop.f32.mrb[189].mxu0 }
0x1ad2   :  { %v7122_v29 = vadd.f32 %v7121_v44, %v7039_v1  ;;  %v7123_v26 = vpop.f32.mrb[190].mxu0 }
0x1ad3   :  { %v7167_v21 = vadd.f32 %v7120_v27, %v9127_v37  ;;  %v7124_v5 = vpop.f32.mrb[191].mxu0 }
0x1ad4   :  { %v7168_v30 = vadd.f32 %v7122_v29, %v9129_v38  ;;  %v7289_v5 = vld [vmem:[#allocation5 + $0x38] sm:$0xff] }
0x1ad5   :  { %v7171_v11 = vmul.f32 0.5, %v7167_v21  ;;  %v7284_v21 = vld [vmem:[#allocation5 + $0x10] sm:$0xff] }
0x1ad6   :  { %v7172_v22 = vmul.f32 0.5, %v7168_v30  ;;  %v7293_v30 = vld [vmem:[#allocation5 + $0x58] sm:$0xff] }
0x1ad7   :  { %8346 = vtanh.f32 %v7171_v11  ;;  %v7292_v11 = vld [vmem:[#allocation5 + $0x50] sm:$0xff] }
0x1ad8   :  { %8348 = vtanh.f32 %v7172_v22  ;;  %v7297_v22 = vld [vmem:[#allocation5 + $0x78] sm:$0xff] }
0x1ad9   :  { %8350 = vtanh.f32 %v7170_v43  ;;  %v7305_v43 = vld [vmem:[#allocation5 + $0xb8] sm:$0xff] }
0x1ada   :  { %8352 = vtanh.f32 %v7173_v14 }
0x1ae1   :  { %v8347_v10 = vpop.eup %8346 }
0x1ae2   :  { %v8349_v47 = vpop.eup %8348  ;;  %v7177_v19 = vadd.f32 1.0, %v8347_v10 }
0x1ae3   :  { %v7178_v36 = vadd.f32 1.0, %v8349_v47  ;;  %v8351_v35 = vpop.eup %8350 }
0x1ae4   :  { %v7180_v15 = vmul.f32 0.5, %v7177_v19  ;;  %v8353_v16 = vpop.eup %8352 }
0x1ae5   :  { %v7181_v1 = vmul.f32 0.5, %v7178_v36  ;;  %v7179_v27 = vadd.f32 1.0, %v8353_v16 }
0x1ae6   :  { %v7185_v45 = vmul.f32 %v8351_v35, %v7180_v15 }
0x1ae7   :  { %v7184_v54 = vmul.f32 %v7181_v1, %v11432_v57  ;;  %v7182_v58 = vmul.f32 0.5, %v7179_v27  ;;  %v7288_v57 = vld [vmem:[#allocation5 + $0x30] sm:$0xff] }
0x1ae9   :  { %v11639_v41 = vadd.f32 %v7185_v45, %v7184_v54 }
0x1aeb   :  { %8354 = vtanh.f32 %v11639_v41 }
0x1af5   :  { %v8355_v44 = vpop.eup %8354 }
0x1af6   :  { %v7188_v29 = vmul.f32 %v8355_v44, %v7182_v58 }
0x1af8   :  { %v7189_v26 = vpack.c.bf16 %v7188_v29, %v7188_v29 }
0x1afa   :  { %7239 = vmatmul.mubr.bf16.vlgmr.msra.gmra.mrb[192].mxu0 %v7189_v26  ;;  %7347 = vmatmul.mubr.bf16.vlgmr.msra.gmra.mrb[176].mxu1 %v7189_v26 }
0x1afb   :  { %7356 = vmatpush1.bf16.msra.mxu0 %v7284_v21  ;;  %7397 = vmatpush1.bf16.msra.mxu1 %v11524_v20  ;;  %v7296_v20 = vld [vmem:[#allocation5 + $0x70] sm:$0xff] }
0x1afc   :  { %7357 = vmatprep.subr.bf16.mxu0 %v7289_v5  ;;  %7398 = vmatprep.subr.bf16.mxu1 %v11526_v0  ;;  %v7301_v0 = vld [vmem:[#allocation5 + $0x98] sm:$0xff] }
0x1afd   :  { %7387 = vmatprep.mubr.bf16.mxu0 %v12029_v49  ;;  %7428 = vmatprep.mubr.bf16.mxu1 %v12029_v49 }
0x1aff   :  { %7358 = vmatpush1.bf16.msra.mxu0 %v7288_v57  ;;  %7399 = vmatpush1.bf16.msra.mxu1 %v11532_v52  ;;  %v7300_v52 = vld [vmem:[#allocation5 + $0x90] sm:$0xff] }
0x1b00   :  { %7359 = vmatprep.subr.bf16.mxu0 %v7293_v30  ;;  %7400 = vmatprep.subr.bf16.mxu1 %v11534_v42  ;;  %v7304_v42 = vld [vmem:[#allocation5 + $0xb0] sm:$0xff] }
0x1b03   :  { %7360 = vmatpush1.bf16.msra.mxu0 %v7292_v11  ;;  %7401 = vmatpush1.bf16.msra.mxu1 %v11538_v33  ;;  %v7309_v33 = vld [vmem:[#allocation5 + $0xd8] sm:$0xff] }
0x1b04   :  { %7361 = vmatprep.subr.bf16.mxu0 %v7297_v22  ;;  %7402 = vmatprep.subr.bf16.mxu1 %v11540_v51  ;;  %v7308_v51 = vld [vmem:[#allocation5 + $0xd0] sm:$0xff] }
0x1b07   :  { %7362 = vmatpush1.bf16.msra.mxu0 %v7296_v20  ;;  %7403 = vmatpush1.bf16.msra.mxu1 %v11544_v17  ;;  %v7313_v17 = vld [vmem:[#allocation5 + $0xf8] sm:$0xff] }
0x1b08   :  { %7363 = vmatprep.subr.bf16.mxu0 %v7301_v0  ;;  %7404 = vmatprep.subr.bf16.mxu1 %v11546_v53  ;;  %v7312_v53 = vld [vmem:[#allocation5 + $0xf0] sm:$0xff] }
0x1b0b   :  { %7364 = vmatpush1.bf16.msra.mxu0 %v7300_v52  ;;  %7405 = vmatpush1.bf16.msra.mxu1 %v11550_v2  ;;  %v7253_v2 = vld [vmem:[#allocation4 + $0x18] sm:$0xff] }
0x1b0c   :  { %7365 = vmatprep.subr.bf16.mxu0 %v7305_v43  ;;  %7406 = vmatprep.subr.bf16.mxu1 %v11552_v13  ;;  %v7249_v13 = vpack.c.bf16 %v11630_v9, %v11630_v9  ;;  %v7264_v9 = vld [vmem:[#allocation4 + $0x70] sm:$0xff] }
0x1b0f   :  { %7366 = vmatpush1.bf16.msra.mxu0 %v7304_v42  ;;  %7407 = vmatpush1.bf16.msra.mxu1 %v11556_v32  ;;  %v7252_v32 = vld [vmem:[#allocation4 + $0x10] sm:$0xff] }
0x1b10   :  { %7367 = vmatprep.subr.bf16.mxu0 %v7309_v33  ;;  %7408 = vmatprep.subr.bf16.mxu1 %v11558_v48  ;;  %v7257_v48 = vld [vmem:[#allocation4 + $0x38] sm:$0xff] }
0x1b13   :  { %7368 = vmatpush1.bf16.msra.mxu0 %v7308_v51  ;;  %7409 = vmatpush1.bf16.msra.mxu1 %v11562_v7  ;;  %v7256_v7 = vld [vmem:[#allocation4 + $0x30] sm:$0xff] }
0x1b14   :  { %7369 = vmatprep.subr.bf16.mxu0 %v7313_v17  ;;  %7410 = vmatprep.subr.bf16.mxu1 %v11564_v24  ;;  %v7261_v24 = vld [vmem:[#allocation4 + $0x58] sm:$0xff] }
0x1b17   :  { %7370 = vmatpush1.bf16.msra.mxu0 %v7312_v53  ;;  %7411 = vmatpush1.bf16.msra.mxu1 %v11568_v56  ;;  %v7260_v56 = vld [vmem:[#allocation4 + $0x50] sm:$0xff] }
0x1b18   :  { %7437 = vmatprep.subr.bf16.mxu0 %v7253_v2  ;;  %7517 = vmatprep.subr.bf16.mxu1 %v11573_v61  ;;  %v7265_v61 = vld [vmem:[#allocation4 + $0x78] sm:$0xff] }
0x1b1a   :  { %7388 = vmatmul.mubr.bf16.vlgmr.msra.gmra.mrb[196].mxu0 %v7189_v26  ;;  %7429 = vmatmul.mubr.bf16.vlgmr.msra.gmra.mrb[180].mxu1 %v7249_v13 }
0x1b1b   :  { %7438 = vmatpush1.bf16.msra.mxu0 %v7252_v32  ;;  %7469 = vmatprep.mubr.bf16.mxu0 %v12029_v49 }
0x1b1c   :  { %7439 = vmatprep.subr.bf16.mxu0 %v7257_v48  ;;  %7518 = vmatpush1.bf16.msra.mxu1 %v11576_v6  ;;  %v7268_v6 = vld [vmem:[#allocation4 + $0x90] sm:$0xff] }
0x1b1d   :  { %7519 = vmatprep.subr.bf16.mxu1 %v11579_v18  ;;  %7549 = vmatprep.mubr.bf16.mxu1 %v12029_v49  ;;  %v12522_v49 = vld [vmem:[#allocation76_spill] sm:$0xff]  ;;  %v12523_v18 = vld [vmem:[#allocation78_spill] sm:$0xff] }
0x1b1f   :  { %7440 = vmatpush1.bf16.msra.mxu0 %v7256_v7 }
0x1b20   :  { %7441 = vmatprep.subr.bf16.mxu0 %v7261_v24  ;;  %7520 = vmatpush1.bf16.msra.mxu1 %v11582_v31  ;;  %v12525_v31 = vld [vmem:[#allocation80_spill] sm:$0xff] }
0x1b21   :  { %7521 = vmatprep.subr.bf16.mxu1 %v11585_v55 }
0x1b23   :  { %7442 = vmatpush1.bf16.msra.mxu0 %v7260_v56 }
0x1b24   :  { %7443 = vmatprep.subr.bf16.mxu0 %v7265_v61  ;;  %7522 = vmatpush1.bf16.msra.mxu1 %v11588_v23 }
0x1b25   :  { %7523 = vmatprep.subr.bf16.mxu1 %v11591_v28 }
0x1b27   :  { %7444 = vmatpush1.bf16.msra.mxu0 %v7264_v9 }
0x1b28   :  { %7445 = vmatprep.subr.bf16.mxu0 %v7269_v4  ;;  %7524 = vmatpush1.bf16.msra.mxu1 %v11594_v50 }
0x1b29   :  { %7525 = vmatprep.subr.bf16.mxu1 %v11597_v34  ;;  %v12527_v34 = vld [vmem:[#allocation22_spill] sm:$0xff] }
0x1b2b   :  { %7446 = vmatpush1.bf16.msra.mxu0 %v7268_v6 }
0x1b2c   :  { %7447 = vmatprep.subr.bf16.mxu0 %v11470_v59  ;;  %7526 = vmatpush1.bf16.msra.mxu1 %v11600_v46  ;;  %v12524_v59 = vld [vmem:[#allocation74_spill] sm:$0xff] }
0x1b2d   :  { %7527 = vmatprep.subr.bf16.mxu1 %v11603_v60 }
0x1b2f   :  { %7448 = vmatpush1.bf16.msra.mxu0 %v11474_v12 }
0x1b30   :  { %7449 = vmatprep.subr.bf16.mxu0 %v11476_v63  ;;  %7528 = vmatpush1.bf16.msra.mxu1 %v11606_v8  ;;  %v12526_v63 = vld [vmem:[#allocation21_spill] sm:$0xff] }
0x1b31   :  { %7529 = vmatprep.subr.bf16.mxu1 %v11608_v62 }
0x1b33   :  { %7450 = vmatpush1.bf16.msra.mxu0 %v11480_v25 }
0x1b34   :  { %7451 = vmatprep.subr.bf16.mxu0 %v11482_v3  ;;  %7530 = vmatpush1.bf16.msra.mxu1 %v12522_v49 }
0x1b35   :  { %7531 = vmatprep.subr.bf16.mxu1 %v12523_v18 }
0x1b37   :  { %7452 = vmatpush1.bf16.msra.mxu0 %v12524_v59 }
0x1b38   :  { %7532 = vmatpush1.bf16.msra.mxu1 %v12525_v31 }
0x1b3a   :  { %7470 = vmatmul.mubr.bf16.vlgmr.msra.gmra.mrb[200].mxu0 %v7249_v13 }
0x1bcd   :  { %v7240_v12 = vpop.f32.mrb[192].mxu0  ;;  %v7348_v55 = vpop.f32.mrb[176].mxu1 }
0x1bce   :  { %v7241_v23 = vadd.f32 %v7240_v12, %v12526_v63  ;;  %v7242_v28 = vpop.f32.mrb[193].mxu0  ;;  %v7350_v50 = vpop.f32.mrb[177].mxu1 }
0x1bcf   :  { %v7243_v46 = vadd.f32 %v7242_v28, %v12527_v34  ;;  %v7244_v25 = vpop.f32.mrb[194].mxu0  ;;  %v7352_v60 = vpop.f32.mrb[178].mxu1 }
0x1bd0   :  { %7247 = vst [vmem:[%s11721_s15 + $0x60] sm:$0xff] %v7241_v23  ;;  %v7245_v3 = vpop.f32.mrb[195].mxu0  ;;  %v7353_v8 = vpop.f32.mrb[179].mxu1 }
0x1bd1   :  { %7248 = vst [vmem:[%s11721_s15 + $0x68] sm:$0xff] %v7243_v46 }
0x1bed   :  { %v7389_v62 = vpop.f32.mrb[196].mxu0  ;;  %v7430_v14 = vpop.f32.mrb[180].mxu1 }
0x1bee   :  { %v7431_v10 = vadd.f32 %v7430_v14, %v7348_v55  ;;  %v7391_v47 = vpop.f32.mrb[197].mxu0  ;;  %v7432_v19 = vpop.f32.mrb[181].mxu1 }
0x1bef   :  { %v7433_v36 = vadd.f32 %v7432_v19, %v7350_v50  ;;  %v7393_v15 = vpop.f32.mrb[198].mxu0  ;;  %v7434_v35 = vpop.f32.mrb[182].mxu1 }
0x1bf0   :  { %v7394_v1 = vpop.f32.mrb[199].mxu0  ;;  %v7435_v45 = vpop.f32.mrb[183].mxu1  ;;  %v7478_v16 = vadd.f32 %v7431_v10, %v9127_v37 }
0x1bf1   :  { %v7479_v54 = vadd.f32 %v7433_v36, %v9129_v38 }
0x1bf2   :  { %v7482_v58 = vmul.f32 0.5, %v7478_v16 }
0x1bf3   :  { %v7483_v27 = vmul.f32 0.5, %v7479_v54 }
0x1bf5   :  { %8356 = vtanh.f32 %v7483_v27 }
0x1bf6   :  { %8358 = vtanh.f32 %v7482_v58 }
0x1bff   :  { %v8357_v22 = vpop.eup %8356 }
0x1c00   :  { %v8359_v20 = vpop.eup %8358  ;;  %v7489_v38 = vadd.f32 1.0, %v8357_v22 }
0x1c01   :  { %v7488_v37 = vadd.f32 1.0, %v8359_v20 }
0x1c02   :  { %v7492_v52 = vmul.f32 0.5, %v7489_v38 }
0x1c03   :  { %v7491_v43 = vmul.f32 0.5, %v7488_v37 }
0x1c04   :  { %v7495_v33 = vmul.f32 %v7492_v52, %v11639_v41 }
0x1c0d   :  { %v7471_v44 = vpop.f32.mrb[200].mxu0 }
0x1c0e   :  { %v7472_v29 = vadd.f32 %v7471_v44, %v7389_v62  ;;  %v7473_v26 = vpop.f32.mrb[201].mxu0 }
0x1c0f   :  { %v7474_v21 = vadd.f32 %v7473_v26, %v7391_v47  ;;  %v7475_v5 = vpop.f32.mrb[202].mxu0 }
0x1c10   :  { %v7476_v57 = vpop.f32.mrb[203].mxu0  ;;  %v7480_v11 = vadd.f32 %v7472_v29, %v9131_v39 }
0x1c11   :  { %v7481_v30 = vadd.f32 %v7474_v21, %v9133_v40 }
0x1c12   :  { %v7484_v0 = vmul.f32 0.5, %v7480_v11 }
0x1c13   :  { %8360 = vtanh.f32 %v7481_v30 }
0x1c14   :  { %8362 = vtanh.f32 %v7484_v0 }
0x1c1d   :  { %v8361_v42 = vpop.eup %8360 }
0x1c1e   :  { %v7496_v51 = vmul.f32 %v8361_v42, %v7491_v43  ;;  %v8363_v53 = vpop.eup %8362 }
0x1c1f   :  { %v7490_v2 = vadd.f32 1.0, %v8363_v53 }
0x1c20   :  { %v7497_v17 = vadd.f32 %v7496_v51, %v7495_v33 }
0x1c21   :  { %v7493_v40 = vmul.f32 0.5, %v7490_v2 }
0x1c22   :  { %8364 = vtanh.f32 %v7497_v17 }
0x1c2c   :  { %v8365_v13 = vpop.eup %8364 }
0x1c2d   :  { %v7499_v39 = vmul.f32 %v8365_v13, %v7493_v40 }
0x1c2f   :  { %v7500_v32 = vpack.c.bf16 %v7499_v39, %v7499_v39 }
0x1c31   :  { %7550 = vmatmul.mubr.bf16.vlgmr.msra.gmra.mrb[184].mxu1 %v7500_v32 }
0x1d04   :  { %v7551_v48 = vpop.f32.mrb[184].mxu1 }
0x1d05   :  { %v7552_v7 = vadd.f32 %v7551_v48, %v12526_v63  ;;  %v7553_v24 = vpop.f32.mrb[185].mxu1 }
0x1d06   :  { %v7554_v56 = vadd.f32 %v7553_v24, %v12527_v34  ;;  %v7555_v61 = vpop.f32.mrb[186].mxu1 }
0x1d07   :  { %7558 = vst [vmem:[%s11721_s15 + $0x70] sm:$0xff] %v7552_v7  ;;  %v7556_v41 = vpop.f32.mrb[187].mxu1 }
0x1d08   :  { %7559 = vst [vmem:[%s11721_s15 + $0x78] sm:$0xff] %v7554_v56 }
0x1d09   :  { %7564 = vsyncmov [#allocation7] }
0x1d0c   :  { %s7565_s17 = vpop.sfrf %7564 }
0x1d0d   :  { %p7762_p0 = scmp.ne.s32.totalorder %s7565_s17, 0 }
0x1d0f   :  { %7569 = shalt.err (%p7762_p0)  }
0x1d10   :  { %7571 = vsyncmov [#allocation7 + $0x1] }
0x1d13   :  { %s7572_s3 = vpop.sfrf %7571 }
0x1d14   :  { %p7763_p1 = scmp.ne.s32.totalorder %s7572_s3, 0 }
0x1d16   :  { %7576 = shalt.err (%p7763_p1)  }
0x1d17   :  { %7578 = vsyncmov [#allocation7 + $0x2] }
0x1d1a   :  { %s7579_s19 = vpop.sfrf %7578 }
0x1d1b   :  { %p7764_p2 = scmp.ne.s32.totalorder %s7579_s19, 0 }
0x1d1d   :  { %7583 = shalt.err (%p7764_p2)  }
0x1d1e   :  { %7585 = vsyncmov [#allocation7 + $0x3] }
0x1d21   :  { %s7586_s13 = vpop.sfrf %7585 }
0x1d22   :  { %p7765_p3 = scmp.ne.s32.totalorder %s7586_s13, 0 }
0x1d24   :  { %7590 = shalt.err (%p7765_p3)  }
0x1d25   :  { %7592 = vsyncmov [#allocation7 + $0x4] }
0x1d28   :  { %s7593_s20 = vpop.sfrf %7592 }
0x1d29   :  { %p7766_p4 = scmp.ne.s32.totalorder %s7593_s20, 0 }
0x1d2b   :  { %7597 = shalt.err (%p7766_p4)  }

</bundles_post_ra>
